<compile_context>
chip_gen: v6e
topology: v6e:2x2x1
jax: 0.10.0
libtpu: 0.0.40
codegen_flags: <defaults>
</compile_context>

<pallas_src>
import jax
import jax.numpy as jnp
import numpy as np
from jax.experimental import pallas as pl
from jax.experimental.pallas import tpu as pltpu

KH = 5            # conv kernel height
KW = 5            # conv kernel width
N1 = 18 * 16      # conv2 padded-input lanes  (padded width 18 x Cin 16)
N2 = 7 * 32       # conv2 pooled-output lanes (pooled width 7 x Cout 32)
NCLS = 128        # lane-dense logits width (valid classes = first 10)


def _pick_tb(batch):
    """Batch-tile selection.

    32 is the sweet spot: conv matmul M becomes 896 (conv1) / 448 (conv2) rows while
    total VMEM (resident weights + pipeline buffers + f32 temporaries) stays ~10 MiB,
    inside v5e's 16 MiB default scoped limit.  For smaller batches shrink the tile so
    padding waste stays low and -- where possible -- keep >= 2 grid steps so
    dimension_semantics=("parallel",) can shard across v7x's two TensorCores.
    """
    for tb in (32, 16, 8):
        if batch >= 2 * tb:
            return tb
    return 8


# ------------------------------ Pallas kernel -------------------------------

def _folded_lhs(x, ho):
    """Fold the KH row taps of the 5x5 conv into the contraction dimension.

    x  : (hp, tb, k) bf16 zero-padded activations, hp = 2*ho + KH - 1
    ho : pooled output height
    Returns (2*ho*tb, KH*k) bf16; rows [0, ho*tb) are pooling row parity di=0,
    rows [ho*tb, 2*ho*tb) are di=1; columns ordered (kh, input lane).
    """
    hp, tb, k = x.shape
    xp = x.reshape(hp // 2, 2, tb, k)
    halves = []
    for di in range(2):
        taps = []
        for kh in range(KH):
            s = di + kh                               # padded row = 2*ip + di + kh
            taps.append(xp[s // 2: s // 2 + ho, s % 2])
        halves.append(jnp.concatenate(taps, axis=-1).reshape(ho * tb, KH * k))
    return jnp.concatenate(halves, axis=0)


def _conv_relu_pool(x, w_ref, bias_row, ho):
    """Conv2d(5x5, 'same', padding pre-applied) + bias + ReLU + MaxPool2d(2).

    x        : (hp, tb, k) bf16, layout [padded_row, image, width*Cin]
    w_ref    : (2, KH*k, n) bf16 folded width-Toeplitz weights (dim 0 = pooling
               column parity dj; the KH row taps are folded into K)
    bias_row : (1, n) f32 bias over the n = width*Cout lane layout (0 in pad cols)
    returns  : (ho*tb, n) f32, row = pooled_row * tb + image

    Only 2 MXU matmuls (one per column parity): both row parities share each RHS
    load by being stacked along M, and each result is folded into a running pooled
    max immediately so at most one (2*ho*tb, n) f32 temporary is live.  Bias and
    ReLU are applied once after the max (they commute with it).
    """
    m = ho * x.shape[1]
    big = _folded_lhs(x, ho)                          # (2*m, KH*k) bf16
    pooled = None
    for dj in range(2):
        d = jnp.dot(big, w_ref[dj], preferred_element_type=jnp.float32)
        p = jnp.maximum(d[:m], d[m:])                 # max over row parity di
        pooled = p if pooled is None else jnp.maximum(pooled, p)
    return jnp.maximum(pooled + bias_row, 0.0)


def _cnn_kernel(x_ref, w1_ref, b1_ref, w2_ref, b2_ref, wl_ref, bl_ref, o_ref):
    tb = x_ref.shape[1]

    # conv1 + ReLU + pool.  Its Toeplitz already targets conv2's zero-padded column
    # layout, so p1 IS the interior of conv2's padded input.
    x = x_ref[...].astype(jnp.bfloat16)
    p1 = _conv_relu_pool(x, w1_ref, b1_ref[...], ho=14)        # (14*tb, N1) f32

    # Padded conv2 input, kept in bf16 (2 zero rows top/bottom).
    zpad = jnp.zeros((2, tb, N1), jnp.bfloat16)
    h = jnp.concatenate(
        [zpad, p1.astype(jnp.bfloat16).reshape(14, tb, N1), zpad], axis=0)

    # conv2 + ReLU + pool -> (7*tb, 224), column layout jp*32 + co.
    p2 = _conv_relu_pool(h, w2_ref, b2_ref[...], ho=7)

    # Fused Linear epilogue in f32.  wl rows are pre-permuted so that
    #   logits[b] = sum_ip p2[ip*tb + b, :] @ wl[ip] + bias  (== PyTorch NCHW flatten);
    # weights/bias are zero-padded to 128 classes for a lane-dense output store.
    p2 = p2.reshape(7, tb, N2)
    acc = None
    for ip in range(7):
        d = jnp.dot(p2[ip], wl_ref[ip], preferred_element_type=jnp.float32)
        acc = d if acc is None else acc + d
    o_ref[...] = (acc + bl_ref[...]).astype(o_ref.dtype)


# --------------------- one-time weight / layout prep (host) -----------------

def _folded_toeplitz(w_hwio, wo_out, n_cols, col_offset):
    """Folded width-Toeplitz of a 5x5 'same' conv evaluated at 2x2-pooled columns.

    Returns T of shape (2, KH*wp*Cin, n_cols), wp = 2*wo_out + KW - 1, with
      T[dj, kh*wp*cin + (2*jp+dj+kw)*cin + ci, col_offset + jp*cout + co] = w[kh,kw,ci,co]
    and zeros elsewhere, so matmul output columns outside the data range stay exactly
    0 (they double as the next layer's built-in zero padding).
    """
    kh, kw, cin, cout = w_hwio.shape
    wp = 2 * wo_out + kw - 1
    blk = np.asarray(w_hwio, np.float32).reshape(kh, kw * cin, cout)
    t = np.zeros((2, kh, wp * cin, n_cols), np.float32)
    for dj in range(2):
        for jp in range(wo_out):
            r0 = (2 * jp + dj) * cin
            c0 = col_offset + jp * cout
            t[dj, :, r0:r0 + kw * cin, c0:c0 + cout] = blk
    return jnp.asarray(t.reshape(2, kh * wp * cin, n_cols), jnp.bfloat16)


def _bias_row(b, wo_out, n_cols, col_offset):
    cout = b.shape[0]
    row = np.zeros((1, n_cols), np.float32)
    row[0, col_offset:col_offset + wo_out * cout] = np.tile(
        np.asarray(b, np.float32), wo_out)
    return jnp.asarray(row)


def prepare_cnn_params(params):
    """One-time host-side layout prep (hoisted out of the per-call jitted path)."""
    # conv1: output columns map straight into conv2's padded (18*16)-lane layout
    # (column = (jp + 2)*16 + co  ->  col_offset = 2*Cin2 = 32).
    w1t = _folded_toeplitz(params["w1"], 14, N1, 2 * 16)     # (2, 160, 288) bf16
    b1v = _bias_row(params["b1"], 14, N1, 2 * 16)
    # conv2: plain jp*32 + co column layout, 7*32 = 224 lanes.
    w2t = _folded_toeplitz(params["w2"], 7, N2, 0)           # (2, 1440, 224) bf16
    b2v = _bias_row(params["b2"], 7, N2, 0)
    # Linear: rows permuted to the kernel's (ip, jp*32 + co) feature layout
    # (== PyTorch NCHW flatten co*49 + ip*7 + jp); classes zero-padded to 128 lanes.
    wo = np.asarray(params["wo"], np.float32).reshape(32, 7, 7, 10)
    wl = np.zeros((7, N2, NCLS), np.float32)
    wl[:, :, :10] = np.transpose(wo, (1, 2, 0, 3)).reshape(7, N2, 10)
    bl = np.zeros((1, NCLS), np.float32)
    bl[0, :10] = np.asarray(params["bo"], np.float32)
    return {"w1t": w1t, "b1v": b1v, "w2t": w2t, "b2v": b2v,
            "wl": jnp.asarray(wl), "bl": jnp.asarray(bl)}


# --------------------------------- wrapper -----------------------------------

def cnn_forward(prep, x_nchw):
    B = x_nchw.shape[0]
    tb = _pick_tb(B)
    Bp = ((B + tb - 1) // tb) * tb

    # Input: NCHW (B,1,28,28) -> (H, batch, W) with W on lanes, zero-padded to (32, Bp, 32).
    x = jnp.transpose(x_nchw[:, 0], (1, 0, 2))
    x = jnp.pad(x, ((2, 2), (0, Bp - B), (2, 2))).astype(jnp.float32)

    out = pl.pallas_call(
        _cnn_kernel,
        out_shape=jax.ShapeDtypeStruct((Bp, NCLS), jnp.float32),
        grid=(Bp // tb,),
        in_specs=[
            pl.BlockSpec((32, tb, 32), lambda bi: (0, bi, 0)),     # input batch tile
            pl.BlockSpec((2, KH * 32, N1), lambda bi: (0, 0, 0)),  # conv1 folded Toeplitz
            pl.BlockSpec((1, N1), lambda bi: (0, 0)),              # conv1 bias row
            pl.BlockSpec((2, KH * N1, N2), lambda bi: (0, 0, 0)),  # conv2 folded Toeplitz
            pl.BlockSpec((1, N2), lambda bi: (0, 0)),              # conv2 bias row
            pl.BlockSpec((7, N2, NCLS), lambda bi: (0, 0, 0)),     # permuted Linear weight
            pl.BlockSpec((1, NCLS), lambda bi: (0, 0)),            # Linear bias (padded)
        ],
        out_specs=pl.BlockSpec((tb, NCLS), lambda bi: (bi, 0)),    # lane-dense logits tile
        compiler_params=pltpu.CompilerParams(
            dimension_semantics=("parallel",),
            # ~10 MiB peak at tb=32 (weights ~4.6 MiB double-buffered + temporaries);
            # 32 MiB gives margin and is within physical VMEM on v5e/v6e/v7x.
            vmem_limit_bytes=32 * 1024 * 1024),
    )(x, prep["w1t"], prep["b1v"], prep["w2t"], prep["b2v"],
      prep["wl"], prep["bl"])

    return out[:B, :10]


# --------------------------- Pure-JAX reference ----------------------------

def cnn_reference(params, x_nchw):
    x = jnp.transpose(x_nchw, (0, 2, 3, 1))

    def block(h, w, b):
        y = jax.lax.conv_general_dilated(
            h, w, window_strides=(1, 1), padding=((2, 2), (2, 2)),
            dimension_numbers=("NHWC", "HWIO", "NHWC")) + b
        y = jnp.maximum(y, 0.0)
        return jax.lax.reduce_window(y, -jnp.inf, jax.lax.max,
                                     (1, 2, 2, 1), (1, 2, 2, 1), "VALID")

    h1 = block(x, params["w1"], params["b1"])
    h2 = block(h1, params["w2"], params["b2"])
    feat = jnp.transpose(h2, (0, 3, 1, 2)).reshape(x.shape[0], -1)
    return feat @ params["wo"] + params["bo"]


# ---------------------------------- main -----------------------------------

if __name__ == "__main__":
    key = jax.random.PRNGKey(0)
    kx, k1, k2, k3, k4, k5, k6 = jax.random.split(key, 7)

    # Deterministic synthetic parameters (shapes from the module's __init__).
    params = {
        "w1": jax.random.normal(k1, (5, 5, 1, 16), jnp.float32) * 0.1,    # HWIO
        "b1": jax.random.normal(k2, (16,), jnp.float32) * 0.01,
        "w2": jax.random.normal(k3, (5, 5, 16, 32), jnp.float32) * 0.05,  # HWIO
        "b2": jax.random.normal(k4, (32,), jnp.float32) * 0.01,
        "wo": jax.random.normal(k5, (32 * 7 * 7, 10), jnp.float32) * 0.02,
        "bo": jax.random.normal(k6, (10,), jnp.float32) * 0.01,
    }

    # Input consistent with the module: MNIST-like (B, 1, 28, 28) NCHW.
    x = jax.random.normal(kx, (2, 1, 28, 28), jnp.float32)

    prep = prepare_cnn_params(params)       # one-time layout prep (not per call)
    fwd = jax.jit(cnn_forward)
    out = jax.block_until_ready(fwd(prep, x))
    assert out.shape == (2, 10), out.shape

    ref = jax.block_until_ready(cnn_reference(params, x))
    if not np.allclose(np.asarray(out), np.asarray(ref), rtol=3e-2, atol=3e-2):
        raise AssertionError(
            "mismatch vs reference, max abs diff = "
            f"{np.max(np.abs(np.asarray(out) - np.asarray(ref)))}")

    print("KERNEL_OK")
</pallas_src>

<mosaic_0001>
module attributes {stable_mosaic.version = 11 : i64} {
  func.func @_cnn_kernel(%arg0: i32, %arg1: memref<32x8x32xf32, #tpu.memory_space<vmem>>, %arg2: memref<2x160x288xbf16, #tpu.memory_space<vmem>>, %arg3: memref<1x288xf32, #tpu.memory_space<vmem>>, %arg4: memref<2x1440x224xbf16, #tpu.memory_space<vmem>>, %arg5: memref<1x224xf32, #tpu.memory_space<vmem>>, %arg6: memref<7x224x128xf32, #tpu.memory_space<vmem>>, %arg7: memref<1x128xf32, #tpu.memory_space<vmem>>, %arg8: memref<8x128xf32, #tpu.memory_space<vmem>>) attributes {dimension_semantics = [#tpu.dimension_semantics<parallel>], iteration_bounds = array<i64: 1>, scalar_prefetch = 0 : i64, scratch_operands = 0 : i64, tpu.core_type = #tpu.core_type<tc>, window_params = [{transform_indices = @transform_0, window_bounds = array<i64: 32, 8, 32>}, {pipeline_mode = #tpu.pipeline_mode<synchronous>, transform_indices = @transform_1, window_bounds = array<i64: 2, 160, 288>}, {pipeline_mode = #tpu.pipeline_mode<synchronous>, transform_indices = @transform_2, window_bounds = array<i64: 1, 288>}, {pipeline_mode = #tpu.pipeline_mode<synchronous>, transform_indices = @transform_3, window_bounds = array<i64: 2, 1440, 224>}, {pipeline_mode = #tpu.pipeline_mode<synchronous>, transform_indices = @transform_4, window_bounds = array<i64: 1, 224>}, {pipeline_mode = #tpu.pipeline_mode<synchronous>, transform_indices = @transform_5, window_bounds = array<i64: 7, 224, 128>}, {pipeline_mode = #tpu.pipeline_mode<synchronous>, transform_indices = @transform_6, window_bounds = array<i64: 1, 128>}, {transform_indices = @transform_7, window_bounds = array<i64: 8, 128>}]} {
    %c0 = arith.constant 0 : index
    %c0_0 = arith.constant 0 : index
    %c0_1 = arith.constant 0 : index
    %0 = vector.load %arg1[%c0, %c0_0, %c0_1] : memref<32x8x32xf32, #tpu.memory_space<vmem>>, vector<32x8x32xf32>
    %1 = arith.truncf %0 : vector<32x8x32xf32> to vector<32x8x32xbf16>
    %c0_2 = arith.constant 0 : index
    %c0_3 = arith.constant 0 : index
    %2 = vector.load %arg3[%c0_2, %c0_3] : memref<1x288xf32, #tpu.memory_space<vmem>>, vector<1x288xf32>
    %3 = vector.shape_cast %1 : vector<32x8x32xbf16> to vector<16x2x8x32xbf16>
    %4 = vector.extract_strided_slice %3 {offsets = [0, 0, 0, 0], sizes = [14, 1, 8, 32], strides = [1, 1, 1, 1]} : vector<16x2x8x32xbf16> to vector<14x1x8x32xbf16>
    %5 = vector.shape_cast %4 : vector<14x1x8x32xbf16> to vector<14x8x32xbf16>
    %6 = vector.extract_strided_slice %3 {offsets = [0, 1, 0, 0], sizes = [14, 1, 8, 32], strides = [1, 1, 1, 1]} : vector<16x2x8x32xbf16> to vector<14x1x8x32xbf16>
    %7 = vector.shape_cast %6 : vector<14x1x8x32xbf16> to vector<14x8x32xbf16>
    %8 = vector.extract_strided_slice %3 {offsets = [1, 0, 0, 0], sizes = [14, 1, 8, 32], strides = [1, 1, 1, 1]} : vector<16x2x8x32xbf16> to vector<14x1x8x32xbf16>
    %9 = vector.shape_cast %8 : vector<14x1x8x32xbf16> to vector<14x8x32xbf16>
    %10 = vector.extract_strided_slice %3 {offsets = [1, 1, 0, 0], sizes = [14, 1, 8, 32], strides = [1, 1, 1, 1]} : vector<16x2x8x32xbf16> to vector<14x1x8x32xbf16>
    %11 = vector.shape_cast %10 : vector<14x1x8x32xbf16> to vector<14x8x32xbf16>
    %12 = vector.extract_strided_slice %3 {offsets = [2, 0, 0, 0], sizes = [14, 1, 8, 32], strides = [1, 1, 1, 1]} : vector<16x2x8x32xbf16> to vector<14x1x8x32xbf16>
    %13 = vector.shape_cast %12 : vector<14x1x8x32xbf16> to vector<14x8x32xbf16>
    %14 = tpu.concatenate %5, %7, %9, %11, %13 in 2 : vector<14x8x32xbf16>, vector<14x8x32xbf16>, vector<14x8x32xbf16>, vector<14x8x32xbf16>, vector<14x8x32xbf16> -> vector<14x8x160xbf16>
    %15 = vector.shape_cast %14 : vector<14x8x160xbf16> to vector<112x160xbf16>
    %16 = vector.extract_strided_slice %3 {offsets = [0, 1, 0, 0], sizes = [14, 1, 8, 32], strides = [1, 1, 1, 1]} : vector<16x2x8x32xbf16> to vector<14x1x8x32xbf16>
    %17 = vector.shape_cast %16 : vector<14x1x8x32xbf16> to vector<14x8x32xbf16>
    %18 = vector.extract_strided_slice %3 {offsets = [1, 0, 0, 0], sizes = [14, 1, 8, 32], strides = [1, 1, 1, 1]} : vector<16x2x8x32xbf16> to vector<14x1x8x32xbf16>
    %19 = vector.shape_cast %18 : vector<14x1x8x32xbf16> to vector<14x8x32xbf16>
    %20 = vector.extract_strided_slice %3 {offsets = [1, 1, 0, 0], sizes = [14, 1, 8, 32], strides = [1, 1, 1, 1]} : vector<16x2x8x32xbf16> to vector<14x1x8x32xbf16>
    %21 = vector.shape_cast %20 : vector<14x1x8x32xbf16> to vector<14x8x32xbf16>
    %22 = vector.extract_strided_slice %3 {offsets = [2, 0, 0, 0], sizes = [14, 1, 8, 32], strides = [1, 1, 1, 1]} : vector<16x2x8x32xbf16> to vector<14x1x8x32xbf16>
    %23 = vector.shape_cast %22 : vector<14x1x8x32xbf16> to vector<14x8x32xbf16>
    %24 = vector.extract_strided_slice %3 {offsets = [2, 1, 0, 0], sizes = [14, 1, 8, 32], strides = [1, 1, 1, 1]} : vector<16x2x8x32xbf16> to vector<14x1x8x32xbf16>
    %25 = vector.shape_cast %24 : vector<14x1x8x32xbf16> to vector<14x8x32xbf16>
    %26 = tpu.concatenate %17, %19, %21, %23, %25 in 2 : vector<14x8x32xbf16>, vector<14x8x32xbf16>, vector<14x8x32xbf16>, vector<14x8x32xbf16>, vector<14x8x32xbf16> -> vector<14x8x160xbf16>
    %27 = vector.shape_cast %26 : vector<14x8x160xbf16> to vector<112x160xbf16>
    %28 = tpu.concatenate %15, %27 in 0 : vector<112x160xbf16>, vector<112x160xbf16> -> vector<224x160xbf16>
    %c0_4 = arith.constant 0 : index
    %c0_5 = arith.constant 0 : index
    %c0_6 = arith.constant 0 : index
    %29 = vector.load %arg2[%c0_4, %c0_5, %c0_6] : memref<2x160x288xbf16, #tpu.memory_space<vmem>>, vector<1x160x288xbf16>
    %30 = vector.shape_cast %29 : vector<1x160x288xbf16> to vector<160x288xbf16>
    %cst = arith.constant dense<0.000000e+00> : vector<224x288xf32>
    %31 = tpu.matmul %28, %30, %cst {dimension_numbers = #tpu.dot_dimension_numbers<[1], [0], [0], [1], [0, 0, 1, 1], [], []>} : vector<224x160xbf16>, vector<160x288xbf16>, vector<224x288xf32> -> vector<224x288xf32>
    %32 = vector.extract_strided_slice %31 {offsets = [0, 0], sizes = [112, 288], strides = [1, 1]} : vector<224x288xf32> to vector<112x288xf32>
    %33 = vector.extract_strided_slice %31 {offsets = [112, 0], sizes = [112, 288], strides = [1, 1]} : vector<224x288xf32> to vector<112x288xf32>
    %34 = arith.maximumf %32, %33 : vector<112x288xf32>
    %c1 = arith.constant 1 : index
    %c0_7 = arith.constant 0 : index
    %c0_8 = arith.constant 0 : index
    %35 = vector.load %arg2[%c1, %c0_7, %c0_8] : memref<2x160x288xbf16, #tpu.memory_space<vmem>>, vector<1x160x288xbf16>
    %36 = vector.shape_cast %35 : vector<1x160x288xbf16> to vector<160x288xbf16>
    %cst_9 = arith.constant dense<0.000000e+00> : vector<224x288xf32>
    %37 = tpu.matmul %28, %36, %cst_9 {dimension_numbers = #tpu.dot_dimension_numbers<[1], [0], [0], [1], [0, 0, 1, 1], [], []>} : vector<224x160xbf16>, vector<160x288xbf16>, vector<224x288xf32> -> vector<224x288xf32>
    %38 = vector.extract_strided_slice %37 {offsets = [0, 0], sizes = [112, 288], strides = [1, 1]} : vector<224x288xf32> to vector<112x288xf32>
    %39 = vector.extract_strided_slice %37 {offsets = [112, 0], sizes = [112, 288], strides = [1, 1]} : vector<224x288xf32> to vector<112x288xf32>
    %40 = arith.maximumf %38, %39 : vector<112x288xf32>
    %41 = arith.maximumf %34, %40 : vector<112x288xf32>
    %42 = vector.broadcast %2 : vector<1x288xf32> to vector<112x288xf32>
    %43 = arith.addf %41, %42 : vector<112x288xf32>
    %cst_10 = arith.constant 0.000000e+00 : f32
    %44 = vector.broadcast %cst_10 : f32 to vector<112x288xf32>
    %45 = arith.maximumf %43, %44 : vector<112x288xf32>
    %cst_11 = arith.constant 0.000000e+00 : bf16
    %46 = vector.broadcast %cst_11 : bf16 to vector<2x8x288xbf16>
    %47 = arith.truncf %45 : vector<112x288xf32> to vector<112x288xbf16>
    %48 = vector.shape_cast %47 : vector<112x288xbf16> to vector<14x8x288xbf16>
    %49 = tpu.concatenate %46, %48, %46 in 0 : vector<2x8x288xbf16>, vector<14x8x288xbf16>, vector<2x8x288xbf16> -> vector<18x8x288xbf16>
    %c0_12 = arith.constant 0 : index
    %c0_13 = arith.constant 0 : index
    %50 = vector.load %arg5[%c0_12, %c0_13] : memref<1x224xf32, #tpu.memory_space<vmem>>, vector<1x224xf32>
    %51 = vector.shape_cast %49 : vector<18x8x288xbf16> to vector<9x2x8x288xbf16>
    %52 = vector.extract_strided_slice %51 {offsets = [0, 0, 0, 0], sizes = [7, 1, 8, 288], strides = [1, 1, 1, 1]} : vector<9x2x8x288xbf16> to vector<7x1x8x288xbf16>
    %53 = vector.shape_cast %52 : vector<7x1x8x288xbf16> to vector<7x8x288xbf16>
    %54 = vector.extract_strided_slice %51 {offsets = [0, 1, 0, 0], sizes = [7, 1, 8, 288], strides = [1, 1, 1, 1]} : vector<9x2x8x288xbf16> to vector<7x1x8x288xbf16>
    %55 = vector.shape_cast %54 : vector<7x1x8x288xbf16> to vector<7x8x288xbf16>
    %56 = vector.extract_strided_slice %51 {offsets = [1, 0, 0, 0], sizes = [7, 1, 8, 288], strides = [1, 1, 1, 1]} : vector<9x2x8x288xbf16> to vector<7x1x8x288xbf16>
    %57 = vector.shape_cast %56 : vector<7x1x8x288xbf16> to vector<7x8x288xbf16>
    %58 = vector.extract_strided_slice %51 {offsets = [1, 1, 0, 0], sizes = [7, 1, 8, 288], strides = [1, 1, 1, 1]} : vector<9x2x8x288xbf16> to vector<7x1x8x288xbf16>
    %59 = vector.shape_cast %58 : vector<7x1x8x288xbf16> to vector<7x8x288xbf16>
    %60 = vector.extract_strided_slice %51 {offsets = [2, 0, 0, 0], sizes = [7, 1, 8, 288], strides = [1, 1, 1, 1]} : vector<9x2x8x288xbf16> to vector<7x1x8x288xbf16>
    %61 = vector.shape_cast %60 : vector<7x1x8x288xbf16> to vector<7x8x288xbf16>
    %62 = tpu.concatenate %53, %55, %57, %59, %61 in 2 : vector<7x8x288xbf16>, vector<7x8x288xbf16>, vector<7x8x288xbf16>, vector<7x8x288xbf16>, vector<7x8x288xbf16> -> vector<7x8x1440xbf16>
    %63 = vector.shape_cast %62 : vector<7x8x1440xbf16> to vector<56x1440xbf16>
    %64 = vector.extract_strided_slice %51 {offsets = [0, 1, 0, 0], sizes = [7, 1, 8, 288], strides = [1, 1, 1, 1]} : vector<9x2x8x288xbf16> to vector<7x1x8x288xbf16>
    %65 = vector.shape_cast %64 : vector<7x1x8x288xbf16> to vector<7x8x288xbf16>
    %66 = vector.extract_strided_slice %51 {offsets = [1, 0, 0, 0], sizes = [7, 1, 8, 288], strides = [1, 1, 1, 1]} : vector<9x2x8x288xbf16> to vector<7x1x8x288xbf16>
    %67 = vector.shape_cast %66 : vector<7x1x8x288xbf16> to vector<7x8x288xbf16>
    %68 = vector.extract_strided_slice %51 {offsets = [1, 1, 0, 0], sizes = [7, 1, 8, 288], strides = [1, 1, 1, 1]} : vector<9x2x8x288xbf16> to vector<7x1x8x288xbf16>
    %69 = vector.shape_cast %68 : vector<7x1x8x288xbf16> to vector<7x8x288xbf16>
    %70 = vector.extract_strided_slice %51 {offsets = [2, 0, 0, 0], sizes = [7, 1, 8, 288], strides = [1, 1, 1, 1]} : vector<9x2x8x288xbf16> to vector<7x1x8x288xbf16>
    %71 = vector.shape_cast %70 : vector<7x1x8x288xbf16> to vector<7x8x288xbf16>
    %72 = vector.extract_strided_slice %51 {offsets = [2, 1, 0, 0], sizes = [7, 1, 8, 288], strides = [1, 1, 1, 1]} : vector<9x2x8x288xbf16> to vector<7x1x8x288xbf16>
    %73 = vector.shape_cast %72 : vector<7x1x8x288xbf16> to vector<7x8x288xbf16>
    %74 = tpu.concatenate %65, %67, %69, %71, %73 in 2 : vector<7x8x288xbf16>, vector<7x8x288xbf16>, vector<7x8x288xbf16>, vector<7x8x288xbf16>, vector<7x8x288xbf16> -> vector<7x8x1440xbf16>
    %75 = vector.shape_cast %74 : vector<7x8x1440xbf16> to vector<56x1440xbf16>
    %76 = tpu.concatenate %63, %75 in 0 : vector<56x1440xbf16>, vector<56x1440xbf16> -> vector<112x1440xbf16>
    %c0_14 = arith.constant 0 : index
    %c0_15 = arith.constant 0 : index
    %c0_16 = arith.constant 0 : index
    %77 = vector.load %arg4[%c0_14, %c0_15, %c0_16] : memref<2x1440x224xbf16, #tpu.memory_space<vmem>>, vector<1x1440x224xbf16>
    %78 = vector.shape_cast %77 : vector<1x1440x224xbf16> to vector<1440x224xbf16>
    %cst_17 = arith.constant dense<0.000000e+00> : vector<112x224xf32>
    %79 = tpu.matmul %76, %78, %cst_17 {dimension_numbers = #tpu.dot_dimension_numbers<[1], [0], [0], [1], [0, 0, 1, 1], [], []>} : vector<112x1440xbf16>, vector<1440x224xbf16>, vector<112x224xf32> -> vector<112x224xf32>
    %80 = vector.extract_strided_slice %79 {offsets = [0, 0], sizes = [56, 224], strides = [1, 1]} : vector<112x224xf32> to vector<56x224xf32>
    %81 = vector.extract_strided_slice %79 {offsets = [56, 0], sizes = [56, 224], strides = [1, 1]} : vector<112x224xf32> to vector<56x224xf32>
    %82 = arith.maximumf %80, %81 : vector<56x224xf32>
    %c1_18 = arith.constant 1 : index
    %c0_19 = arith.constant 0 : index
    %c0_20 = arith.constant 0 : index
    %83 = vector.load %arg4[%c1_18, %c0_19, %c0_20] : memref<2x1440x224xbf16, #tpu.memory_space<vmem>>, vector<1x1440x224xbf16>
    %84 = vector.shape_cast %83 : vector<1x1440x224xbf16> to vector<1440x224xbf16>
    %cst_21 = arith.constant dense<0.000000e+00> : vector<112x224xf32>
    %85 = tpu.matmul %76, %84, %cst_21 {dimension_numbers = #tpu.dot_dimension_numbers<[1], [0], [0], [1], [0, 0, 1, 1], [], []>} : vector<112x1440xbf16>, vector<1440x224xbf16>, vector<112x224xf32> -> vector<112x224xf32>
    %86 = vector.extract_strided_slice %85 {offsets = [0, 0], sizes = [56, 224], strides = [1, 1]} : vector<112x224xf32> to vector<56x224xf32>
    %87 = vector.extract_strided_slice %85 {offsets = [56, 0], sizes = [56, 224], strides = [1, 1]} : vector<112x224xf32> to vector<56x224xf32>
    %88 = arith.maximumf %86, %87 : vector<56x224xf32>
    %89 = arith.maximumf %82, %88 : vector<56x224xf32>
    %90 = vector.broadcast %50 : vector<1x224xf32> to vector<56x224xf32>
    %91 = arith.addf %89, %90 : vector<56x224xf32>
    %cst_22 = arith.constant 0.000000e+00 : f32
    %92 = vector.broadcast %cst_22 : f32 to vector<56x224xf32>
    %93 = arith.maximumf %91, %92 : vector<56x224xf32>
    %94 = vector.shape_cast %93 : vector<56x224xf32> to vector<7x8x224xf32>
    %95 = vector.extract_strided_slice %94 {offsets = [0, 0, 0], sizes = [1, 8, 224], strides = [1, 1, 1]} : vector<7x8x224xf32> to vector<1x8x224xf32>
    %96 = vector.shape_cast %95 : vector<1x8x224xf32> to vector<8x224xf32>
    %c0_23 = arith.constant 0 : index
    %c0_24 = arith.constant 0 : index
    %c0_25 = arith.constant 0 : index
    %97 = vector.load %arg6[%c0_23, %c0_24, %c0_25] : memref<7x224x128xf32, #tpu.memory_space<vmem>>, vector<1x224x128xf32>
    %98 = vector.shape_cast %97 : vector<1x224x128xf32> to vector<224x128xf32>
    %cst_26 = arith.constant dense<0.000000e+00> : vector<8x128xf32>
    %99 = tpu.matmul %96, %98, %cst_26 {dimension_numbers = #tpu.dot_dimension_numbers<[1], [0], [0], [1], [0, 0, 1, 1], [], []>} : vector<8x224xf32>, vector<224x128xf32>, vector<8x128xf32> -> vector<8x128xf32>
    %100 = vector.extract_strided_slice %94 {offsets = [1, 0, 0], sizes = [1, 8, 224], strides = [1, 1, 1]} : vector<7x8x224xf32> to vector<1x8x224xf32>
    %101 = vector.shape_cast %100 : vector<1x8x224xf32> to vector<8x224xf32>
    %c1_27 = arith.constant 1 : index
    %c0_28 = arith.constant 0 : index
    %c0_29 = arith.constant 0 : index
    %102 = vector.load %arg6[%c1_27, %c0_28, %c0_29] : memref<7x224x128xf32, #tpu.memory_space<vmem>>, vector<1x224x128xf32>
    %103 = vector.shape_cast %102 : vector<1x224x128xf32> to vector<224x128xf32>
    %cst_30 = arith.constant dense<0.000000e+00> : vector<8x128xf32>
    %104 = tpu.matmul %101, %103, %cst_30 {dimension_numbers = #tpu.dot_dimension_numbers<[1], [0], [0], [1], [0, 0, 1, 1], [], []>} : vector<8x224xf32>, vector<224x128xf32>, vector<8x128xf32> -> vector<8x128xf32>
    %105 = arith.addf %99, %104 : vector<8x128xf32>
    %106 = vector.extract_strided_slice %94 {offsets = [2, 0, 0], sizes = [1, 8, 224], strides = [1, 1, 1]} : vector<7x8x224xf32> to vector<1x8x224xf32>
    %107 = vector.shape_cast %106 : vector<1x8x224xf32> to vector<8x224xf32>
    %c2 = arith.constant 2 : index
    %c0_31 = arith.constant 0 : index
    %c0_32 = arith.constant 0 : index
    %108 = vector.load %arg6[%c2, %c0_31, %c0_32] : memref<7x224x128xf32, #tpu.memory_space<vmem>>, vector<1x224x128xf32>
    %109 = vector.shape_cast %108 : vector<1x224x128xf32> to vector<224x128xf32>
    %cst_33 = arith.constant dense<0.000000e+00> : vector<8x128xf32>
    %110 = tpu.matmul %107, %109, %cst_33 {dimension_numbers = #tpu.dot_dimension_numbers<[1], [0], [0], [1], [0, 0, 1, 1], [], []>} : vector<8x224xf32>, vector<224x128xf32>, vector<8x128xf32> -> vector<8x128xf32>
    %111 = arith.addf %105, %110 : vector<8x128xf32>
    %112 = vector.extract_strided_slice %94 {offsets = [3, 0, 0], sizes = [1, 8, 224], strides = [1, 1, 1]} : vector<7x8x224xf32> to vector<1x8x224xf32>
    %113 = vector.shape_cast %112 : vector<1x8x224xf32> to vector<8x224xf32>
    %c3 = arith.constant 3 : index
    %c0_34 = arith.constant 0 : index
    %c0_35 = arith.constant 0 : index
    %114 = vector.load %arg6[%c3, %c0_34, %c0_35] : memref<7x224x128xf32, #tpu.memory_space<vmem>>, vector<1x224x128xf32>
    %115 = vector.shape_cast %114 : vector<1x224x128xf32> to vector<224x128xf32>
    %cst_36 = arith.constant dense<0.000000e+00> : vector<8x128xf32>
    %116 = tpu.matmul %113, %115, %cst_36 {dimension_numbers = #tpu.dot_dimension_numbers<[1], [0], [0], [1], [0, 0, 1, 1], [], []>} : vector<8x224xf32>, vector<224x128xf32>, vector<8x128xf32> -> vector<8x128xf32>
    %117 = arith.addf %111, %116 : vector<8x128xf32>
    %118 = vector.extract_strided_slice %94 {offsets = [4, 0, 0], sizes = [1, 8, 224], strides = [1, 1, 1]} : vector<7x8x224xf32> to vector<1x8x224xf32>
    %119 = vector.shape_cast %118 : vector<1x8x224xf32> to vector<8x224xf32>
    %c4 = arith.constant 4 : index
    %c0_37 = arith.constant 0 : index
    %c0_38 = arith.constant 0 : index
    %120 = vector.load %arg6[%c4, %c0_37, %c0_38] : memref<7x224x128xf32, #tpu.memory_space<vmem>>, vector<1x224x128xf32>
    %121 = vector.shape_cast %120 : vector<1x224x128xf32> to vector<224x128xf32>
    %cst_39 = arith.constant dense<0.000000e+00> : vector<8x128xf32>
    %122 = tpu.matmul %119, %121, %cst_39 {dimension_numbers = #tpu.dot_dimension_numbers<[1], [0], [0], [1], [0, 0, 1, 1], [], []>} : vector<8x224xf32>, vector<224x128xf32>, vector<8x128xf32> -> vector<8x128xf32>
    %123 = arith.addf %117, %122 : vector<8x128xf32>
    %124 = vector.extract_strided_slice %94 {offsets = [5, 0, 0], sizes = [1, 8, 224], strides = [1, 1, 1]} : vector<7x8x224xf32> to vector<1x8x224xf32>
    %125 = vector.shape_cast %124 : vector<1x8x224xf32> to vector<8x224xf32>
    %c5 = arith.constant 5 : index
    %c0_40 = arith.constant 0 : index
    %c0_41 = arith.constant 0 : index
    %126 = vector.load %arg6[%c5, %c0_40, %c0_41] : memref<7x224x128xf32, #tpu.memory_space<vmem>>, vector<1x224x128xf32>
    %127 = vector.shape_cast %126 : vector<1x224x128xf32> to vector<224x128xf32>
    %cst_42 = arith.constant dense<0.000000e+00> : vector<8x128xf32>
    %128 = tpu.matmul %125, %127, %cst_42 {dimension_numbers = #tpu.dot_dimension_numbers<[1], [0], [0], [1], [0, 0, 1, 1], [], []>} : vector<8x224xf32>, vector<224x128xf32>, vector<8x128xf32> -> vector<8x128xf32>
    %129 = arith.addf %123, %128 : vector<8x128xf32>
    %130 = vector.extract_strided_slice %94 {offsets = [6, 0, 0], sizes = [1, 8, 224], strides = [1, 1, 1]} : vector<7x8x224xf32> to vector<1x8x224xf32>
    %131 = vector.shape_cast %130 : vector<1x8x224xf32> to vector<8x224xf32>
    %c6 = arith.constant 6 : index
    %c0_43 = arith.constant 0 : index
    %c0_44 = arith.constant 0 : index
    %132 = vector.load %arg6[%c6, %c0_43, %c0_44] : memref<7x224x128xf32, #tpu.memory_space<vmem>>, vector<1x224x128xf32>
    %133 = vector.shape_cast %132 : vector<1x224x128xf32> to vector<224x128xf32>
    %cst_45 = arith.constant dense<0.000000e+00> : vector<8x128xf32>
    %134 = tpu.matmul %131, %133, %cst_45 {dimension_numbers = #tpu.dot_dimension_numbers<[1], [0], [0], [1], [0, 0, 1, 1], [], []>} : vector<8x224xf32>, vector<224x128xf32>, vector<8x128xf32> -> vector<8x128xf32>
    %135 = arith.addf %129, %134 : vector<8x128xf32>
    %c0_46 = arith.constant 0 : index
    %c0_47 = arith.constant 0 : index
    %136 = vector.load %arg7[%c0_46, %c0_47] : memref<1x128xf32, #tpu.memory_space<vmem>>, vector<1x128xf32>
    %137 = vector.broadcast %136 : vector<1x128xf32> to vector<8x128xf32>
    %138 = arith.addf %135, %137 : vector<8x128xf32>
    %c0_48 = arith.constant 0 : index
    %c0_49 = arith.constant 0 : index
    %139 = vector.load %arg8[%c0_48, %c0_49] : memref<8x128xf32, #tpu.memory_space<vmem>>, vector<8x128xf32>
    tpu.vector_store %arg8[%c0_48, %c0_49], %138 {strides = array<i32>} : memref<8x128xf32, #tpu.memory_space<vmem>>, vector<8x128xf32>,
    return
  }
  func.func @transform_0(%arg0: i32) -> (i32, i32, i32) {
    %c0_i32 = arith.constant 0 : i32
    %c0_i32_0 = arith.constant 0 : i32
    %c0_i32_1 = arith.constant 0 : i32
    return %c0_i32, %arg0, %c0_i32_0 : i32, i32, i32
  }
  func.func @transform_1(%arg0: i32) -> (i32, i32, i32) {
    %c0_i32 = arith.constant 0 : i32
    %c0_i32_0 = arith.constant 0 : i32
    %c0_i32_1 = arith.constant 0 : i32
    %c0_i32_2 = arith.constant 0 : i32
    return %c0_i32, %c0_i32_0, %c0_i32_1 : i32, i32, i32
  }
  func.func @transform_2(%arg0: i32) -> (i32, i32) {
    %c0_i32 = arith.constant 0 : i32
    %c0_i32_0 = arith.constant 0 : i32
    %c0_i32_1 = arith.constant 0 : i32
    return %c0_i32, %c0_i32_0 : i32, i32
  }
  func.func @transform_3(%arg0: i32) -> (i32, i32, i32) {
    %c0_i32 = arith.constant 0 : i32
    %c0_i32_0 = arith.constant 0 : i32
    %c0_i32_1 = arith.constant 0 : i32
    %c0_i32_2 = arith.constant 0 : i32
    return %c0_i32, %c0_i32_0, %c0_i32_1 : i32, i32, i32
  }
  func.func @transform_4(%arg0: i32) -> (i32, i32) {
    %c0_i32 = arith.constant 0 : i32
    %c0_i32_0 = arith.constant 0 : i32
    %c0_i32_1 = arith.constant 0 : i32
    return %c0_i32, %c0_i32_0 : i32, i32
  }
  func.func @transform_5(%arg0: i32) -> (i32, i32, i32) {
    %c0_i32 = arith.constant 0 : i32
    %c0_i32_0 = arith.constant 0 : i32
    %c0_i32_1 = arith.constant 0 : i32
    %c0_i32_2 = arith.constant 0 : i32
    return %c0_i32, %c0_i32_0, %c0_i32_1 : i32, i32, i32
  }
  func.func @transform_6(%arg0: i32) -> (i32, i32) {
    %c0_i32 = arith.constant 0 : i32
    %c0_i32_0 = arith.constant 0 : i32
    %c0_i32_1 = arith.constant 0 : i32
    return %c0_i32, %c0_i32_0 : i32, i32
  }
  func.func @transform_7(%arg0: i32) -> (i32, i32) {
    %c0_i32 = arith.constant 0 : i32
    %c0_i32_0 = arith.constant 0 : i32
    return %arg0, %c0_i32 : i32, i32
  }
}

</mosaic_0001>

<bundles_post_ra>
// kernel: cnn_forward.1
= control target key start
LH: loop header
LB: loop body
LE: loop exit
PB: predicated region body
PF: predicated region fallthrough
CT: control target
= control target key end

     0   :  { %v14081_v3 = vmov 0   ;;  %s8800_s9 = smov 64   ;;  %s8801_s10 = smov 32   ;;  %vm205_vm0 = vcmask 261120   ;;  %vm248_vm1 = vcmask 523264   ;;  %vm277_vm2 = vcmask 785408   ;;  %s14073_s0 = inlined_call_operand.vmem [shape: f32[32,8,32], index: 0, kind: input, shape index: {}]   ;;  %s14074_s1 = inlined_call_operand.vmem [shape: bf16[2,160,288], index: 1, kind: input, shape index: {}]   ;;  %s14075_s3 = inlined_call_operand.vmem [shape: bf16[2,1440,224], index: 3, kind: input, shape index: {}]   ;;  %s14076_s2 = inlined_call_operand.vmem [shape: f32[1,288], index: 2, kind: input, shape index: {}]   ;;  %s14077_s5 = inlined_call_operand.vmem [shape: f32[7,224,128], index: 5, kind: input, shape index: {}]   ;;  %s14078_s4 = inlined_call_operand.vmem [shape: f32[1,224], index: 4, kind: input, shape index: {}]   ;;  %s14079_s6 = inlined_call_operand.vmem [shape: f32[1,128], index: 6, kind: input, shape index: {}]   ;;  %s14080_s7 = inlined_call_operand.vmem [shape: f32[8,128], index: 7, kind: output, shape index: {}]  }
   0x1   :  { %v29_v0 = vld [vmem:[%s14073_s0 + $0x10] sm:$0xff]  ;;  %v28_v1 = vld [vmem:[%s14073_s0 + $0x8] sm:$0xff]  ;;  %v31_v2 = vld [vmem:[%s14073_s0 + $0x20] sm:$0xff]  ;;  %1031 = vmatprep.subr.bf16.mxu1 %v14081_v3  ;;  %s8802_s25 = smov 96   ;;  %vm2777_vm3 = vcmask 1043456  }
   0x2   :  { %v8854_v4 = vpack.c.bf16 %v29_v0, %v29_v0  ;;  %v8856_v5 = vpack.c.bf16 %v28_v1, %v28_v1  ;;  %v30_v6 = vld [vmem:[%s14073_s0 + $0x18] sm:$0xff]  ;;  %v8865_v7 = vpack.c.bf16 %v31_v2, %v31_v2  ;;  %v33_v9 = vld [vmem:[%s14073_s0 + $0x30] sm:$0xff]  ;;  %v8875_v10 = vld [vmem:[%s14073_s0 + $0x28] sm:$0xff] }
   0x3   :  { %v8867_v8 = vpack.c.bf16 %v30_v6, %v30_v6  ;;  %v8877_v11 = vpack.c.bf16 %v33_v9, %v31_v2  ;;  %v8889_v12 = vpack.c.bf16 %v8875_v10, %v8875_v10  ;;  %v8894_v13 = vld [vmem:[%s14073_s0 + $0x38] sm:$0xff]  ;;  %v35_v14 = vld [vmem:[%s14073_s0 + $0x40] sm:$0xff]  ;;  %v37_v15 = vld [vmem:[%s14073_s0 + $0x50] sm:$0xff]  ;;  %v8949_v28 = vpack.c.bf16 %v33_v9, %v33_v9 }
   0x4   :  { %148 = vrot.lane.b32.xlu1 %v8854_v4, %s8800_s9  ;;  %106 = vrot.lane.b32.xlu0 %v8856_v5, %s8801_s10  ;;  %v8905_v16 = vld [vmem:[%s14073_s0 + $0xe8] sm:$0xff]  ;;  %v58_v17 = vld [vmem:[%s14073_s0 + $0xf8] sm:$0xff]  ;;  %v8910_v18 = vpack.c.bf16 %v37_v15, %v35_v14  ;;  %v8918_v19 = vpack.c.bf16 %v8894_v13, %v8894_v13  ;;  %v8947_v27 = vpack.c.bf16 %v35_v14, %v35_v14 }
   0x5   :  { %7107 = vmatprep.mubr.msk.bf16.mxu0 %vm205_vm0, %v8877_v11  ;;  %7121 = vmatprep.mubr.msk.bf16.mxu1 %vm205_vm0, %v8877_v11  ;;  %v8921_v20 = vpack.c.bf16 %v58_v17, %v8905_v16  ;;  %v8179_v21 = vld [vmem:[%s14074_s1 + $0xac] ss:$12 sps:$4 sm:$0xff]   ;;  %v8181_v22 = vld [vmem:[%s14074_s1 + $0xa8] ss:$12 sps:$4 sm:$0xff]   ;;  %v8182_v23 = vld [vmem:[%s14074_s1 + $0xb0] ss:$12 sps:$4 sm:$0xff]   ;;  %v9021_v46 = vpack.c.bf16 %v37_v15, %v37_v15 }
   0x6   :  { %858 = vmatprep.subr.bf16.mxu0 %v8179_v21  ;;  %v8935_v24 = vld [vmem:[%s14073_s0 + $0x48] sm:$0xff]  ;;  %v8183_v25 = vld [vmem:[%s14074_s1 + $0x94] ss:$12 sps:$4 sm:$0xff]   ;;  %v8185_v26 = vld [vmem:[%s14074_s1 + $0x90] ss:$12 sps:$4 sm:$0xff]   ;;  %1032 = vmatpush1.bf16.msra.mxu1 %v8182_v23 }
   0x7   :  { %859 = vmatpush1.bf16.msra.mxu0 %v8181_v22  ;;  %v8186_v29 = vld [vmem:[%s14074_s1 + $0x98] ss:$12 sps:$4 sm:$0xff]   ;;  %v8187_v30 = vld [vmem:[%s14074_s1 + $0x7c] ss:$12 sps:$4 sm:$0xff]   ;;  %1033 = vmatprep.subr.bf16.mxu1 %v14081_v3  ;;  %v8972_v33 = vpack.c.bf16 %v8935_v24, %v8935_v24  ;;  %v8190_v35 = vld [vmem:[%s14074_s1 + $0x80] ss:$12 sps:$4 sm:$0xff]  }
   0x8   :  { %150 = vrot.lane.b32.xlu1 %v8865_v7, %s8800_s9  ;;  %108 = vrot.lane.b32.xlu0 %v8867_v8, %s8801_s10  ;;  %v8961_v31 = vld [vmem:[%s14073_s0 + $0x58] sm:$0xff]  ;;  %v39_v34 = vld [vmem:[%s14073_s0 + $0x60] sm:$0xff] }
   0x9   :  { %860 = vmatprep.subr.bf16.mxu0 %v8183_v25  ;;  %v8189_v32 = vld [vmem:[%s14074_s1 + $0x78] ss:$12 sps:$4 sm:$0xff]   ;;  %v41_v37 = vld [vmem:[%s14073_s0 + $0x70] sm:$0xff]  ;;  %v8193_v38 = vld [vmem:[%s14074_s1 + $0x60] ss:$12 sps:$4 sm:$0xff]   ;;  %v8998_v40 = vpack.c.bf16 %v8961_v31, %v8961_v31  ;;  %v9019_v45 = vpack.c.bf16 %v39_v34, %v39_v34 }
   0xa   :  { %1034 = vmatpush1.bf16.msra.mxu1 %v8186_v29  ;;  %v8191_v36 = vld [vmem:[%s14074_s1 + $0x64] ss:$12 sps:$4 sm:$0xff]   ;;  %v8990_v39 = vpack.c.bf16 %v41_v37, %v39_v34  ;;  %v8194_v41 = vld [vmem:[%s14074_s1 + $0x68] ss:$12 sps:$4 sm:$0xff]   ;;  %v8195_v42 = vld [vmem:[%s14074_s1 + $0x4c] ss:$12 sps:$4 sm:$0xff]   ;;  %v9113_v14 = vpack.c.bf16 %v41_v37, %v41_v37 }
   0xb   :  { %861 = vmatpush1.bf16.msra.mxu0 %v8185_v26  ;;  %1035 = vmatprep.subr.bf16.mxu1 %v14081_v3  ;;  %v9010_v43 = vld [vmem:[%s14073_s0 + $0x68] sm:$0xff]  ;;  %v8198_v47 = vld [vmem:[%s14074_s1 + $0x50] ss:$12 sps:$4 sm:$0xff]   ;;  %v8199_v48 = vld [vmem:[%s14074_s1 + $0x34] ss:$12 sps:$4 sm:$0xff]  }
   0xc   :  { %179 = vrot.lane.b32.xlu1 %v8889_v12, %s8802_s25  ;;  %177 = vrot.lane.b32.xlu0 %v8867_v8, %s8802_s25  ;;  %v8197_v44 = vld [vmem:[%s14074_s1 + $0x48] ss:$12 sps:$4 sm:$0xff]   ;;  %v9033_v49 = vld [vmem:[%s14073_s0 + $0x78] sm:$0xff]  ;;  %v9044_v51 = vpack.c.bf16 %v9010_v43, %v9010_v43 }
   0xd   :  { %862 = vmatprep.subr.bf16.mxu0 %v8187_v30  ;;  %v8201_v50 = vld [vmem:[%s14074_s1 + $0x30] ss:$12 sps:$4 sm:$0xff]   ;;  %v43_v52 = vld [vmem:[%s14073_s0 + $0x80] sm:$0xff]  ;;  %v9073_v59 = vpack.c.bf16 %v9033_v49, %v9033_v49  ;;  %v9095_v0 = vld [vmem:[%s14073_s0 + $0x88] sm:$0xff] }
   0xe   :  { %1036 = vmatpush1.bf16.msra.mxu1 %v8190_v35  ;;  %v45_v53 = vld [vmem:[%s14073_s0 + $0x90] sm:$0xff]  ;;  %v8202_v54 = vld [vmem:[%s14074_s1 + $0x38] ss:$12 sps:$4 sm:$0xff]   ;;  %v8203_v55 = vld [vmem:[%s14074_s1 + $0x1c] ss:$12 sps:$4 sm:$0xff]   ;;  %v9111_v9 = vpack.c.bf16 %v43_v52, %v43_v52  ;;  %v9136_v23 = vpack.c.bf16 %v9095_v0, %v9095_v0 }
   0xf   :  { %863 = vmatpush1.bf16.msra.mxu0 %v8189_v32  ;;  %1037 = vmatprep.subr.bf16.mxu1 %v14081_v3  ;;  %v8205_v56 = vld [vmem:[%s14074_s1 + $0x18] ss:$12 sps:$4 sm:$0xff]   ;;  %v8206_v57 = vld [vmem:[%s14074_s1 + $0x20] ss:$12 sps:$4 sm:$0xff]   ;;  %v9065_v58 = vpack.c.bf16 %v45_v53, %v43_v52  ;;  %v9089_v63 = vld [vmem:[%s14073_s0 + $0xf0] sm:$0xff]  ;;  %v9171_v37 = vpack.c.bf16 %v45_v53, %v45_v53 }
  0x10   :  { %112 = vrot.lane.b32.xlu1 %v8918_v19, %s8801_s10  ;;  %110 = vrot.lane.b32.xlu0 %v8889_v12, %s8801_s10  ;;  %v9078_v60 = vld [vmem:[%s14073_s0 + $0xe0] sm:$0xff]  ;;  %v8210_v1 = vld [vmem:[%s14074_s1 + $0x8] ss:$12 sps:$4 sm:$0xff]  }
  0x11   :  { %864 = vmatprep.subr.bf16.mxu0 %v8191_v36  ;;  %v8207_v61 = vld [vmem:[%s14074_s1 + $0x4] ss:$12 sps:$4 sm:$0xff]   ;;  %v8209_v62 = vld [vmem:[%s14074_s1] ss:$12 sps:$4 sm:$0xff]   ;;  %v8211_v2 = vld [vmem:[%s14074_s1 + $0xdc] ss:$12 sps:$4 sm:$0xff]   ;;  %v9105_v6 = vpack.c.bf16 %v9089_v63, %v9078_v60 }
  0x12   :  { %1038 = vmatpush1.bf16.msra.mxu1 %v8194_v41  ;;  %v8213_v15 = vld [vmem:[%s14074_s1 + $0xd8] ss:$12 sps:$4 sm:$0xff]   ;;  %v8214_v21 = vld [vmem:[%s14074_s1 + $0xe0] ss:$12 sps:$4 sm:$0xff]   ;;  %v49_v26 = vld [vmem:[%s14073_s0 + $0xb0] sm:$0xff] }
  0x13   :  { %865 = vmatpush1.bf16.msra.mxu0 %v8193_v38  ;;  %1039 = vmatprep.subr.bf16.mxu1 %v14081_v3  ;;  %v9122_v17 = vld [vmem:[%s14073_s0 + $0x98] sm:$0xff]  ;;  %v8215_v22 = vld [vmem:[%s14074_s1 + $0xc4] ss:$12 sps:$4 sm:$0xff]   ;;  %v8217_v29 = vld [vmem:[%s14074_s1 + $0xc0] ss:$12 sps:$4 sm:$0xff]   ;;  %v9213_v53 = vpack.c.bf16 %v49_v26, %v49_v26 }
  0x14   :  { %154 = vrot.lane.b32.xlu1 %v8947_v27, %s8800_s9  ;;  %152 = vrot.lane.b32.xlu0 %v8949_v28, %s8800_s9  ;;  %v47_v25 = vld [vmem:[%s14073_s0 + $0xa0] sm:$0xff]  ;;  %v8218_v30 = vld [vmem:[%s14074_s1 + $0xc8] ss:$12 sps:$4 sm:$0xff]   ;;  %v9159_v34 = vpack.c.bf16 %v9122_v17, %v9122_v17 }
  0x15   :  { %866 = vmatprep.subr.bf16.mxu0 %v8195_v42  ;;  %v9151_v32 = vpack.c.bf16 %v49_v26, %v47_v25  ;;  %v8221_v35 = vld [vmem:[%s14074_s1 + $0x19c] ss:$12 sps:$4 sm:$0xff]   ;;  %v9169_v36 = vpack.c.bf16 %v47_v25, %v47_v25 }
  0x16   :  { %1040 = vmatpush1.bf16.msra.mxu1 %v8198_v47  ;;  %v9176_v38 = vld [vmem:[%s14073_s0 + $0xa8] sm:$0xff]  ;;  %v9189_v42 = vld [vmem:[%s14073_s0 + $0xb8] sm:$0xff]  ;;  %v53_v47 = vld [vmem:[%s14073_s0 + $0xd0] sm:$0xff] }
  0x17   :  { %867 = vmatpush1.bf16.msra.mxu0 %v8197_v44  ;;  %1041 = vmatprep.subr.bf16.mxu1 %v14081_v3  ;;  %v9184_v41 = vpack.c.bf16 %v9176_v38, %v9176_v38  ;;  %v51_v44 = vld [vmem:[%s14073_s0 + $0xc0] sm:$0xff] }
  0x18   :  { %183 = vrot.lane.b32.xlu1 %v8972_v33, %s8802_s25  ;;  %181 = vrot.lane.b32.xlu0 %v8918_v19, %s8802_s25  ;;  %v9211_v52 = vpack.c.bf16 %v51_v44, %v51_v44 }
  0x19   :  { %868 = vmatprep.subr.bf16.mxu0 %v8199_v48  ;;  %v9197_v48 = vpack.c.bf16 %v53_v47, %v51_v44 }
  0x1a   :  { %1042 = vmatpush1.bf16.msra.mxu1 %v8202_v54  ;;  %v9218_v54 = vld [vmem:[%s14073_s0 + $0xc8] sm:$0xff] }
  0x1b   :  { %869 = vmatpush1.bf16.msra.mxu0 %v8201_v50  ;;  %1043 = vmatprep.subr.bf16.mxu1 %v14081_v3  ;;  %v9205_v50 = vpack.c.bf16 %v9189_v42, %v9189_v42 }
  0x1c   :  { %116 = vrot.lane.b32.xlu1 %v8998_v40, %s8801_s10  ;;  %114 = vrot.lane.b32.xlu0 %v8972_v33, %s8801_s10 }
  0x1d   :  { %870 = vmatprep.subr.bf16.mxu0 %v8203_v55  ;;  %v9226_v55 = vpack.c.bf16 %v9218_v54, %v9218_v54 }
  0x1e   :  { %1044 = vmatpush1.bf16.msra.mxu1 %v8206_v57 }
  0x1f   :  { %871 = vmatpush1.bf16.msra.mxu0 %v8205_v56  ;;  %1045 = vmatprep.subr.bf16.mxu1 %v14081_v3  ;;  %v9231_v56 = vld [vmem:[%s14073_s0 + $0xd8] sm:$0xff] }
  0x20   :  { %158 = vrot.lane.b32.xlu1 %v9019_v45, %s8800_s9  ;;  %156 = vrot.lane.b32.xlu0 %v9021_v46, %s8800_s9  ;;  %v9239_v57 = vpack.c.bf16 %v9231_v56, %v9231_v56 }
  0x21   :  { %872 = vmatprep.subr.bf16.mxu0 %v8207_v61  ;;  %v9247_v61 = vpack.c.bf16 %v9078_v60, %v9078_v60 }
  0x22   :  { %1046 = vmatpush1.bf16.msra.mxu1 %v8210_v1  ;;  %v9257_v1 = vpack.c.bf16 %v8905_v16, %v8905_v16  ;;  %v27_v16 = vld [vmem:[%s14073_s0] sm:$0xff] }
  0x23   :  { %873 = vmatpush1.bf16.msra.mxu0 %v8209_v62  ;;  %1059 = vmatprep.subr.bf16.mxu1 %v14081_v3  ;;  %v9249_v62 = vpack.c.bf16 %v53_v47, %v53_v47 }
  0x24   :  { %187 = vrot.lane.b32.xlu1 %v9044_v51, %s8802_s25  ;;  %185 = vrot.lane.b32.xlu0 %v8998_v40, %s8802_s25 }
  0x25   :  { %886 = vmatprep.subr.bf16.mxu0 %v8211_v2 }
  0x26   :  { %1060 = vmatpush2.bf16.msra.mxu1 %v8214_v21 }
  0x27   :  { %887 = vmatpush2.bf16.msra.mxu0 %v8213_v15  ;;  %1061 = vmatprep.subr.bf16.mxu1 %v14081_v3  ;;  %v59_v15 = vpack.c.bf16 %v27_v16, %v27_v16 }
  0x28   :  { %120 = vrot.lane.b32.xlu1 %v9073_v59, %s8801_s10  ;;  %118 = vrot.lane.b32.xlu0 %v9044_v51, %s8801_s10 }
  0x29   :  { %888 = vmatprep.subr.bf16.mxu0 %v8215_v22 }
  0x2a   :  { %1062 = vmatpush2.bf16.msra.mxu1 %v8218_v30 }
  0x2b   :  { %889 = vmatpush2.bf16.msra.mxu0 %v8217_v29  ;;  %8154 = vmatprep.subr.bf16.mxu1 %v8221_v35 }
  0x2c   :  { %162 = vrot.lane.b32.xlu1 %v9111_v9, %s8800_s9  ;;  %160 = vrot.lane.b32.xlu0 %v9113_v14, %s8800_s9 }
  0x2d   :  { %1419 = vmatprep.subr.bf16.mxu0 %v8221_v35 }
  0x30   :  { %191 = vrot.lane.b32.xlu1 %v9136_v23, %s8802_s25  ;;  %189 = vrot.lane.b32.xlu0 %v9073_v59, %s8802_s25 }
  0x34   :  { %124 = vrot.lane.b32.xlu1 %v9159_v34, %s8801_s10  ;;  %122 = vrot.lane.b32.xlu0 %v9136_v23, %s8801_s10 }
  0x38   :  { %166 = vrot.lane.b32.xlu1 %v9169_v36, %s8800_s9  ;;  %164 = vrot.lane.b32.xlu0 %v9171_v37, %s8800_s9 }
  0x3c   :  { %195 = vrot.lane.b32.xlu1 %v9184_v41, %s8802_s25  ;;  %193 = vrot.lane.b32.xlu0 %v9159_v34, %s8802_s25 }
  0x40   :  { %128 = vrot.lane.b32.xlu1 %v9205_v50, %s8801_s10  ;;  %126 = vrot.lane.b32.xlu0 %v9184_v41, %s8801_s10 }
  0x44   :  { %170 = vrot.lane.b32.xlu1 %v9211_v52, %s8800_s9  ;;  %168 = vrot.lane.b32.xlu0 %v9213_v53, %s8800_s9 }
  0x48   :  { %199 = vrot.lane.b32.xlu1 %v9226_v55, %s8802_s25  ;;  %197 = vrot.lane.b32.xlu0 %v9205_v50, %s8802_s25 }
  0x4c   :  { %132 = vrot.lane.b32.xlu1 %v9239_v57, %s8801_s10  ;;  %130 = vrot.lane.b32.xlu0 %v9226_v55, %s8801_s10 }
  0x50   :  { %174 = vrot.lane.b32.xlu1 %v9247_v61, %s8800_s9  ;;  %172 = vrot.lane.b32.xlu0 %v9249_v62, %s8800_s9 }
  0x54   :  { %203 = vrot.lane.b32.xlu1 %v9257_v1, %s8802_s25  ;;  %201 = vrot.lane.b32.xlu0 %v9239_v57, %s8802_s25 }
  0x58   :  { %351 = vrot.lane.b32.xlu1 %v8865_v7, %s8801_s10  ;;  %349 = vrot.lane.b32.xlu0 %v8854_v4, %s8801_s10 }
  0x5c   :  { %379 = vrot.lane.b32.xlu1 %v8889_v12, %s8800_s9  ;;  %377 = vrot.lane.b32.xlu0 %v8867_v8, %s8800_s9 }
  0x60   :  { %407 = vrot.lane.b32.xlu1 %v8949_v28, %s8802_s25  ;;  %405 = vrot.lane.b32.xlu0 %v8865_v7, %s8802_s25 }
  0x64   :  { %355 = vrot.lane.b32.xlu1 %v8947_v27, %s8801_s10  ;;  %353 = vrot.lane.b32.xlu0 %v8949_v28, %s8801_s10 }
  0x68   :  { %383 = vrot.lane.b32.xlu1 %v8972_v33, %s8800_s9  ;;  %381 = vrot.lane.b32.xlu0 %v8918_v19, %s8800_s9 }
  0x6c   :  { %411 = vrot.lane.b32.xlu1 %v9021_v46, %s8802_s25  ;;  %409 = vrot.lane.b32.xlu0 %v8947_v27, %s8802_s25 }
  0x70   :  { %359 = vrot.lane.b32.xlu1 %v9019_v45, %s8801_s10  ;;  %357 = vrot.lane.b32.xlu0 %v9021_v46, %s8801_s10 }
  0x74   :  { %387 = vrot.lane.b32.xlu1 %v9044_v51, %s8800_s9  ;;  %385 = vrot.lane.b32.xlu0 %v8998_v40, %s8800_s9 }
  0x76   :  { %v149_v60 = vpop.permute.xlu1 %148  ;;  %v107_v2 = vpop.permute.xlu0 %106 }
  0x77   :  { %v208_v25 = vsel %vm205_vm0, %v59_v15, %v107_v2 }
  0x78   :  { %415 = vrot.lane.b32.xlu1 %v9113_v14, %s8802_s25  ;;  %413 = vrot.lane.b32.xlu0 %v9019_v45, %s8802_s25  ;;  %v250_v44 = vsel %vm248_vm1, %v208_v25, %v149_v60  ;;  %v8224_v60 = vld [vmem:[%s14074_s1 + $0x184] ss:$12 sps:$4 sm:$0xff]  }
  0x7a   :  { %v151_v21 = vpop.permute.xlu1 %150  ;;  %v109_v22 = vpop.permute.xlu0 %108 }
  0x7b   :  { %v211_v26 = vsel %vm205_vm0, %v8854_v4, %v109_v22  ;;  %v8219_v4 = vld [vmem:[%s14074_s1 + $0x198] ss:$12 sps:$4 sm:$0xff]   ;;  %v8222_v22 = vld [vmem:[%s14074_s1 + $0x180] ss:$12 sps:$4 sm:$0xff]  }
  0x7c   :  { %363 = vrot.lane.b32.xlu1 %v9111_v9, %s8801_s10  ;;  %361 = vrot.lane.b32.xlu0 %v9113_v14, %s8801_s10  ;;  %v252_v30 = vsel %vm248_vm1, %v211_v26, %v151_v21 }
  0x7e   :  { %v180_v29 = vpop.permute.xlu1 %179  ;;  %v178_v35 = vpop.permute.xlu0 %177 }
  0x7f   :  { %v281_v47 = vsel %vm277_vm2, %v252_v30, %v180_v29  ;;  %v279_v16 = vsel %vm277_vm2, %v250_v44, %v178_v35  ;;  %v8227_v29 = vld [vmem:[%s14074_s1 + $0x16c] ss:$12 sps:$4 sm:$0xff]   ;;  %v8225_v44 = vld [vmem:[%s14074_s1 + $0x168] ss:$12 sps:$4 sm:$0xff]  }
  0x80   :  { %v9313_v2 = vcombine.low %v279_v16, %v281_v47  ;;  %391 = vrot.lane.b32.xlu1 %v9136_v23, %s8800_s9  ;;  %389 = vrot.lane.b32.xlu0 %v9073_v59, %s8800_s9 }
  0x82   :  { %v113_v15 = vpop.permute.xlu1 %112  ;;  %v111_v21 = vpop.permute.xlu0 %110  ;;  %891 = vmatmul.mubr.bf16.vlgmr.msra.gmra.mxu0 %v9313_v2  ;;  %1064 = vmatmul.mubr.bf16.vlgmr.msra.gmra.mxu1 %v9313_v2 }
  0x83   :  { %7108 = vmatprep.mubr.msk.bf16.mxu0 %vm205_vm0, %v8910_v18  ;;  %7122 = vmatprep.mubr.msk.bf16.mxu1 %vm205_vm0, %v8910_v18  ;;  %v217_v30 = vsel %vm205_vm0, %v8949_v28, %v113_v15  ;;  %v214_v35 = vsel %vm205_vm0, %v8865_v7, %v111_v21  ;;  %v8230_v7 = vld [vmem:[%s14074_s1 + $0x154] ss:$12 sps:$4 sm:$0xff]  }
  0x84   :  { %419 = vrot.lane.b32.xlu1 %v9171_v37, %s8802_s25  ;;  %417 = vrot.lane.b32.xlu0 %v9111_v9, %s8802_s25 }
  0x85   :  { %1420 = vmatpush1.bf16.msra.mxu0 %v8219_v4  ;;  %8164 = vmatpush1.bf16.msra.mxu1 %v8219_v4 }
  0x86   :  { %v155_v25 = vpop.permute.xlu1 %154  ;;  %v153_v26 = vpop.permute.xlu0 %152  ;;  %1421 = vmatprep.subr.bf16.mxu0 %v8224_v60  ;;  %8155 = vmatprep.subr.bf16.mxu1 %v8224_v60 }
  0x87   :  { %v256_v47 = vsel %vm248_vm1, %v217_v30, %v155_v25  ;;  %v254_v16 = vsel %vm248_vm1, %v214_v35, %v153_v26  ;;  %v8233_v25 = vld [vmem:[%s14074_s1 + $0x13c] ss:$12 sps:$4 sm:$0xff]   ;;  %v8231_v30 = vld [vmem:[%s14074_s1 + $0x138] ss:$12 sps:$4 sm:$0xff]  }
  0x88   :  { %367 = vrot.lane.b32.xlu1 %v9169_v36, %s8801_s10  ;;  %365 = vrot.lane.b32.xlu0 %v9171_v37, %s8801_s10  ;;  %v8236_v35 = vld [vmem:[%s14074_s1 + $0x124] ss:$12 sps:$4 sm:$0xff]  }
  0x89   :  { %1422 = vmatpush1.bf16.msra.mxu0 %v8222_v22  ;;  %8165 = vmatpush1.bf16.msra.mxu1 %v8222_v22 }
  0x8a   :  { %v184_v4 = vpop.permute.xlu1 %183  ;;  %v182_v60 = vpop.permute.xlu0 %181  ;;  %1423 = vmatprep.subr.bf16.mxu0 %v8227_v29  ;;  %8156 = vmatprep.subr.bf16.mxu1 %v8227_v29 }
  0x8b   :  { %v285_v3 = vsel %vm277_vm2, %v256_v47, %v184_v4  ;;  %v283_v28 = vsel %vm277_vm2, %v254_v16, %v182_v60 }
  0x8c   :  { %v9356_v15 = vcombine.low %v283_v28, %v285_v3  ;;  %395 = vrot.lane.b32.xlu1 %v9184_v41, %s8800_s9  ;;  %393 = vrot.lane.b32.xlu0 %v9159_v34, %s8800_s9  ;;  %v8228_v3 = vld [vmem:[%s14074_s1 + $0x150] ss:$12 sps:$4 sm:$0xff]  }
  0x8d   :  { %1424 = vmatpush1.bf16.msra.mxu0 %v8225_v44  ;;  %8166 = vmatpush1.bf16.msra.mxu1 %v8225_v44 }
  0x8e   :  { %v117_v21 = vpop.permute.xlu1 %116  ;;  %v115_v22 = vpop.permute.xlu0 %114  ;;  %901 = vmatmul.mubr.bf16.gmra.mxu0 %v9356_v15  ;;  %1072 = vmatmul.mubr.bf16.gmra.mxu1 %v9356_v15 }
  0x8f   :  { %7109 = vmatprep.mubr.msk.bf16.mxu0 %vm205_vm0, %v8990_v39  ;;  %7123 = vmatprep.mubr.msk.bf16.mxu1 %vm205_vm0, %v8990_v39  ;;  %v223_v44 = vsel %vm205_vm0, %v9021_v46, %v117_v21  ;;  %v220_v47 = vsel %vm205_vm0, %v8947_v27, %v115_v22  ;;  %v8234_v27 = vld [vmem:[%s14074_s1 + $0x120] ss:$12 sps:$4 sm:$0xff]  }
  0x90   :  { %423 = vrot.lane.b32.xlu1 %v9213_v53, %s8802_s25  ;;  %421 = vrot.lane.b32.xlu0 %v9169_v36, %s8802_s25  ;;  %v8239_v22 = vld [vmem:[%s14074_s1 + $0x10c] ss:$12 sps:$4 sm:$0xff]  }
  0x91   :  { %1425 = vmatprep.subr.bf16.mxu0 %v8230_v7  ;;  %8157 = vmatprep.subr.bf16.mxu1 %v8230_v7 }
  0x92   :  { %v159_v26 = vpop.permute.xlu1 %158  ;;  %v157_v29 = vpop.permute.xlu0 %156  ;;  %1426 = vmatpush1.bf16.msra.mxu0 %v8228_v3  ;;  %8167 = vmatpush1.bf16.msra.mxu1 %v8228_v3 }
  0x93   :  { %1427 = vmatprep.subr.bf16.mxu0 %v8233_v25  ;;  %8158 = vmatprep.subr.bf16.mxu1 %v8233_v25  ;;  %v260_v16 = vsel %vm248_vm1, %v223_v44, %v159_v26  ;;  %v258_v4 = vsel %vm248_vm1, %v220_v47, %v157_v29  ;;  %v8237_v26 = vld [vmem:[%s14074_s1 + $0x108] ss:$12 sps:$4 sm:$0xff]  }
  0x94   :  { %371 = vrot.lane.b32.xlu1 %v9211_v52, %s8801_s10  ;;  %369 = vrot.lane.b32.xlu0 %v9213_v53, %s8801_s10 }
  0x96   :  { %v188_v60 = vpop.permute.xlu1 %187  ;;  %v186_v28 = vpop.permute.xlu0 %185  ;;  %1428 = vmatpush1.bf16.msra.mxu0 %v8231_v30  ;;  %8168 = vmatpush1.bf16.msra.mxu1 %v8231_v30 }
  0x97   :  { %v289_v7 = vsel %vm277_vm2, %v260_v16, %v188_v60  ;;  %v287_v3 = vsel %vm277_vm2, %v258_v4, %v186_v28  ;;  %1429 = vmatprep.subr.bf16.mxu0 %v8236_v35  ;;  %8159 = vmatprep.subr.bf16.mxu1 %v8236_v35  ;;  %v8242_v35 = vld [vmem:[%s14074_s1 + $0xf4] ss:$12 sps:$4 sm:$0xff]   ;;  %v8240_v16 = vld [vmem:[%s14074_s1 + $0xf0] ss:$12 sps:$4 sm:$0xff]  }
  0x98   :  { %v9399_v25 = vcombine.low %v287_v3, %v289_v7  ;;  %399 = vrot.lane.b32.xlu1 %v9226_v55, %s8800_s9  ;;  %397 = vrot.lane.b32.xlu0 %v9205_v50, %s8800_s9 }
  0x9a   :  { %v121_v46 = vpop.permute.xlu1 %120  ;;  %v119_v21 = vpop.permute.xlu0 %118  ;;  %911 = vmatmul.mubr.bf16.gmra.mxu0 %v9399_v25  ;;  %1080 = vmatmul.mubr.bf16.gmra.mxu1 %v9399_v25 }
  0x9b   :  { %7110 = vmatprep.mubr.msk.bf16.mxu0 %vm205_vm0, %v9065_v58  ;;  %7124 = vmatprep.mubr.msk.bf16.mxu1 %vm205_vm0, %v9065_v58  ;;  %v229_v44 = vsel %vm205_vm0, %v9113_v14, %v121_v46  ;;  %v226_v47 = vsel %vm205_vm0, %v9019_v45, %v119_v21  ;;  %v89_v45 = vpack.c.bf16 %v9089_v63, %v9089_v63  ;;  %v8245_v46 = vld [vmem:[%s14074_s1 + $0x1cc] ss:$12 sps:$4 sm:$0xff]   ;;  %v8248_v63 = vld [vmem:[%s14074_s1 + $0x1b4] ss:$12 sps:$4 sm:$0xff]  }
  0x9c   :  { %427 = vrot.lane.b32.xlu1 %v9249_v62, %s8802_s25  ;;  %425 = vrot.lane.b32.xlu0 %v9211_v52, %s8802_s25 }
  0x9d   :  { %1430 = vmatpush1.bf16.msra.mxu0 %v8234_v27  ;;  %8169 = vmatpush1.bf16.msra.mxu1 %v8234_v27 }
  0x9e   :  { %v163_v29 = vpop.permute.xlu1 %162  ;;  %v161_v30 = vpop.permute.xlu0 %160  ;;  %1431 = vmatprep.subr.bf16.mxu0 %v8239_v22  ;;  %8160 = vmatprep.subr.bf16.mxu1 %v8239_v22 }
  0x9f   :  { %v264_v4 = vsel %vm248_vm1, %v229_v44, %v163_v29  ;;  %v262_v60 = vsel %vm248_vm1, %v226_v47, %v161_v30  ;;  %v8246_v30 = vld [vmem:[%s14074_s1 + $0x1b0] ss:$12 sps:$4 sm:$0xff]  }
  0xa0   :  { %375 = vrot.lane.b32.xlu1 %v9247_v61, %s8801_s10  ;;  %373 = vrot.lane.b32.xlu0 %v9249_v62, %s8801_s10 }
  0xa1   :  { %1432 = vmatpush1.bf16.msra.mxu0 %v8237_v26  ;;  %8170 = vmatpush1.bf16.msra.mxu1 %v8237_v26 }
  0xa2   :  { %v192_v28 = vpop.permute.xlu1 %191  ;;  %v190_v7 = vpop.permute.xlu0 %189  ;;  %1433 = vmatprep.subr.bf16.mxu0 %v8242_v35  ;;  %8161 = vmatprep.subr.bf16.mxu1 %v8242_v35  ;;  %v14210_v35 = vmov 0  }
  0xa3   :  { %v293_v3 = vsel %vm277_vm2, %v264_v4, %v192_v28  ;;  %v291_v14 = vsel %vm277_vm2, %v262_v60, %v190_v7 }
  0xa4   :  { %v9442_v27 = vcombine.low %v291_v14, %v293_v3  ;;  %403 = vrot.lane.b32.xlu1 %v9257_v1, %s8800_s9  ;;  %401 = vrot.lane.b32.xlu0 %v9239_v57, %s8800_s9  ;;  %v8243_v1 = vld [vmem:[%s14074_s1 + $0x1c8] ss:$12 sps:$4 sm:$0xff]  }
  0xa5   :  { %1434 = vmatpush1.bf16.msra.mxu0 %v8240_v16  ;;  %8171 = vmatpush1.bf16.msra.mxu1 %v8240_v16 }
  0xa6   :  { %v125_v21 = vpop.permute.xlu1 %124  ;;  %v123_v22 = vpop.permute.xlu0 %122  ;;  %921 = vmatmul.mubr.bf16.gmra.mxu0 %v9442_v27  ;;  %1088 = vmatmul.mubr.bf16.gmra.mxu1 %v9442_v27 }
  0xa7   :  { %7111 = vmatprep.mubr.msk.bf16.mxu0 %vm205_vm0, %v9151_v32  ;;  %7125 = vmatprep.mubr.msk.bf16.mxu1 %vm205_vm0, %v9151_v32  ;;  %v235_v44 = vsel %vm205_vm0, %v9171_v37, %v125_v21 }
  0xa8   :  { %431 = vrot.lane.b32.xlu1 %v89_v45, %s8802_s25  ;;  %429 = vrot.lane.b32.xlu0 %v9247_v61, %s8802_s25  ;;  %v232_v61 = vsel %vm205_vm0, %v9111_v9, %v123_v22 }
  0xa9   :  { %1447 = vmatprep.subr.bf16.mxu0 %v8245_v46  ;;  %8162 = vmatprep.subr.bf16.mxu1 %v8245_v46 }
  0xaa   :  { %v167_v26 = vpop.permute.xlu1 %166  ;;  %v165_v29 = vpop.permute.xlu0 %164  ;;  %1448 = vmatpush2.bf16.msra.mxu0 %v8243_v1  ;;  %8172 = vmatpush2.bf16.msra.mxu1 %v8243_v1 }
  0xab   :  { %1449 = vmatprep.subr.bf16.mxu0 %v8248_v63  ;;  %8163 = vmatprep.subr.bf16.mxu1 %v8248_v63  ;;  %v268_v47 = vsel %vm248_vm1, %v235_v44, %v167_v26  ;;  %v266_v16 = vsel %vm248_vm1, %v232_v61, %v165_v29 }
  0xac   :  { %2049 = vrot.lane.b32.xlu0 %v14210_v35, %s8801_s10 }
  0xae   :  { %v196_v4 = vpop.permute.xlu1 %195  ;;  %v194_v60 = vpop.permute.xlu0 %193  ;;  %1450 = vmatpush2.bf16.msra.mxu0 %v8246_v30  ;;  %8173 = vmatpush2.bf16.msra.mxu1 %v8246_v30 }
  0xaf   :  { %v297_v28 = vsel %vm277_vm2, %v268_v47, %v196_v4  ;;  %v295_v7 = vsel %vm277_vm2, %v266_v16, %v194_v60  ;;  %1592 = vmatprep.subr.bf16.mxu1 %v14210_v35 }
  0xb0   :  { %v9482_v3 = vcombine.low %v295_v7, %v297_v28 }
  0xb2   :  { %v129_v37 = vpop.permute.xlu1 %128  ;;  %v127_v14 = vpop.permute.xlu0 %126  ;;  %931 = vmatmul.mubr.bf16.gmra.mxu0 %v9482_v3  ;;  %1096 = vmatmul.mubr.bf16.gmra.mxu1 %v9482_v3 }
  0xb3   :  { %7112 = vmatprep.mubr.msk.bf16.mxu0 %vm205_vm0, %v9197_v48  ;;  %7126 = vmatprep.mubr.msk.bf16.mxu1 %vm205_vm0, %v9197_v48  ;;  %v241_v46 = vsel %vm205_vm0, %v9213_v53, %v129_v37  ;;  %v238_v21 = vsel %vm205_vm0, %v9169_v36, %v127_v14 }
  0xb6   :  { %v171_v9 = vpop.permute.xlu1 %170  ;;  %v169_v45 = vpop.permute.xlu0 %168 }
  0xb7   :  { %v272_v22 = vsel %vm248_vm1, %v241_v46, %v171_v9  ;;  %v270_v1 = vsel %vm248_vm1, %v238_v21, %v169_v45  ;;  %v9516_v45 = vpack.c.bf16 %v8894_v13, %v8875_v10 }
  0xba   :  { %v200_v63 = vpop.permute.xlu1 %199  ;;  %v198_v26 = vpop.permute.xlu0 %197 }
  0xbb   :  { %v301_v29 = vsel %vm277_vm2, %v272_v22, %v200_v63  ;;  %v299_v30 = vsel %vm277_vm2, %v270_v1, %v198_v26 }
  0xbc   :  { %v9498_v44 = vcombine.low %v299_v30, %v301_v29 }
  0xbe   :  { %v133_v61 = vpop.permute.xlu1 %132  ;;  %v131_v47 = vpop.permute.xlu0 %130  ;;  %941 = vmatmul.mubr.bf16.gmra.mxu0 %v9498_v44  ;;  %1104 = vmatmul.mubr.bf16.gmra.mxu1 %v9498_v44 }
  0xbf   :  { %7113 = vmatprep.mubr.msk.bf16.mxu0 %vm205_vm0, %v9105_v6  ;;  %7127 = vmatprep.mubr.msk.bf16.mxu1 %vm205_vm0, %v9105_v6  ;;  %v247_v16 = vsel %vm205_vm0, %v9249_v62, %v133_v61  ;;  %v244_v4 = vsel %vm205_vm0, %v9211_v52, %v131_v47  ;;  %v9536_v47 = vpack.c.bf16 %v8961_v31, %v8935_v24 }
  0xc2   :  { %v175_v36 = vpop.permute.xlu1 %174  ;;  %v173_v53 = vpop.permute.xlu0 %172 }
  0xc3   :  { %v276_v60 = vsel %vm248_vm1, %v247_v16, %v175_v36  ;;  %v274_v28 = vsel %vm248_vm1, %v244_v4, %v173_v53 }
  0xc6   :  { %v204_v7 = vpop.permute.xlu1 %203  ;;  %v202_v37 = vpop.permute.xlu0 %201 }
  0xc7   :  { %v305_v14 = vsel %vm277_vm2, %v276_v60, %v204_v7  ;;  %v303_v9 = vsel %vm277_vm2, %v274_v28, %v202_v37 }
  0xc8   :  { %v9518_v46 = vcombine.low %v303_v9, %v305_v14  ;;  %v9556_v9 = vpack.c.bf16 %v9033_v49, %v9010_v43 }
  0xca   :  { %v352_v62 = vpop.permute.xlu1 %351  ;;  %v350_v21 = vpop.permute.xlu0 %349  ;;  %951 = vmatmul.mubr.bf16.gmra.mxu0 %v9518_v46  ;;  %1112 = vmatmul.mubr.bf16.gmra.mxu1 %v9518_v46 }
  0xcb   :  { %7114 = vmatprep.mubr.msk.bf16.mxu0 %vm205_vm0, %v9516_v45  ;;  %7128 = vmatprep.mubr.msk.bf16.mxu1 %vm205_vm0, %v9516_v45  ;;  %v438_v10 = vsel %vm205_vm0, %v8867_v8, %v352_v62  ;;  %v435_v13 = vsel %vm205_vm0, %v8856_v5, %v350_v21 }
  0xce   :  { %v380_v52 = vpop.permute.xlu1 %379  ;;  %v378_v22 = vpop.permute.xlu0 %377 }
  0xcf   :  { %v478_v1 = vsel %vm248_vm1, %v438_v10, %v380_v52  ;;  %v476_v63 = vsel %vm248_vm1, %v435_v13, %v378_v22 }
  0xd2   :  { %v408_v26 = vpop.permute.xlu1 %407  ;;  %v406_v29 = vpop.permute.xlu0 %405 }
  0xd3   :  { %v506_v30 = vsel %vm277_vm2, %v478_v1, %v408_v26  ;;  %v504_v61 = vsel %vm277_vm2, %v476_v63, %v406_v29  ;;  %v9576_v29 = vpack.c.bf16 %v9122_v17, %v9095_v0 }
  0xd4   :  { %v9538_v36 = vcombine.low %v504_v61, %v506_v30 }
  0xd6   :  { %v356_v8 = vpop.permute.xlu1 %355  ;;  %v354_v53 = vpop.permute.xlu0 %353  ;;  %961 = vmatmul.mubr.bf16.gmra.mxu0 %v9538_v36  ;;  %1120 = vmatmul.mubr.bf16.gmra.mxu1 %v9538_v36 }
  0xd7   :  { %7115 = vmatprep.mubr.msk.bf16.mxu0 %vm205_vm0, %v9536_v47  ;;  %7129 = vmatprep.mubr.msk.bf16.mxu1 %vm205_vm0, %v9536_v47  ;;  %v444_v24 = vsel %vm205_vm0, %v8918_v19, %v356_v8  ;;  %v441_v31 = vsel %vm205_vm0, %v8889_v12, %v354_v53 }
  0xda   :  { %v384_v5 = vpop.permute.xlu1 %383  ;;  %v382_v16 = vpop.permute.xlu0 %381 }
  0xdb   :  { %v482_v4 = vsel %vm248_vm1, %v444_v24, %v384_v5  ;;  %v480_v60 = vsel %vm248_vm1, %v441_v31, %v382_v16 }
  0xde   :  { %v412_v28 = vpop.permute.xlu1 %411  ;;  %v410_v7 = vpop.permute.xlu0 %409 }
  0xdf   :  { %v510_v37 = vsel %vm277_vm2, %v482_v4, %v412_v28  ;;  %v508_v14 = vsel %vm277_vm2, %v480_v60, %v410_v7  ;;  %v9596_v60 = vpack.c.bf16 %v9189_v42, %v9176_v38 }
  0xe0   :  { %v9558_v62 = vcombine.low %v508_v14, %v510_v37 }
  0xe2   :  { %v360_v19 = vpop.permute.xlu1 %359  ;;  %v358_v21 = vpop.permute.xlu0 %357  ;;  %971 = vmatmul.mubr.bf16.gmra.mxu0 %v9558_v62  ;;  %1128 = vmatmul.mubr.bf16.gmra.mxu1 %v9558_v62 }
  0xe3   :  { %7116 = vmatprep.mubr.msk.bf16.mxu0 %vm205_vm0, %v9556_v9  ;;  %7130 = vmatprep.mubr.msk.bf16.mxu1 %vm205_vm0, %v9556_v9  ;;  %v450_v43 = vsel %vm205_vm0, %v8998_v40, %v360_v19  ;;  %v447_v49 = vsel %vm205_vm0, %v8972_v33, %v358_v21 }
  0xe6   :  { %v388_v12 = vpop.permute.xlu1 %387  ;;  %v386_v52 = vpop.permute.xlu0 %385 }
  0xe7   :  { %v486_v22 = vsel %vm248_vm1, %v450_v43, %v388_v12  ;;  %v484_v10 = vsel %vm248_vm1, %v447_v49, %v386_v52  ;;  %v9616_v49 = vpack.c.bf16 %v9231_v56, %v9218_v54 }
  0xea   :  { %v416_v13 = vpop.permute.xlu1 %415  ;;  %v414_v1 = vpop.permute.xlu0 %413 }
  0xeb   :  { %v514_v63 = vsel %vm277_vm2, %v486_v22, %v416_v13  ;;  %v512_v26 = vsel %vm277_vm2, %v484_v10, %v414_v1 }
  0xec   :  { %v9578_v30 = vcombine.low %v512_v26, %v514_v63 }
  0xee   :  { %v364_v40 = vpop.permute.xlu1 %363  ;;  %v362_v61 = vpop.permute.xlu0 %361  ;;  %981 = vmatmul.mubr.bf16.gmra.mxu0 %v9578_v30  ;;  %1136 = vmatmul.mubr.bf16.gmra.mxu1 %v9578_v30 }
  0xef   :  { %7117 = vmatprep.mubr.msk.bf16.mxu0 %vm205_vm0, %v9576_v29  ;;  %7131 = vmatprep.mubr.msk.bf16.mxu1 %vm205_vm0, %v9576_v29  ;;  %v456_v0 = vsel %vm205_vm0, %v9073_v59, %v364_v40  ;;  %v453_v17 = vsel %vm205_vm0, %v9044_v51, %v362_v61 }
  0xf2   :  { %v392_v33 = vpop.permute.xlu1 %391  ;;  %v390_v8 = vpop.permute.xlu0 %389 }
  0xf3   :  { %v490_v53 = vsel %vm248_vm1, %v456_v0, %v392_v33  ;;  %v488_v5 = vsel %vm248_vm1, %v453_v17, %v390_v8 }
  0xf6   :  { %v420_v16 = vpop.permute.xlu1 %419  ;;  %v418_v24 = vpop.permute.xlu0 %417 }
  0xf7   :  { %v518_v31 = vsel %vm277_vm2, %v490_v53, %v420_v16  ;;  %v516_v4 = vsel %vm277_vm2, %v488_v5, %v418_v24 }
  0xf8   :  { %v9598_v28 = vcombine.low %v516_v4, %v518_v31 }
  0xfa   :  { %v368_v59 = vpop.permute.xlu1 %367  ;;  %v366_v7 = vpop.permute.xlu0 %365  ;;  %991 = vmatmul.mubr.bf16.gmra.mxu0 %v9598_v28  ;;  %1144 = vmatmul.mubr.bf16.gmra.mxu1 %v9598_v28 }
  0xfb   :  { %7118 = vmatprep.mubr.msk.bf16.mxu0 %vm205_vm0, %v9596_v60  ;;  %7132 = vmatprep.mubr.msk.bf16.mxu1 %vm205_vm0, %v9596_v60  ;;  %v462_v38 = vsel %vm205_vm0, %v9159_v34, %v368_v59  ;;  %v459_v42 = vsel %vm205_vm0, %v9136_v23, %v366_v7 }
  0xfe   :  { %v396_v51 = vpop.permute.xlu1 %395  ;;  %v394_v37 = vpop.permute.xlu0 %393 }
  0xff   :  { %v494_v14 = vsel %vm248_vm1, %v462_v38, %v396_v51  ;;  %v492_v19 = vsel %vm248_vm1, %v459_v42, %v394_v37  ;;  %v8251_v37 = vld [vmem:[%s14074_s1 + $0x170] ss:$12 sps:$4 sm:$0xff]   ;;  %v8252_v38 = vld [vmem:[%s14074_s1 + $0x158] ss:$12 sps:$4 sm:$0xff]   ;;  %v8253_v42 = vld [vmem:[%s14074_s1 + $0x140] ss:$12 sps:$4 sm:$0xff]  }
 0x102   :  { %v424_v21 = vpop.permute.xlu1 %423  ;;  %v422_v12 = vpop.permute.xlu0 %421 }
 0x103   :  { %v522_v52 = vsel %vm277_vm2, %v494_v14, %v424_v21  ;;  %v520_v43 = vsel %vm277_vm2, %v492_v19, %v422_v12  ;;  %v8254_v14 = vld [vmem:[%s14074_s1 + $0x128] ss:$12 sps:$4 sm:$0xff]   ;;  %v8255_v19 = vld [vmem:[%s14074_s1 + $0x110] ss:$12 sps:$4 sm:$0xff]   ;;  %v8256_v21 = vld [vmem:[%s14074_s1 + $0xf8] ss:$12 sps:$4 sm:$0xff]  }
 0x104   :  { %v9618_v22 = vcombine.low %v520_v43, %v522_v52 }
 0x106   :  { %v372_v34 = vpop.permute.xlu1 %371  ;;  %v370_v10 = vpop.permute.xlu0 %369  ;;  %1001 = vmatmul.mubr.bf16.gmra.mxu0 %v9618_v22  ;;  %1152 = vmatmul.mubr.bf16.gmra.mxu1 %v9618_v22 }
 0x107   :  { %7119 = vmatprep.mubr.msk.bf16.mxu0 %vm205_vm0, %v9616_v49  ;;  %7133 = vmatprep.mubr.msk.bf16.mxu1 %vm205_vm0, %v9616_v49  ;;  %v468_v54 = vsel %vm205_vm0, %v9205_v50, %v372_v34  ;;  %v465_v56 = vsel %vm205_vm0, %v9184_v41, %v370_v10  ;;  %v8257_v10 = vld [vmem:[%s14074_s1 + $0x1d0] ss:$12 sps:$4 sm:$0xff]  }
 0x10a   :  { %v400_v23 = vpop.permute.xlu1 %399  ;;  %v398_v13 = vpop.permute.xlu0 %397 }
 0x10b   :  { %v498_v1 = vsel %vm248_vm1, %v468_v54, %v400_v23  ;;  %v496_v63 = vsel %vm248_vm1, %v465_v56, %v398_v13  ;;  %v8258_v56 = vld [vmem:[%s14074_s1 + $0x1b8] ss:$12 sps:$4 sm:$0xff]  }
 0x10e   :  { %v428_v26 = vpop.permute.xlu1 %427  ;;  %v426_v40 = vpop.permute.xlu0 %425 }
 0x10f   :  { %v526_v61 = vsel %vm277_vm2, %v498_v1, %v428_v26  ;;  %v524_v33 = vsel %vm277_vm2, %v496_v63, %v426_v40 }
 0x110   :  { %v9634_v8 = vcombine.low %v524_v33, %v526_v61 }
 0x112   :  { %v376_v0 = vpop.permute.xlu1 %375  ;;  %v374_v17 = vpop.permute.xlu0 %373  ;;  %1011 = vmatmul.mubr.bf16.gmra.mxu0 %v9634_v8  ;;  %1160 = vmatmul.mubr.bf16.gmra.mxu1 %v9634_v8 }
 0x113   :  { %7120 = vmatprep.mubr.msk.bf16.mxu0 %vm205_vm0, %v8921_v20  ;;  %7134 = vmatprep.mubr.msk.bf16.mxu1 %vm205_vm0, %v8921_v20  ;;  %v474_v53 = vsel %vm205_vm0, %v9239_v57, %v376_v0  ;;  %v471_v5 = vsel %vm205_vm0, %v9226_v55, %v374_v17  ;;  %v8249_v55 = vld [vmem:[%s14074_s1 + $0x1a0] ss:$12 sps:$4 sm:$0xff]   ;;  %v8250_v57 = vld [vmem:[%s14074_s1 + $0x188] ss:$12 sps:$4 sm:$0xff]  }
 0x116   :  { %v404_v41 = vpop.permute.xlu1 %403  ;;  %v402_v50 = vpop.permute.xlu0 %401 }
 0x117   :  { %v502_v16 = vsel %vm248_vm1, %v474_v53, %v404_v41  ;;  %v500_v24 = vsel %vm248_vm1, %v471_v5, %v402_v50 }
 0x11a   :  { %v432_v31 = vpop.permute.xlu1 %431  ;;  %v430_v4 = vpop.permute.xlu0 %429 }
 0x11b   :  { %v530_v59 = vsel %vm277_vm2, %v502_v16, %v432_v31  ;;  %v528_v7 = vsel %vm277_vm2, %v500_v24, %v430_v4 }
 0x11c   :  { %v9650_v51 = vcombine.low %v528_v7, %v530_v59 }
 0x11e   :  { %1021 = vmatmul.mubr.bf16.gmra.mxu0 %v9650_v51  ;;  %1168 = vmatmul.mubr.bf16.gmra.mxu1 %v9650_v51 }
 0x11f   :  { %7205 = vmatprep.mubr.msk.bf16.mxu0 %vm205_vm0, %v8877_v11  ;;  %7213 = vmatprep.mubr.msk.bf16.mxu1 %vm205_vm0, %v9536_v47 }
 0x126   :  { %1452 = vmatmul.mubr.bf16.vlgmr.msra.gmra.mxu0 %v9313_v2  ;;  %1532 = vmatmul.mubr.bf16.vlgmr.msra.gmra.mxu1 %v9558_v62 }
 0x127   :  { %7206 = vmatprep.mubr.msk.bf16.mxu0 %vm205_vm0, %v8910_v18  ;;  %7214 = vmatprep.mubr.msk.bf16.mxu1 %vm205_vm0, %v9556_v9 }
 0x128   :  { %1593 = vmatpush1.bf16.msra.mxu1 %v8249_v55 }
 0x129   :  { %1594 = vmatprep.subr.bf16.mxu1 %v14210_v35 }
 0x12c   :  { %1595 = vmatpush1.bf16.msra.mxu1 %v8250_v57 }
 0x12d   :  { %1596 = vmatprep.subr.bf16.mxu1 %v14210_v35 }
 0x12e   :  { %1462 = vmatmul.mubr.bf16.gmra.mxu0 %v9356_v15  ;;  %1542 = vmatmul.mubr.bf16.gmra.mxu1 %v9578_v30 }
 0x12f   :  { %7207 = vmatprep.mubr.msk.bf16.mxu0 %vm205_vm0, %v8990_v39  ;;  %7215 = vmatprep.mubr.msk.bf16.mxu1 %vm205_vm0, %v9576_v29 }
 0x130   :  { %1597 = vmatpush1.bf16.msra.mxu1 %v8251_v37 }
 0x131   :  { %1598 = vmatprep.subr.bf16.mxu1 %v14210_v35 }
 0x134   :  { %1599 = vmatpush1.bf16.msra.mxu1 %v8252_v38 }
 0x135   :  { %1600 = vmatprep.subr.bf16.mxu1 %v14210_v35 }
 0x136   :  { %1472 = vmatmul.mubr.bf16.gmra.mxu0 %v9399_v25  ;;  %1552 = vmatmul.mubr.bf16.gmra.mxu1 %v9598_v28 }
 0x137   :  { %7208 = vmatprep.mubr.msk.bf16.mxu0 %vm205_vm0, %v9065_v58  ;;  %7216 = vmatprep.mubr.msk.bf16.mxu1 %vm205_vm0, %v9596_v60 }
 0x138   :  { %1601 = vmatpush1.bf16.msra.mxu1 %v8253_v42 }
 0x139   :  { %1602 = vmatprep.subr.bf16.mxu1 %v14210_v35 }
 0x13c   :  { %1603 = vmatpush1.bf16.msra.mxu1 %v8254_v14  ;;  %v8262_v14 = vld [vmem:[%s14075_s3 + $0x60] ss:$8 sps:$4 sm:$0xff]  }
 0x13d   :  { %1604 = vmatprep.subr.bf16.mxu1 %v14210_v35 }
 0x13e   :  { %1482 = vmatmul.mubr.bf16.gmra.mxu0 %v9442_v27  ;;  %1562 = vmatmul.mubr.bf16.gmra.mxu1 %v9618_v22 }
 0x13f   :  { %7209 = vmatprep.mubr.msk.bf16.mxu0 %vm205_vm0, %v9151_v32  ;;  %7217 = vmatprep.mubr.msk.bf16.mxu1 %vm205_vm0, %v9616_v49 }
 0x140   :  { %1605 = vmatpush1.bf16.msra.mxu1 %v8255_v19 }
 0x141   :  { %1606 = vmatprep.subr.bf16.mxu1 %v14210_v35 }
 0x142   :  { %v9713_v12 = vpop.f32.mrf.mxu0  ;;  %v9715_v52 = vpop.f32.mrf.mxu1 }
 0x143   :  { %14211 = vst [vmem:[#allocation2_spill] sm:$0xff] %v9713_v12  ;;  %14212 = vst [vmem:[#allocation3_spill] sm:$0xff] %v9715_v52  ;;  %v1822_v52 = vlaneseq }
 0x144   :  { %v9717_v43 = vpop.f32.mrf.mxu0  ;;  %v1067_v34 = vpop.f32.mrf.mxu1  ;;  %1607 = vmatpush1.bf16.msra.mxu1 %v8256_v21 }
 0x145   :  { %14213 = vst [vmem:[#allocation4_spill] sm:$0xff] %v9717_v43  ;;  %1620 = vmatprep.subr.bf16.mxu1 %v14210_v35 }
 0x146   :  { %v9723_v23 = vpop.f32.mrf.mxu1  ;;  %1492 = vmatmul.mubr.bf16.gmra.mxu0 %v9482_v3  ;;  %1572 = vmatmul.mubr.bf16.gmra.mxu1 %v9634_v8  ;;  %v9731_v13 = vpop.f32.mrf.mxu0 }
 0x147   :  { %14214 = vst [vmem:[#allocation5_spill] sm:$0xff] %v9723_v23  ;;  %7210 = vmatprep.mubr.msk.bf16.mxu0 %vm205_vm0, %v9197_v48  ;;  %7218 = vmatprep.mubr.msk.bf16.mxu1 %vm205_vm0, %v8921_v20  ;;  %14215 = vst [vmem:[#allocation6_spill] sm:$0xff] %v9731_v13 }
 0x148   :  { %v1070_v54 = vpop.f32.mrf.mxu1  ;;  %1621 = vmatpush2.bf16.msra.mxu1 %v8257_v10  ;;  %v9737_v1 = vpop.f32.mrf.mxu0  ;;  %v8267_v10 = vld [vmem:[%s14075_s3 + $0x54] ss:$8 sps:$4 sm:$0xff]  }
 0x149   :  { %1622 = vmatprep.subr.bf16.mxu1 %v14210_v35  ;;  %14216 = vst [vmem:[#allocation7_spill] sm:$0xff] %v9737_v1  ;;  %v8265_v54 = vld [vmem:[%s14075_s3 + $0x50] ss:$8 sps:$4 sm:$0xff]   ;;  %v10049_v35 = vshrl.u32 %v1822_v52, 7  ;;  %v8312_v52 = vld [vmem:[%s14075_s3 + $0x164] ss:$8 sps:$4 sm:$0xff]  }
 0x14b   :  { %14252 = vst [vmem:[#allocation43_spill] sm:$0xff] %v10049_v35 }
 0x14c   :  { %1623 = vmatpush2.bf16.msra.mxu1 %v8258_v56 }
 0x14e   :  { %v9739_v63 = vpop.f32.mrf.mxu0  ;;  %v9741_v26 = vpop.f32.mrf.mxu1  ;;  %1502 = vmatmul.mubr.bf16.gmra.mxu0 %v9498_v44  ;;  %1582 = vmatmul.mubr.bf16.gmra.mxu1 %v9650_v51 }
 0x14f   :  { %14217 = vst [vmem:[#allocation8_spill] sm:$0xff] %v9741_v26  ;;  %7211 = vmatprep.mubr.msk.bf16.mxu0 %vm205_vm0, %v9105_v6  ;;  %7219 = vmatprep.mubr.msk.bf16.mxu1 %vm205_vm0, %v8877_v11 }
 0x150   :  { %v9749_v40 = vpop.f32.mrf.mxu0  ;;  %v1075_v61 = vpop.f32.mrf.mxu1 }
 0x152   :  { %v9751_v33 = vpop.f32.mrf.mxu1  ;;  %v9753_v0 = vpop.f32.mrf.mxu0 }
 0x153   :  { %14218 = vst [vmem:[#allocation9_spill] sm:$0xff] %v9751_v33 }
 0x154   :  { %v1078_v17 = vpop.f32.mrf.mxu1  ;;  %v9761_v41 = vpop.f32.mrf.mxu0 }
 0x155   :  { %v8268_v17 = vld [vmem:[%s14075_s3 + $0x40] ss:$8 sps:$4 sm:$0xff]  }
 0x156   :  { %1512 = vmatmul.mubr.bf16.gmra.mxu0 %v9518_v46  ;;  %1625 = vmatmul.mubr.bf16.vlgmr.msra.gmra.mxu1 %v9313_v2 }
 0x157   :  { %7212 = vmatprep.mubr.msk.bf16.mxu0 %vm205_vm0, %v9516_v45  ;;  %7220 = vmatprep.mubr.msk.bf16.mxu1 %vm205_vm0, %v8910_v18 }
 0x15a   :  { %v9763_v11 = vpop.f32.mrf.mxu0  ;;  %v9765_v50 = vpop.f32.mrf.mxu1 }
 0x15b   :  { %14219 = vst [vmem:[#allocation10_spill] sm:$0xff] %v9765_v50 }
 0x15c   :  { %v9767_v53 = vpop.f32.mrf.mxu0  ;;  %v1083_v5 = vpop.f32.mrf.mxu1 }
 0x15e   :  { %v9769_v16 = vpop.f32.mrf.mxu1  ;;  %1522 = vmatmul.mubr.bf16.gmra.mxu0 %v9538_v36  ;;  %1633 = vmatmul.mubr.bf16.gmra.mxu1 %v9356_v15  ;;  %v9775_v2 = vpop.f32.mrf.mxu0 }
 0x15f   :  { %14220 = vst [vmem:[#allocation11_spill] sm:$0xff] %v9769_v16  ;;  %7221 = vmatprep.mubr.msk.bf16.mxu1 %vm205_vm0, %v8990_v39 }
 0x160   :  { %v1086_v18 = vpop.f32.mrf.mxu1  ;;  %v9777_v24 = vpop.f32.mrf.mxu0 }
 0x166   :  { %v9779_v31 = vpop.f32.mrf.mxu0  ;;  %v9781_v4 = vpop.f32.mrf.mxu1  ;;  %1641 = vmatmul.mubr.bf16.gmra.mxu1 %v9399_v25  ;;  %v8261_v25 = vld [vmem:[%s14075_s3 + $0x74] ss:$8 sps:$4 sm:$0xff]  }
 0x167   :  { %14221 = vst [vmem:[#allocation12_spill] sm:$0xff] %v9781_v4  ;;  %7222 = vmatprep.mubr.msk.bf16.mxu1 %vm205_vm0, %v9065_v58  ;;  %v8259_v58 = vld [vmem:[%s14075_s3 + $0x70] ss:$8 sps:$4 sm:$0xff]   ;;  %3920 = vmatprep.subr.bf16.mxu0 %v8261_v25 }
 0x168   :  { %v9786_v59 = vpop.f32.mrf.mxu0  ;;  %v1091_v15 = vpop.f32.mrf.mxu1  ;;  %3921 = vmatpush1.bf16.msra.mxu0 %v8259_v58 }
 0x169   :  { %v8273_v15 = vld [vmem:[%s14075_s3 + $0x34] ss:$8 sps:$4 sm:$0xff]  }
 0x16a   :  { %v9788_v7 = vpop.f32.mrf.mxu1  ;;  %v9790_v39 = vpop.f32.mrf.mxu0 }
 0x16b   :  { %14222 = vst [vmem:[#allocation13_spill] sm:$0xff] %v9788_v7 }
 0x16c   :  { %v1094_v55 = vpop.f32.mrf.mxu1  ;;  %v9795_v57 = vpop.f32.mrf.mxu0 }
 0x16e   :  { %1649 = vmatmul.mubr.bf16.gmra.mxu1 %v9442_v27 }
 0x16f   :  { %7223 = vmatprep.mubr.msk.bf16.mxu1 %vm205_vm0, %v9151_v32  ;;  %v8264_v32 = vld [vmem:[%s14075_s3 + $0x64] ss:$8 sps:$4 sm:$0xff]  }
 0x170   :  { %3922 = vmatprep.subr.bf16.mxu0 %v8264_v32 }
 0x171   :  { %3923 = vmatpush1.bf16.msra.mxu0 %v8262_v14  ;;  %v8279_v14 = vld [vmem:[%s14075_s3 + $0x14] ss:$8 sps:$4 sm:$0xff]  }
 0x172   :  { %v9803_v37 = vpop.f32.mrf.mxu0  ;;  %v9805_v38 = vpop.f32.mrf.mxu1  ;;  %3924 = vmatprep.subr.bf16.mxu0 %v8267_v10 }
 0x173   :  { %14223 = vst [vmem:[#allocation14_spill] sm:$0xff] %v9805_v38 }
 0x174   :  { %v9807_v27 = vpop.f32.mrf.mxu0  ;;  %v1099_v42 = vpop.f32.mrf.mxu1 }
 0x175   :  { %3925 = vmatpush1.bf16.msra.mxu0 %v8265_v54  ;;  %v8274_v42 = vld [vmem:[%s14075_s3 + $0x20] ss:$8 sps:$4 sm:$0xff]  }
 0x176   :  { %v9815_v19 = vpop.f32.mrf.mxu1  ;;  %1657 = vmatmul.mubr.bf16.gmra.mxu1 %v9482_v3  ;;  %v9820_v21 = vpop.f32.mrf.mxu0 }
 0x177   :  { %14224 = vst [vmem:[#allocation15_spill] sm:$0xff] %v9815_v19  ;;  %7224 = vmatprep.mubr.msk.bf16.mxu1 %vm205_vm0, %v9197_v48  ;;  %v8270_v48 = vld [vmem:[%s14075_s3 + $0x44] ss:$8 sps:$4 sm:$0xff]  }
 0x178   :  { %v1102_v34 = vpop.f32.mrf.mxu1  ;;  %v9828_v56 = vpop.f32.mrf.mxu0  ;;  %3926 = vmatprep.subr.bf16.mxu0 %v8270_v48  ;;  %v8282_v48 = vld [vmem:[%s14075_s3 + $0x4] ss:$8 sps:$4 sm:$0xff]  }
 0x179   :  { %3927 = vmatpush1.bf16.msra.mxu0 %v8268_v17 }
 0x17a   :  { %3928 = vmatprep.subr.bf16.mxu0 %v8273_v15 }
 0x17e   :  { %v9833_v3 = vpop.f32.mrf.mxu0  ;;  %v9835_v61 = vpop.f32.mrf.mxu1  ;;  %1665 = vmatmul.mubr.bf16.gmra.mxu1 %v9498_v44  ;;  %v8271_v44 = vld [vmem:[%s14075_s3 + $0x30] ss:$8 sps:$4 sm:$0xff]  }
 0x17f   :  { %14225 = vst [vmem:[#allocation16_spill] sm:$0xff] %v9835_v61  ;;  %7225 = vmatprep.mubr.msk.bf16.mxu1 %vm205_vm0, %v9105_v6  ;;  %3929 = vmatpush1.bf16.msra.mxu0 %v8271_v44  ;;  %v8276_v6 = vld [vmem:[%s14075_s3 + $0x24] ss:$8 sps:$4 sm:$0xff]  }
 0x180   :  { %v9843_v5 = vpop.f32.mrf.mxu0  ;;  %v1107_v18 = vpop.f32.mrf.mxu1  ;;  %3930 = vmatprep.subr.bf16.mxu0 %v8276_v6 }
 0x181   :  { %v8280_v18 = vld [vmem:[%s14075_s3] ss:$8 sps:$4 sm:$0xff]  }
 0x182   :  { %v9848_v55 = vpop.f32.mrf.mxu1  ;;  %v9853_v25 = vpop.f32.mrf.mxu0 }
 0x183   :  { %14226 = vst [vmem:[#allocation17_spill] sm:$0xff] %v9848_v55  ;;  %3931 = vmatpush1.bf16.msra.mxu0 %v8274_v42 }
 0x184   :  { %v1110_v58 = vpop.f32.mrf.mxu1  ;;  %v9864_v32 = vpop.f32.mrf.mxu0  ;;  %3932 = vmatprep.subr.bf16.mxu0 %v8279_v14 }
 0x185   :  { %14227 = vst [vmem:[#allocation18_spill] sm:$0xff] %v9864_v32  ;;  %v8285_v58 = vld [vmem:[%s14075_s3 + $0xf4] ss:$8 sps:$4 sm:$0xff]  }
 0x186   :  { %1673 = vmatmul.mubr.bf16.gmra.mxu1 %v9518_v46  ;;  %v8277_v46 = vld [vmem:[%s14075_s3 + $0x10] ss:$8 sps:$4 sm:$0xff]  }
 0x187   :  { %7226 = vmatprep.mubr.msk.bf16.mxu1 %vm205_vm0, %v9516_v45  ;;  %3933 = vmatpush1.bf16.msra.mxu0 %v8277_v46  ;;  %v8286_v46 = vld [vmem:[%s14075_s3 + $0xe0] ss:$8 sps:$4 sm:$0xff]  }
 0x188   :  { %3934 = vmatprep.subr.bf16.mxu0 %v8282_v48 }
 0x18a   :  { %v9869_v34 = vpop.f32.mrf.mxu0  ;;  %v9871_v10 = vpop.f32.mrf.mxu1 }
 0x18b   :  { %14228 = vst [vmem:[#allocation19_spill] sm:$0xff] %v9871_v10  ;;  %3935 = vmatpush1.bf16.msra.mxu0 %v8280_v18  ;;  %v8291_v18 = vld [vmem:[%s14075_s3 + $0xd4] ss:$8 sps:$4 sm:$0xff]  }
 0x18c   :  { %v9876_v54 = vpop.f32.mrf.mxu0  ;;  %v1115_v45 = vpop.f32.mrf.mxu1  ;;  %3936 = vmatprep.subr.bf16.mxu0 %v8285_v58 }
 0x18e   :  { %v9881_v17 = vpop.f32.mrf.mxu1  ;;  %1681 = vmatmul.mubr.bf16.gmra.mxu1 %v9538_v36  ;;  %v9889_v15 = vpop.f32.mrf.mxu0  ;;  %v8283_v36 = vld [vmem:[%s14075_s3 + $0xf0] ss:$8 sps:$4 sm:$0xff]  }
 0x18f   :  { %14229 = vst [vmem:[#allocation20_spill] sm:$0xff] %v9881_v17  ;;  %7227 = vmatprep.mubr.msk.bf16.mxu1 %vm205_vm0, %v9536_v47  ;;  %3937 = vmatpush2.bf16.msra.mxu0 %v8283_v36  ;;  %v8288_v47 = vld [vmem:[%s14075_s3 + $0xe4] ss:$8 sps:$4 sm:$0xff]   ;;  %v8298_v17 = vld [vmem:[%s14075_s3 + $0xa0] ss:$8 sps:$4 sm:$0xff]  }
 0x190   :  { %v1118_v44 = vpop.f32.mrf.mxu1  ;;  %v9897_v6 = vpop.f32.mrf.mxu0  ;;  %3938 = vmatprep.subr.bf16.mxu0 %v8288_v47  ;;  %v8292_v47 = vld [vmem:[%s14075_s3 + $0xc0] ss:$8 sps:$4 sm:$0xff]  }
 0x191   :  { %14230 = vst [vmem:[#allocation21_spill] sm:$0xff] %v9897_v6 }
 0x193   :  { %3939 = vmatpush2.bf16.msra.mxu0 %v8286_v46 }
 0x194   :  { %3940 = vmatprep.subr.bf16.mxu0 %v8291_v18 }
 0x196   :  { %v9902_v42 = vpop.f32.mrf.mxu0  ;;  %v9904_v14 = vpop.f32.mrf.mxu1  ;;  %1689 = vmatmul.mubr.bf16.gmra.mxu1 %v9558_v62  ;;  %v8289_v62 = vld [vmem:[%s14075_s3 + $0xd0] ss:$8 sps:$4 sm:$0xff]  }
 0x197   :  { %14231 = vst [vmem:[#allocation22_spill] sm:$0xff] %v9902_v42  ;;  %14232 = vst [vmem:[#allocation23_spill] sm:$0xff] %v9904_v14  ;;  %7228 = vmatprep.mubr.msk.bf16.mxu1 %vm205_vm0, %v9556_v9  ;;  %3941 = vmatpush2.bf16.msra.mxu0 %v8289_v62  ;;  %v8294_v9 = vld [vmem:[%s14075_s3 + $0xc4] ss:$8 sps:$4 sm:$0xff]  }
 0x198   :  { %v9912_v45 = vpop.f32.mrf.mxu0  ;;  %v1123_v48 = vpop.f32.mrf.mxu1  ;;  %3942 = vmatprep.subr.bf16.mxu0 %v8294_v9  ;;  %v8300_v9 = vld [vmem:[%s14075_s3 + $0xa4] ss:$8 sps:$4 sm:$0xff]  }
 0x199   :  { %14233 = vst [vmem:[#allocation24_spill] sm:$0xff] %v9912_v45  ;;  %v8297_v48 = vld [vmem:[%s14075_s3 + $0xb4] ss:$8 sps:$4 sm:$0xff]  }
 0x19a   :  { %v9917_v44 = vpop.f32.mrf.mxu1  ;;  %v9922_v58 = vpop.f32.mrf.mxu0 }
 0x19b   :  { %14234 = vst [vmem:[#allocation25_spill] sm:$0xff] %v9917_v44  ;;  %14235 = vst [vmem:[#allocation26_spill] sm:$0xff] %v9922_v58  ;;  %3943 = vmatpush2.bf16.msra.mxu0 %v8292_v47 }
 0x19c   :  { %v1126_v36 = vpop.f32.mrf.mxu1  ;;  %v9933_v46 = vpop.f32.mrf.mxu0  ;;  %3944 = vmatprep.subr.bf16.mxu0 %v8297_v48 }
 0x19d   :  { %14236 = vst [vmem:[#allocation27_spill] sm:$0xff] %v9933_v46  ;;  %v10058_v46 = vld [vmem:[%s14076_s2] sm:$0x7] }
 0x19e   :  { %1697 = vmatmul.mubr.bf16.gmra.mxu1 %v9578_v30  ;;  %v8295_v30 = vld [vmem:[%s14075_s3 + $0xb0] ss:$8 sps:$4 sm:$0xff]   ;;  %14255 = vst [vmem:[#allocation46_spill] sm:$0xff] %v10058_v46 }
 0x19f   :  { %7229 = vmatprep.mubr.msk.bf16.mxu1 %vm205_vm0, %v9576_v29  ;;  %3945 = vmatpush2.bf16.msra.mxu0 %v8295_v30  ;;  %v8303_v30 = vld [vmem:[%s14075_s3 + $0x94] ss:$8 sps:$4 sm:$0xff]  }
 0x1a0   :  { %3946 = vmatprep.subr.bf16.mxu0 %v8300_v9 }
 0x1a2   :  { %v9938_v18 = vpop.f32.mrf.mxu0  ;;  %v9940_v62 = vpop.f32.mrf.mxu1 }
 0x1a3   :  { %14237 = vst [vmem:[#allocation28_spill] sm:$0xff] %v9940_v62  ;;  %3947 = vmatpush2.bf16.msra.mxu0 %v8298_v17  ;;  %v8304_v17 = vld [vmem:[%s14075_s3 + $0x80] ss:$8 sps:$4 sm:$0xff]  }
 0x1a4   :  { %v9945_v36 = vpop.f32.mrf.mxu0  ;;  %v1131_v29 = vpop.f32.mrf.mxu1  ;;  %3948 = vmatprep.subr.bf16.mxu0 %v8303_v30 }
 0x1a6   :  { %v9950_v47 = vpop.f32.mrf.mxu1  ;;  %1705 = vmatmul.mubr.bf16.gmra.mxu1 %v9598_v28  ;;  %v9958_v48 = vpop.f32.mrf.mxu0  ;;  %v8301_v28 = vld [vmem:[%s14075_s3 + $0x90] ss:$8 sps:$4 sm:$0xff]  }
 0x1a7   :  { %14238 = vst [vmem:[#allocation29_spill] sm:$0xff] %v9950_v47  ;;  %7230 = vmatprep.mubr.msk.bf16.mxu1 %vm205_vm0, %v9596_v60  ;;  %3949 = vmatpush2.bf16.msra.mxu0 %v8301_v28  ;;  %v8306_v60 = vld [vmem:[%s14075_s3 + $0x84] ss:$8 sps:$4 sm:$0xff]  }
 0x1a8   :  { %v1134_v29 = vpop.f32.mrf.mxu1  ;;  %v9966_v10 = vpop.f32.mrf.mxu0  ;;  %3950 = vmatprep.subr.bf16.mxu0 %v8306_v60 }
 0x1ab   :  { %3951 = vmatpush2.bf16.msra.mxu0 %v8304_v17 }
 0x1ae   :  { %v9971_v9 = vpop.f32.mrf.mxu0  ;;  %v9973_v29 = vpop.f32.mrf.mxu1  ;;  %1713 = vmatmul.mubr.bf16.gmra.mxu1 %v9618_v22 }
 0x1af   :  { %14239 = vst [vmem:[#allocation30_spill] sm:$0xff] %v9973_v29  ;;  %7231 = vmatprep.mubr.msk.bf16.mxu1 %vm205_vm0, %v9616_v49 }
 0x1b0   :  { %v9981_v30 = vpop.f32.mrf.mxu0  ;;  %v1139_v28 = vpop.f32.mrf.mxu1 }
 0x1b2   :  { %v9983_v55 = vpop.f32.mrf.mxu1  ;;  %v9985_v61 = vpop.f32.mrf.mxu0 }
 0x1b3   :  { %14240 = vst [vmem:[#allocation31_spill] sm:$0xff] %v9983_v55 }
 0x1b4   :  { %v1142_v19 = vpop.f32.mrf.mxu1  ;;  %v9990_v22 = vpop.f32.mrf.mxu0 }
 0x1b6   :  { %1721 = vmatmul.mubr.bf16.gmra.mxu1 %v9634_v8 }
 0x1b7   :  { %7232 = vmatprep.mubr.msk.bf16.mxu1 %vm205_vm0, %v8921_v20 }
 0x1ba   :  { %v9992_v38 = vpop.f32.mrf.mxu0  ;;  %v9994_v49 = vpop.f32.mrf.mxu1 }
 0x1bb   :  { %14241 = vst [vmem:[#allocation32_spill] sm:$0xff] %v9994_v49 }
 0x1bc   :  { %v9996_v60 = vpop.f32.mrf.mxu0  ;;  %v1147_v28 = vpop.f32.mrf.mxu1 }
 0x1be   :  { %v9998_v17 = vpop.f32.mrf.mxu1  ;;  %1729 = vmatmul.mubr.bf16.gmra.mxu1 %v9650_v51  ;;  %v10001_v7 = vpop.f32.mrf.mxu0 }
 0x1bf   :  { %14242 = vst [vmem:[#allocation33_spill] sm:$0xff] %v9998_v17 }
 0x1c0   :  { %v1150_v19 = vpop.f32.mrf.mxu1  ;;  %v10003_v8 = vpop.f32.mrf.mxu0 }
 0x1c6   :  { %v10005_v4 = vpop.f32.mrf.mxu0  ;;  %v10007_v20 = vpop.f32.mrf.mxu1 }
 0x1c7   :  { %14243 = vst [vmem:[#allocation34_spill] sm:$0xff] %v10007_v20 }
 0x1c8   :  { %v10009_v16 = vpop.f32.mrf.mxu0  ;;  %v1155_v55 = vpop.f32.mrf.mxu1 }
 0x1ca   :  { %v10011_v49 = vpop.f32.mrf.mxu1  ;;  %v10013_v50 = vpop.f32.mrf.mxu0 }
 0x1cb   :  { %14244 = vst [vmem:[#allocation35_spill] sm:$0xff] %v10011_v49 }
 0x1cc   :  { %v1158_v28 = vpop.f32.mrf.mxu1  ;;  %v10015_v17 = vpop.f32.mrf.mxu0 }
 0x1d2   :  { %v10017_v51 = vpop.f32.mrf.mxu0  ;;  %v10019_v29 = vpop.f32.mrf.mxu1 }
 0x1d3   :  { %14245 = vst [vmem:[#allocation36_spill] sm:$0xff] %v10019_v29 }
 0x1d4   :  { %v10021_v19 = vpop.f32.mrf.mxu0  ;;  %v1163_v33 = vpop.f32.mrf.mxu1 }
 0x1d5   :  { %v8307_v33 = vld [vmem:[%s14075_s3 + $0x170] ss:$8 sps:$4 sm:$0xff]  }
 0x1d6   :  { %v10023_v47 = vpop.f32.mrf.mxu1  ;;  %v10025_v20 = vpop.f32.mrf.mxu0 }
 0x1d7   :  { %14246 = vst [vmem:[#allocation37_spill] sm:$0xff] %v10023_v47 }
 0x1d8   :  { %v1166_v26 = vpop.f32.mrf.mxu1  ;;  %v10027_v55 = vpop.f32.mrf.mxu0 }
 0x1d9   :  { %14247 = vst [vmem:[#allocation38_spill] sm:$0xff] %v10027_v55  ;;  %v8309_v26 = vld [vmem:[%s14075_s3 + $0x174] ss:$8 sps:$4 sm:$0xff]  }
 0x1da   :  { %4023 = vmatprep.subr.bf16.mxu1 %v8309_v26  ;;  %v8310_v26 = vld [vmem:[%s14075_s3 + $0x160] ss:$8 sps:$4 sm:$0xff]  }
 0x1db   :  { %4024 = vmatpush1.bf16.msra.mxu1 %v8307_v33 }
 0x1dc   :  { %4025 = vmatprep.subr.bf16.mxu1 %v8312_v52  ;;  %v14258_v52 = vsub.s32 1, %v10049_v35 }
 0x1de   :  { %v10029_v49 = vpop.f32.mrf.mxu0  ;;  %v10031_v62 = vpop.f32.mrf.mxu1 }
 0x1df   :  { %14248 = vst [vmem:[#allocation39_spill] sm:$0xff] %v10031_v62  ;;  %4026 = vmatpush1.bf16.msra.mxu1 %v8310_v26  ;;  %v10082_v26 = vrot.slane %v10058_v46, %v14258_v52 }
 0x1e0   :  { %v10033_v28 = vpop.f32.mrf.mxu0  ;;  %v1171_v23 = vpop.f32.mrf.mxu1 }
 0x1e2   :  { %v10035_v44 = vpop.f32.mrf.mxu0  ;;  %v10037_v29 = vpop.f32.mrf.mxu1 }
 0x1e3   :  { %14249 = vst [vmem:[#allocation40_spill] sm:$0xff] %v10037_v29 }
 0x1e4   :  { %v10045_v47 = vpop.f32.mrf.mxu0  ;;  %v1174_v14 = vpop.f32.mrf.mxu1 }
 0x1e5   :  { %14250 = vst [vmem:[#allocation41_spill] sm:$0xff] %v10045_v47  ;;  %v1182_v14 = vmax.f32 %v9739_v63, %v9938_v18 }
 0x1e6   :  { %v10047_v62 = vpop.f32.mrf.mxu0  ;;  %v1533_v23 = vpop.f32.mrf.mxu1 }
 0x1e7   :  { %14251 = vst [vmem:[#allocation42_spill] sm:$0xff] %v10047_v62 }
 0x1e8   :  { %v10051_v29 = vpop.f32.mrf.mxu0  ;;  %v1535_v32 = vpop.f32.mrf.mxu1 }
 0x1e9   :  { %14253 = vst [vmem:[#allocation44_spill] sm:$0xff] %v10051_v29  ;;  %v14257_v29 = vsub.s32 0, %v10049_v35 }
 0x1ea   :  { %v10053_v55 = vpop.f32.mrf.mxu0  ;;  %v1537_v1 = vpop.f32.mrf.mxu1 }
 0x1eb   :  { %14254 = vst [vmem:[#allocation45_spill] sm:$0xff] %v10053_v55  ;;  %v10075_v62 = vrot.slane %v10058_v46, %v14257_v29  ;;  %v8313_v29 = vld [vmem:[%s14075_s3 + $0x150] ss:$8 sps:$4 sm:$0xff]  }
 0x1ec   :  { %v10067_v33 = vpop.f32.mrf.mxu0  ;;  %v1539_v13 = vpop.f32.mrf.mxu1 }
 0x1ed   :  { %14256 = vst [vmem:[#allocation47_spill] sm:$0xff] %v10067_v33  ;;  %v1183_v33 = vmax.f32 %v9749_v40, %v9945_v36  ;;  %v8315_v40 = vld [vmem:[%s14075_s3 + $0x154] ss:$8 sps:$4 sm:$0xff]   ;;  %v1186_v36 = vmax.f32 %v9761_v41, %v9966_v10 }
 0x1ee   :  { %v1463_v58 = vpop.f32.mrf.mxu0  ;;  %v1543_v43 = vpop.f32.mrf.mxu1  ;;  %4027 = vmatprep.subr.bf16.mxu1 %v8315_v40 }
 0x1ef   :  { %v1743_v45 = vmax.f32 %v1463_v58, %v1533_v23  ;;  %4028 = vmatpush1.bf16.msra.mxu1 %v8313_v29 }
 0x1f0   :  { %v1465_v12 = vpop.f32.mrf.mxu0  ;;  %v1545_v42 = vpop.f32.mrf.mxu1 }
 0x1f1   :  { %v1785_v6 = vmax.f32 %v1182_v14, %v1743_v45  ;;  %v1744_v55 = vmax.f32 %v1465_v12, %v1535_v32 }
 0x1f2   :  { %v1467_v47 = vpop.f32.mrf.mxu0  ;;  %v1547_v63 = vpop.f32.mrf.mxu1 }
 0x1f3   :  { %v1843_v58 = vadd.f32 %v10075_v62, %v1785_v6  ;;  %v1786_v18 = vmax.f32 %v1183_v33, %v1744_v55  ;;  %v1746_v45 = vmax.f32 %v1467_v47, %v1537_v1  ;;  %v1185_v55 = vmax.f32 %v9753_v0, %v9958_v48 }
 0x1f4   :  { %v1469_v12 = vpop.f32.mrf.mxu0  ;;  %v10091_v32 = vpop.f32.mrf.mxu1  ;;  %v1188_v1 = vmax.f32 %v9763_v11, %v9971_v9  ;;  %v1189_v0 = vmax.f32 %v9767_v53, %v9981_v30  ;;  %v8316_v53 = vld [vmem:[%s14075_s3 + $0x140] ss:$8 sps:$4 sm:$0xff]  }
 0x1f5   :  { %v1885_v23 = vmax.f32 %v1843_v58, 0.0  ;;  %v1844_v14 = vadd.f32 %v10082_v26, %v1786_v18  ;;  %v1747_v6 = vmax.f32 %v1469_v12, %v1539_v13  ;;  %v1788_v41 = vmax.f32 %v1185_v55, %v1746_v45 }
 0x1f6   :  { %v1473_v33 = vpop.f32.mrf.mxu0  ;;  %v10098_v52 = vpop.f32.mrf.mxu1 }
 0x1f7   :  { %v10102_v47 = vmax.f32 %v1844_v14, 0.0  ;;  %v1789_v46 = vmax.f32 %v1186_v36, %v1747_v6  ;;  %v1749_v35 = vmax.f32 %v1473_v33, %v1543_v43  ;;  %v10106_v13 = vpack.c.bf16 %v1885_v23, %v1885_v23 }
 0x1f8   :  { %v1475_v10 = vpop.f32.mrf.mxu0  ;;  %v10104_v58 = vpop.f32.mrf.mxu1 }
 0x1f9   :  { %v1847_v48 = vadd.f32 %v10082_v26, %v1789_v46  ;;  %v1791_v18 = vmax.f32 %v1188_v1, %v1749_v35  ;;  %v1750_v29 = vmax.f32 %v1475_v10, %v1545_v42  ;;  %2353 = vrot.lane.b32.xlu1 %v10106_v13, %s8801_s10  ;;  %v10115_v43 = vpack.c.bf16 %v10102_v47, %v10102_v47  ;;  %v8318_v35 = vld [vmem:[%s14075_s3 + $0x144] ss:$8 sps:$4 sm:$0xff]  }
 0x1fa   :  { %v1477_v11 = vpop.f32.mrf.mxu0  ;;  %v1557_v9 = vpop.f32.mrf.mxu1  ;;  %v1846_v42 = vadd.f32 %v10075_v62, %v1788_v41  ;;  %4029 = vmatprep.subr.bf16.mxu1 %v8318_v35  ;;  %v1191_v41 = vmax.f32 %v9775_v2, %v9985_v61 }
 0x1fb   :  { %v10117_v40 = vmax.f32 %v1847_v48, 0.0  ;;  %v1849_v45 = vadd.f32 %v10075_v62, %v1791_v18  ;;  %v1792_v12 = vmax.f32 %v1189_v0, %v1750_v29  ;;  %2355 = vrot.lane.b32.xlu0 %v10115_v43, %s8801_s10  ;;  %v1752_v14 = vmax.f32 %v1477_v11, %v1547_v63  ;;  %4030 = vmatpush1.bf16.msra.mxu1 %v8316_v53  ;;  %v8319_v63 = vld [vmem:[%s14075_s3 + $0x130] ss:$8 sps:$4 sm:$0xff]   ;;  %v8321_v0 = vld [vmem:[%s14075_s3 + $0x134] ss:$8 sps:$4 sm:$0xff]  }
 0x1fc   :  { %v1479_v46 = vpop.f32.mrf.mxu0  ;;  %v10129_v30 = vpop.f32.mrf.mxu1  ;;  %v10151_v48 = vmax.f32 %v1846_v42, 0.0  ;;  %4031 = vmatprep.subr.bf16.mxu1 %v8321_v0  ;;  %v1197_v53 = vmax.f32 %v9790_v39, %v10001_v7  ;;  %v1195_v7 = vmax.f32 %v9786_v59, %v9996_v60 }
 0x1fd   :  { %v10131_v36 = vmax.f32 %v1849_v45, 0.0  ;;  %v10135_v6 = vpack.c.bf16 %v10117_v40, %v10117_v40  ;;  %v1850_v55 = vadd.f32 %v10082_v26, %v1792_v12  ;;  %2106 = vrot.lane.b32.xlu1 %v10106_v13, %s8800_s9  ;;  %v1794_v11 = vmax.f32 %v1191_v41, %v1752_v14 }
 0x1fe   :  { %v1483_v33 = vpop.f32.mrf.mxu0  ;;  %v1563_v1 = vpop.f32.mrf.mxu1  ;;  %v1753_v61 = vmax.f32 %v1479_v46, %v10091_v32  ;;  %v1192_v14 = vmax.f32 %v9777_v24, %v9990_v22  ;;  %v1194_v32 = vmax.f32 %v9779_v31, %v9992_v38  ;;  %v8322_v31 = vld [vmem:[%s14075_s3 + $0x120] ss:$8 sps:$4 sm:$0xff]   ;;  %v8324_v38 = vld [vmem:[%s14075_s3 + $0x124] ss:$8 sps:$4 sm:$0xff]  }
 0x1ff   :  { %14259 = vst [vmem:[#allocation48_spill] sm:$0xff] %v10135_v6  ;;  %v10143_v10 = vpack.c.bf16 %v10131_v36, %v1885_v23  ;;  %2059 = vrot.lane.b32.xlu0 %v10135_v6, %s8801_s10  ;;  %v10155_v2 = vmax.f32 %v1850_v55, 0.0  ;;  %v1755_v23 = vmax.f32 %v1483_v33, %v10098_v52  ;;  %4032 = vmatpush1.bf16.msra.mxu1 %v8319_v63 }
 0x200   :  { %v1485_v18 = vpop.f32.mrf.mxu0  ;;  %v1565_v29 = vpop.f32.mrf.mxu1  ;;  %v10172_v52 = vpack.c.bf16 %v10151_v48, %v10151_v48  ;;  %v1852_v39 = vadd.f32 %v10075_v62, %v1794_v11  ;;  %v1795_v22 = vmax.f32 %v1192_v14, %v1753_v61  ;;  %4033 = vmatprep.subr.bf16.mxu1 %v8324_v38  ;;  %v1200_v63 = vmax.f32 %v9803_v37, %v10005_v4 }
 0x201   :  { %14260 = vst [vmem:[#allocation49_spill] sm:$0xff] %v10143_v10  ;;  %2108 = vrot.lane.b32.xlu1 %v10115_v43, %s8800_s9  ;;  %v1756_v35 = vmax.f32 %v1485_v18, %v10104_v58  ;;  %v1797_v58 = vmax.f32 %v1194_v32, %v1755_v23  ;;  %v10195_v59 = vpack.c.bf16 %v10155_v2, %v10155_v2 }
 0x202   :  { %v1487_v45 = vpop.f32.mrf.mxu0  ;;  %v10161_v12 = vpop.f32.mrf.mxu1  ;;  %14261 = vst [vmem:[#allocation50_spill] sm:$0xff] %v10172_v52  ;;  %v1201_v61 = vmax.f32 %v9807_v27, %v10009_v16  ;;  %v1894_v23 = vmax.f32 %v1852_v39, 0.0 }
 0x203   :  { %v1758_v42 = vmax.f32 %v1487_v45, %v1557_v9  ;;  %2165 = vrot.lane.b32.xlu0 %v10135_v6, %s8802_s25  ;;  %v1798_v60 = vmax.f32 %v1195_v7, %v1756_v35  ;;  %4034 = vmatpush1.bf16.msra.mxu1 %v8322_v31  ;;  %v1853_v35 = vadd.f32 %v10082_v26, %v1795_v22  ;;  %v8327_v22 = vld [vmem:[%s14075_s3 + $0x114] ss:$8 sps:$4 sm:$0xff]  }
 0x204   :  { %v10176_v46 = vpop.f32.mrf.mxu0  ;;  %v10178_v55 = vpop.f32.mrf.mxu1  ;;  %v1203_v31 = vmax.f32 %v9820_v21, %v10013_v50  ;;  %v10243_v21 = vpack.c.bf16 %v1894_v23, %v1894_v23  ;;  %4035 = vmatprep.subr.bf16.mxu1 %v8327_v22 }
 0x205   :  { %v1800_v24 = vmax.f32 %v1197_v53, %v1758_v42  ;;  %2057 = vrot.lane.b32.xlu1 %v10172_v52, %s8801_s10  ;;  %v1855_v42 = vadd.f32 %v10075_v62, %v1797_v58  ;;  %v1856_v14 = vadd.f32 %v10082_v26, %v1798_v60  ;;  %v10237_v58 = vmax.f32 %v1853_v35, 0.0 }
 0x206   :  { %v1493_v9 = vpop.f32.mrf.mxu0  ;;  %v10191_v33 = vpop.f32.mrf.mxu1 }
 0x207   :  { %v1858_v41 = vadd.f32 %v10075_v62, %v1800_v24  ;;  %v1761_v0 = vmax.f32 %v1493_v9, %v1563_v1  ;;  %2361 = vrot.lane.b32.xlu0 %v10195_v59, %s8801_s10  ;;  %v10226_v24 = vpack.c.bf16 %v10131_v36, %v10131_v36  ;;  %v1897_v9 = vmax.f32 %v1855_v42, 0.0  ;;  %v8328_v42 = vld [vmem:[%s14075_s3 + $0x100] ss:$8 sps:$4 sm:$0xff]  }
 0x208   :  { %v1495_v18 = vpop.f32.mrf.mxu0  ;;  %v10202_v11 = vpop.f32.mrf.mxu1 }
 0x209   :  { %v10206_v45 = vmax.f32 %v1858_v41, 0.0  ;;  %v1762_v53 = vmax.f32 %v1495_v18, %v1565_v29  ;;  %v1803_v4 = vmax.f32 %v1200_v63, %v1761_v0  ;;  %2163 = vrot.lane.b32.xlu1 %v10172_v52, %s8802_s25  ;;  %v8330_v41 = vld [vmem:[%s14075_s3 + $0x104] ss:$8 sps:$4 sm:$0xff]   ;;  %v1898_v63 = vmax.f32 %v1856_v14, 0.0 }
 0x20a   :  { %v1497_v37 = vpop.f32.mrf.mxu0  ;;  %v1577_v1 = vpop.f32.mrf.mxu1  ;;  %v1759_v18 = vmax.f32 %v10176_v46, %v10129_v30  ;;  %v1198_v30 = vmax.f32 %v9795_v57, %v10003_v8 }
 0x20b   :  { %v10214_v32 = vpack.c.bf16 %v10206_v45, %v1894_v23  ;;  %v1804_v16 = vmax.f32 %v1201_v61, %v1762_v53  ;;  %v1861_v27 = vadd.f32 %v10075_v62, %v1803_v4  ;;  %v1764_v29 = vmax.f32 %v1497_v37, %v10161_v12  ;;  %2114 = vrot.lane.b32.xlu0 %v10195_v59, %s8800_s9  ;;  %v8325_v12 = vld [vmem:[%s14075_s3 + $0x110] ss:$8 sps:$4 sm:$0xff]  }
 0x20c   :  { %v10220_v7 = vpop.f32.mrf.mxu0  ;;  %v10222_v39 = vpop.f32.mrf.mxu1  ;;  %4036 = vmatpush1.bf16.msra.mxu1 %v8325_v12 }
 0x20d   :  { %14262 = vst [vmem:[#allocation51_spill] sm:$0xff] %v10214_v32  ;;  %v1862_v38 = vadd.f32 %v10082_v26, %v1804_v16  ;;  %v10239_v60 = vmax.f32 %v1861_v27, 0.0  ;;  %2359 = vrot.lane.b32.xlu1 %v10226_v24, %s8801_s10  ;;  %v1806_v53 = vmax.f32 %v1203_v31, %v1764_v29  ;;  %4037 = vmatprep.subr.bf16.mxu1 %v8330_v41 }
 0x20e   :  { %v1503_v36 = vpop.f32.mrf.mxu0  ;;  %v1583_v50 = vpop.f32.mrf.mxu1  ;;  %v10270_v16 = vpack.c.bf16 %v10237_v58, %v10237_v58  ;;  %v1206_v27 = vmax.f32 %v9833_v3, %v10017_v51  ;;  %v1209_v29 = vmax.f32 %v9853_v25, %v10025_v20  ;;  %v1801_v31 = vmax.f32 %v1198_v30, %v1759_v18  ;;  %v8331_v3 = vld [vmem:[%s14075_s3 + $0x1f0] ss:$8 sps:$4 sm:$0xff]   ;;  %v8333_v25 = vld [vmem:[%s14075_s3 + $0x1f4] ss:$8 sps:$4 sm:$0xff]  }
 0x20f   :  { %v10248_v0 = vmax.f32 %v1862_v38, 0.0  ;;  %v10253_v61 = vpack.c.bf16 %v10239_v60, %v1897_v9  ;;  %2169 = vrot.lane.b32.xlu0 %v10243_v21, %s8802_s25  ;;  %v1767_v37 = vmax.f32 %v1503_v36, %v10191_v33  ;;  %v1864_v38 = vadd.f32 %v10075_v62, %v1806_v53 }
 0x210   :  { %v1505_v23 = vpop.f32.mrf.mxu0  ;;  %v1585_v35 = vpop.f32.mrf.mxu1  ;;  %4038 = vmatpush1.bf16.msra.mxu1 %v8328_v42  ;;  %v1207_v20 = vmax.f32 %v9843_v5, %v10021_v19  ;;  %v10290_v51 = vpack.c.bf16 %v1898_v63, %v1898_v63  ;;  %v1212_v41 = vmax.f32 %v9869_v34, %v10029_v49  ;;  %v1859_v42 = vadd.f32 %v10082_v26, %v1801_v31 }
 0x211   :  { %14263 = vst [vmem:[#allocation52_spill] sm:$0xff] %v10253_v61  ;;  %v10261_v4 = vpack.c.bf16 %v10248_v0, %v1898_v63  ;;  %2063 = vrot.lane.b32.xlu1 %v10243_v21, %s8801_s10  ;;  %v1768_v57 = vmax.f32 %v1505_v23, %v10202_v11  ;;  %v1809_v22 = vmax.f32 %v1206_v27, %v1767_v37  ;;  %v10302_v5 = vmax.f32 %v1864_v38, 0.0 }
 0x212   :  { %v1507_v46 = vpop.f32.mrf.mxu0  ;;  %v1587_v14 = vpop.f32.mrf.mxu1  ;;  %4039 = vmatprep.subr.bf16.mxu1 %v8333_v25  ;;  %v10299_v23 = vpack.c.bf16 %v1897_v9, %v1897_v9  ;;  %v1204_v9 = vmax.f32 %v9828_v56, %v10015_v17  ;;  %v1215_v27 = vmax.f32 %v9889_v15, %v10035_v44  ;;  %v10321_v31 = vpack.c.bf16 %v10206_v45, %v10206_v45  ;;  %v14269_v25 = vld [vmem:[#allocation22_spill] sm:$0xff] }
 0x213   :  { %14264 = vst [vmem:[#allocation53_spill] sm:$0xff] %v10261_v4  ;;  %v1770_v33 = vmax.f32 %v1507_v46, %v1577_v1  ;;  %2065 = vrot.lane.b32.xlu0 %v10270_v16, %s8801_s10  ;;  %v1810_v19 = vmax.f32 %v1207_v20, %v1768_v57  ;;  %v1867_v30 = vadd.f32 %v10075_v62, %v1809_v22  ;;  %v10330_v15 = vmax.f32 %v1859_v42, 0.0  ;;  %v14266_v57 = vld [vmem:[#allocation41_spill] sm:$0xff]  ;;  %v14270_v20 = vld [vmem:[#allocation2_spill] sm:$0xff] }
 0x214   :  { %v10280_v8 = vpop.f32.mrf.mxu0  ;;  %v1589_v12 = vpop.f32.mrf.mxu1  ;;  %4040 = vmatpush2.bf16.msra.mxu1 %v8331_v3  ;;  %v1213_v46 = vmax.f32 %v9876_v54, %v10033_v28  ;;  %v14267_v22 = vld [vmem:[#allocation21_spill] sm:$0xff]  ;;  %v8334_v42 = vld [vmem:[%s14075_s3 + $0x1e0] ss:$8 sps:$4 sm:$0xff]  }
 0x215   :  { %v1812_v36 = vmax.f32 %v1209_v29, %v1770_v33  ;;  %2171 = vrot.lane.b32.xlu1 %v10270_v16, %s8802_s25  ;;  %v1868_v44 = vadd.f32 %v10082_v26, %v1810_v19 }
 0x216   :  { %v1513_v11 = vpop.f32.mrf.mxu0  ;;  %v10294_v1 = vpop.f32.mrf.mxu1 }
 0x217   :  { %v1870_v18 = vadd.f32 %v10075_v62, %v1812_v36  ;;  %v1773_v53 = vmax.f32 %v1513_v11, %v1583_v50  ;;  %2367 = vrot.lane.b32.xlu0 %v10290_v51, %s8801_s10  ;;  %v1176_v11 = vmax.f32 %v14270_v20, %v14269_v25  ;;  %v14279_v20 = vld [vmem:[#allocation26_spill] sm:$0xff] }
 0x218   :  { %v1515_v63 = vpop.f32.mrf.mxu0  ;;  %v1628_v37 = vpop.f32.mrf.mxu1 }
 0x219   :  { %v10307_v34 = vmax.f32 %v1870_v18, 0.0  ;;  %v1815_v49 = vmax.f32 %v1212_v41, %v1773_v53  ;;  %v1774_v50 = vmax.f32 %v1515_v63, %v1585_v35  ;;  %2365 = vrot.lane.b32.xlu1 %v10299_v23, %s8801_s10  ;;  %v1765_v35 = vmax.f32 %v10220_v7, %v10178_v55  ;;  %v14271_v37 = vld [vmem:[#allocation42_spill] sm:$0xff] }
 0x21a   :  { %v1517_v29 = vpop.f32.mrf.mxu0  ;;  %v10317_v33 = vpop.f32.mrf.mxu1  ;;  %v1216_v55 = vmax.f32 %v14267_v22, %v14266_v57  ;;  %v10337_v7 = vmax.f32 %v1867_v30, 0.0 }
 0x21b   :  { %v10327_v56 = vpack.c.bf16 %v10307_v34, %v10302_v5  ;;  %v1873_v54 = vadd.f32 %v10075_v62, %v1815_v49  ;;  %v1816_v17 = vmax.f32 %v1213_v46, %v1774_v50  ;;  %v1776_v28 = vmax.f32 %v1517_v29, %v1587_v14  ;;  %2120 = vrot.lane.b32.xlu0 %v10290_v51, %s8800_s9 }
 0x21c   :  { %v1519_v45 = vpop.f32.mrf.mxu0  ;;  %v1631_v38 = vpop.f32.mrf.mxu1  ;;  %v1807_v19 = vmax.f32 %v1204_v9, %v1765_v35  ;;  %v10359_v50 = vmax.f32 %v1868_v44, 0.0  ;;  %v10368_v9 = vpack.c.bf16 %v10330_v15, %v10330_v15 }
 0x21d   :  { %14265 = vst [vmem:[#allocation54_spill] sm:$0xff] %v10327_v56  ;;  %v10339_v36 = vmax.f32 %v1873_v54, 0.0  ;;  %v1777_v3 = vmax.f32 %v1519_v45, %v1589_v12  ;;  %v1874_v41 = vadd.f32 %v10082_v26, %v1816_v17  ;;  %v1818_v18 = vmax.f32 %v1215_v27, %v1776_v28  ;;  %2069 = vrot.lane.b32.xlu1 %v10321_v31, %s8801_s10  ;;  %v8336_v12 = vld [vmem:[%s14075_s3 + $0x1e4] ss:$8 sps:$4 sm:$0xff]   ;;  %v14274_v28 = vld [vmem:[#allocation44_spill] sm:$0xff] }
 0x21e   :  { %v1523_v14 = vpop.f32.mrf.mxu0  ;;  %v10346_v53 = vpop.f32.mrf.mxu1  ;;  %4041 = vmatprep.subr.bf16.mxu1 %v8336_v12  ;;  %v14275_v45 = vld [vmem:[#allocation24_spill] sm:$0xff] }
 0x21f   :  { %14268 = vst [vmem:[#allocation41_spill] sm:$0xff] %v10339_v36  ;;  %v1819_v63 = vmax.f32 %v1216_v55, %v1777_v3  ;;  %v1737_v30 = vmax.f32 %v14271_v37, %v1523_v14  ;;  %v10357_v49 = vpack.c.bf16 %v10339_v36, %v10337_v7  ;;  %v10361_v46 = vmax.f32 %v1874_v41, 0.0  ;;  %2175 = vrot.lane.b32.xlu0 %v10321_v31, %s8802_s25  ;;  %v14276_v38 = vld [vmem:[#allocation4_spill] sm:$0xff] }
 0x220   :  { %v1876_v27 = vadd.f32 %v10075_v62, %v1818_v18  ;;  %v1525_v29 = vpop.f32.mrf.mxu0  ;;  %v1636_v54 = vpop.f32.mrf.mxu1  ;;  %4042 = vmatpush2.bf16.msra.mxu1 %v8334_v42  ;;  %v1177_v57 = vmax.f32 %v14276_v38, %v14275_v45  ;;  %v1865_v18 = vadd.f32 %v10082_v26, %v1807_v19  ;;  %v14282_v42 = vld [vmem:[#allocation45_spill] sm:$0xff]  ;;  %v14283_v38 = vld [vmem:[#allocation27_spill] sm:$0xff] }
 0x221   :  { %14272 = vst [vmem:[#allocation21_spill] sm:$0xff] %v10357_v49  ;;  %14273 = vst [vmem:[#allocation22_spill] sm:$0xff] %v10361_v46  ;;  %v1877_v35 = vadd.f32 %v10082_v26, %v1819_v63  ;;  %v1779_v17 = vmax.f32 %v1176_v11, %v1737_v30  ;;  %v1738_v44 = vmax.f32 %v14274_v28, %v1525_v29  ;;  %2177 = vrot.lane.b32.xlu1 %v10368_v9, %s8802_s25  ;;  %v14280_v11 = vld [vmem:[#allocation6_spill] sm:$0xff]  ;;  %v8337_v63 = vld [vmem:[%s14075_s3 + $0x1d0] ss:$8 sps:$4 sm:$0xff]  }
 0x222   :  { %v10374_v22 = vmax.f32 %v1876_v27, 0.0  ;;  %v1527_v55 = vpop.f32.mrf.mxu0  ;;  %v10378_v3 = vpop.f32.mrf.mxu1  ;;  %v10382_v25 = vpack.c.bf16 %v10361_v46, %v10359_v50  ;;  %v1179_v41 = vmax.f32 %v14280_v11, %v14279_v20  ;;  %v8339_v37 = vld [vmem:[%s14075_s3 + $0x1d4] ss:$8 sps:$4 sm:$0xff]   ;;  %v10398_v30 = vpack.c.bf16 %v10239_v60, %v10239_v60  ;;  %v8378_v49 = vld [vmem:[%s14075_s3 + $0x184] ss:$8 sps:$4 sm:$0xff]  }
 0x223   :  { %v10387_v14 = vmax.f32 %v1877_v35, 0.0  ;;  %v1740_v12 = vmax.f32 %v14282_v42, %v1527_v55  ;;  %v1780_v27 = vmax.f32 %v1177_v57, %v1738_v44  ;;  %2071 = vrot.lane.b32.xlu0 %v10368_v9, %s8801_s10  ;;  %v1837_v28 = vadd.f32 %v10075_v62, %v1779_v17  ;;  %4043 = vmatprep.subr.bf16.mxu1 %v8339_v37  ;;  %v14284_v55 = vld [vmem:[#allocation7_spill] sm:$0xff] }
 0x224   :  { %14277 = vst [vmem:[#allocation2_spill] sm:$0xff] %v10374_v22  ;;  %14278 = vst [vmem:[#allocation42_spill] sm:$0xff] %v10382_v25  ;;  %v1529_v19 = vpop.f32.mrf.mxu0  ;;  %v1639_v29 = vpop.f32.mrf.mxu1  ;;  %v1180_v60 = vmax.f32 %v14284_v55, %v14283_v38  ;;  %v10411_v44 = vpack.c.bf16 %v10248_v0, %v10248_v0  ;;  %v14285_v57 = vld [vmem:[#allocation47_spill] sm:$0xff]  ;;  %4044 = vmatpush2.bf16.msra.mxu1 %v8337_v63  ;;  %v10418_v42 = vmax.f32 %v1865_v18, 0.0 }
 0x225   :  { %14281 = vst [vmem:[#allocation44_spill] sm:$0xff] %v10387_v14  ;;  %v1782_v45 = vmax.f32 %v1179_v41, %v1740_v12  ;;  %v1741_v20 = vmax.f32 %v14285_v57, %v1529_v19  ;;  %2371 = vrot.lane.b32.xlu1 %v10398_v30, %s8801_s10  ;;  %v8342_v41 = vld [vmem:[%s14075_s3 + $0x274] ss:$8 sps:$4 sm:$0xff]   ;;  %v10426_v0 = vpack.c.bf16 %v10302_v5, %v10302_v5  ;;  %v10433_v63 = vmax.f32 %v1837_v28, 0.0  ;;  %v14286_v29 = vld [vmem:[#allocation38_spill] sm:$0xff] }
 0x226   :  { %v10416_v11 = vpop.f32.mrf.mxu1  ;;  %v1771_v12 = vmax.f32 %v10280_v8, %v10222_v39  ;;  %v1838_v37 = vadd.f32 %v10082_v26, %v1780_v27  ;;  %4126 = vmatprep.subr.bf16.mxu0 %v8342_v41  ;;  %v8343_v28 = vld [vmem:[%s14075_s3 + $0x1c0] ss:$8 sps:$4 sm:$0xff]   ;;  %v8345_v55 = vld [vmem:[%s14075_s3 + $0x1c4] ss:$8 sps:$4 sm:$0xff]  }
 0x227   :  { %v1840_v17 = vadd.f32 %v10075_v62, %v1782_v45  ;;  %v1783_v19 = vmax.f32 %v1180_v60, %v1741_v20  ;;  %2373 = vrot.lane.b32.xlu0 %v10411_v44, %s8801_s10  ;;  %v14287_v45 = vld [vmem:[#allocation18_spill] sm:$0xff]  ;;  %4045 = vmatprep.subr.bf16.mxu1 %v8345_v55  ;;  %v8095_v54 = vpack.c.bf16 %v10433_v63, %v10433_v63 }
 0x228   :  { %v1644_v18 = vpop.f32.mrf.mxu1  ;;  %v1210_v38 = vmax.f32 %v14287_v45, %v14286_v29  ;;  %v10456_v57 = vmax.f32 %v1838_v37, 0.0  ;;  %4046 = vmatpush2.bf16.msra.mxu1 %v8343_v28  ;;  %v10474_v37 = vpack.c.bf16 %v10337_v7, %v10337_v7  ;;  %v14289_v29 = vmov 0   ;;  %v8354_v28 = vld [vmem:[%s14075_s3 + $0x1b4] ss:$8 sps:$4 sm:$0xff]  }
 0x229   :  { %v10435_v62 = vmax.f32 %v1840_v17, 0.0  ;;  %v1841_v5 = vadd.f32 %v10082_v26, %v1783_v19  ;;  %2075 = vrot.lane.b32.xlu1 %v10426_v0, %s8801_s10  ;;  %v10490_v7 = vpack.c.bf16 %v10155_v2, %v10102_v47  ;;  %v8352_v47 = vld [vmem:[%s14075_s3 + $0x1b0] ss:$8 sps:$4 sm:$0xff]   ;;  %v10509_v2 = vpack.c.bf16 %v10307_v34, %v10307_v34  ;;  %4047 = vmatprep.subr.bf16.mxu1 %v8354_v28  ;;  %v8358_v28 = vld [vmem:[%s14075_s3 + $0x1a0] ss:$8 sps:$4 sm:$0xff]  }
 0x22a   :  { %v10442_v39 = vpop.f32.mrf.mxu1  ;;  %v1813_v60 = vmax.f32 %v1210_v38, %v1771_v12  ;;  %v10579_v35 = vcombine.low %v14289_v29, %v14289_v29 }
 0x22b   :  { %v1921_v8 = vpack.c.bf16 %v10435_v62, %v10433_v63  ;;  %v10448_v27 = vpack.c.bf16 %v10151_v48, %v10435_v62  ;;  %v10458_v20 = vmax.f32 %v1841_v5, 0.0  ;;  %2126 = vrot.lane.b32.xlu0 %v10411_v44, %s8800_s9  ;;  %v10464_v48 = vpack.c.bf16 %v10418_v42, %v10418_v42  ;;  %v8340_v5 = vld [vmem:[%s14075_s3 + $0x270] ss:$8 sps:$4 sm:$0xff]   ;;  %14292 = vst [vmem:[#allocation6_spill] sm:$0xff] %v10490_v7 }
 0x22c   :  { %v1647_v17 = vpop.f32.mrf.mxu1  ;;  %v1871_v19 = vadd.f32 %v10082_v26, %v1813_v60  ;;  %4048 = vmatpush2.bf16.msra.mxu1 %v8352_v47  ;;  %14293 = vst [vmem:[#allocation45_spill] sm:$0xff] %v10579_v35  ;;  %v8367_v63 = vld [vmem:[%s14075_s3 + $0x190] ss:$8 sps:$4 sm:$0xff]  }
 0x22d   :  { %14288 = vst [vmem:[#allocation24_spill] sm:$0xff] %v10448_v27  ;;  %2183 = vrot.lane.b32.xlu1 %v10464_v48, %s8802_s25  ;;  %v1922_v12 = vpack.c.bf16 %v10458_v20, %v10456_v57  ;;  %v10483_v38 = vcombine.low %v14289_v29, %v1921_v8  ;;  %v8348_v8 = vld [vmem:[%s14075_s3 + $0x264] ss:$8 sps:$4 sm:$0xff]   ;;  %v8346_v17 = vld [vmem:[%s14075_s3 + $0x260] ss:$8 sps:$4 sm:$0xff]  }
 0x22e   :  { %v10468_v41 = vpop.f32.mrf.mxu1  ;;  %v10511_v55 = vmax.f32 %v1871_v19, 0.0  ;;  %v8351_v19 = vld [vmem:[%s14075_s3 + $0x254] ss:$8 sps:$4 sm:$0xff]  }
 0x22f   :  { %2181 = vrot.lane.b32.xlu0 %v10426_v0, %s8802_s25  ;;  %v10480_v45 = vcombine.low %v14289_v29, %v1922_v12  ;;  %14291 = vst [vmem:[#allocation26_spill] sm:$0xff] %v10483_v38  ;;  %v10521_v12 = vpack.c.bf16 %v10359_v50, %v10359_v50  ;;  %v8360_v50 = vld [vmem:[%s14075_s3 + $0x1a4] ss:$8 sps:$4 sm:$0xff]  }
 0x230   :  { %v1652_v18 = vpop.f32.mrf.mxu1  ;;  %4049 = vmatprep.subr.bf16.mxu1 %v8360_v50 }
 0x231   :  { %14290 = vst [vmem:[#allocation4_spill] sm:$0xff] %v10480_v45  ;;  %2377 = vrot.lane.b32.xlu1 %v10474_v37, %s8801_s10  ;;  %3952 = vmatprep.mubr.bf16.mxu0 %v10480_v45  ;;  %v8096_v45 = vpack.c.bf16 %v10456_v57, %v10456_v57  ;;  %v10615_v57 = vpack.c.bf16 %v10361_v46, %v10361_v46 }
 0x232   :  { %v10495_v26 = vpop.f32.mrf.mxu1  ;;  %3953 = vmatmul.mubr.bf16.vlgmr.msra.gmra.mxu0 %v10483_v38  ;;  %4050 = vmatpush2.bf16.msra.mxu1 %v8358_v28  ;;  %v8369_v28 = vld [vmem:[%s14075_s3 + $0x194] ss:$8 sps:$4 sm:$0xff]   ;;  %v8366_v38 = vld [vmem:[%s14075_s3 + $0x224] ss:$8 sps:$4 sm:$0xff]  }
 0x233   :  { %2077 = vrot.lane.b32.xlu0 %v10464_v48, %s8801_s10  ;;  %3962 = vmatprep.mubr.bf16.mxu0 %v10490_v7 }
 0x234   :  { %v1655_v60 = vpop.f32.mrf.mxu1  ;;  %4127 = vmatpush1.bf16.msra.mxu0 %v8340_v5  ;;  %v10534_v5 = vpack.c.bf16 %v10511_v55, %v10511_v55  ;;  %4051 = vmatprep.subr.bf16.mxu1 %v8369_v28 }
 0x235   :  { %2081 = vrot.lane.b32.xlu1 %v10509_v2, %s8801_s10  ;;  %4128 = vmatprep.subr.bf16.mxu0 %v8348_v8  ;;  %v8349_v8 = vld [vmem:[%s14075_s3 + $0x250] ss:$8 sps:$4 sm:$0xff]   ;;  %v8357_v60 = vld [vmem:[%s14075_s3 + $0x244] ss:$8 sps:$4 sm:$0xff]  }
 0x236   :  { %v10525_v34 = vpop.f32.mrf.mxu1  ;;  %4052 = vmatpush2.bf16.msra.mxu1 %v8367_v63  ;;  %v8376_v63 = vld [vmem:[%s14075_s3 + $0x180] ss:$8 sps:$4 sm:$0xff]  }
 0x237   :  { %2379 = vrot.lane.b32.xlu0 %v10521_v12, %s8801_s10  ;;  %4053 = vmatprep.subr.bf16.mxu1 %v8378_v49  ;;  %v10638_v49 = vsel %vm2777_vm3, %v10474_v37, %v10579_v35 }
 0x238   :  { %v1660_v18 = vpop.f32.mrf.mxu1  ;;  %4129 = vmatpush1.bf16.msra.mxu0 %v8346_v17  ;;  %14295 = vst [vmem:[#allocation7_spill] sm:$0xff] %v10638_v49 }
 0x239   :  { %2189 = vrot.lane.b32.xlu1 %v10534_v5, %s8802_s25  ;;  %4130 = vmatprep.subr.bf16.mxu0 %v8351_v19  ;;  %v10558_v18 = vpack.c.bf16 %v10339_v36, %v10339_v36  ;;  %v8355_v19 = vld [vmem:[%s14075_s3 + $0x240] ss:$8 sps:$4 sm:$0xff]  }
 0x23a   :  { %v10547_v47 = vpop.f32.mrf.mxu1  ;;  %3963 = vmatmul.mubr.bf16.gmra.mxu0 %v10143_v10  ;;  %v8364_v36 = vld [vmem:[%s14075_s3 + $0x220] ss:$8 sps:$4 sm:$0xff]   ;;  %4054 = vmatpush2.bf16.msra.mxu1 %v8376_v63  ;;  %v8375_v63 = vld [vmem:[%s14075_s3 + $0x204] ss:$8 sps:$4 sm:$0xff]  }
 0x23b   :  { %2132 = vrot.lane.b32.xlu0 %v10521_v12, %s8800_s9  ;;  %3972 = vmatprep.mubr.bf16.mxu0 %v10261_v4 }
 0x23c   :  { %v1663_v17 = vpop.f32.mrf.mxu1  ;;  %4131 = vmatpush1.bf16.msra.mxu0 %v8349_v8 }
 0x23d   :  { %2383 = vrot.lane.b32.xlu1 %v10558_v18, %s8801_s10  ;;  %4132 = vmatprep.subr.bf16.mxu0 %v8357_v60  ;;  %v8363_v17 = vld [vmem:[%s14075_s3 + $0x234] ss:$8 sps:$4 sm:$0xff]   ;;  %v8361_v60 = vld [vmem:[%s14075_s3 + $0x230] ss:$8 sps:$4 sm:$0xff]  }
 0x23e   :  { %v10565_v50 = vpop.f32.mrf.mxu1 }
 0x23f   :  { %2187 = vrot.lane.b32.xlu0 %v10509_v2, %s8802_s25 }
 0x240   :  { %v1668_v8 = vpop.f32.mrf.mxu1  ;;  %4133 = vmatpush1.bf16.msra.mxu0 %v8355_v19  ;;  %v10597_v19 = vsel %vm2777_vm3, %v10521_v12, %v10579_v35  ;;  %v10652_v35 = vpack.c.bf16 %v10435_v62, %v10435_v62 }
 0x241   :  { %2347 = vrot.lane.b32.xlu1 %v8095_v54, %s8801_s10  ;;  %4134 = vmatprep.subr.bf16.mxu0 %v8363_v17  ;;  %14294 = vst [vmem:[#allocation27_spill] sm:$0xff] %v10597_v19 }
 0x242   :  { %v10588_v8 = vpop.f32.mrf.mxu1  ;;  %3973 = vmatmul.mubr.bf16.gmra.mxu0 %v10253_v61 }
 0x243   :  { %2083 = vrot.lane.b32.xlu0 %v10534_v5, %s8801_s10  ;;  %3982 = vmatprep.mubr.bf16.mxu0 %v10597_v19  ;;  %v8370_v19 = vld [vmem:[%s14075_s3 + $0x210] ss:$8 sps:$4 sm:$0xff]  }
 0x244   :  { %v1671_v17 = vpop.f32.mrf.mxu1  ;;  %4135 = vmatpush1.bf16.msra.mxu0 %v8361_v60  ;;  %v8372_v60 = vld [vmem:[%s14075_s3 + $0x214] ss:$8 sps:$4 sm:$0xff]  }
 0x245   :  { %2102 = vrot.lane.b32.xlu1 %v8096_v45, %s8800_s9  ;;  %4136 = vmatprep.subr.bf16.mxu0 %v8366_v38  ;;  %v8384_v38 = vld [vmem:[%s14075_s3 + $0x374] ss:$8 sps:$4 sm:$0xff]  }
 0x246   :  { %v10611_v28 = vpop.f32.mrf.mxu1  ;;  %4229 = vmatprep.subr.bf16.mxu1 %v8384_v38  ;;  %v14297_v38 = vld [vmem:[#allocation23_spill] sm:$0xff] }
 0x247   :  { %2385 = vrot.lane.b32.xlu0 %v10615_v57, %s8801_s10 }
 0x248   :  { %v1676_v17 = vpop.f32.mrf.mxu1  ;;  %4137 = vmatpush1.bf16.msra.mxu0 %v8364_v36  ;;  %v10642_v36 = vpack.c.bf16 %v10117_v40, %v10458_v20  ;;  %v8373_v40 = vld [vmem:[%s14075_s3 + $0x200] ss:$8 sps:$4 sm:$0xff]  }
 0x249   :  { %2118 = vrot.lane.b32.xlu1 %v10299_v23, %s8800_s9  ;;  %4138 = vmatprep.subr.bf16.mxu0 %v8372_v60 }
 0x24a   :  { %v10633_v46 = vpop.f32.mrf.mxu1  ;;  %14296 = vst [vmem:[#allocation47_spill] sm:$0xff] %v10642_v36  ;;  %3983 = vmatmul.mubr.bf16.gmra.mxu0 %v10638_v49  ;;  %v10668_v49 = vpack.c.bf16 %v10458_v20, %v10458_v20  ;;  %v8387_v20 = vld [vmem:[%s14075_s3 + $0x2e4] ss:$8 sps:$4 sm:$0xff]  }
 0x24b   :  { %2100 = vrot.lane.b32.xlu0 %v8095_v54, %s8800_s9  ;;  %3992 = vmatprep.mubr.bf16.mxu0 %v10642_v36  ;;  %v8381_v54 = vld [vmem:[%s14075_s3 + $0x2f4] ss:$8 sps:$4 sm:$0xff]  }
 0x24c   :  { %v1679_v17 = vpop.f32.mrf.mxu1  ;;  %4139 = vmatpush1.bf16.msra.mxu0 %v8370_v19 }
 0x24d   :  { %2157 = vrot.lane.b32.xlu1 %v10652_v35, %s8802_s25  ;;  %4140 = vmatprep.subr.bf16.mxu0 %v8375_v63  ;;  %v14298_v17 = vld [vmem:[#allocation3_spill] sm:$0xff]  ;;  %v8379_v63 = vld [vmem:[%s14075_s3 + $0x2f0] ss:$8 sps:$4 sm:$0xff]  }
 0x24e   :  { %v1682_v60 = vpop.f32.mrf.mxu1  ;;  %v1178_v36 = vmax.f32 %v14298_v17, %v14297_v38 }
 0x24f   :  { %v1739_v62 = vmax.f32 %v10294_v1, %v1682_v60  ;;  %2349 = vrot.lane.b32.xlu0 %v8096_v45, %s8801_s10  ;;  %v10679_v1 = vpack.c.bf16 %v10330_v15, %v10237_v58  ;;  %v14300_v45 = vld [vmem:[#allocation25_spill] sm:$0xff]  ;;  %v10693_v58 = vpack.c.bf16 %v10387_v14, %v10387_v14 }
 0x250   :  { %v1684_v19 = vpop.f32.mrf.mxu1  ;;  %4141 = vmatpush1.bf16.msra.mxu0 %v8373_v40 }
 0x251   :  { %v10670_v25 = vmax.f32 %v1178_v36, %v1739_v62  ;;  %2053 = vrot.lane.b32.xlu1 %v10668_v49, %s8801_s10  ;;  %14299 = vst [vmem:[#allocation38_spill] sm:$0xff] %v10679_v1  ;;  %4142 = vmatprep.subr.bf16.mxu0 %v8381_v54  ;;  %v14301_v36 = vld [vmem:[#allocation5_spill] sm:$0xff]  ;;  %v8385_v54 = vld [vmem:[%s14075_s3 + $0x2e0] ss:$8 sps:$4 sm:$0xff]   ;;  %v14302_v19 = vld [vmem:[#allocation28_spill] sm:$0xff] }
 0x252   :  { %v1685_v38 = vpop.f32.mrf.mxu1  ;;  %v1181_v40 = vmax.f32 %v14301_v36, %v14300_v45  ;;  %3993 = vmatmul.mubr.bf16.gmra.mxu0 %v10448_v27  ;;  %v8393_v62 = vld [vmem:[%s14075_s3 + $0x2d4] ss:$8 sps:$4 sm:$0xff]  }
 0x253   :  { %v1742_v60 = vmax.f32 %v10317_v33, %v1685_v38  ;;  %2051 = vrot.lane.b32.xlu0 %v10652_v35, %s8801_s10  ;;  %4002 = vmatprep.mubr.bf16.mxu0 %v10679_v1  ;;  %v14303_v38 = vld [vmem:[#allocation8_spill] sm:$0xff] }
 0x254   :  { %v1687_v17 = vpop.f32.mrf.mxu1  ;;  %4143 = vmatpush2.bf16.msra.mxu0 %v8379_v63  ;;  %v1184_v45 = vmax.f32 %v14303_v38, %v14302_v19  ;;  %v14306_v19 = vld [vmem:[#allocation9_spill] sm:$0xff]  ;;  %v14307_v38 = vld [vmem:[#allocation43_spill] sm:$0xff] }
 0x255   :  { %v10695_v15 = vmax.f32 %v1181_v40, %v1742_v60  ;;  %2195 = vrot.lane.b32.xlu1 %v10693_v58, %s8802_s25  ;;  %4144 = vmatprep.subr.bf16.mxu0 %v8387_v20  ;;  %v8391_v60 = vld [vmem:[%s14075_s3 + $0x2d0] ss:$8 sps:$4 sm:$0xff]   ;;  %v10717_v17 = vpack.c.bf16 %v10511_v55, %v10418_v42  ;;  %v8397_v55 = vld [vmem:[%s14075_s3 + $0x2c0] ss:$8 sps:$4 sm:$0xff]  }
 0x256   :  { %v1690_v33 = vpop.f32.mrf.mxu1 }
 0x257   :  { %v1745_v36 = vmax.f32 %v10346_v53, %v1690_v33  ;;  %2112 = vrot.lane.b32.xlu0 %v10226_v24, %s8800_s9  ;;  %14304 = vst [vmem:[#allocation18_spill] sm:$0xff] %v10717_v17  ;;  %v8399_v53 = vld [vmem:[%s14075_s3 + $0x2c4] ss:$8 sps:$4 sm:$0xff]   ;;  %v14305_v33 = vld [vmem:[#allocation29_spill] sm:$0xff] }
 0x258   :  { %v1692_v63 = vpop.f32.mrf.mxu1  ;;  %4145 = vmatpush2.bf16.msra.mxu0 %v8385_v54  ;;  %v1187_v54 = vmax.f32 %v14306_v19, %v14305_v33  ;;  %v14309_v33 = vld [vmem:[#allocation10_spill] sm:$0xff] }
 0x259   :  { %v1787_v40 = vmax.f32 %v1184_v45, %v1745_v36  ;;  %2461 = vrot.lane.b32.xlu1 %v10115_v43, %s8802_s25  ;;  %4146 = vmatprep.subr.bf16.mxu0 %v8393_v62  ;;  %v1832_v45 = vsub.s32 2, %v14307_v38  ;;  %v10737_v62 = vpack.c.bf16 %v10374_v22, %v10374_v22  ;;  %v8405_v63 = vld [vmem:[%s14075_s3 + $0x2b4] ss:$8 sps:$4 sm:$0xff]   ;;  %v14310_v19 = vld [vmem:[#allocation46_spill] sm:$0xff] }
 0x25a   :  { %v1693_v20 = vpop.f32.mrf.mxu1  ;;  %4003 = vmatmul.mubr.bf16.gmra.mxu0 %v10214_v32 }
 0x25b   :  { %v1748_v36 = vmax.f32 %v10378_v3, %v1693_v20  ;;  %2138 = vrot.lane.b32.xlu0 %v10615_v57, %s8800_s9  ;;  %4012 = vmatprep.mubr.bf16.mxu0 %v10717_v17  ;;  %v14308_v20 = vld [vmem:[#allocation30_spill] sm:$0xff] }
 0x25c   :  { %v1695_v43 = vpop.f32.mrf.mxu1  ;;  %4147 = vmatpush2.bf16.msra.mxu0 %v8391_v60  ;;  %v1190_v60 = vmax.f32 %v14309_v33, %v14308_v20 }
 0x25d   :  { %v10730_v42 = vmax.f32 %v1187_v54, %v1748_v36  ;;  %2130 = vrot.lane.b32.xlu1 %v10474_v37, %s8800_s9  ;;  %4148 = vmatprep.subr.bf16.mxu0 %v8399_v53  ;;  %v10747_v54 = vrot.slane %v14310_v19, %v1832_v45  ;;  %v8403_v53 = vld [vmem:[%s14075_s3 + $0x2b0] ss:$8 sps:$4 sm:$0xff]   ;;  %v14311_v45 = vld [vmem:[#allocation31_spill] sm:$0xff] }
 0x25e   :  { %v1698_v3 = vpop.f32.mrf.mxu1 }
 0x25f   :  { %v1751_v36 = vmax.f32 %v10416_v11, %v1698_v3  ;;  %2193 = vrot.lane.b32.xlu0 %v10737_v62, %s8802_s25  ;;  %v1845_v38 = vadd.f32 %v10747_v54, %v1787_v40  ;;  %v8411_v11 = vld [vmem:[%s14075_s3 + $0x2a4] ss:$8 sps:$4 sm:$0xff]  }
 0x260   :  { %v1700_v43 = vpop.f32.mrf.mxu1  ;;  %4149 = vmatpush2.bf16.msra.mxu0 %v8397_v55  ;;  %v14312_v3 = vld [vmem:[#allocation11_spill] sm:$0xff] }
 0x261   :  { %v1793_v27 = vmax.f32 %v1190_v60, %v1751_v36  ;;  %2467 = vrot.lane.b32.xlu1 %v10195_v59, %s8802_s25  ;;  %4150 = vmatprep.subr.bf16.mxu0 %v8405_v63  ;;  %v1193_v33 = vmax.f32 %v14312_v3, %v14311_v45  ;;  %v10768_v59 = vmax.f32 %v1845_v38, 0.0  ;;  %v8409_v36 = vld [vmem:[%s14075_s3 + $0x2a0] ss:$8 sps:$4 sm:$0xff]   ;;  %v14314_v38 = vld [vmem:[#allocation12_spill] sm:$0xff]  ;;  %v1842_v45 = vadd.f32 %v10747_v54, %v10695_v15  ;;  %v14316_v15 = vld [vmem:[#allocation33_spill] sm:$0xff] }
 0x262   :  { %v1701_v20 = vpop.f32.mrf.mxu1  ;;  %4013 = vmatmul.mubr.bf16.gmra.mxu0 %v10327_v56  ;;  %v14327_v56 = vld [vmem:[#allocation17_spill] sm:$0xff] }
 0x263   :  { %v1851_v40 = vadd.f32 %v10747_v54, %v1793_v27  ;;  %v1754_v55 = vmax.f32 %v10442_v39, %v1701_v20  ;;  %2459 = vrot.lane.b32.xlu0 %v10106_v13, %s8802_s25  ;;  %v8417_v13 = vld [vmem:[%s14075_s3 + $0x294] ss:$8 sps:$4 sm:$0xff]  }
 0x264   :  { %v1703_v60 = vpop.f32.mrf.mxu1  ;;  %4151 = vmatpush2.bf16.msra.mxu0 %v8403_v53  ;;  %v14313_v27 = vld [vmem:[#allocation32_spill] sm:$0xff] }
 0x265   :  { %v10770_v63 = vmax.f32 %v1851_v40, 0.0  ;;  %v1796_v19 = vmax.f32 %v1193_v33, %v1754_v55  ;;  %2473 = vrot.lane.b32.xlu1 %v10290_v51, %s8802_s25  ;;  %4152 = vmatprep.subr.bf16.mxu0 %v8411_v11  ;;  %v1196_v43 = vmax.f32 %v14314_v38, %v14313_v27  ;;  %v10791_v11 = vpop.permute.xlu0 %2049  ;;  %v8415_v33 = vld [vmem:[%s14075_s3 + $0x290] ss:$8 sps:$4 sm:$0xff]   ;;  %v1884_v27 = vmax.f32 %v1842_v45, 0.0  ;;  %v14318_v45 = vld [vmem:[#allocation34_spill] sm:$0xff] }
 0x266   :  { %v1706_v39 = vpop.f32.mrf.mxu1  ;;  %v14317_v55 = vld [vmem:[#allocation13_spill] sm:$0xff] }
 0x267   :  { %v10784_v20 = vpack.c.bf16 %v10770_v63, %v10768_v59  ;;  %v1757_v53 = vmax.f32 %v10468_v41, %v1706_v39  ;;  %2124 = vrot.lane.b32.xlu0 %v10398_v30, %s8800_s9  ;;  %v8423_v41 = vld [vmem:[%s14075_s3 + $0x284] ss:$8 sps:$4 sm:$0xff]   ;;  %v1199_v60 = vmax.f32 %v14317_v55, %v14316_v15 }
 0x268   :  { %v1708_v51 = vpop.f32.mrf.mxu1  ;;  %4153 = vmatpush2.bf16.msra.mxu0 %v8409_v36 }
 0x269   :  { %14315 = vst [vmem:[#allocation23_spill] sm:$0xff] %v10784_v20  ;;  %v1799_v3 = vmax.f32 %v1196_v43, %v1757_v53  ;;  %2136 = vrot.lane.b32.xlu1 %v10558_v18, %s8800_s9  ;;  %4154 = vmatprep.subr.bf16.mxu0 %v8417_v13  ;;  %v1854_v43 = vadd.f32 %v10747_v54, %v1796_v19  ;;  %v8421_v13 = vld [vmem:[%s14075_s3 + $0x280] ss:$8 sps:$4 sm:$0xff]  }
 0x26a   :  { %v1709_v40 = vpop.f32.mrf.mxu1 }
 0x26b   :  { %v1760_v39 = vmax.f32 %v10495_v26, %v1709_v40  ;;  %v10804_v36 = vpop.permute.xlu1 %2353  ;;  %2411 = vrot.lane.b32.xlu0 %v10135_v6, %s8800_s9  ;;  %v14319_v40 = vld [vmem:[#allocation14_spill] sm:$0xff] }
 0x26c   :  { %v1711_v38 = vpop.f32.mrf.mxu1  ;;  %4155 = vmatpush2.bf16.msra.mxu0 %v8415_v33  ;;  %v1202_v15 = vmax.f32 %v14319_v40, %v14318_v45 }
 0x26d   :  { %v1802_v53 = vmax.f32 %v1199_v60, %v1760_v39  ;;  %v10812_v51 = vpop.permute.xlu0 %2355  ;;  %2403 = vrot.lane.b32.xlu1 %v10652_v35, %s8800_s9  ;;  %4156 = vmatprep.subr.bf16.mxu0 %v8423_v41  ;;  %v10820_v60 = vpack.c.bf16 %v1884_v27, %v1884_v27  ;;  %v10826_v38 = vmax.f32 %v1854_v43, 0.0  ;;  %v1857_v35 = vadd.f32 %v10747_v54, %v1799_v3  ;;  %v14320_v27 = vld [vmem:[#allocation35_spill] sm:$0xff] }
 0x26e   :  { %v1714_v26 = vpop.f32.mrf.mxu1 }
 0x26f   :  { %v1860_v55 = vadd.f32 %v10747_v54, %v1802_v53  ;;  %v1763_v19 = vmax.f32 %v10525_v34, %v1714_v26  ;;  %v10822_v33 = vpop.permute.xlu1 %2106  ;;  %2417 = vrot.lane.b32.xlu0 %v10270_v16, %s8800_s9  ;;  %v14321_v53 = vld [vmem:[#allocation15_spill] sm:$0xff] }
 0x270   :  { %v1716_v39 = vpop.f32.mrf.mxu1  ;;  %4157 = vmatpush2.bf16.msra.mxu0 %v8421_v13  ;;  %v1205_v26 = vmax.f32 %v14321_v53, %v14320_v27  ;;  %v1848_v13 = vadd.f32 %v10747_v54, %v10730_v42 }
 0x271   :  { %v10829_v41 = vmax.f32 %v1860_v55, 0.0  ;;  %v1805_v22 = vmax.f32 %v1202_v15, %v1763_v19  ;;  %v10831_v45 = vpop.permute.xlu0 %2059  ;;  %2055 = vrot.lane.b32.xlu1 %v10820_v60, %s8801_s10  ;;  %v10849_v55 = vmax.f32 %v1857_v35, 0.0 }
 0x272   :  { %v1717_v34 = vpop.f32.mrf.mxu1  ;;  %v1890_v35 = vmax.f32 %v1848_v13, 0.0 }
 0x273   :  { %v10839_v16 = vpack.c.bf16 %v10829_v41, %v10826_v38  ;;  %v1863_v43 = vadd.f32 %v10747_v54, %v1805_v22  ;;  %v1766_v3 = vmax.f32 %v10547_v47, %v1717_v34  ;;  %v10845_v40 = vpop.permute.xlu1 %2108  ;;  %2465 = vrot.lane.b32.xlu0 %v10226_v24, %s8802_s25  ;;  %v14323_v47 = vld [vmem:[#allocation36_spill] sm:$0xff] }
 0x274   :  { %v1719_v15 = vpop.f32.mrf.mxu1  ;;  %v14324_v34 = vld [vmem:[#allocation16_spill] sm:$0xff] }
 0x275   :  { %14322 = vst [vmem:[#allocation3_spill] sm:$0xff] %v10839_v16  ;;  %v10851_v19 = vmax.f32 %v1863_v43, 0.0  ;;  %v1808_v39 = vmax.f32 %v1205_v26, %v1766_v3  ;;  %v10853_v27 = vpop.permute.xlu0 %2165  ;;  %2407 = vrot.lane.b32.xlu1 %v10820_v60, %s8800_s9  ;;  %v1208_v42 = vmax.f32 %v14324_v34, %v14323_v47  ;;  %v14326_v34 = vld [vmem:[#allocation37_spill] sm:$0xff] }
 0x276   :  { %v1722_v22 = vpop.f32.mrf.mxu1  ;;  %v1211_v14 = vmax.f32 %v14327_v56, %v14326_v34  ;;  %v14328_v56 = vld [vmem:[#allocation39_spill] sm:$0xff] }
 0x277   :  { %v10861_v53 = vpack.c.bf16 %v10851_v19, %v10849_v55  ;;  %v1769_v24 = vmax.f32 %v10565_v50, %v1722_v22  ;;  %v10864_v15 = vpop.permute.xlu1 %2057  ;;  %2471 = vrot.lane.b32.xlu0 %v10299_v23, %s8802_s25  ;;  %v10875_v50 = vpack.c.bf16 %v1890_v35, %v1890_v35  ;;  %v1866_v22 = vadd.f32 %v10747_v54, %v1808_v39 }
 0x278   :  { %v1724_v26 = vpop.f32.mrf.mxu1 }
 0x279   :  { %14325 = vst [vmem:[#allocation25_spill] sm:$0xff] %v10861_v53  ;;  %v1811_v43 = vmax.f32 %v1208_v42, %v1769_v24  ;;  %v10868_v3 = vpop.permute.xlu0 %2361  ;;  %2479 = vrot.lane.b32.xlu1 %v10411_v44, %s8802_s25  ;;  %v14329_v26 = vld [vmem:[#allocation19_spill] sm:$0xff] }
 0x27a   :  { %v1725_v47 = vpop.f32.mrf.mxu1 }
 0x27b   :  { %v1772_v17 = vmax.f32 %v10588_v8, %v1725_v47  ;;  %v10877_v13 = vpop.permute.xlu1 %2163  ;;  %2423 = vrot.lane.b32.xlu0 %v10368_v9, %s8800_s9  ;;  %v1214_v8 = vmax.f32 %v14329_v26, %v14328_v56  ;;  %v10892_v9 = vpack.c.bf16 %v10770_v63, %v10770_v63  ;;  %v1869_v39 = vadd.f32 %v10747_v54, %v1811_v43  ;;  %v14331_v26 = vld [vmem:[#allocation20_spill] sm:$0xff] }
 0x27c   :  { %v1727_v23 = vpop.f32.mrf.mxu1 }
 0x27d   :  { %v1814_v42 = vmax.f32 %v1211_v14, %v1772_v17  ;;  %v10882_v24 = vpop.permute.xlu0 %2114  ;;  %2413 = vrot.lane.b32.xlu1 %v10875_v50, %s8800_s9  ;;  %v1908_v17 = vmax.f32 %v1866_v22, 0.0 }
 0x27e   :  { %v1730_v44 = vpop.f32.mrf.mxu1 }
 0x27f   :  { %v1872_v35 = vadd.f32 %v10747_v54, %v1814_v42  ;;  %v1775_v47 = vmax.f32 %v10611_v28, %v1730_v44  ;;  %v10894_v34 = vpop.permute.xlu1 %2359  ;;  %2429 = vrot.lane.b32.xlu0 %v10464_v48, %s8800_s9  ;;  %v1839_v42 = vadd.f32 %v10747_v54, %v10670_v25  ;;  %v14330_v44 = vld [vmem:[#allocation40_spill] sm:$0xff] }
 0x280   :  { %v1732_v14 = vpop.f32.mrf.mxu1  ;;  %v1217_v32 = vmax.f32 %v14331_v26, %v14330_v44 }
 0x281   :  { %v10899_v23 = vmax.f32 %v1872_v35, 0.0  ;;  %v1817_v56 = vmax.f32 %v1214_v8, %v1775_v47  ;;  %v10903_v28 = vpop.permute.xlu0 %2169  ;;  %2116 = vrot.lane.b32.xlu1 %v10892_v9, %s8800_s9  ;;  %v10916_v8 = vpack.c.bf16 %v10826_v38, %v10826_v38  ;;  %v1911_v47 = vmax.f32 %v1869_v39, 0.0 }
 0x282   :  { %v1733_v63 = vpop.f32.mrf.mxu1  ;;  %v1881_v26 = vmax.f32 %v1839_v42, 0.0  ;;  %v10948_v42 = vpack.c.bf16 %v10849_v55, %v10849_v55 }
 0x283   :  { %v10910_v48 = vpack.c.bf16 %v10899_v23, %v1908_v17  ;;  %v1875_v43 = vadd.f32 %v10747_v54, %v1817_v56  ;;  %v1778_v22 = vmax.f32 %v10633_v46, %v1733_v63  ;;  %v10918_v25 = vpop.permute.xlu1 %2063  ;;  %2159 = vrot.lane.b32.xlu0 %v10668_v49, %s8802_s25  ;;  %v11035_v10 = vpack.c.bf16 %v10899_v23, %v10899_v23 }
 0x284   :  { %v1735_v35 = vpop.f32.mrf.mxu1  ;;  %v10938_v63 = vpack.c.bf16 %v1881_v26, %v1881_v26 }
 0x285   :  { %14332 = vst [vmem:[#allocation5_spill] sm:$0xff] %v10910_v48  ;;  %v10922_v14 = vmax.f32 %v1875_v43, 0.0  ;;  %v1820_v44 = vmax.f32 %v1217_v32, %v1778_v22  ;;  %v10924_v48 = vpop.permute.xlu0 %2065  ;;  %2067 = vrot.lane.b32.xlu1 %v10916_v8, %s8801_s10  ;;  %v10963_v35 = vpack.c.bf16 %v10829_v41, %v10829_v41 }
 0x286   :  { %14334 = vst [vmem:[#allocation8_spill] sm:$0xff] %v10924_v48 }
 0x287   :  { %14333 = vst [vmem:[#allocation28_spill] sm:$0xff] %v10922_v14  ;;  %v1878_v46 = vadd.f32 %v10747_v54, %v1820_v44  ;;  %v10930_v38 = vpack.c.bf16 %v10922_v14, %v1911_v47  ;;  %v10932_v56 = vpop.permute.xlu1 %2171  ;;  %2405 = vrot.lane.b32.xlu0 %v10668_v49, %s8800_s9  ;;  %v8456_v49 = vld [vmem:[%s14075_s3 + $0x474] ss:$8 sps:$4 sm:$0xff]   ;;  %v10971_v44 = vpack.c.bf16 %v10768_v59, %v10768_v59 }
 0x288   :  { %4332 = vmatprep.subr.bf16.mxu0 %v8456_v49  ;;  %v10989_v59 = vpack.c.bf16 %v1908_v17, %v1908_v17  ;;  %v11007_v17 = vpack.c.bf16 %v1911_v47, %v1911_v47  ;;  %v11031_v4 = vpack.c.bf16 %v10922_v14, %v10922_v14 }
 0x289   :  { %14335 = vst [vmem:[#allocation29_spill] sm:$0xff] %v10930_v38  ;;  %v10936_v39 = vmax.f32 %v1878_v46, 0.0  ;;  %v10940_v32 = vpop.permute.xlu0 %2367  ;;  %2419 = vrot.lane.b32.xlu1 %v10916_v8, %s8800_s9  ;;  %v10979_v46 = vpack.c.bf16 %v10851_v19, %v10851_v19 }
 0x28b   :  { %14336 = vst [vmem:[#allocation9_spill] sm:$0xff] %v10936_v39  ;;  %v10950_v43 = vpop.permute.xlu1 %2365  ;;  %2104 = vrot.lane.b32.xlu0 %v10938_v63, %s8800_s9 }
 0x28d   :  { %v10957_v22 = vpop.permute.xlu0 %2120  ;;  %2122 = vrot.lane.b32.xlu1 %v10948_v42, %s8800_s9 }
 0x28f   :  { %v10965_v55 = vpop.permute.xlu1 %2069  ;;  %2351 = vrot.lane.b32.xlu0 %v10938_v63, %s8801_s10 }
 0x291   :  { %v10973_v26 = vpop.permute.xlu0 %2175  ;;  %2425 = vrot.lane.b32.xlu1 %v10963_v35, %s8800_s9 }
 0x293   :  { %v10981_v41 = vpop.permute.xlu1 %2177  ;;  %2110 = vrot.lane.b32.xlu0 %v10971_v44, %s8800_s9 }
 0x295   :  { %v10985_v49 = vpop.permute.xlu0 %2071  ;;  %2128 = vrot.lane.b32.xlu1 %v10979_v46, %s8800_s9 }
 0x297   :  { %v10991_v54 = vpop.permute.xlu1 %2371  ;;  %2477 = vrot.lane.b32.xlu0 %v10398_v30, %s8802_s25 }
 0x299   :  { %v10995_v1 = vpop.permute.xlu0 %2373  ;;  %2079 = vrot.lane.b32.xlu1 %v10989_v59, %s8801_s10 }
 0x29b   :  { %v10999_v19 = vpop.permute.xlu1 %2075  ;;  %2483 = vrot.lane.b32.xlu0 %v10474_v37, %s8802_s25 }
 0x29d   :  { %v11003_v16 = vpop.permute.xlu0 %2126  ;;  %2431 = vrot.lane.b32.xlu1 %v10989_v59, %s8800_s9 }
 0x29e   :  { %14337 = vst [vmem:[#allocation30_spill] sm:$0xff] %v11003_v16 }
 0x29f   :  { %v11009_v6 = vpop.permute.xlu1 %2183  ;;  %2061 = vrot.lane.b32.xlu0 %v10875_v50, %s8801_s10 }
 0x2a0   :  { %14338 = vst [vmem:[#allocation10_spill] sm:$0xff] %v11009_v6 }
 0x2a1   :  { %v11013_v30 = vpop.permute.xlu0 %2181  ;;  %2134 = vrot.lane.b32.xlu1 %v11007_v17, %s8800_s9 }
 0x2a2   :  { %14339 = vst [vmem:[#allocation46_spill] sm:$0xff] %v11013_v30 }
 0x2a3   :  { %v2378_v61 = vpop.permute.xlu1 %2377  ;;  %2073 = vrot.lane.b32.xlu0 %v10963_v35, %s8801_s10 }
 0x2a4   :  { %v2525_v37 = vsel %vm205_vm0, %v10989_v59, %v2378_v61 }
 0x2a5   :  { %v11021_v38 = vpop.permute.xlu0 %2077  ;;  %2485 = vrot.lane.b32.xlu1 %v10521_v12, %s8802_s25 }
 0x2a7   :  { %v11025_v47 = vpop.permute.xlu1 %2081  ;;  %2357 = vrot.lane.b32.xlu0 %v10971_v44, %s8801_s10 }
 0x2a9   :  { %v11037_v53 = vpop.permute.xlu0 %2379  ;;  %2140 = vrot.lane.b32.xlu1 %v11031_v4, %s8800_s9 }
 0x2aa   :  { %14340 = vst [vmem:[#allocation31_spill] sm:$0xff] %v11037_v53 }
 0x2ab   :  { %v11041_v7 = vpop.permute.xlu1 %2189  ;;  %2085 = vrot.lane.b32.xlu0 %v11035_v10, %s8801_s10 }
 0x2ac   :  { %14341 = vst [vmem:[#allocation11_spill] sm:$0xff] %v11041_v7  ;;  %v2090_v7 = vsel %vm205_vm0, %v10864_v15, %v10831_v45 }
 0x2ad   :  { %v11045_v12 = vpop.permute.xlu0 %2132  ;;  %2363 = vrot.lane.b32.xlu1 %v10892_v9, %s8801_s10 }
 0x2ae   :  { %14342 = vst [vmem:[#allocation32_spill] sm:$0xff] %v11045_v12 }
 0x2af   :  { %v2384_v14 = vpop.permute.xlu1 %2383  ;;  %2409 = vrot.lane.b32.xlu0 %v10172_v52, %s8800_s9 }
 0x2b0   :  { %v2528_v23 = vsel %vm205_vm0, %v11035_v10, %v2384_v14 }
 0x2b1   :  { %v11053_v20 = vcombine.low %v2525_v37, %v2528_v23  ;;  %v11055_v16 = vpop.permute.xlu0 %2187  ;;  %2415 = vrot.lane.b32.xlu1 %v10243_v21, %s8800_s9  ;;  %v2399_v21 = vsel %vm205_vm0, %v2378_v61, %v11037_v53 }
 0x2b2   :  { %14344 = vst [vmem:[#allocation33_spill] sm:$0xff] %v11055_v16 }
 0x2b3   :  { %14343 = vst [vmem:[#allocation12_spill] sm:$0xff] %v11053_v20  ;;  %v11059_v30 = vpop.permute.xlu1 %2347  ;;  %2435 = vrot.lane.b32.xlu0 %v10534_v5, %s8800_s9 }
 0x2b5   :  { %v11063_v12 = vpop.permute.xlu0 %2083  ;;  %2437 = vrot.lane.b32.xlu1 %v11035_v10, %s8800_s9 }
 0x2b6   :  { %14345 = vst [vmem:[#allocation13_spill] sm:$0xff] %v11063_v12 }
 0x2b7   :  { %v11067_v52 = vpop.permute.xlu1 %2102  ;;  %2441 = vrot.lane.b32.xlu0 %v10693_v58, %s8800_s9  ;;  %v11097_v58 = vpack.c.bf16 %v10936_v39, %v10936_v39 }
 0x2b9   :  { %v11071_v37 = vpop.permute.xlu0 %2385  ;;  %2491 = vrot.lane.b32.xlu1 %v10615_v57, %s8802_s25  ;;  %v2145_v57 = vsel %vm248_vm1, %v10822_v33, %v10845_v40 }
 0x2ba   :  { %14346 = vst [vmem:[#allocation34_spill] sm:$0xff] %v11071_v37  ;;  %v2401_v5 = vsel %vm205_vm0, %v2384_v14, %v11071_v37 }
 0x2bb   :  { %v11079_v23 = vcombine.low %v2399_v21, %v2401_v5  ;;  %v11081_v6 = vpop.permute.xlu1 %2118  ;;  %2489 = vrot.lane.b32.xlu0 %v10558_v18, %s8802_s25 }
 0x2bd   :  { %14347 = vst [vmem:[#allocation14_spill] sm:$0xff] %v11079_v23  ;;  %v11085_v16 = vpop.permute.xlu0 %2100  ;;  %2369 = vrot.lane.b32.xlu1 %v10948_v42, %s8801_s10 }
 0x2be   :  { %v2143_v61 = vsel %vm248_vm1, %v11085_v16, %v11067_v52 }
 0x2bf   :  { %v11099_v14 = vcombine.low %v2143_v61, %v2145_v57  ;;  %v11101_v18 = vpop.permute.xlu1 %2157  ;;  %2495 = vrot.lane.b32.xlu0 %v14289_v29, %s8802_s25  ;;  %v2092_v57 = vsel %vm205_vm0, %v10918_v25, %v10924_v48  ;;  %v2216_v61 = vsel %vm205_vm0, 0, %v10791_v11  ;;  %v8382_v48 = vld [vmem:[%s14075_s3 + $0x370] ss:$8 sps:$4 sm:$0xff]  }
 0x2c1   :  { %14348 = vst [vmem:[#allocation35_spill] sm:$0xff] %v11099_v14  ;;  %v11105_v21 = vpop.permute.xlu0 %2349  ;;  %4158 = vmatprep.mubr.bf16.mxu0 %v11099_v14  ;;  %2443 = vrot.lane.b32.xlu1 %v11097_v58, %s8800_s9 }
 0x2c3   :  { %v11110_v5 = vpop.permute.xlu1 %2053  ;;  %2375 = vrot.lane.b32.xlu0 %v10979_v46, %s8801_s10 }
 0x2c5   :  { %v2052_v39 = vpop.permute.xlu0 %2051  ;;  %2421 = vrot.lane.b32.xlu1 %v10321_v31, %s8800_s9 }
 0x2c6   :  { %v2088_v14 = vsel %vm205_vm0, %v2052_v39, %v11110_v5  ;;  %v2219_v29 = vsel %vm205_vm0, %v10938_v63, %v2052_v39 }
 0x2c7   :  { %v11125_v37 = vcombine.low %v2216_v61, %v2219_v29  ;;  %v11128_v53 = vcombine.low %v10791_v11, %v2088_v14  ;;  %2427 = vrot.lane.b32.xlu0 %v10426_v0, %s8800_s9  ;;  %v11132_v31 = vpop.permute.xlu1 %2195  ;;  %v8390_v29 = vld [vmem:[%s14075_s3 + $0x364] ss:$8 sps:$4 sm:$0xff]   ;;  %v11148_v0 = vcombine.low %v2090_v7, %v2092_v57  ;;  %v8388_v14 = vld [vmem:[%s14075_s3 + $0x360] ss:$8 sps:$4 sm:$0xff]   ;;  %v8396_v7 = vld [vmem:[%s14075_s3 + $0x354] ss:$8 sps:$4 sm:$0xff]   ;;  %v2225_v57 = vsel %vm205_vm0, %v10892_v9, %v10918_v25 }
 0x2c8   :  { %v8394_v25 = vld [vmem:[%s14075_s3 + $0x350] ss:$8 sps:$4 sm:$0xff]  }
 0x2c9   :  { %14349 = vst [vmem:[#allocation15_spill] sm:$0xff] %v11125_v37  ;;  %14350 = vst [vmem:[#allocation36_spill] sm:$0xff] %v11128_v53  ;;  %v11143_v39 = vpop.permute.xlu0 %2112  ;;  %4055 = vmatprep.mubr.bf16.mxu1 %v11128_v53  ;;  %2381 = vrot.lane.b32.xlu1 %v11007_v17, %s8801_s10 }
 0x2ca   :  { %14351 = vst [vmem:[#allocation16_spill] sm:$0xff] %v11148_v0  ;;  %4056 = vmatmul.mubr.bf16.vlgmr.msra.gmra.mxu1 %v11125_v37 }
 0x2cb   :  { %4065 = vmatprep.mubr.bf16.mxu1 %v11148_v0  ;;  %4230 = vmatpush1.bf16.msra.mxu1 %v8382_v48  ;;  %v11152_v63 = vpop.permute.xlu1 %2461  ;;  %v2096_v48 = vsel %vm205_vm0, %v10999_v19, %v11021_v38 }
 0x2cc   :  { %2387 = vrot.lane.b32.xlu0 %v11031_v4, %s8801_s10  ;;  %4231 = vmatprep.subr.bf16.mxu1 %v8390_v29  ;;  %v2222_v29 = vsel %vm205_vm0, %v10971_v44, %v10864_v15  ;;  %v8402_v15 = vld [vmem:[%s14075_s3 + $0x344] ss:$8 sps:$4 sm:$0xff]  }
 0x2cd   :  { %v11165_v61 = vpop.permute.xlu0 %2138  ;;  %2433 = vrot.lane.b32.xlu1 %v10509_v2, %s8800_s9  ;;  %v11180_v37 = vcombine.low %v2222_v29, %v2225_v57  ;;  %v2094_v2 = vsel %vm205_vm0, %v10965_v55, %v10985_v49  ;;  %v2389_v57 = vsel %vm205_vm0, %v11059_v30, %v11105_v21  ;;  %v2231_v29 = vsel %vm205_vm0, %v10979_v46, %v10999_v19  ;;  %v8406_v19 = vld [vmem:[%s14075_s3 + $0x330] ss:$8 sps:$4 sm:$0xff]  }
 0x2ce   :  { %14352 = vst [vmem:[#allocation37_spill] sm:$0xff] %v11165_v61 }
 0x2cf   :  { %4232 = vmatpush1.bf16.msra.mxu1 %v8388_v14  ;;  %v11175_v0 = vpop.permute.xlu1 %2130  ;;  %14353 = vst [vmem:[#allocation17_spill] sm:$0xff] %v11180_v37  ;;  %v11190_v14 = vcombine.low %v2094_v2, %v2096_v48  ;;  %v8408_v48 = vld [vmem:[%s14075_s3 + $0x334] ss:$8 sps:$4 sm:$0xff]  }
 0x2d0   :  { %2439 = vrot.lane.b32.xlu0 %v10737_v62, %s8800_s9  ;;  %4233 = vmatprep.subr.bf16.mxu1 %v8396_v7  ;;  %v8400_v7 = vld [vmem:[%s14075_s3 + $0x340] ss:$8 sps:$4 sm:$0xff]  }
 0x2d1   :  { %14354 = vst [vmem:[#allocation39_spill] sm:$0xff] %v11190_v14  ;;  %v11192_v53 = vpop.permute.xlu0 %2193  ;;  %2161 = vrot.lane.b32.xlu1 %v10820_v60, %s8802_s25 }
 0x2d2   :  { %4066 = vmatmul.mubr.bf16.gmra.mxu1 %v11180_v37 }
 0x2d3   :  { %4075 = vmatprep.mubr.bf16.mxu1 %v11190_v14  ;;  %4234 = vmatpush1.bf16.msra.mxu1 %v8394_v25  ;;  %v11201_v62 = vpop.permute.xlu1 %2467  ;;  %v2098_v25 = vsel %vm205_vm0, %v11025_v47, %v11063_v12  ;;  %v7316_v14 = vcombine.low %v2389_v57, %v2389_v57  ;;  %v8414_v57 = vld [vmem:[%s14075_s3 + $0x324] ss:$8 sps:$4 sm:$0xff]  }
 0x2d4   :  { %14355 = vst [vmem:[#allocation19_spill] sm:$0xff] %v11201_v62  ;;  %2167 = vrot.lane.b32.xlu0 %v10875_v50, %s8802_s25  ;;  %4235 = vmatprep.subr.bf16.mxu1 %v8402_v15  ;;  %v2228_v15 = vsel %vm205_vm0, %v10948_v42, %v10965_v55  ;;  %v7308_v12 = vcombine.low %v2098_v25, %v2098_v25  ;;  %v2510_v55 = vsel %vm205_vm0, 0, %v11059_v30  ;;  %v8420_v30 = vld [vmem:[%s14075_s3 + $0x314] ss:$8 sps:$4 sm:$0xff]  }
 0x2d5   :  { %v11217_v2 = vpop.permute.xlu0 %2459  ;;  %2173 = vrot.lane.b32.xlu1 %v10916_v8, %s8802_s25  ;;  %v11229_v62 = vcombine.low %v2228_v15, %v2231_v29  ;;  %v8412_v29 = vld [vmem:[%s14075_s3 + $0x320] ss:$8 sps:$4 sm:$0xff]   ;;  %v2393_v25 = vsel %vm205_vm0, %v10894_v34, %v10868_v3 }
 0x2d7   :  { %4236 = vmatpush1.bf16.msra.mxu1 %v8400_v7  ;;  %v11224_v37 = vpop.permute.xlu1 %2473  ;;  %14356 = vst [vmem:[#allocation40_spill] sm:$0xff] %v11229_v62  ;;  %v11244_v7 = vsel %vm2777_vm3, %v7308_v12, %v7316_v14  ;;  %v7315_v12 = vcombine.low %v2510_v55, %v2510_v55 }
 0x2d8   :  { %2179 = vrot.lane.b32.xlu0 %v10963_v35, %s8802_s25  ;;  %4237 = vmatprep.subr.bf16.mxu1 %v8408_v48  ;;  %14357 = vst [vmem:[#allocation20_spill] sm:$0xff] %v11244_v7 }
 0x2d9   :  { %v11236_v61 = vpop.permute.xlu0 %2124  ;;  %2185 = vrot.lane.b32.xlu1 %v10989_v59, %s8802_s25  ;;  %v2234_v59 = vsel %vm205_vm0, %v11007_v17, %v11025_v47 }
 0x2da   :  { %4076 = vmatmul.mubr.bf16.gmra.mxu1 %v11229_v62  ;;  %v7307_v15 = vcombine.low %v2234_v59, %v2234_v59  ;;  %v8424_v59 = vld [vmem:[%s14075_s3 + $0x300] ss:$8 sps:$4 sm:$0xff]  }
 0x2db   :  { %4085 = vmatprep.mubr.bf16.mxu1 %v11244_v7  ;;  %4238 = vmatpush1.bf16.msra.mxu1 %v8406_v19  ;;  %v11247_v48 = vpop.permute.xlu1 %2136  ;;  %v2391_v19 = vsel %vm205_vm0, %v10804_v36, %v10812_v51  ;;  %v8475_v62 = vld [vmem:[%s14075_s3 + $0x540] ss:$8 sps:$4 sm:$0xff]  }
 0x2dc   :  { %2191 = vrot.lane.b32.xlu0 %v11035_v10, %s8802_s25  ;;  %4239 = vmatprep.subr.bf16.mxu1 %v8414_v57  ;;  %v8418_v10 = vld [vmem:[%s14075_s3 + $0x310] ss:$8 sps:$4 sm:$0xff]   ;;  %v11285_v55 = vsel %vm2777_vm3, %v7307_v15, %v7315_v12  ;;  %v2516_v12 = vsel %vm205_vm0, %v10875_v50, %v10894_v34  ;;  %v2149_v34 = vsel %vm248_vm1, %v11081_v6, %v10957_v22 }
 0x2dd   :  { %v11260_v14 = vpop.permute.xlu0 %2411  ;;  %2197 = vrot.lane.b32.xlu1 %v11097_v58, %s8802_s25  ;;  %v8426_v58 = vld [vmem:[%s14075_s3 + $0x304] ss:$8 sps:$4 sm:$0xff]   ;;  %14358 = vst [vmem:[#allocation55_spill] sm:$0xff] %v11285_v55 }
 0x2df   :  { %4240 = vmatpush1.bf16.msra.mxu1 %v8412_v29  ;;  %v11267_v47 = vpop.permute.xlu1 %2403  ;;  %v11287_v29 = vcombine.low %v2391_v19, %v2393_v25  ;;  %v2236_v25 = vsel %vm248_vm1, %v10791_v11, %v11085_v16  ;;  %v8429_v11 = vld [vmem:[%s14075_s3 + $0x3f4] ss:$8 sps:$4 sm:$0xff]   ;;  %v8427_v19 = vld [vmem:[%s14075_s3 + $0x3f0] ss:$8 sps:$4 sm:$0xff]  }
 0x2e0   :  { %2463 = vrot.lane.b32.xlu0 %v10971_v44, %s8802_s25  ;;  %4241 = vmatprep.subr.bf16.mxu1 %v8420_v30  ;;  %v2147_v30 = vsel %vm248_vm1, %v11143_v39, %v10882_v24 }
 0x2e1   :  { %v11280_v57 = vpop.permute.xlu0 %2417  ;;  %2469 = vrot.lane.b32.xlu1 %v10892_v9, %s8802_s25  ;;  %14359 = vst [vmem:[#allocation56_spill] sm:$0xff] %v11287_v29  ;;  %v11327_v16 = vcombine.low %v2147_v30, %v2149_v34  ;;  %v8465_v34 = vld [vmem:[%s14075_s3 + $0x454] ss:$8 sps:$4 sm:$0xff]  }
 0x2e2   :  { %4086 = vmatmul.mubr.bf16.gmra.mxu1 %v11285_v55 }
 0x2e3   :  { %4095 = vmatprep.mubr.bf16.mxu1 %v11287_v29  ;;  %4242 = vmatpush1.bf16.msra.mxu1 %v8418_v10  ;;  %v2056_v44 = vpop.permute.xlu1 %2055  ;;  %14361 = vst [vmem:[#allocation58_spill] sm:$0xff] %v11327_v16 }
 0x2e4   :  { %2475 = vrot.lane.b32.xlu0 %v10948_v42, %s8802_s25  ;;  %v2089_v9 = vsel %vm205_vm0, %v11110_v5, %v2056_v44  ;;  %4243 = vmatprep.subr.bf16.mxu1 %v8426_v58  ;;  %v2397_v42 = vsel %vm205_vm0, %v10991_v54, %v10995_v1  ;;  %v2395_v44 = vsel %vm205_vm0, %v10950_v43, %v10940_v32 }
 0x2e5   :  { %v2239_v15 = vsel %vm248_vm1, %v2089_v9, %v10822_v33  ;;  %v11309_v10 = vpop.permute.xlu0 %2465  ;;  %2481 = vrot.lane.b32.xlu1 %v10979_v46, %s8802_s25  ;;  %v2513_v33 = vsel %vm205_vm0, %v10820_v60, %v10804_v36  ;;  %v8432_v36 = vld [vmem:[%s14075_s3 + $0x3e4] ss:$8 sps:$4 sm:$0xff]   ;;  %v8454_v60 = vld [vmem:[%s14075_s3 + $0x470] ss:$8 sps:$4 sm:$0xff]  }
 0x2e6   :  { %v11319_v5 = vcombine.low %v2236_v25, %v2239_v15  ;;  %v11334_v58 = vcombine.low %v2513_v33, %v2516_v12  ;;  %v8430_v12 = vld [vmem:[%s14075_s3 + $0x3e0] ss:$8 sps:$4 sm:$0xff]   ;;  %v2522_v15 = vsel %vm205_vm0, %v10963_v35, %v10991_v54  ;;  %v8438_v54 = vld [vmem:[%s14075_s3 + $0x3c4] ss:$8 sps:$4 sm:$0xff]   ;;  %v8463_v35 = vld [vmem:[%s14075_s3 + $0x450] ss:$8 sps:$4 sm:$0xff]  }
 0x2e7   :  { %4244 = vmatpush1.bf16.msra.mxu1 %v8424_v59  ;;  %v11329_v46 = vpop.permute.xlu1 %2407  ;;  %v11348_v59 = vcombine.low %v2395_v44, %v2397_v42  ;;  %v8457_v25 = vld [vmem:[%s14075_s3 + $0x460] ss:$8 sps:$4 sm:$0xff]  }
 0x2e8   :  { %14360 = vst [vmem:[#allocation57_spill] sm:$0xff] %v11319_v5  ;;  %14362 = vst [vmem:[#allocation59_spill] sm:$0xff] %v11334_v58  ;;  %2487 = vrot.lane.b32.xlu0 %v11007_v17, %s8802_s25  ;;  %4159 = vmatmul.mubr.bf16.vlgmr.msra.gmra.mxu0 %v11319_v5  ;;  %v8459_v17 = vld [vmem:[%s14075_s3 + $0x464] ss:$8 sps:$4 sm:$0xff]  }
 0x2e9   :  { %14363 = vst [vmem:[#allocation60_spill] sm:$0xff] %v11348_v59  ;;  %v11350_v30 = vpop.permute.xlu0 %2471  ;;  %2493 = vrot.lane.b32.xlu1 %v11031_v4, %s8802_s25  ;;  %4168 = vmatprep.mubr.bf16.mxu0 %v11327_v16  ;;  %v8435_v4 = vld [vmem:[%s14075_s3 + $0x3d4] ss:$8 sps:$4 sm:$0xff]   ;;  %v8480_v16 = vld [vmem:[%s14075_s3 + $0x424] ss:$8 sps:$4 sm:$0xff]  }
 0x2ea   :  { %4096 = vmatmul.mubr.bf16.gmra.mxu1 %v11334_v58  ;;  %4245 = vmatprep.subr.bf16.mxu1 %v8429_v11  ;;  %v2519_v11 = vsel %vm205_vm0, %v10916_v8, %v10950_v43  ;;  %v8471_v8 = vld [vmem:[%s14075_s3 + $0x444] ss:$8 sps:$4 sm:$0xff]   ;;  %v14374_v58 = vld [vmem:[#allocation32_spill] sm:$0xff] }
 0x2eb   :  { %4105 = vmatprep.mubr.bf16.mxu1 %v11348_v59  ;;  %4246 = vmatpush2.bf16.msra.mxu1 %v8427_v19  ;;  %v11360_v9 = vpop.permute.xlu1 %2479  ;;  %v8433_v19 = vld [vmem:[%s14075_s3 + $0x3d0] ss:$8 sps:$4 sm:$0xff]   ;;  %v11385_v44 = vcombine.low %v2519_v11, %v2522_v15  ;;  %v2153_v29 = vsel %vm248_vm1, %v11175_v0, %v14374_v58 }
 0x2ec   :  { %4247 = vmatprep.subr.bf16.mxu1 %v8432_v36  ;;  %4333 = vmatpush1.bf16.msra.mxu0 %v8454_v60  ;;  %v8436_v60 = vld [vmem:[%s14075_s3 + $0x3c0] ss:$8 sps:$4 sm:$0xff]   ;;  %v8439_v11 = vld [vmem:[%s14075_s3 + $0x3b0] ss:$8 sps:$4 sm:$0xff]  }
 0x2ed   :  { %v11374_v42 = vpop.permute.xlu0 %2423  ;;  %4334 = vmatprep.subr.bf16.mxu0 %v8459_v17  ;;  %14364 = vst [vmem:[#allocation61_spill] sm:$0xff] %v11385_v44  ;;  %v8441_v17 = vld [vmem:[%s14075_s3 + $0x3b4] ss:$8 sps:$4 sm:$0xff]  }
 0x2ef   :  { %4248 = vmatpush2.bf16.msra.mxu1 %v8430_v12  ;;  %v2414_v33 = vpop.permute.xlu1 %2413  ;;  %v8469_v12 = vld [vmem:[%s14075_s3 + $0x440] ss:$8 sps:$4 sm:$0xff]  }
 0x2f0   :  { %4249 = vmatprep.subr.bf16.mxu1 %v8435_v4  ;;  %4335 = vmatpush1.bf16.msra.mxu0 %v8457_v25  ;;  %v8474_v25 = vld [vmem:[%s14075_s3 + $0x434] ss:$8 sps:$4 sm:$0xff]  }
 0x2f1   :  { %v11393_v36 = vpop.permute.xlu0 %2429  ;;  %4336 = vmatprep.subr.bf16.mxu0 %v8465_v34 }
 0x2f2   :  { %4106 = vmatmul.mubr.bf16.gmra.mxu1 %v11385_v44  ;;  %v2204_v44 = vsel %vm277_vm2, %v10903_v28, %v10932_v56 }
 0x2f3   :  { %4115 = vmatprep.mubr.bf16.mxu1 %v11079_v23  ;;  %4250 = vmatpush2.bf16.msra.mxu1 %v8433_v19  ;;  %v11400_v43 = vpop.permute.xlu1 %2116  ;;  %v2202_v19 = vsel %vm277_vm2, %v10877_v13, %v10853_v27  ;;  %v8453_v23 = vld [vmem:[%s14075_s3 + $0x574] ss:$8 sps:$4 sm:$0xff]  }
 0x2f4   :  { %4251 = vmatprep.subr.bf16.mxu1 %v8438_v54  ;;  %4337 = vmatpush1.bf16.msra.mxu0 %v8463_v35  ;;  %v8444_v54 = vld [vmem:[%s14075_s3 + $0x3a4] ss:$8 sps:$4 sm:$0xff]   ;;  %v8472_v35 = vld [vmem:[%s14075_s3 + $0x430] ss:$8 sps:$4 sm:$0xff]  }
 0x2f5   :  { %v11411_v4 = vpop.permute.xlu0 %2159  ;;  %4338 = vmatprep.subr.bf16.mxu0 %v8471_v8 }
 0x2f6   :  { %v2200_v15 = vsel %vm277_vm2, %v11101_v18, %v11411_v4 }
 0x2f7   :  { %4252 = vmatpush2.bf16.msra.mxu1 %v8436_v60  ;;  %v11419_v34 = vpop.permute.xlu1 %2067  ;;  %v11433_v8 = vcombine.low %v2200_v15, %v2202_v19  ;;  %v8442_v15 = vld [vmem:[%s14075_s3 + $0x3a0] ss:$8 sps:$4 sm:$0xff]   ;;  %v8447_v19 = vld [vmem:[%s14075_s3 + $0x394] ss:$8 sps:$4 sm:$0xff]  }
 0x2f8   :  { %4253 = vmatprep.subr.bf16.mxu1 %v8441_v17  ;;  %4339 = vmatpush1.bf16.msra.mxu0 %v8469_v12  ;;  %v2448_v17 = vsel %vm248_vm1, %v11260_v14, %v2414_v33  ;;  %v8478_v33 = vld [vmem:[%s14075_s3 + $0x420] ss:$8 sps:$4 sm:$0xff]  }
 0x2f9   :  { %14365 = vst [vmem:[#allocation62_spill] sm:$0xff] %v11433_v8  ;;  %v11435_v60 = vpop.permute.xlu0 %2405  ;;  %4340 = vmatprep.subr.bf16.mxu0 %v8474_v25 }
 0x2fa   :  { %4116 = vmatmul.mubr.bf16.gmra.mxu1 %v11053_v20  ;;  %v8445_v20 = vld [vmem:[%s14075_s3 + $0x390] ss:$8 sps:$4 sm:$0xff]  }
 0x2fb   :  { %4254 = vmatpush2.bf16.msra.mxu1 %v8439_v11  ;;  %4261 = vmatprep.mubr.bf16.mxu1 %v11433_v8  ;;  %v2420_v12 = vpop.permute.xlu1 %2419  ;;  %v2555_v11 = vsel %vm277_vm2, %v2448_v17, %v11309_v10  ;;  %v8450_v17 = vld [vmem:[%s14075_s3 + $0x384] ss:$8 sps:$4 sm:$0xff]  }
 0x2fc   :  { %v2450_v25 = vsel %vm248_vm1, %v11280_v57, %v2420_v12  ;;  %4255 = vmatprep.subr.bf16.mxu1 %v8444_v54  ;;  %4341 = vmatpush1.bf16.msra.mxu0 %v8472_v35  ;;  %v8486_v54 = vld [vmem:[%s14075_s3 + $0x414] ss:$8 sps:$4 sm:$0xff]  }
 0x2fd   :  { %v2558_v5 = vsel %vm277_vm2, %v2450_v25, %v11350_v30  ;;  %v2105_v8 = vpop.permute.xlu0 %2104  ;;  %4342 = vmatprep.subr.bf16.mxu0 %v8480_v16  ;;  %v8484_v16 = vld [vmem:[%s14075_s3 + $0x410] ss:$8 sps:$4 sm:$0xff]  }
 0x2fe   :  { %v11462_v12 = vcombine.low %v2555_v11, %v2558_v5  ;;  %v8492_v5 = vld [vmem:[%s14075_s3 + $0x404] ss:$8 sps:$4 sm:$0xff]  }
 0x2ff   :  { %4256 = vmatpush2.bf16.msra.mxu1 %v8442_v15  ;;  %v2123_v35 = vpop.permute.xlu1 %2122 }
 0x300   :  { %14366 = vst [vmem:[#allocation63_spill] sm:$0xff] %v11462_v12  ;;  %4257 = vmatprep.subr.bf16.mxu1 %v8447_v19  ;;  %4343 = vmatpush1.bf16.msra.mxu0 %v8478_v33  ;;  %v8448_v33 = vld [vmem:[%s14075_s3 + $0x380] ss:$8 sps:$4 sm:$0xff]  }
 0x301   :  { %v2352_v25 = vpop.permute.xlu0 %2351  ;;  %4344 = vmatprep.subr.bf16.mxu0 %v8486_v54  ;;  %v2144_v54 = vsel %vm248_vm1, %v11067_v52, %v2105_v8  ;;  %v2206_v52 = vsel %vm277_vm2, %v10973_v26, %v10981_v41 }
 0x302   :  { %v2390_v15 = vsel %vm205_vm0, %v11105_v21, %v2352_v25  ;;  %v8490_v21 = vld [vmem:[%s14075_s3 + $0x400] ss:$8 sps:$4 sm:$0xff]   ;;  %v8495_v25 = vld [vmem:[%s14075_s3 + $0x4f4] ss:$8 sps:$4 sm:$0xff]  }
 0x303   :  { %v11480_v19 = vsel %vm248_vm1, %v2390_v15, %v11267_v47  ;;  %4258 = vmatpush2.bf16.msra.mxu1 %v8445_v20  ;;  %v11482_v11 = vpop.permute.xlu1 %2425 }
 0x304   :  { %4259 = vmatprep.subr.bf16.mxu1 %v8450_v17  ;;  %4345 = vmatpush1.bf16.msra.mxu0 %v8484_v16  ;;  %v2257_v17 = vsel %vm277_vm2, %v2144_v54, %v11101_v18  ;;  %v8501_v54 = vld [vmem:[%s14075_s3 + $0x4e4] ss:$8 sps:$4 sm:$0xff]  }
 0x305   :  { %v2111_v20 = vpop.permute.xlu0 %2110  ;;  %4346 = vmatprep.subr.bf16.mxu0 %v8492_v5  ;;  %v8451_v5 = vld [vmem:[%s14075_s3 + $0x570] ss:$8 sps:$4 sm:$0xff]  }
 0x306   :  { %v2146_v8 = vsel %vm248_vm1, %v10845_v40, %v2111_v20  ;;  %v8462_v40 = vld [vmem:[%s14075_s3 + $0x564] ss:$8 sps:$4 sm:$0xff]   ;;  %v8460_v20 = vld [vmem:[%s14075_s3 + $0x560] ss:$8 sps:$4 sm:$0xff]  }
 0x307   :  { %v2260_v16 = vsel %vm277_vm2, %v2146_v8, %v10877_v13  ;;  %4260 = vmatpush2.bf16.msra.mxu1 %v8448_v33  ;;  %v2129_v15 = vpop.permute.xlu1 %2128  ;;  %v8493_v13 = vld [vmem:[%s14075_s3 + $0x4f0] ss:$8 sps:$4 sm:$0xff]   ;;  %v11523_v33 = vcombine.low %v2204_v44, %v2206_v52  ;;  %v2148_v44 = vsel %vm248_vm1, %v10882_v24, %v11400_v43  ;;  %v8507_v24 = vld [vmem:[%s14075_s3 + $0x4d4] ss:$8 sps:$4 sm:$0xff]   ;;  %v14369_v43 = vld [vmem:[#allocation11_spill] sm:$0xff] }
 0x308   :  { %v11513_v59 = vcombine.low %v2257_v17, %v2260_v16  ;;  %4435 = vmatprep.subr.bf16.mxu1 %v8453_v23  ;;  %4347 = vmatpush1.bf16.msra.mxu0 %v8490_v21  ;;  %v2150_v23 = vsel %vm248_vm1, %v10957_v22, %v2123_v35  ;;  %v8499_v22 = vld [vmem:[%s14075_s3 + $0x4e0] ss:$8 sps:$4 sm:$0xff]   ;;  %v14370_v8 = vld [vmem:[#allocation33_spill] sm:$0xff]  ;;  %v2263_v16 = vsel %vm277_vm2, %v2148_v44, %v10903_v28  ;;  %v8477_v28 = vld [vmem:[%s14075_s3 + $0x544] ss:$8 sps:$4 sm:$0xff]  }
 0x309   :  { %v11521_v18 = vpop.permute.xlu0 %2477  ;;  %14368 = vst [vmem:[#allocation65_spill] sm:$0xff] %v11523_v33  ;;  %4348 = vmatprep.subr.bf16.mxu0 %v8495_v25  ;;  %v8468_v25 = vld [vmem:[%s14075_s3 + $0x554] ss:$8 sps:$4 sm:$0xff]   ;;  %v2266_v35 = vsel %vm277_vm2, %v2150_v23, %v10973_v26  ;;  %v2210_v17 = vsel %vm277_vm2, %v14370_v8, %v14369_v43  ;;  %v8466_v26 = vld [vmem:[%s14075_s3 + $0x550] ss:$8 sps:$4 sm:$0xff]  }
 0x30a   :  { %14367 = vst [vmem:[#allocation64_spill] sm:$0xff] %v11513_v59  ;;  %4262 = vmatmul.mubr.bf16.vlgmr.msra.gmra.mxu1 %v11513_v59  ;;  %v14373_v23 = vld [vmem:[#allocation8_spill] sm:$0xff]  ;;  %v11567_v59 = vcombine.low %v2263_v16, %v2266_v35  ;;  %v14375_v35 = vld [vmem:[#allocation30_spill] sm:$0xff] }
 0x30b   :  { %4271 = vmatprep.mubr.bf16.mxu1 %v11523_v33  ;;  %v2080_v21 = vpop.permute.xlu1 %2079  ;;  %4436 = vmatpush1.bf16.msra.mxu1 %v8451_v5  ;;  %v2093_v33 = vsel %vm205_vm0, %v14373_v23, %v11419_v34  ;;  %v8513_v34 = vld [vmem:[%s14075_s3 + $0x4c4] ss:$8 sps:$4 sm:$0xff]  }
 0x30c   :  { %4437 = vmatprep.subr.bf16.mxu1 %v8462_v40  ;;  %4349 = vmatpush2.bf16.msra.mxu0 %v8493_v13  ;;  %v14371_v40 = vld [vmem:[#allocation10_spill] sm:$0xff] }
 0x30d   :  { %v11546_v52 = vpop.permute.xlu0 %2483  ;;  %4350 = vmatprep.subr.bf16.mxu0 %v8501_v54  ;;  %v14372_v13 = vld [vmem:[#allocation46_spill] sm:$0xff] }
 0x30e   :  { %v2208_v54 = vsel %vm277_vm2, %v14372_v13, %v14371_v40 }
 0x30f   :  { %v11556_v5 = vpop.permute.xlu1 %2431  ;;  %4438 = vmatpush1.bf16.msra.mxu1 %v8460_v20  ;;  %v8505_v20 = vld [vmem:[%s14075_s3 + $0x4d0] ss:$8 sps:$4 sm:$0xff]   ;;  %v11575_v44 = vcombine.low %v2208_v54, %v2210_v17  ;;  %v2151_v17 = vsel %vm248_vm1, %v11236_v61, %v14375_v35  ;;  %v2152_v54 = vsel %vm248_vm1, %v14375_v35, %v2129_v15  ;;  %v8511_v15 = vld [vmem:[%s14075_s3 + $0x4c0] ss:$8 sps:$4 sm:$0xff]  }
 0x310   :  { %4439 = vmatprep.subr.bf16.mxu1 %v8468_v25  ;;  %4351 = vmatpush2.bf16.msra.mxu0 %v8499_v22  ;;  %v2212_v25 = vsel %vm277_vm2, %v11192_v53, %v11132_v31  ;;  %v2497_v22 = vsel %vm277_vm2, %v11217_v2, %v11152_v63 }
 0x311   :  { %v2062_v55 = vpop.permute.xlu0 %2061  ;;  %4352 = vmatprep.subr.bf16.mxu0 %v8507_v24  ;;  %v2245_v24 = vsel %vm248_vm1, %v2093_v33, %v11081_v6  ;;  %v11617_v33 = vcombine.low %v2151_v17, %v2153_v29  ;;  %v2269_v29 = vsel %vm277_vm2, %v2152_v54, %v14372_v13 }
 0x312   :  { %v2091_v16 = vsel %vm205_vm0, %v10831_v45, %v2062_v55  ;;  %4272 = vmatmul.mubr.bf16.gmra.mxu1 %v11567_v59  ;;  %v2097_v45 = vsel %vm205_vm0, %v11021_v38, %v2080_v21 }
 0x313   :  { %v2242_v23 = vsel %vm248_vm1, %v2091_v16, %v11143_v39  ;;  %4281 = vmatprep.mubr.bf16.mxu1 %v11575_v44  ;;  %v2135_v7 = vpop.permute.xlu1 %2134  ;;  %4440 = vmatpush1.bf16.msra.mxu1 %v8466_v26  ;;  %v8483_v39 = vld [vmem:[%s14075_s3 + $0x534] ss:$8 sps:$4 sm:$0xff]   ;;  %v7320_v26 = vcombine.low %v2497_v22, %v2497_v22 }
 0x314   :  { %v11607_v55 = vcombine.low %v2242_v23, %v2245_v24  ;;  %v2154_v6 = vsel %vm248_vm1, %v14374_v58, %v2135_v7  ;;  %4441 = vmatprep.subr.bf16.mxu1 %v8477_v28  ;;  %4353 = vmatpush2.bf16.msra.mxu0 %v8505_v20  ;;  %v8519_v7 = vld [vmem:[%s14075_s3 + $0x4b4] ss:$8 sps:$4 sm:$0xff]   ;;  %v7312_v58 = vcombine.low %v2212_v25, %v2212_v25  ;;  %v8487_v23 = vld [vmem:[%s14075_s3 + $0x520] ss:$8 sps:$4 sm:$0xff]  }
 0x315   :  { %v2272_v38 = vsel %vm277_vm2, %v2154_v6, %v14370_v8  ;;  %v2074_v21 = vpop.permute.xlu0 %2073  ;;  %4354 = vmatprep.subr.bf16.mxu0 %v8513_v34  ;;  %v2445_v28 = vsel %vm248_vm1, %v11267_v47, %v11435_v60  ;;  %v2251_v8 = vsel %vm248_vm1, %v2097_v45, %v11175_v0  ;;  %v2446_v47 = vsel %vm248_vm1, %v11435_v60, %v11329_v46  ;;  %v8489_v0 = vld [vmem:[%s14075_s3 + $0x524] ss:$8 sps:$4 sm:$0xff]  }
 0x316   :  { %v2095_v20 = vsel %vm205_vm0, %v10985_v49, %v2074_v21  ;;  %4169 = vmatmul.mubr.bf16.gmra.mxu0 %v11607_v55  ;;  %v8481_v49 = vld [vmem:[%s14075_s3 + $0x530] ss:$8 sps:$4 sm:$0xff]   ;;  %v11645_v13 = vcombine.low %v2269_v29, %v2272_v38  ;;  %v8525_v46 = vld [vmem:[%s14075_s3 + $0x4a4] ss:$8 sps:$4 sm:$0xff]   ;;  %v7318_v60 = vcombine.low %v2445_v28, %v2445_v28  ;;  %v11665_v16 = vsel %vm2777_vm3, %v7312_v58, %v7320_v26 }
 0x317   :  { %v2248_v34 = vsel %vm248_vm1, %v2095_v20, %v11236_v61  ;;  %4178 = vmatprep.mubr.bf16.mxu0 %v11617_v33  ;;  %v11637_v25 = vpop.permute.xlu1 %2485  ;;  %4442 = vmatpush1.bf16.msra.mxu1 %v8475_v62  ;;  %v8517_v61 = vld [vmem:[%s14075_s3 + $0x4b0] ss:$8 sps:$4 sm:$0xff]   ;;  %v2552_v24 = vsel %vm277_vm2, %v2446_v47, %v11217_v2  ;;  %v8523_v2 = vld [vmem:[%s14075_s3 + $0x4a0] ss:$8 sps:$4 sm:$0xff]  }
 0x318   :  { %v11647_v22 = vcombine.low %v2248_v34, %v2251_v8  ;;  %4443 = vmatprep.subr.bf16.mxu1 %v8483_v39  ;;  %4355 = vmatpush2.bf16.msra.mxu0 %v8511_v15  ;;  %v14376_v62 = vld [vmem:[#allocation37_spill] sm:$0xff]  ;;  %v2501_v15 = vsel %vm277_vm2, %v11350_v30, %v11224_v37  ;;  %v7319_v58 = vcombine.low %v2552_v24, %v2552_v24  ;;  %v14378_v34 = vld [vmem:[#allocation19_spill] sm:$0xff] }
 0x319   :  { %v2155_v35 = vsel %vm248_vm1, %v11247_v48, %v14376_v62  ;;  %v11658_v17 = vpop.permute.xlu0 %2357  ;;  %4356 = vmatprep.subr.bf16.mxu0 %v8519_v7  ;;  %v8498_v39 = vld [vmem:[%s14075_s3 + $0x514] ss:$8 sps:$4 sm:$0xff]   ;;  %v8496_v8 = vld [vmem:[%s14075_s3 + $0x510] ss:$8 sps:$4 sm:$0xff]   ;;  %v8502_v24 = vld [vmem:[%s14075_s3 + $0x500] ss:$8 sps:$4 sm:$0xff]  }
 0x31a   :  { %4282 = vmatmul.mubr.bf16.gmra.mxu1 %v11645_v13  ;;  %v7310_v45 = vcombine.low %v2155_v35, %v2155_v35  ;;  %v8528_v7 = vld [vmem:[%s14075_s3 + $0x494] ss:$8 sps:$4 sm:$0xff]  }
 0x31b   :  { %4291 = vmatprep.mubr.bf16.mxu1 %v11665_v16  ;;  %v2141_v54 = vpop.permute.xlu1 %2140  ;;  %4444 = vmatpush1.bf16.msra.mxu1 %v8481_v49  ;;  %v14377_v28 = vld [vmem:[#allocation13_spill] sm:$0xff]  ;;  %v2499_v49 = vsel %vm277_vm2, %v11309_v10, %v14378_v34  ;;  %v8534_v10 = vld [vmem:[%s14075_s3 + $0x484] ss:$8 sps:$4 sm:$0xff]  }
 0x31c   :  { %v2156_v6 = vsel %vm248_vm1, %v14376_v62, %v2141_v54  ;;  %4445 = vmatprep.subr.bf16.mxu1 %v8489_v0  ;;  %4357 = vmatpush2.bf16.msra.mxu0 %v8517_v61  ;;  %v11693_v29 = vsel %vm2777_vm3, %v7310_v45, %v7318_v60  ;;  %v8526_v0 = vld [vmem:[%s14075_s3 + $0x490] ss:$8 sps:$4 sm:$0xff]   ;;  %v11713_v61 = vcombine.low %v2499_v49, %v2501_v15  ;;  %v8510_v45 = vld [vmem:[%s14075_s3 + $0x594] ss:$8 sps:$4 sm:$0xff]   ;;  %v8514_v49 = vld [vmem:[%s14075_s3 + $0x580] ss:$8 sps:$4 sm:$0xff]  }
 0x31d   :  { %v2275_v38 = vsel %vm277_vm2, %v2156_v6, %v11192_v53  ;;  %v2086_v21 = vpop.permute.xlu0 %2085  ;;  %4358 = vmatprep.subr.bf16.mxu0 %v8525_v46  ;;  %v7317_v46 = vcombine.low %v11480_v19, %v11480_v19  ;;  %v8532_v19 = vld [vmem:[%s14075_s3 + $0x480] ss:$8 sps:$4 sm:$0xff]  }
 0x31e   :  { %v7311_v26 = vcombine.low %v2275_v38, %v2275_v38  ;;  %v2099_v20 = vsel %vm205_vm0, %v14377_v28, %v2086_v21  ;;  %4179 = vmatmul.mubr.bf16.gmra.mxu0 %v11647_v22  ;;  %v8508_v38 = vld [vmem:[%s14075_s3 + $0x590] ss:$8 sps:$4 sm:$0xff]   ;;  %v2503_v21 = vsel %vm277_vm2, %v11521_v18, %v11360_v9 }
 0x31f   :  { %v2254_v30 = vsel %vm248_vm1, %v2099_v20, %v11247_v48  ;;  %4188 = vmatprep.mubr.bf16.mxu0 %v11693_v29  ;;  %v2364_v53 = vpop.permute.xlu1 %2363  ;;  %4446 = vmatpush1.bf16.msra.mxu1 %v8487_v23  ;;  %v8504_v48 = vld [vmem:[%s14075_s3 + $0x504] ss:$8 sps:$4 sm:$0xff]  }
 0x320   :  { %v11705_v47 = vsel %vm2777_vm3, %v7311_v26, %v7319_v58  ;;  %4447 = vmatprep.subr.bf16.mxu1 %v8498_v39  ;;  %4359 = vmatpush2.bf16.msra.mxu0 %v8523_v2  ;;  %v7309_v62 = vcombine.low %v2254_v30, %v2254_v30  ;;  %v8516_v58 = vld [vmem:[%s14075_s3 + $0x584] ss:$8 sps:$4 sm:$0xff]   ;;  %v2454_v30 = vsel %vm248_vm1, %v11393_v36, %v11556_v5 }
 0x321   :  { %v2410_v35 = vpop.permute.xlu0 %2409  ;;  %4360 = vmatprep.subr.bf16.mxu0 %v8528_v7  ;;  %v2394_v7 = vsel %vm205_vm0, %v10868_v3, %v2364_v53  ;;  %v2392_v3 = vsel %vm205_vm0, %v10812_v51, %v11658_v17  ;;  %v8522_v51 = vld [vmem:[%s14075_s3 + $0x614] ss:$8 sps:$4 sm:$0xff]   ;;  %v2564_v5 = vsel %vm277_vm2, %v2454_v30, %v11546_v52 }
 0x322   :  { %4292 = vmatmul.mubr.bf16.gmra.mxu1 %v11705_v47  ;;  %v2447_v54 = vsel %vm248_vm1, %v2410_v35, %v11260_v14  ;;  %v11740_v2 = vsel %vm2777_vm3, %v7309_v62, %v7317_v46  ;;  %v8543_v14 = vld [vmem:[%s14075_s3 + $0x714] ss:$8 sps:$4 sm:$0xff]   ;;  %v2534_v53 = vsel %vm248_vm1, %v2392_v3, %v2410_v35 }
 0x323   :  { %4301 = vmatprep.mubr.bf16.mxu1 %v11713_v61  ;;  %v2416_v60 = vpop.permute.xlu1 %2415  ;;  %4448 = vmatpush1.bf16.msra.mxu1 %v8496_v8 }
 0x324   :  { %v2449_v23 = vsel %vm248_vm1, %v2416_v60, %v11280_v57  ;;  %4449 = vmatprep.subr.bf16.mxu1 %v8504_v48  ;;  %4361 = vmatpush2.bf16.msra.mxu0 %v8526_v0  ;;  %v2505_v57 = vsel %vm277_vm2, %v11546_v52, %v11637_v25  ;;  %v2537_v28 = vsel %vm248_vm1, %v2394_v7, %v2416_v60  ;;  %v11817_v7 = vpop.f32.mrf.mxu0 }
 0x325   :  { %v11735_v6 = vcombine.low %v2447_v54, %v2449_v23  ;;  %v11737_v39 = vpop.permute.xlu0 %2435  ;;  %4362 = vmatprep.subr.bf16.mxu0 %v8534_v10  ;;  %v11761_v26 = vcombine.low %v2503_v21, %v2505_v57  ;;  %v11780_v48 = vcombine.low %v2534_v53, %v2537_v28  ;;  %v2452_v0 = vsel %vm248_vm1, %v11374_v42, %v11482_v11 }
 0x326   :  { %4189 = vmatmul.mubr.bf16.gmra.mxu0 %v11740_v2  ;;  %v2561_v62 = vsel %vm277_vm2, %v2452_v0, %v11521_v18  ;;  %v14384_v0 = vld [vmem:[#allocation31_spill] sm:$0xff] }
 0x327   :  { %4198 = vmatprep.mubr.bf16.mxu0 %v11735_v6  ;;  %v2438_v15 = vpop.permute.xlu1 %2437  ;;  %4450 = vmatpush1.bf16.msra.mxu1 %v8502_v24  ;;  %14379 = vst [vmem:[#allocation11_spill] sm:$0xff] %v11761_v26  ;;  %v11793_v10 = vcombine.low %v2561_v62, %v2564_v5  ;;  %v8531_v5 = vld [vmem:[%s14075_s3 + $0x604] ss:$8 sps:$4 sm:$0xff]  }
 0x328   :  { %4463 = vmatprep.subr.bf16.mxu1 %v8510_v45  ;;  %4363 = vmatpush2.bf16.msra.mxu0 %v8532_v19  ;;  %v2456_v23 = vsel %vm248_vm1, %v11737_v39, %v2438_v15 }
 0x329   :  { %v11764_v20 = vpop.permute.xlu0 %2441  ;;  %5736 = vmatprep.subr.bf16.mxu0 %v8543_v14  ;;  %14380 = vst [vmem:[#allocation33_spill] sm:$0xff] %v11793_v10 }
 0x32a   :  { %4302 = vmatmul.mubr.bf16.gmra.mxu1 %v11462_v12 }
 0x32b   :  { %4311 = vmatprep.mubr.bf16.mxu1 %v11761_v26  ;;  %v11775_v8 = vpop.permute.xlu1 %2491  ;;  %4464 = vmatpush2.bf16.msra.mxu1 %v8508_v38 }
 0x32c   :  { %4465 = vmatprep.subr.bf16.mxu1 %v8516_v58 }
 0x32d   :  { %v2490_v17 = vpop.permute.xlu0 %2489 }
 0x32e   :  { %4199 = vmatmul.mubr.bf16.gmra.mxu0 %v11780_v48  ;;  %v2507_v46 = vsel %vm277_vm2, %v2490_v17, %v11775_v8  ;;  %v2567_v45 = vsel %vm277_vm2, %v2456_v23, %v2490_v17 }
 0x32f   :  { %v2370_v35 = vpop.permute.xlu1 %2369  ;;  %4466 = vmatpush2.bf16.msra.mxu1 %v8514_v49 }
 0x330   :  { %5633 = vmatprep.subr.bf16.mxu1 %v8522_v51  ;;  %v2396_v57 = vsel %vm205_vm0, %v10940_v32, %v2370_v35  ;;  %v8520_v51 = vld [vmem:[%s14075_s3 + $0x610] ss:$8 sps:$4 sm:$0xff]   ;;  %v14385_v35 = vld [vmem:[#allocation34_spill] sm:$0xff] }
 0x331   :  { %v11797_v60 = vpop.permute.xlu0 %2495 }
 0x332   :  { %v11800_v52 = vcombine.low %v2507_v46, %v11797_v60  ;;  %4312 = vmatmul.mubr.bf16.gmra.mxu1 %v11793_v10 }
 0x333   :  { %v2444_v11 = vpop.permute.xlu1 %2443 }
 0x334   :  { %14381 = vst [vmem:[#allocation10_spill] sm:$0xff] %v11800_v52  ;;  %v2458_v24 = vsel %vm248_vm1, %v11764_v20, %v2444_v11  ;;  %4321 = vmatprep.mubr.bf16.mxu1 %v11800_v52  ;;  %v8658_v52 = vld [vmem:[%s14075_s3 + $0x7a0] ss:$8 sps:$4 sm:$0xff]  }
 0x335   :  { %v2570_v18 = vsel %vm277_vm2, %v2458_v24, %v11797_v60  ;;  %v2376_v54 = vpop.permute.xlu0 %2375 }
 0x336   :  { %v11811_v14 = vcombine.low %v2567_v45, %v2570_v18  ;;  %v2398_v38 = vsel %vm205_vm0, %v10995_v1, %v2376_v54  ;;  %v14383_v1 = vld [vmem:[#allocation23_spill] sm:$0xff]  ;;  %v14386_v18 = vld [vmem:[#allocation6_spill] sm:$0xff] }
 0x337   :  { %v2422_v19 = vpop.permute.xlu1 %2421 }
 0x338   :  { %14382 = vst [vmem:[#allocation46_spill] sm:$0xff] %v11811_v14  ;;  %v2451_v58 = vsel %vm248_vm1, %v2422_v19, %v11374_v42  ;;  %v2540_v28 = vsel %vm248_vm1, %v2396_v57, %v2422_v19  ;;  %v11833_v42 = vpop.f32.mrf.mxu0  ;;  %v14387_v19 = vld [vmem:[#allocation25_spill] sm:$0xff] }
 0x339   :  { %v2428_v21 = vpop.permute.xlu0 %2427 }
 0x33a   :  { %v2453_v15 = vsel %vm248_vm1, %v2428_v21, %v11393_v36  ;;  %v2543_v30 = vsel %vm248_vm1, %v2398_v38, %v2428_v21  ;;  %4322 = vmatmul.mubr.bf16.gmra.mxu1 %v11811_v14  ;;  %v11842_v17 = vpop.f32.mrf.mxu0  ;;  %v8529_v38 = vld [vmem:[%s14075_s3 + $0x600] ss:$8 sps:$4 sm:$0xff]  }
 0x33b   :  { %v11826_v3 = vcombine.low %v2540_v28, %v2543_v30  ;;  %v11828_v32 = vcombine.low %v2451_v58, %v2453_v15  ;;  %7531 = vmatprep.mubr.msk.bf16.mxu1 %vm205_vm0, %v14383_v1  ;;  %v2382_v53 = vpop.permute.xlu1 %2381  ;;  %v8535_v30 = vld [vmem:[%s14075_s3 + $0x5f0] ss:$8 sps:$4 sm:$0xff]  }
 0x33c   :  { %v2400_v62 = vsel %vm205_vm0, %v14384_v0, %v2382_v53  ;;  %v11867_v58 = vpop.f32.mrf.mxu0  ;;  %v14389_v53 = vld [vmem:[#allocation49_spill] sm:$0xff]  ;;  %v14425_v1 = vld [vmem:[#allocation4_spill] sm:$0xff] }
 0x33d   :  { %4208 = vmatprep.mubr.bf16.mxu0 %v11828_v32  ;;  %v14391_v0 = vld [vmem:[#allocation29_spill] sm:$0xff] }
 0x33e   :  { %v2388_v49 = vpop.permute.xlu0 %2387  ;;  %4209 = vmatmul.mubr.bf16.gmra.mxu0 %v11826_v3 }
 0x33f   :  { %v2434_v36 = vpop.permute.xlu1 %2433  ;;  %v2402_v46 = vsel %vm205_vm0, %v14385_v35, %v2388_v49  ;;  %v8540_v49 = vld [vmem:[%s14075_s3 + $0x5e4] ss:$8 sps:$4 sm:$0xff]   ;;  %v8538_v35 = vld [vmem:[%s14075_s3 + $0x5e0] ss:$8 sps:$4 sm:$0xff]  }
 0x340   :  { %v2455_v11 = vsel %vm248_vm1, %v2434_v36, %v11737_v39  ;;  %v2546_v54 = vsel %vm248_vm1, %v2400_v62, %v2434_v36  ;;  %v11878_v36 = vpop.f32.mrf.mxu0 }
 0x342   :  { %v2440_v24 = vpop.permute.xlu0 %2439  ;;  %4468 = vmatmul.mubr.bf16.vlgmr.msra.gmra.mxu1 %v14386_v18 }
 0x343   :  { %v2457_v23 = vsel %vm248_vm1, %v2440_v24, %v11764_v20  ;;  %v2549_v45 = vsel %vm248_vm1, %v2402_v46, %v2440_v24  ;;  %5634 = vmatpush1.bf16.msra.mxu1 %v8520_v51  ;;  %7532 = vmatprep.mubr.msk.bf16.mxu1 %vm205_vm0, %v14387_v19  ;;  %v2162_v57 = vpop.permute.xlu1 %2161  ;;  %v8537_v20 = vld [vmem:[%s14075_s3 + $0x5f4] ss:$8 sps:$4 sm:$0xff]  }
 0x344   :  { %v11860_v39 = vcombine.low %v2546_v54, %v2549_v45  ;;  %v11862_v21 = vcombine.low %v2455_v11, %v2457_v23  ;;  %5635 = vmatprep.subr.bf16.mxu1 %v8531_v5  ;;  %v14390_v5 = vld [vmem:[#allocation53_spill] sm:$0xff]  ;;  %v2201_v46 = vsel %vm277_vm2, %v11411_v4, %v2162_v57  ;;  %v8549_v54 = vld [vmem:[%s14075_s3 + $0x704] ss:$8 sps:$4 sm:$0xff]   ;;  %v11901_v23 = vpop.f32.mrf.mxu0 }
 0x345   :  { %v8541_v11 = vld [vmem:[%s14075_s3 + $0x710] ss:$8 sps:$4 sm:$0xff]   ;;  %v8546_v24 = vld [vmem:[%s14075_s3 + $0x5d4] ss:$8 sps:$4 sm:$0xff]  }
 0x346   :  { %14388 = vst [vmem:[#allocation8_spill] sm:$0xff] %v11860_v39  ;;  %4218 = vmatprep.mubr.bf16.mxu0 %v11862_v21  ;;  %v2168_v28 = vpop.permute.xlu0 %2167  ;;  %v8544_v57 = vld [vmem:[%s14075_s3 + $0x5d0] ss:$8 sps:$4 sm:$0xff]  }
 0x347   :  { %4219 = vmatmul.mubr.bf16.gmra.mxu0 %v11860_v39  ;;  %5636 = vmatpush1.bf16.msra.mxu1 %v8529_v38  ;;  %v2174_v15 = vpop.permute.xlu1 %2173  ;;  %v2203_v51 = vsel %vm277_vm2, %v10853_v27, %v2168_v28  ;;  %v14393_v38 = vld [vmem:[#allocation52_spill] sm:$0xff]  ;;  %v8552_v28 = vld [vmem:[%s14075_s3 + $0x5c4] ss:$8 sps:$4 sm:$0xff]  }
 0x348   :  { %4364 = vmatprep.mubr.bf16.mxu0 %v14389_v53  ;;  %5637 = vmatprep.subr.bf16.mxu1 %v8537_v20  ;;  %v11893_v27 = vcombine.low %v2201_v46, %v2203_v51  ;;  %v8547_v20 = vld [vmem:[%s14075_s3 + $0x700] ss:$8 sps:$4 sm:$0xff]   ;;  %v14395_v46 = vld [vmem:[#allocation45_spill] sm:$0xff]  ;;  %v14452_v39 = vld [vmem:[#allocation56_spill] sm:$0xff] }
 0x34a   :  { %4478 = vmatmul.mubr.bf16.gmra.mxu1 %v14390_v5  ;;  %14392 = vst [vmem:[#allocation32_spill] sm:$0xff] %v11893_v27  ;;  %v2180_v45 = vpop.permute.xlu0 %2179 }
 0x34b   :  { %5638 = vmatpush1.bf16.msra.mxu1 %v8535_v30  ;;  %7533 = vmatprep.mubr.msk.bf16.mxu1 %vm205_vm0, %v14391_v0  ;;  %v2186_v62 = vpop.permute.xlu1 %2185  ;;  %v8555_v30 = vld [vmem:[%s14075_s3 + $0x6f4] ss:$8 sps:$4 sm:$0xff]   ;;  %v2207_v51 = vsel %vm277_vm2, %v10981_v41, %v2180_v45  ;;  %v2205_v41 = vsel %vm277_vm2, %v10932_v56, %v2174_v15 }
 0x34c   :  { %5639 = vmatprep.subr.bf16.mxu1 %v8540_v49  ;;  %v11919_v49 = vpop.f32.mrf.mxu0  ;;  %v11941_v45 = vcombine.low %v2205_v41, %v2207_v51  ;;  %v8564_v51 = vld [vmem:[%s14075_s3 + $0x5a4] ss:$8 sps:$4 sm:$0xff]  }
 0x34e   :  { %14397 = vst [vmem:[#allocation37_spill] sm:$0xff] %v11941_v45  ;;  %v2192_v56 = vpop.permute.xlu0 %2191 }
 0x34f   :  { %4365 = vmatmul.mubr.bf16.vlgmr.msra.gmra.mxu0 %v11893_v27  ;;  %5640 = vmatpush1.bf16.msra.mxu1 %v8538_v35  ;;  %v11904_v4 = vpop.permute.xlu1 %2197  ;;  %v14394_v35 = vld [vmem:[#allocation42_spill] sm:$0xff] }
 0x350   :  { %5737 = vmatpush1.bf16.msra.mxu0 %v8541_v11  ;;  %4374 = vmatprep.mubr.bf16.mxu0 %v14393_v38  ;;  %v11927_v11 = vsel %vm2777_vm3, %v14395_v46, %v10875_v50  ;;  %v8553_v50 = vld [vmem:[%s14075_s3 + $0x6f0] ss:$8 sps:$4 sm:$0xff]  }
 0x351   :  { %5641 = vmatprep.subr.bf16.mxu1 %v8546_v24  ;;  %5738 = vmatprep.subr.bf16.mxu0 %v8549_v54  ;;  %14396 = vst [vmem:[#allocation30_spill] sm:$0xff] %v11927_v11  ;;  %v8550_v54 = vld [vmem:[%s14075_s3 + $0x5c0] ss:$8 sps:$4 sm:$0xff]  }
 0x352   :  { %4488 = vmatmul.mubr.bf16.gmra.mxu1 %v14394_v35  ;;  %v11949_v35 = vpop.f32.mrf.mxu0  ;;  %v2464_v19 = vpop.permute.xlu0 %2463 }
 0x353   :  { %5642 = vmatpush1.bf16.msra.mxu1 %v8544_v57  ;;  %7534 = vmatprep.mubr.msk.bf16.mxu1 %vm205_vm0, %v11927_v11  ;;  %v11931_v24 = vpop.permute.xlu1 %2469  ;;  %v8558_v57 = vld [vmem:[%s14075_s3 + $0x5b4] ss:$8 sps:$4 sm:$0xff]   ;;  %v8561_v11 = vld [vmem:[%s14075_s3 + $0x6e4] ss:$8 sps:$4 sm:$0xff]  }
 0x354   :  { %5739 = vmatpush1.bf16.msra.mxu0 %v8547_v20  ;;  %5643 = vmatprep.subr.bf16.mxu1 %v8552_v28  ;;  %v8556_v20 = vld [vmem:[%s14075_s3 + $0x5b0] ss:$8 sps:$4 sm:$0xff]   ;;  %v11972_v0 = vpop.f32.mrf.mxu0 }
 0x355   :  { %5740 = vmatprep.subr.bf16.mxu0 %v8555_v30  ;;  %v14398_v28 = vld [vmem:[#allocation21_spill] sm:$0xff]  ;;  %v8559_v30 = vld [vmem:[%s14075_s3 + $0x6e0] ss:$8 sps:$4 sm:$0xff]  }
 0x357   :  { %4375 = vmatmul.mubr.bf16.gmra.mxu0 %v11941_v45  ;;  %5644 = vmatpush1.bf16.msra.mxu1 %v8550_v54  ;;  %v11952_v15 = vpop.permute.xlu1 %2481  ;;  %v14399_v54 = vld [vmem:[#allocation48_spill] sm:$0xff]  ;;  %v14401_v45 = vld [vmem:[#allocation3_spill] sm:$0xff] }
 0x358   :  { %5741 = vmatpush1.bf16.msra.mxu0 %v8553_v50  ;;  %4384 = vmatprep.mubr.bf16.mxu0 %v14398_v28  ;;  %v11967_v41 = vsel %vm2777_vm3, %v14395_v46, %v14399_v54  ;;  %v8567_v50 = vld [vmem:[%s14075_s3 + $0x6d4] ss:$8 sps:$4 sm:$0xff]   ;;  %v2211_v28 = vsel %vm277_vm2, %v14369_v43, %v2192_v56  ;;  %v2209_v54 = vsel %vm277_vm2, %v14371_v40, %v2186_v62  ;;  %v8565_v43 = vld [vmem:[%s14075_s3 + $0x6d0] ss:$8 sps:$4 sm:$0xff]   ;;  %v8573_v62 = vld [vmem:[%s14075_s3 + $0x6c4] ss:$8 sps:$4 sm:$0xff]  }
 0x359   :  { %5645 = vmatprep.subr.bf16.mxu1 %v8558_v57  ;;  %5742 = vmatprep.subr.bf16.mxu0 %v8561_v11  ;;  %14400 = vst [vmem:[#allocation13_spill] sm:$0xff] %v11967_v41  ;;  %v8562_v57 = vld [vmem:[%s14075_s3 + $0x5a0] ss:$8 sps:$4 sm:$0xff]   ;;  %v11989_v56 = vcombine.low %v2209_v54, %v2211_v28  ;;  %v8570_v40 = vld [vmem:[%s14075_s3 + $0x694] ss:$8 sps:$4 sm:$0xff]  }
 0x35a   :  { %4498 = vmatmul.mubr.bf16.gmra.mxu1 %v11967_v41  ;;  %v14404_v28 = vld [vmem:[#allocation50_spill] sm:$0xff]  ;;  %v14407_v54 = vld [vmem:[#allocation5_spill] sm:$0xff] }
 0x35b   :  { %5646 = vmatpush1.bf16.msra.mxu1 %v8556_v20  ;;  %7535 = vmatprep.mubr.msk.bf16.mxu1 %vm205_vm0, %v14401_v45  ;;  %v2494_v11 = vpop.permute.xlu1 %2493  ;;  %14402 = vst [vmem:[#allocation19_spill] sm:$0xff] %v11989_v56  ;;  %v8583_v45 = vld [vmem:[%s14075_s3 + $0x6a0] ss:$8 sps:$4 sm:$0xff]  }
 0x35c   :  { %5743 = vmatpush1.bf16.msra.mxu0 %v8559_v30  ;;  %v2508_v27 = vsel %vm277_vm2, %v11775_v8, %v2494_v11  ;;  %5647 = vmatprep.subr.bf16.mxu1 %v8564_v51  ;;  %v12000_v8 = vpop.f32.mrf.mxu0  ;;  %v2498_v30 = vsel %vm277_vm2, %v11152_v63, %v2464_v19  ;;  %v8571_v51 = vld [vmem:[%s14075_s3 + $0x6c0] ss:$8 sps:$4 sm:$0xff]   ;;  %v8576_v63 = vld [vmem:[%s14075_s3 + $0x684] ss:$8 sps:$4 sm:$0xff]   ;;  %v2213_v19 = vsel %vm277_vm2, %v11132_v31, %v11904_v4  ;;  %v8577_v4 = vld [vmem:[%s14075_s3 + $0x6b0] ss:$8 sps:$4 sm:$0xff]  }
 0x35d   :  { %v11992_v20 = vcombine.low %v2508_v27, %v11797_v60  ;;  %5744 = vmatprep.subr.bf16.mxu0 %v8567_v50  ;;  %v12008_v60 = vsel %vm2777_vm3, %v14395_v46, %v14404_v28  ;;  %v8568_v27 = vld [vmem:[%s14075_s3 + $0x690] ss:$8 sps:$4 sm:$0xff]   ;;  %v8579_v46 = vld [vmem:[%s14075_s3 + $0x6b4] ss:$8 sps:$4 sm:$0xff]   ;;  %v7321_v11 = vcombine.low %v2498_v30, %v2498_v30  ;;  %v7313_v31 = vcombine.low %v2213_v19, %v2213_v19  ;;  %v14415_v41 = vld [vmem:[#allocation18_spill] sm:$0xff] }
 0x35e   :  { %14405 = vst [vmem:[#allocation34_spill] sm:$0xff] %v12008_v60  ;;  %v12026_v50 = vpop.f32.mrf.mxu0 }
 0x35f   :  { %14403 = vst [vmem:[#allocation31_spill] sm:$0xff] %v11992_v20  ;;  %4385 = vmatmul.mubr.bf16.gmra.mxu0 %v11989_v56  ;;  %5648 = vmatpush1.bf16.msra.mxu1 %v8562_v57  ;;  %v14406_v57 = vld [vmem:[#allocation38_spill] sm:$0xff]  ;;  %v2500_v56 = vsel %vm277_vm2, %v14378_v34, %v11931_v24  ;;  %v8592_v24 = vld [vmem:[%s14075_s3 + $0x650] ss:$8 sps:$4 sm:$0xff]  }
 0x360   :  { %5745 = vmatpush1.bf16.msra.mxu0 %v8565_v43  ;;  %4394 = vmatprep.mubr.bf16.mxu0 %v12008_v60  ;;  %v8574_v43 = vld [vmem:[%s14075_s3 + $0x680] ss:$8 sps:$4 sm:$0xff]   ;;  %v12046_v19 = vpop.f32.mrf.mxu0 }
 0x361   :  { %5649 = vmatprep.subr.bf16.mxu1 %v8570_v40  ;;  %5746 = vmatprep.subr.bf16.mxu0 %v8573_v62  ;;  %v14408_v40 = vld [vmem:[#allocation9_spill] sm:$0xff]  ;;  %v14409_v62 = vld [vmem:[#allocation28_spill] sm:$0xff] }
 0x362   :  { %4508 = vmatmul.mubr.bf16.gmra.mxu1 %v14406_v57  ;;  %v14410_v30 = vpack.c.bf16 %v14408_v40, %v14409_v62  ;;  %v14412_v40 = vmov 0  }
 0x363   :  { %5650 = vmatpush2.bf16.msra.mxu1 %v8568_v27  ;;  %7536 = vmatprep.mubr.msk.bf16.mxu1 %vm205_vm0, %v14407_v54  ;;  %v8582_v27 = vld [vmem:[%s14075_s3 + $0x674] ss:$8 sps:$4 sm:$0xff]   ;;  %v8585_v54 = vld [vmem:[%s14075_s3 + $0x6a4] ss:$8 sps:$4 sm:$0xff]   ;;  %v2297_v62 = vunpack.c.l.b16 %v14412_v40  ;;  %v12068_v40 = vpop.f32.mrf.mxu0 }
 0x364   :  { %5747 = vmatpush1.bf16.msra.mxu0 %v8571_v51  ;;  %5651 = vmatprep.subr.bf16.mxu1 %v8576_v63  ;;  %v2004_v28 = vunpack.c.h.b16 %v14410_v30  ;;  %v12049_v51 = vsel %vm2777_vm3, %v7313_v31, %v7321_v11  ;;  %v2476_v63 = vpop.permute.xlu0 %2475  ;;  %v14413_v30 = vld [vmem:[#allocation51_spill] sm:$0xff]  ;;  %v8591_v31 = vld [vmem:[%s14075_s3 + $0x794] ss:$8 sps:$4 sm:$0xff]  }
 0x365   :  { %5748 = vmatprep.subr.bf16.mxu0 %v8579_v46  ;;  %14411 = vst [vmem:[#allocation45_spill] sm:$0xff] %v12049_v51  ;;  %v8580_v46 = vld [vmem:[%s14075_s3 + $0x670] ss:$8 sps:$4 sm:$0xff]   ;;  %v8588_v11 = vld [vmem:[%s14075_s3 + $0x664] ss:$8 sps:$4 sm:$0xff]  }
 0x367   :  { %4395 = vmatmul.mubr.bf16.gmra.mxu0 %v12049_v51  ;;  %5652 = vmatpush2.bf16.msra.mxu1 %v8574_v43  ;;  %v12063_v43 = vpack.c.b16 %v2297_v62, %v2004_v28  ;;  %v14416_v28 = vld [vmem:[#allocation44_spill] sm:$0xff] }
 0x368   :  { %5749 = vmatpush1.bf16.msra.mxu0 %v8577_v4  ;;  %4404 = vmatprep.mubr.bf16.mxu0 %v14413_v30  ;;  %v2502_v4 = vsel %vm277_vm2, %v11224_v37, %v2476_v63  ;;  %v8589_v37 = vld [vmem:[%s14075_s3 + $0x790] ss:$8 sps:$4 sm:$0xff]   ;;  %v2488_v34 = vpop.permute.xlu0 %2487 }
 0x369   :  { %5653 = vmatprep.subr.bf16.mxu1 %v8582_v27  ;;  %5750 = vmatprep.subr.bf16.mxu0 %v8585_v54  ;;  %14414 = vst [vmem:[#allocation48_spill] sm:$0xff] %v12063_v43  ;;  %v8586_v54 = vld [vmem:[%s14075_s3 + $0x660] ss:$8 sps:$4 sm:$0xff]   ;;  %v12087_v63 = vcombine.low %v2500_v56, %v2502_v4  ;;  %v8603_v4 = vld [vmem:[%s14075_s3 + $0x774] ss:$8 sps:$4 sm:$0xff]  }
 0x36a   :  { %4518 = vmatmul.mubr.bf16.gmra.mxu1 %v14415_v41  ;;  %v14417_v27 = vld [vmem:[#allocation22_spill] sm:$0xff] }
 0x36b   :  { %5654 = vmatpush2.bf16.msra.mxu1 %v8580_v46  ;;  %7537 = vmatprep.mubr.msk.bf16.mxu1 %vm205_vm0, %v12063_v43  ;;  %v14418_v51 = vpack.c.bf16 %v14416_v28, %v14417_v27  ;;  %14419 = vst [vmem:[#allocation50_spill] sm:$0xff] %v12087_v63  ;;  %v8594_v46 = vld [vmem:[%s14075_s3 + $0x654] ss:$8 sps:$4 sm:$0xff]   ;;  %v12095_v28 = vpop.f32.mrf.mxu0  ;;  %v8595_v56 = vld [vmem:[%s14075_s3 + $0x780] ss:$8 sps:$4 sm:$0xff]   ;;  %v2506_v27 = vsel %vm277_vm2, %v11637_v25, %v2488_v34 }
 0x36c   :  { %5751 = vmatpush1.bf16.msra.mxu0 %v8583_v45  ;;  %5655 = vmatprep.subr.bf16.mxu1 %v8588_v11  ;;  %v14420_v45 = vld [vmem:[#allocation54_spill] sm:$0xff]  ;;  %v8601_v25 = vld [vmem:[%s14075_s3 + $0x770] ss:$8 sps:$4 sm:$0xff]  }
 0x36d   :  { %v2003_v60 = vunpack.c.h.b16 %v14418_v51  ;;  %5752 = vmatprep.subr.bf16.mxu0 %v8591_v31  ;;  %v8597_v51 = vld [vmem:[%s14075_s3 + $0x784] ss:$8 sps:$4 sm:$0xff]  }
 0x36e   :  { %v8600_v31 = vld [vmem:[%s14075_s3 + $0x644] ss:$8 sps:$4 sm:$0xff]  }
 0x36f   :  { %4405 = vmatmul.mubr.bf16.gmra.mxu0 %v12087_v63  ;;  %5656 = vmatpush2.bf16.msra.mxu1 %v8586_v54  ;;  %v12105_v11 = vpack.c.b16 %v2297_v62, %v2003_v60  ;;  %v12113_v54 = vpop.f32.mrf.mxu0  ;;  %v14423_v60 = vld [vmem:[#allocation41_spill] sm:$0xff] }
 0x370   :  { %5753 = vmatpush2.bf16.msra.mxu0 %v8589_v37  ;;  %4414 = vmatprep.mubr.bf16.mxu0 %v14420_v45  ;;  %v14422_v37 = vld [vmem:[#allocation2_spill] sm:$0xff] }
 0x371   :  { %14421 = vst [vmem:[#allocation9_spill] sm:$0xff] %v12105_v11  ;;  %5657 = vmatprep.subr.bf16.mxu1 %v8594_v46  ;;  %5754 = vmatprep.subr.bf16.mxu0 %v8597_v51  ;;  %v14424_v43 = vpack.c.bf16 %v14422_v37, %v14423_v60  ;;  %v8598_v46 = vld [vmem:[%s14075_s3 + $0x640] ss:$8 sps:$4 sm:$0xff]   ;;  %v2504_v51 = vsel %vm277_vm2, %v11360_v9, %v11952_v15  ;;  %v8604_v15 = vld [vmem:[%s14075_s3 + $0x630] ss:$8 sps:$4 sm:$0xff]  }
 0x372   :  { %4528 = vmatmul.mubr.bf16.gmra.mxu1 %v12105_v11  ;;  %v12131_v34 = vcombine.low %v2504_v51, %v2506_v27  ;;  %v8613_v27 = vld [vmem:[%s14075_s3 + $0x750] ss:$8 sps:$4 sm:$0xff]   ;;  %v8618_v37 = vld [vmem:[%s14075_s3 + $0x744] ss:$8 sps:$4 sm:$0xff]   ;;  %v8621_v60 = vld [vmem:[%s14075_s3 + $0x814] ss:$8 sps:$4 sm:$0xff]  }
 0x373   :  { %v2002_v63 = vunpack.c.h.b16 %v14424_v43  ;;  %5658 = vmatpush2.bf16.msra.mxu1 %v8592_v24  ;;  %5665 = vmatprep.mubr.bf16.mxu1 %v14425_v1  ;;  %v8606_v1 = vld [vmem:[%s14075_s3 + $0x634] ss:$8 sps:$4 sm:$0xff]   ;;  %v8609_v43 = vld [vmem:[%s14075_s3 + $0x764] ss:$8 sps:$4 sm:$0xff]   ;;  %v12139_v24 = vpop.f32.mrf.mxu0  ;;  %v8619_v51 = vld [vmem:[%s14075_s3 + $0x810] ss:$8 sps:$4 sm:$0xff]  }
 0x374   :  { %5755 = vmatpush2.bf16.msra.mxu0 %v8595_v56  ;;  %5659 = vmatprep.subr.bf16.mxu1 %v8600_v31  ;;  %14426 = vst [vmem:[#allocation28_spill] sm:$0xff] %v12131_v34  ;;  %v8607_v56 = vld [vmem:[%s14075_s3 + $0x760] ss:$8 sps:$4 sm:$0xff]   ;;  %v8612_v31 = vld [vmem:[%s14075_s3 + $0x624] ss:$8 sps:$4 sm:$0xff]  }
 0x375   :  { %5756 = vmatprep.subr.bf16.mxu0 %v8603_v4  ;;  %v12141_v9 = vpack.c.b16 %v2297_v62, %v2002_v63  ;;  %v8615_v62 = vld [vmem:[%s14075_s3 + $0x754] ss:$8 sps:$4 sm:$0xff]   ;;  %v12157_v63 = vpop.f32.mrf.mxu0  ;;  %v8610_v4 = vld [vmem:[%s14075_s3 + $0x620] ss:$8 sps:$4 sm:$0xff]  }
 0x377   :  { %14427 = vst [vmem:[#allocation44_spill] sm:$0xff] %v12141_v9  ;;  %4415 = vmatmul.mubr.bf16.gmra.mxu0 %v12131_v34  ;;  %5660 = vmatpush2.bf16.msra.mxu1 %v8598_v46  ;;  %v12171_v46 = vpop.f32.mrf.mxu0  ;;  %v8643_v34 = vld [vmem:[%s14075_s3 + $0x900] ss:$8 sps:$4 sm:$0xff]  }
 0x378   :  { %5757 = vmatpush2.bf16.msra.mxu0 %v8601_v25  ;;  %4424 = vmatprep.mubr.bf16.mxu0 %v12141_v9  ;;  %14428 = vst [vmem:[#allocation22_spill] sm:$0xff] %v12171_v46  ;;  %v14429_v25 = vld [vmem:[#allocation36_spill] sm:$0xff] }
 0x379   :  { %5661 = vmatprep.subr.bf16.mxu1 %v8606_v1  ;;  %5758 = vmatprep.subr.bf16.mxu0 %v8609_v43  ;;  %v8616_v1 = vld [vmem:[%s14075_s3 + $0x740] ss:$8 sps:$4 sm:$0xff]   ;;  %v8627_v43 = vld [vmem:[%s14075_s3 + $0x804] ss:$8 sps:$4 sm:$0xff]  }
 0x37b   :  { %5662 = vmatpush2.bf16.msra.mxu1 %v8604_v15  ;;  %v8624_v15 = vld [vmem:[%s14075_s3 + $0x734] ss:$8 sps:$4 sm:$0xff]  }
 0x37c   :  { %5759 = vmatpush2.bf16.msra.mxu0 %v8607_v56  ;;  %5663 = vmatprep.subr.bf16.mxu1 %v8612_v31  ;;  %v12187_v56 = vpop.f32.mrf.mxu0  ;;  %v14431_v31 = vld [vmem:[#allocation26_spill] sm:$0xff] }
 0x37d   :  { %5760 = vmatprep.subr.bf16.mxu0 %v8615_v62  ;;  %14430 = vst [vmem:[#allocation2_spill] sm:$0xff] %v12187_v56  ;;  %v8625_v62 = vld [vmem:[%s14075_s3 + $0x800] ss:$8 sps:$4 sm:$0xff]  }
 0x37f   :  { %4425 = vmatmul.mubr.bf16.gmra.mxu0 %v11992_v20  ;;  %5664 = vmatpush2.bf16.msra.mxu1 %v8610_v4  ;;  %v8622_v4 = vld [vmem:[%s14075_s3 + $0x730] ss:$8 sps:$4 sm:$0xff]  }
 0x380   :  { %5761 = vmatpush2.bf16.msra.mxu0 %v8613_v27  ;;  %5768 = vmatprep.mubr.bf16.mxu0 %v14429_v25  ;;  %v8633_v27 = vld [vmem:[%s14075_s3 + $0x7f4] ss:$8 sps:$4 sm:$0xff]   ;;  %v8628_v25 = vld [vmem:[%s14075_s3 + $0x720] ss:$8 sps:$4 sm:$0xff]  }
 0x381   :  { %5762 = vmatprep.subr.bf16.mxu0 %v8618_v37  ;;  %5839 = vmatprep.subr.bf16.mxu1 %v8621_v60  ;;  %v8630_v37 = vld [vmem:[%s14075_s3 + $0x724] ss:$8 sps:$4 sm:$0xff]   ;;  %v12203_v60 = vpop.f32.mrf.mxu0 }
 0x382   :  { %5666 = vmatmul.mubr.bf16.vlgmr.msra.gmra.mxu1 %v14431_v31  ;;  %14432 = vst [vmem:[#allocation41_spill] sm:$0xff] %v12203_v60  ;;  %v8670_v60 = vld [vmem:[%s14075_s3 + $0x880] ss:$8 sps:$4 sm:$0xff]  }
 0x383   :  { %5675 = vmatprep.mubr.bf16.mxu1 %v14386_v18  ;;  %5840 = vmatpush1.bf16.msra.mxu1 %v8619_v51  ;;  %v8631_v51 = vld [vmem:[%s14075_s3 + $0x7f0] ss:$8 sps:$4 sm:$0xff]   ;;  %v8646_v18 = vld [vmem:[%s14075_s3 + $0x7c0] ss:$8 sps:$4 sm:$0xff]  }
 0x384   :  { %5763 = vmatpush2.bf16.msra.mxu0 %v8616_v1  ;;  %5841 = vmatprep.subr.bf16.mxu1 %v8627_v43  ;;  %v8636_v1 = vld [vmem:[%s14075_s3 + $0x7e4] ss:$8 sps:$4 sm:$0xff]   ;;  %v8639_v43 = vld [vmem:[%s14075_s3 + $0x914] ss:$8 sps:$4 sm:$0xff]  }
 0x385   :  { %5764 = vmatprep.subr.bf16.mxu0 %v8624_v15  ;;  %v12217_v15 = vpop.f32.mrf.mxu0 }
 0x386   :  { %14433 = vst [vmem:[#allocation4_spill] sm:$0xff] %v12217_v15  ;;  %v14444_v15 = vld [vmem:[#allocation47_spill] sm:$0xff] }
 0x387   :  { %5842 = vmatpush1.bf16.msra.mxu1 %v8625_v62  ;;  %v8634_v62 = vld [vmem:[%s14075_s3 + $0x7e0] ss:$8 sps:$4 sm:$0xff]   ;;  %v12237_v11 = vpop.f32.mrf.mxu0 }
 0x388   :  { %5765 = vmatpush2.bf16.msra.mxu0 %v8622_v4  ;;  %5843 = vmatprep.subr.bf16.mxu1 %v8633_v27  ;;  %v8637_v27 = vld [vmem:[%s14075_s3 + $0x910] ss:$8 sps:$4 sm:$0xff]   ;;  %14434 = vst [vmem:[#allocation36_spill] sm:$0xff] %v12237_v11  ;;  %v8655_v11 = vld [vmem:[%s14075_s3 + $0x8e0] ss:$8 sps:$4 sm:$0xff]  }
 0x389   :  { %5766 = vmatprep.subr.bf16.mxu0 %v8630_v37  ;;  %v8642_v37 = vld [vmem:[%s14075_s3 + $0x7d4] ss:$8 sps:$4 sm:$0xff]  }
 0x38a   :  { %5676 = vmatmul.mubr.bf16.gmra.mxu1 %v14389_v53  ;;  %v12220_v31 = vpop.f32.mrf.mxu1  ;;  %v8667_v53 = vld [vmem:[%s14075_s3 + $0x8c0] ss:$8 sps:$4 sm:$0xff]  }
 0x38b   :  { %5685 = vmatprep.mubr.bf16.mxu1 %v14390_v5  ;;  %5844 = vmatpush1.bf16.msra.mxu1 %v8631_v51  ;;  %v8645_v51 = vld [vmem:[%s14075_s3 + $0x904] ss:$8 sps:$4 sm:$0xff]  }
 0x38c   :  { %5767 = vmatpush2.bf16.msra.mxu0 %v8628_v25  ;;  %v12226_v4 = vpop.f32.mrf.mxu1  ;;  %5845 = vmatprep.subr.bf16.mxu1 %v8636_v1  ;;  %v14435_v25 = vld [vmem:[#allocation15_spill] sm:$0xff]  ;;  %v8640_v1 = vld [vmem:[%s14075_s3 + $0x7d0] ss:$8 sps:$4 sm:$0xff]  }
 0x38d   :  { %5942 = vmatprep.subr.bf16.mxu0 %v8639_v43  ;;  %v14436_v43 = vld [vmem:[#allocation16_spill] sm:$0xff]  ;;  %v8648_v5 = vld [vmem:[%s14075_s3 + $0x7c4] ss:$8 sps:$4 sm:$0xff]  }
 0x38e   :  { %v12239_v20 = vpop.f32.mrf.mxu1 }
 0x38f   :  { %5769 = vmatmul.mubr.bf16.vlgmr.msra.gmra.mxu0 %v14435_v25  ;;  %5846 = vmatpush1.bf16.msra.mxu1 %v8634_v62  ;;  %v8651_v62 = vld [vmem:[%s14075_s3 + $0x8f4] ss:$8 sps:$4 sm:$0xff]   ;;  %v12257_v25 = vpop.f32.mrf.mxu0  ;;  %v4062_v12 = vadd.f32 %v12239_v20, %v11842_v17  ;;  %v8693_v20 = vld [vmem:[%s14075_s3 + $0x984] ss:$8 sps:$4 sm:$0xff]  }
 0x390   :  { %5778 = vmatprep.mubr.bf16.mxu0 %v14436_v43  ;;  %5943 = vmatpush1.bf16.msra.mxu0 %v8637_v27  ;;  %v12246_v9 = vpop.f32.mrf.mxu1  ;;  %14437 = vst [vmem:[#allocation26_spill] sm:$0xff] %v12257_v25  ;;  %v14438_v43 = vld [vmem:[#allocation27_spill] sm:$0xff]  ;;  %v8690_v17 = vld [vmem:[%s14075_s3 + $0x854] ss:$8 sps:$4 sm:$0xff]  }
 0x391   :  { %5847 = vmatprep.subr.bf16.mxu1 %v8642_v37  ;;  %5944 = vmatprep.subr.bf16.mxu0 %v8645_v51  ;;  %v8649_v51 = vld [vmem:[%s14075_s3 + $0x8f0] ss:$8 sps:$4 sm:$0xff]  }
 0x392   :  { %5686 = vmatmul.mubr.bf16.gmra.mxu1 %v14393_v38  ;;  %v12260_v27 = vpop.f32.mrf.mxu1  ;;  %v8654_v38 = vld [vmem:[%s14075_s3 + $0x7b4] ss:$8 sps:$4 sm:$0xff]  }
 0x393   :  { %5695 = vmatprep.mubr.bf16.mxu1 %v14438_v43  ;;  %5848 = vmatpush1.bf16.msra.mxu1 %v8640_v1  ;;  %v8657_v1 = vld [vmem:[%s14075_s3 + $0x8e4] ss:$8 sps:$4 sm:$0xff]   ;;  %v12277_v43 = vpop.f32.mrf.mxu0 }
 0x394   :  { %5945 = vmatpush1.bf16.msra.mxu0 %v8643_v34  ;;  %v12266_v37 = vpop.f32.mrf.mxu1  ;;  %5849 = vmatprep.subr.bf16.mxu1 %v8648_v5  ;;  %14439 = vst [vmem:[#allocation15_spill] sm:$0xff] %v12277_v43  ;;  %v14440_v34 = vld [vmem:[#allocation17_spill] sm:$0xff]  ;;  %v8660_v43 = vld [vmem:[%s14075_s3 + $0x7a4] ss:$8 sps:$4 sm:$0xff]  }
 0x395   :  { %5946 = vmatprep.subr.bf16.mxu0 %v8651_v62  ;;  %v8652_v5 = vld [vmem:[%s14075_s3 + $0x7b0] ss:$8 sps:$4 sm:$0xff]   ;;  %v14441_v62 = vld [vmem:[#allocation39_spill] sm:$0xff] }
 0x396   :  { %v12279_v25 = vpop.f32.mrf.mxu1 }
 0x397   :  { %5779 = vmatmul.mubr.bf16.gmra.mxu0 %v14440_v34  ;;  %5850 = vmatpush1.bf16.msra.mxu1 %v8646_v18  ;;  %v8663_v18 = vld [vmem:[%s14075_s3 + $0x8d4] ss:$8 sps:$4 sm:$0xff]   ;;  %v12297_v34 = vpop.f32.mrf.mxu0 }
 0x398   :  { %5788 = vmatprep.mubr.bf16.mxu0 %v14441_v62  ;;  %5947 = vmatpush1.bf16.msra.mxu0 %v8649_v51  ;;  %v12286_v14 = vpop.f32.mrf.mxu1  ;;  %14442 = vst [vmem:[#allocation16_spill] sm:$0xff] %v12297_v34  ;;  %v14443_v62 = vld [vmem:[#allocation7_spill] sm:$0xff] }
 0x399   :  { %5851 = vmatprep.subr.bf16.mxu1 %v8654_v38  ;;  %5948 = vmatprep.subr.bf16.mxu0 %v8657_v1  ;;  %v8661_v1 = vld [vmem:[%s14075_s3 + $0x8d0] ss:$8 sps:$4 sm:$0xff]  }
 0x39a   :  { %5696 = vmatmul.mubr.bf16.gmra.mxu1 %v14443_v62  ;;  %v12300_v51 = vpop.f32.mrf.mxu1  ;;  %v8666_v62 = vld [vmem:[%s14075_s3 + $0x894] ss:$8 sps:$4 sm:$0xff]  }
 0x39b   :  { %5705 = vmatprep.mubr.bf16.mxu1 %v14444_v15  ;;  %5852 = vmatpush1.bf16.msra.mxu1 %v8652_v5  ;;  %v8669_v15 = vld [vmem:[%s14075_s3 + $0x8c4] ss:$8 sps:$4 sm:$0xff]   ;;  %v12317_v5 = vpop.f32.mrf.mxu0 }
 0x39c   :  { %5949 = vmatpush1.bf16.msra.mxu0 %v8655_v11  ;;  %v12306_v38 = vpop.f32.mrf.mxu1  ;;  %5853 = vmatprep.subr.bf16.mxu1 %v8660_v43  ;;  %14445 = vst [vmem:[#allocation27_spill] sm:$0xff] %v12317_v5  ;;  %v14446_v11 = vld [vmem:[#allocation40_spill] sm:$0xff]  ;;  %v8672_v5 = vld [vmem:[%s14075_s3 + $0x884] ss:$8 sps:$4 sm:$0xff]  }
 0x39d   :  { %5950 = vmatprep.subr.bf16.mxu0 %v8663_v18  ;;  %v8664_v43 = vld [vmem:[%s14075_s3 + $0x890] ss:$8 sps:$4 sm:$0xff]  }
 0x39e   :  { %v12319_v34 = vpop.f32.mrf.mxu1  ;;  %v14447_v18 = vld [vmem:[#allocation20_spill] sm:$0xff] }
 0x39f   :  { %5789 = vmatmul.mubr.bf16.gmra.mxu0 %v14446_v11  ;;  %5854 = vmatpush1.bf16.msra.mxu1 %v8658_v52  ;;  %v8675_v52 = vld [vmem:[%s14075_s3 + $0x8b4] ss:$8 sps:$4 sm:$0xff]   ;;  %v12337_v11 = vpop.f32.mrf.mxu0 }
 0x3a0   :  { %5798 = vmatprep.mubr.bf16.mxu0 %v14447_v18  ;;  %5951 = vmatpush1.bf16.msra.mxu0 %v8661_v1  ;;  %v12326_v10 = vpop.f32.mrf.mxu1  ;;  %14448 = vst [vmem:[#allocation17_spill] sm:$0xff] %v12337_v11  ;;  %v14449_v18 = vld [vmem:[#allocation24_spill] sm:$0xff] }
 0x3a1   :  { %5855 = vmatprep.subr.bf16.mxu1 %v8666_v62  ;;  %5952 = vmatprep.subr.bf16.mxu0 %v8669_v15  ;;  %v8673_v15 = vld [vmem:[%s14075_s3 + $0x8b0] ss:$8 sps:$4 sm:$0xff]  }
 0x3a2   :  { %5706 = vmatmul.mubr.bf16.gmra.mxu1 %v14449_v18  ;;  %v12340_v1 = vpop.f32.mrf.mxu1  ;;  %v8678_v18 = vld [vmem:[%s14075_s3 + $0x874] ss:$8 sps:$4 sm:$0xff]  }
 0x3a3   :  { %5715 = vmatprep.mubr.bf16.mxu1 %v14406_v57  ;;  %5856 = vmatpush2.bf16.msra.mxu1 %v8664_v43  ;;  %v8681_v43 = vld [vmem:[%s14075_s3 + $0x8a4] ss:$8 sps:$4 sm:$0xff]   ;;  %v12357_v57 = vpop.f32.mrf.mxu0 }
 0x3a4   :  { %5953 = vmatpush1.bf16.msra.mxu0 %v8667_v53  ;;  %v12346_v62 = vpop.f32.mrf.mxu1  ;;  %5857 = vmatprep.subr.bf16.mxu1 %v8672_v5  ;;  %14450 = vst [vmem:[#allocation39_spill] sm:$0xff] %v12357_v57  ;;  %v4058_v53 = vadd.f32 %v12220_v31, %v11817_v7  ;;  %v14451_v5 = vld [vmem:[#allocation55_spill] sm:$0xff] }
 0x3a5   :  { %5954 = vmatprep.subr.bf16.mxu0 %v8675_v52  ;;  %v8676_v52 = vld [vmem:[%s14075_s3 + $0x870] ss:$8 sps:$4 sm:$0xff]   ;;  %v8679_v57 = vld [vmem:[%s14075_s3 + $0x8a0] ss:$8 sps:$4 sm:$0xff]   ;;  %v8684_v7 = vld [vmem:[%s14075_s3 + $0x864] ss:$8 sps:$4 sm:$0xff]  }
 0x3a6   :  { %v12359_v11 = vpop.f32.mrf.mxu1 }
 0x3a7   :  { %5799 = vmatmul.mubr.bf16.gmra.mxu0 %v14451_v5  ;;  %5858 = vmatpush2.bf16.msra.mxu1 %v8670_v60  ;;  %v4060_v60 = vadd.f32 %v12226_v4, %v11833_v42 }
 0x3a8   :  { %5808 = vmatprep.mubr.bf16.mxu0 %v14452_v39  ;;  %5955 = vmatpush1.bf16.msra.mxu0 %v8673_v15  ;;  %v12368_v56 = vpop.f32.mrf.mxu1  ;;  %v4160_v26 = vpop.f32.mrf.mxu0  ;;  %v8687_v39 = vld [vmem:[%s14075_s3 + $0x994] ss:$8 sps:$4 sm:$0xff]  }
 0x3a9   :  { %v12378_v31 = vadd.f32 %v4160_v26, %v4058_v53  ;;  %5859 = vmatprep.subr.bf16.mxu1 %v8678_v18  ;;  %5956 = vmatprep.subr.bf16.mxu0 %v8681_v43  ;;  %v8682_v26 = vld [vmem:[%s14075_s3 + $0x860] ss:$8 sps:$4 sm:$0xff]   ;;  %v8685_v18 = vld [vmem:[%s14075_s3 + $0x990] ss:$8 sps:$4 sm:$0xff]  }
 0x3aa   :  { %5716 = vmatmul.mubr.bf16.gmra.mxu1 %v14413_v30  ;;  %v12384_v15 = vpop.f32.mrf.mxu1  ;;  %v4162_v5 = vpop.f32.mrf.mxu0  ;;  %v14453_v53 = vld [vmem:[#allocation59_spill] sm:$0xff]  ;;  %v14461_v30 = vld [vmem:[#allocation62_spill] sm:$0xff] }
 0x3ab   :  { %v12388_v46 = vadd.f32 %v4162_v5, %v4060_v60  ;;  %5725 = vmatprep.mubr.bf16.mxu1 %v14415_v41  ;;  %5860 = vmatpush2.bf16.msra.mxu1 %v8676_v52  ;;  %v8688_v52 = vld [vmem:[%s14075_s3 + $0x850] ss:$8 sps:$4 sm:$0xff]   ;;  %v8691_v60 = vld [vmem:[%s14075_s3 + $0x980] ss:$8 sps:$4 sm:$0xff]   ;;  %v8699_v5 = vld [vmem:[%s14075_s3 + $0x974] ss:$8 sps:$4 sm:$0xff]  }
 0x3ac   :  { %5957 = vmatpush1.bf16.msra.mxu0 %v8679_v57  ;;  %v12394_v42 = vpop.f32.mrf.mxu1  ;;  %v4164_v4 = vpop.f32.mrf.mxu0  ;;  %5861 = vmatprep.subr.bf16.mxu1 %v8684_v7  ;;  %v8703_v41 = vld [vmem:[%s14075_s3 + $0x960] ss:$8 sps:$4 sm:$0xff]  }
 0x3ad   :  { %v12399_v43 = vadd.f32 %v4164_v4, %v4062_v12  ;;  %5958 = vmatprep.subr.bf16.mxu0 %v8687_v39  ;;  %v14454_v12 = vld [vmem:[#allocation60_spill] sm:$0xff]  ;;  %v8696_v39 = vld [vmem:[%s14075_s3 + $0x844] ss:$8 sps:$4 sm:$0xff]  }
 0x3ae   :  { %v12407_v57 = vpop.f32.mrf.mxu1  ;;  %v14455_v4 = vld [vmem:[#allocation35_spill] sm:$0xff] }
 0x3af   :  { %5809 = vmatmul.mubr.bf16.gmra.mxu0 %v14453_v53  ;;  %5862 = vmatpush2.bf16.msra.mxu1 %v8682_v26 }
 0x3b0   :  { %5818 = vmatprep.mubr.bf16.mxu0 %v14454_v12  ;;  %5959 = vmatpush2.bf16.msra.mxu0 %v8685_v18  ;;  %v12414_v7 = vpop.f32.mrf.mxu1  ;;  %v8694_v18 = vld [vmem:[%s14075_s3 + $0x840] ss:$8 sps:$4 sm:$0xff]  }
 0x3b1   :  { %5863 = vmatprep.subr.bf16.mxu1 %v8690_v17  ;;  %5960 = vmatprep.subr.bf16.mxu0 %v8693_v20  ;;  %v8697_v17 = vld [vmem:[%s14075_s3 + $0x970] ss:$8 sps:$4 sm:$0xff]   ;;  %v8702_v20 = vld [vmem:[%s14075_s3 + $0x834] ss:$8 sps:$4 sm:$0xff]  }
 0x3b2   :  { %5726 = vmatmul.mubr.bf16.gmra.mxu1 %v14420_v45  ;;  %v12426_v26 = vpop.f32.mrf.mxu1  ;;  %v8708_v45 = vld [vmem:[%s14075_s3 + $0x824] ss:$8 sps:$4 sm:$0xff]  }
 0x3b3   :  { %5864 = vmatpush2.bf16.msra.mxu1 %v8688_v52  ;;  %5871 = vmatprep.mubr.bf16.mxu1 %v14455_v4  ;;  %v8705_v52 = vld [vmem:[%s14075_s3 + $0x964] ss:$8 sps:$4 sm:$0xff]   ;;  %v14456_v4 = vld [vmem:[#allocation61_spill] sm:$0xff] }
 0x3b4   :  { %5961 = vmatpush2.bf16.msra.mxu0 %v8691_v60  ;;  %v12432_v53 = vpop.f32.mrf.mxu1  ;;  %5865 = vmatprep.subr.bf16.mxu1 %v8696_v39  ;;  %v8700_v60 = vld [vmem:[%s14075_s3 + $0x830] ss:$8 sps:$4 sm:$0xff]   ;;  %v14457_v39 = vld [vmem:[#allocation14_spill] sm:$0xff] }
 0x3b5   :  { %5962 = vmatprep.subr.bf16.mxu0 %v8699_v5 }
 0x3b6   :  { %v12443_v12 = vpop.f32.mrf.mxu1 }
 0x3b7   :  { %5819 = vmatmul.mubr.bf16.gmra.mxu0 %v14456_v4  ;;  %5866 = vmatpush2.bf16.msra.mxu1 %v8694_v18  ;;  %v8711_v18 = vld [vmem:[%s14075_s3 + $0x954] ss:$8 sps:$4 sm:$0xff]  }
 0x3b8   :  { %5828 = vmatprep.mubr.bf16.mxu0 %v14457_v39  ;;  %5963 = vmatpush2.bf16.msra.mxu0 %v8697_v17  ;;  %v12450_v5 = vpop.f32.mrf.mxu1  ;;  %v8706_v17 = vld [vmem:[%s14075_s3 + $0x820] ss:$8 sps:$4 sm:$0xff]   ;;  %v8709_v39 = vld [vmem:[%s14075_s3 + $0x950] ss:$8 sps:$4 sm:$0xff]  }
 0x3b9   :  { %5867 = vmatprep.subr.bf16.mxu1 %v8702_v20  ;;  %5964 = vmatprep.subr.bf16.mxu0 %v8705_v52  ;;  %v8714_v20 = vld [vmem:[%s14075_s3 + $0x944] ss:$8 sps:$4 sm:$0xff]   ;;  %v8717_v52 = vld [vmem:[%s14075_s3 + $0xa14] ss:$8 sps:$4 sm:$0xff]  }
 0x3ba   :  { %v12464_v4 = vpop.f32.mrf.mxu1 }
 0x3bb   :  { %5868 = vmatpush2.bf16.msra.mxu1 %v8700_v60  ;;  %14458 = vst [vmem:[#allocation7_spill] sm:$0xff] %v12464_v4  ;;  %v14459_v60 = vld [vmem:[#allocation12_spill] sm:$0xff]  ;;  %v8723_v4 = vld [vmem:[%s14075_s3 + $0xa04] ss:$8 sps:$4 sm:$0xff]  }
 0x3bc   :  { %5965 = vmatpush2.bf16.msra.mxu0 %v8703_v41  ;;  %5869 = vmatprep.subr.bf16.mxu1 %v8708_v45  ;;  %v8715_v41 = vld [vmem:[%s14075_s3 + $0xa10] ss:$8 sps:$4 sm:$0xff]   ;;  %v12479_v45 = vpop.f32.mrf.mxu1 }
 0x3bd   :  { %5966 = vmatprep.subr.bf16.mxu0 %v8711_v18  ;;  %14460 = vst [vmem:[#allocation47_spill] sm:$0xff] %v12479_v45  ;;  %v8712_v18 = vld [vmem:[%s14075_s3 + $0x940] ss:$8 sps:$4 sm:$0xff]  }
 0x3be   :  { %v14463_v45 = vld [vmem:[#allocation58_spill] sm:$0xff] }
 0x3bf   :  { %5829 = vmatmul.mubr.bf16.gmra.mxu0 %v14459_v60  ;;  %5870 = vmatpush2.bf16.msra.mxu1 %v8706_v17  ;;  %v8720_v17 = vld [vmem:[%s14075_s3 + $0x934] ss:$8 sps:$4 sm:$0xff]  }
 0x3c0   :  { %5967 = vmatpush2.bf16.msra.mxu0 %v8709_v39  ;;  %5974 = vmatprep.mubr.bf16.mxu0 %v14461_v30  ;;  %v14462_v60 = vld [vmem:[#allocation57_spill] sm:$0xff]  ;;  %v8721_v30 = vld [vmem:[%s14075_s3 + $0xa00] ss:$8 sps:$4 sm:$0xff]   ;;  %v12496_v39 = vpop.f32.mrf.mxu1 }
 0x3c1   :  { %5968 = vmatprep.subr.bf16.mxu0 %v8714_v20  ;;  %6045 = vmatprep.subr.bf16.mxu1 %v8717_v52  ;;  %14464 = vst [vmem:[#allocation40_spill] sm:$0xff] %v12496_v39  ;;  %v8718_v20 = vld [vmem:[%s14075_s3 + $0x930] ss:$8 sps:$4 sm:$0xff]   ;;  %v8729_v52 = vld [vmem:[%s14075_s3 + $0x9f4] ss:$8 sps:$4 sm:$0xff]  }
 0x3c2   :  { %5872 = vmatmul.mubr.bf16.vlgmr.msra.gmra.mxu1 %v14462_v60  ;;  %v8735_v60 = vld [vmem:[%s14075_s3 + $0xb14] ss:$8 sps:$4 sm:$0xff]   ;;  %v8733_v39 = vld [vmem:[%s14075_s3 + $0xb10] ss:$8 sps:$4 sm:$0xff]  }
 0x3c3   :  { %5881 = vmatprep.mubr.bf16.mxu1 %v14463_v45  ;;  %6046 = vmatpush1.bf16.msra.mxu1 %v8715_v41  ;;  %v8726_v41 = vld [vmem:[%s14075_s3 + $0x924] ss:$8 sps:$4 sm:$0xff]   ;;  %v8727_v45 = vld [vmem:[%s14075_s3 + $0x9f0] ss:$8 sps:$4 sm:$0xff]  }
 0x3c4   :  { %5969 = vmatpush2.bf16.msra.mxu0 %v8712_v18  ;;  %6047 = vmatprep.subr.bf16.mxu1 %v8723_v4  ;;  %v12510_v18 = vpop.f32.mrf.mxu1  ;;  %v8724_v4 = vld [vmem:[%s14075_s3 + $0x920] ss:$8 sps:$4 sm:$0xff]  }
 0x3c5   :  { %5970 = vmatprep.subr.bf16.mxu0 %v8720_v17  ;;  %14465 = vst [vmem:[#allocation20_spill] sm:$0xff] %v12510_v18  ;;  %v8732_v17 = vld [vmem:[%s14075_s3 + $0x9e4] ss:$8 sps:$4 sm:$0xff]  }
 0x3c7   :  { %6048 = vmatpush1.bf16.msra.mxu1 %v8721_v30 }
 0x3c8   :  { %5971 = vmatpush2.bf16.msra.mxu0 %v8718_v20  ;;  %6049 = vmatprep.subr.bf16.mxu1 %v8729_v52  ;;  %v8730_v20 = vld [vmem:[%s14075_s3 + $0x9e0] ss:$8 sps:$4 sm:$0xff]   ;;  %v4166_v52 = vpop.f32.mrf.mxu0 }
 0x3c9   :  { %5972 = vmatprep.subr.bf16.mxu0 %v8726_v41 }
 0x3ca   :  { %5882 = vmatmul.mubr.bf16.gmra.mxu1 %v11607_v55  ;;  %v4263_v30 = vpop.f32.mrf.mxu1  ;;  %v4064_v55 = vadd.f32 %v12246_v9, %v11867_v58  ;;  %v8736_v58 = vld [vmem:[%s14075_s3 + $0x9d0] ss:$8 sps:$4 sm:$0xff]  }
 0x3cb   :  { %v12523_v18 = vadd.f32 %v4263_v30, %v12378_v31  ;;  %5891 = vmatprep.mubr.bf16.mxu1 %v11617_v33  ;;  %6050 = vmatpush1.bf16.msra.mxu1 %v8727_v45  ;;  %v8738_v33 = vld [vmem:[%s14075_s3 + $0x9d4] ss:$8 sps:$4 sm:$0xff]   ;;  %v8741_v45 = vld [vmem:[%s14075_s3 + $0xb04] ss:$8 sps:$4 sm:$0xff]  }
 0x3cc   :  { %5973 = vmatpush2.bf16.msra.mxu0 %v8724_v4  ;;  %v4265_v41 = vpop.f32.mrf.mxu1  ;;  %6051 = vmatprep.subr.bf16.mxu1 %v8732_v17  ;;  %v4167_v17 = vadd.f32 %v4166_v52, %v4064_v55  ;;  %v14467_v30 = vld [vmem:[#allocation64_spill] sm:$0xff]  ;;  %v14468_v9 = vld [vmem:[#allocation65_spill] sm:$0xff]  ;;  %v8744_v52 = vld [vmem:[%s14075_s3 + $0x9c4] ss:$8 sps:$4 sm:$0xff]  }
 0x3cd   :  { %14466 = vst [vmem:[#allocation24_spill] sm:$0xff] %v12523_v18  ;;  %v12535_v31 = vadd.f32 %v4265_v41, %v12388_v46  ;;  %6148 = vmatprep.subr.bf16.mxu0 %v8735_v60  ;;  %v8739_v60 = vld [vmem:[%s14075_s3 + $0xb00] ss:$8 sps:$4 sm:$0xff]  }
 0x3ce   :  { %v4267_v4 = vpop.f32.mrf.mxu1 }
 0x3cf   :  { %5975 = vmatmul.mubr.bf16.vlgmr.msra.gmra.mxu0 %v14467_v30  ;;  %v12545_v18 = vadd.f32 %v4267_v4, %v12399_v43  ;;  %6052 = vmatpush1.bf16.msra.mxu1 %v8730_v20  ;;  %v8750_v43 = vld [vmem:[%s14075_s3 + $0xaf4] ss:$8 sps:$4 sm:$0xff]   ;;  %v8742_v20 = vld [vmem:[%s14075_s3 + $0x9c0] ss:$8 sps:$4 sm:$0xff]   ;;  %v4070_v30 = vadd.f32 %v12266_v37, %v11901_v23  ;;  %v4072_v23 = vadd.f32 %v12279_v25, %v11919_v49 }
 0x3d0   :  { %5984 = vmatprep.mubr.bf16.mxu0 %v14468_v9  ;;  %6149 = vmatpush1.bf16.msra.mxu0 %v8733_v39  ;;  %v4269_v46 = vpop.f32.mrf.mxu1  ;;  %v4074_v49 = vadd.f32 %v12286_v14, %v11949_v35  ;;  %v4078_v14 = vadd.f32 %v12300_v51, %v11972_v0  ;;  %v8757_v51 = vld [vmem:[%s14075_s3 + $0xa90] ss:$8 sps:$4 sm:$0xff]  }
 0x3d1   :  { %v12557_v41 = vadd.f32 %v4269_v46, %v4167_v17  ;;  %6053 = vmatprep.subr.bf16.mxu1 %v8738_v33  ;;  %6150 = vmatprep.subr.bf16.mxu0 %v8741_v45  ;;  %v8747_v33 = vld [vmem:[%s14075_s3 + $0x9b4] ss:$8 sps:$4 sm:$0xff]   ;;  %v4068_v45 = vadd.f32 %v12260_v27, %v11878_v36  ;;  %v8756_v17 = vld [vmem:[%s14075_s3 + $0xae4] ss:$8 sps:$4 sm:$0xff]   ;;  %v8745_v36 = vld [vmem:[%s14075_s3 + $0x9b0] ss:$8 sps:$4 sm:$0xff]  }
 0x3d2   :  { %5892 = vmatmul.mubr.bf16.gmra.mxu1 %v11647_v22  ;;  %v4273_v39 = vpop.f32.mrf.mxu1  ;;  %v8748_v22 = vld [vmem:[%s14075_s3 + $0xaf0] ss:$8 sps:$4 sm:$0xff]   ;;  %v8753_v46 = vld [vmem:[%s14075_s3 + $0x9a4] ss:$8 sps:$4 sm:$0xff]  }
 0x3d3   :  { %5901 = vmatprep.mubr.bf16.mxu1 %v11693_v29  ;;  %6054 = vmatpush1.bf16.msra.mxu1 %v8736_v58 }
 0x3d4   :  { %v4275_v55 = vpop.f32.mrf.mxu1  ;;  %6151 = vmatpush1.bf16.msra.mxu0 %v8739_v60  ;;  %6055 = vmatprep.subr.bf16.mxu1 %v8744_v52 }
 0x3d5   :  { %6152 = vmatprep.subr.bf16.mxu0 %v8750_v43  ;;  %v8762_v43 = vld [vmem:[%s14075_s3 + $0xad4] ss:$8 sps:$4 sm:$0xff]  }
 0x3d6   :  { %v4170_v29 = vpop.f32.mrf.mxu0  ;;  %v4277_v4 = vpop.f32.mrf.mxu1 }
 0x3d7   :  { %5985 = vmatmul.mubr.bf16.gmra.mxu0 %v11567_v59  ;;  %v4171_v58 = vadd.f32 %v4170_v29, %v4068_v45  ;;  %6056 = vmatpush1.bf16.msra.mxu1 %v8742_v20  ;;  %v8754_v59 = vld [vmem:[%s14075_s3 + $0xae0] ss:$8 sps:$4 sm:$0xff]   ;;  %v8759_v45 = vld [vmem:[%s14075_s3 + $0xa94] ss:$8 sps:$4 sm:$0xff]  }
 0x3d8   :  { %5994 = vmatprep.mubr.bf16.mxu0 %v11575_v44  ;;  %v4172_v27 = vpop.f32.mrf.mxu0  ;;  %v4279_v9 = vpop.f32.mrf.mxu1  ;;  %6057 = vmatprep.subr.bf16.mxu1 %v8747_v33 }
 0x3d9   :  { %v4173_v37 = vadd.f32 %v4172_v27, %v4070_v30  ;;  %6153 = vmatpush1.bf16.msra.mxu0 %v8748_v22  ;;  %v12593_v60 = vadd.f32 %v4273_v39, %v4171_v58  ;;  %v4080_v30 = vadd.f32 %v12306_v38, %v12000_v8  ;;  %v8765_v27 = vld [vmem:[%s14075_s3 + $0xa84] ss:$8 sps:$4 sm:$0xff]   ;;  %v8769_v38 = vld [vmem:[%s14075_s3 + $0xac0] ss:$8 sps:$4 sm:$0xff]  }
 0x3da   :  { %5902 = vmatmul.mubr.bf16.gmra.mxu1 %v11740_v2  ;;  %v4174_v44 = vpop.f32.mrf.mxu0  ;;  %v4283_v52 = vpop.f32.mrf.mxu1  ;;  %6154 = vmatprep.subr.bf16.mxu0 %v8756_v17  ;;  %v8751_v2 = vld [vmem:[%s14075_s3 + $0x9a0] ss:$8 sps:$4 sm:$0xff]   ;;  %v8771_v17 = vld [vmem:[%s14075_s3 + $0xac4] ss:$8 sps:$4 sm:$0xff]  }
 0x3db   :  { %v12601_v25 = vadd.f32 %v4275_v55, %v4173_v37  ;;  %v4175_v20 = vadd.f32 %v4174_v44, %v4072_v23  ;;  %5911 = vmatprep.mubr.bf16.mxu1 %v11735_v6  ;;  %6058 = vmatpush1.bf16.msra.mxu1 %v8745_v36  ;;  %v8760_v6 = vld [vmem:[%s14075_s3 + $0xad0] ss:$8 sps:$4 sm:$0xff]   ;;  %v8777_v23 = vld [vmem:[%s14075_s3 + $0xab4] ss:$8 sps:$4 sm:$0xff]   ;;  %v8763_v37 = vld [vmem:[%s14075_s3 + $0xa80] ss:$8 sps:$4 sm:$0xff]  }
 0x3dc   :  { %v4176_v39 = vpop.f32.mrf.mxu0  ;;  %v4285_v33 = vpop.f32.mrf.mxu1  ;;  %6059 = vmatprep.subr.bf16.mxu1 %v8753_v46 }
 0x3dd   :  { %v4177_v35 = vadd.f32 %v4176_v39, %v4074_v49  ;;  %6155 = vmatpush1.bf16.msra.mxu0 %v8754_v59  ;;  %v12615_v55 = vadd.f32 %v4277_v4, %v4175_v20  ;;  %v4090_v39 = vadd.f32 %v12346_v62, %v12095_v28  ;;  %v8784_v62 = vld [vmem:[%s14075_s3 + $0xaa0] ss:$8 sps:$4 sm:$0xff]  }
 0x3de   :  { %v4180_v22 = vpop.f32.mrf.mxu0  ;;  %v4287_v29 = vpop.f32.mrf.mxu1  ;;  %6156 = vmatprep.subr.bf16.mxu0 %v8762_v43 }
 0x3df   :  { %5995 = vmatmul.mubr.bf16.gmra.mxu0 %v11645_v13  ;;  %v4181_v0 = vadd.f32 %v4180_v22, %v4078_v14  ;;  %6060 = vmatpush1.bf16.msra.mxu1 %v8751_v2  ;;  %v12626_v4 = vadd.f32 %v4279_v9, %v4177_v35  ;;  %v4082_v13 = vadd.f32 %v12319_v34, %v12026_v50  ;;  %v8786_v2 = vld [vmem:[%s14075_s3 + $0xaa4] ss:$8 sps:$4 sm:$0xff]  }
 0x3e0   :  { %6004 = vmatprep.mubr.bf16.mxu0 %v11665_v16  ;;  %v4182_v58 = vpop.f32.mrf.mxu0  ;;  %v4289_v36 = vpop.f32.mrf.mxu1  ;;  %6061 = vmatprep.subr.bf16.mxu1 %v8759_v45  ;;  %v4084_v50 = vadd.f32 %v12326_v10, %v12046_v19  ;;  %v4088_v10 = vadd.f32 %v12340_v1, %v12068_v40  ;;  %v8766_v1 = vld [vmem:[%s14075_s3 + $0xa70] ss:$8 sps:$4 sm:$0xff]   ;;  %v8774_v35 = vld [vmem:[%s14075_s3 + $0xa64] ss:$8 sps:$4 sm:$0xff]  }
 0x3e1   :  { %v4183_v8 = vadd.f32 %v4182_v58, %v4080_v30  ;;  %6157 = vmatpush1.bf16.msra.mxu0 %v8760_v6  ;;  %v12637_v9 = vadd.f32 %v4283_v52, %v4181_v0  ;;  %v8768_v52 = vld [vmem:[%s14075_s3 + $0xa74] ss:$8 sps:$4 sm:$0xff]  }
 0x3e2   :  { %5912 = vmatmul.mubr.bf16.gmra.mxu1 %v11780_v48  ;;  %v4184_v16 = vpop.f32.mrf.mxu0  ;;  %v4293_v46 = vpop.f32.mrf.mxu1  ;;  %6158 = vmatprep.subr.bf16.mxu0 %v8771_v17  ;;  %v8772_v17 = vld [vmem:[%s14075_s3 + $0xa60] ss:$8 sps:$4 sm:$0xff]  }
 0x3e3   :  { %v4185_v34 = vadd.f32 %v4184_v16, %v4082_v13  ;;  %5921 = vmatprep.mubr.bf16.mxu1 %v11828_v32  ;;  %6062 = vmatpush2.bf16.msra.mxu1 %v8757_v51  ;;  %v12649_v59 = vadd.f32 %v4285_v33, %v4183_v8  ;;  %v8775_v32 = vld [vmem:[%s14075_s3 + $0xab0] ss:$8 sps:$4 sm:$0xff]   ;;  %v8780_v51 = vld [vmem:[%s14075_s3 + $0xa54] ss:$8 sps:$4 sm:$0xff]   ;;  %v8798_v13 = vld [vmem:[%s14075_s3 + $0xb24] ss:$8 sps:$4 sm:$0xff]  }
 0x3e4   :  { %v4186_v48 = vpop.f32.mrf.mxu0  ;;  %v4295_v44 = vpop.f32.mrf.mxu1  ;;  %6063 = vmatprep.subr.bf16.mxu1 %v8765_v27  ;;  %v14469_v8 = vld [vmem:[#allocation22_spill] sm:$0xff]  ;;  %v14470_v16 = vld [vmem:[#allocation63_spill] sm:$0xff] }
 0x3e5   :  { %v4187_v19 = vadd.f32 %v4186_v48, %v4084_v50  ;;  %6159 = vmatpush1.bf16.msra.mxu0 %v8769_v38  ;;  %v12659_v43 = vadd.f32 %v4287_v29, %v4185_v34  ;;  %v8792_v29 = vld [vmem:[%s14075_s3 + $0xb34] ss:$8 sps:$4 sm:$0xff]   ;;  %v4100_v38 = vadd.f32 %v12394_v42, %v14469_v8  ;;  %v14472_v42 = vld [vmem:[#allocation2_spill] sm:$0xff] }
 0x3e6   :  { %v4190_v49 = vpop.f32.mrf.mxu0  ;;  %v4297_v20 = vpop.f32.mrf.mxu1  ;;  %6160 = vmatprep.subr.bf16.mxu0 %v8777_v23  ;;  %v14471_v23 = vld [vmem:[#allocation11_spill] sm:$0xff]  ;;  %v4102_v48 = vadd.f32 %v12407_v57, %v14472_v42 }
 0x3e7   :  { %6005 = vmatmul.mubr.bf16.gmra.mxu0 %v11705_v47  ;;  %v4191_v40 = vadd.f32 %v4190_v49, %v4088_v10  ;;  %6064 = vmatpush2.bf16.msra.mxu1 %v8763_v37  ;;  %v12670_v33 = vadd.f32 %v4289_v36, %v4187_v19  ;;  %v4092_v47 = vadd.f32 %v12359_v11, %v12113_v54  ;;  %v8783_v37 = vld [vmem:[%s14075_s3 + $0xa44] ss:$8 sps:$4 sm:$0xff]   ;;  %v14473_v19 = vld [vmem:[#allocation8_spill] sm:$0xff]  ;;  %v8781_v57 = vld [vmem:[%s14075_s3 + $0xa40] ss:$8 sps:$4 sm:$0xff]  }
 0x3e8   :  { %6014 = vmatprep.mubr.bf16.mxu0 %v11713_v61  ;;  %v4192_v45 = vpop.f32.mrf.mxu0  ;;  %v4299_v14 = vpop.f32.mrf.mxu1  ;;  %6065 = vmatprep.subr.bf16.mxu1 %v8768_v52  ;;  %v4094_v54 = vadd.f32 %v12368_v56, %v12139_v24  ;;  %v4098_v24 = vadd.f32 %v12384_v15, %v12157_v63  ;;  %v8778_v15 = vld [vmem:[%s14075_s3 + $0xa50] ss:$8 sps:$4 sm:$0xff]   ;;  %v8796_v52 = vld [vmem:[%s14075_s3 + $0xb20] ss:$8 sps:$4 sm:$0xff]  }
 0x3e9   :  { %v4193_v28 = vadd.f32 %v4192_v45, %v4090_v39  ;;  %6161 = vmatpush1.bf16.msra.mxu0 %v8775_v32  ;;  %v12681_v6 = vadd.f32 %v4293_v46, %v4191_v40  ;;  %v14475_v40 = vld [vmem:[#allocation49_spill] sm:$0xff] }
 0x3ea   :  { %5922 = vmatmul.mubr.bf16.gmra.mxu1 %v11826_v3  ;;  %v4194_v61 = vpop.f32.mrf.mxu0  ;;  %v4303_v22 = vpop.f32.mrf.mxu1  ;;  %6162 = vmatprep.subr.bf16.mxu0 %v8786_v2 }
 0x3eb   :  { %v4195_v11 = vadd.f32 %v4194_v61, %v4092_v47  ;;  %5931 = vmatprep.mubr.bf16.mxu1 %v11862_v21  ;;  %6066 = vmatpush2.bf16.msra.mxu1 %v8766_v1  ;;  %v12693_v30 = vadd.f32 %v4295_v44, %v4193_v28  ;;  %v8790_v21 = vld [vmem:[%s14075_s3 + $0xb30] ss:$8 sps:$4 sm:$0xff]  }
 0x3ec   :  { %v4196_v3 = vpop.f32.mrf.mxu0  ;;  %v4305_v0 = vpop.f32.mrf.mxu1  ;;  %6067 = vmatprep.subr.bf16.mxu1 %v8774_v35  ;;  %v8789_v35 = vld [vmem:[%s14075_s3 + $0xa34] ss:$8 sps:$4 sm:$0xff]   ;;  %v8787_v61 = vld [vmem:[%s14075_s3 + $0xa30] ss:$8 sps:$4 sm:$0xff]  }
 0x3ed   :  { %v4197_v56 = vadd.f32 %v4196_v3, %v4094_v54  ;;  %6163 = vmatpush1.bf16.msra.mxu0 %v8784_v62  ;;  %v12703_v58 = vadd.f32 %v4297_v20, %v4195_v11  ;;  %v14474_v20 = vld [vmem:[#allocation41_spill] sm:$0xff]  ;;  %v8795_v11 = vld [vmem:[%s14075_s3 + $0xa24] ss:$8 sps:$4 sm:$0xff]   ;;  %v8793_v3 = vld [vmem:[%s14075_s3 + $0xa20] ss:$8 sps:$4 sm:$0xff]  }
 0x3ee   :  { %v4200_v36 = vpop.f32.mrf.mxu0  ;;  %v4307_v27 = vpop.f32.mrf.mxu1  ;;  %6176 = vmatprep.subr.bf16.mxu0 %v8792_v29  ;;  %v4104_v2 = vadd.f32 %v12414_v7, %v14474_v20  ;;  %v14476_v62 = vld [vmem:[#allocation33_spill] sm:$0xff]  ;;  %v14477_v29 = vld [vmem:[#allocation10_spill] sm:$0xff] }
 0x3ef   :  { %6015 = vmatmul.mubr.bf16.gmra.mxu0 %v14470_v16  ;;  %v4201_v63 = vadd.f32 %v4200_v36, %v4098_v24  ;;  %6068 = vmatpush2.bf16.msra.mxu1 %v8772_v17  ;;  %v12714_v46 = vadd.f32 %v4299_v14, %v4197_v56  ;;  %v14479_v36 = vld [vmem:[#allocation36_spill] sm:$0xff] }
 0x3f0   :  { %6024 = vmatprep.mubr.bf16.mxu0 %v14471_v23  ;;  %v4202_v50 = vpop.f32.mrf.mxu0  ;;  %v4309_v34 = vpop.f32.mrf.mxu1  ;;  %6069 = vmatprep.subr.bf16.mxu1 %v8780_v51  ;;  %v14478_v51 = vld [vmem:[#allocation4_spill] sm:$0xff] }
 0x3f1   :  { %v4203_v44 = vadd.f32 %v4202_v50, %v4100_v38  ;;  %6177 = vmatpush2.bf16.msra.mxu0 %v8790_v21  ;;  %v12725_v10 = vadd.f32 %v4303_v22, %v4201_v63  ;;  %v4108_v24 = vadd.f32 %v12426_v26, %v14478_v51  ;;  %v14481_v38 = vld [vmem:[#allocation23_spill] sm:$0xff]  ;;  %v14483_v26 = vld [vmem:[#allocation32_spill] sm:$0xff] }
 0x3f2   :  { %5932 = vmatmul.mubr.bf16.gmra.mxu1 %v14473_v19  ;;  %v4204_v32 = vpop.f32.mrf.mxu0  ;;  %v4313_v49 = vpop.f32.mrf.mxu1  ;;  %6178 = vmatprep.subr.bf16.mxu0 %v8798_v13  ;;  %v14480_v13 = vld [vmem:[#allocation46_spill] sm:$0xff]  ;;  %v14493_v51 = vld [vmem:[#allocation40_spill] sm:$0xff] }
 0x3f3   :  { %v4205_v39 = vadd.f32 %v4204_v32, %v4102_v48  ;;  %6070 = vmatpush2.bf16.msra.mxu1 %v8778_v15  ;;  %6077 = vmatprep.mubr.bf16.mxu1 %v14475_v40  ;;  %v12734_v1 = vadd.f32 %v4305_v0, %v4203_v44  ;;  %v14482_v15 = vld [vmem:[#allocation26_spill] sm:$0xff] }
 0x3f4   :  { %v4206_v45 = vpop.f32.mrf.mxu0  ;;  %v4315_v14 = vpop.f32.mrf.mxu1  ;;  %6071 = vmatprep.subr.bf16.mxu1 %v8783_v37  ;;  %v4112_v23 = vadd.f32 %v12443_v12, %v14482_v15 }
 0x3f5   :  { %v4207_v47 = vadd.f32 %v4206_v45, %v4104_v2  ;;  %6179 = vmatpush2.bf16.msra.mxu0 %v8796_v52  ;;  %v12739_v7 = vadd.f32 %v4307_v27, %v4205_v39  ;;  %v4110_v27 = vadd.f32 %v12432_v53, %v14479_v36  ;;  %v14484_v53 = vld [vmem:[#allocation15_spill] sm:$0xff]  ;;  %v14485_v52 = vld [vmem:[#allocation52_spill] sm:$0xff]  ;;  %v14488_v45 = vld [vmem:[#allocation6_spill] sm:$0xff] }
 0x3f6   :  { %v4317_v28 = vpop.f32.mrf.mxu1  ;;  %v4114_v48 = vadd.f32 %v12450_v5, %v14484_v53  ;;  %v14487_v39 = vld [vmem:[#allocation7_spill] sm:$0xff]  ;;  %v14494_v36 = vld [vmem:[#allocation37_spill] sm:$0xff] }
 0x3f7   :  { %6025 = vmatmul.mubr.bf16.gmra.mxu0 %v14476_v62  ;;  %6072 = vmatpush2.bf16.msra.mxu1 %v8781_v57  ;;  %v12745_v22 = vadd.f32 %v4309_v34, %v4207_v47  ;;  %v14489_v5 = vld [vmem:[#allocation27_spill] sm:$0xff] }
 0x3f8   :  { %6034 = vmatprep.mubr.bf16.mxu0 %v14477_v29  ;;  %v4319_v54 = vpop.f32.mrf.mxu1  ;;  %6073 = vmatprep.subr.bf16.mxu1 %v8789_v35  ;;  %v14490_v62 = vld [vmem:[#allocation47_spill] sm:$0xff]  ;;  %v14491_v29 = vld [vmem:[#allocation25_spill] sm:$0xff] }
 0x3fa   :  { %v4323_v17 = vpop.f32.mrf.mxu1 }
 0x3fb   :  { %6074 = vmatpush2.bf16.msra.mxu1 %v8787_v61  ;;  %v4120_v61 = vadd.f32 %v14490_v62, %v14489_v5 }
 0x3fc   :  { %v4325_v0 = vpop.f32.mrf.mxu1  ;;  %6075 = vmatprep.subr.bf16.mxu1 %v8795_v11 }
 0x3fe   :  { %v4210_v56 = vpop.f32.mrf.mxu0  ;;  %v4327_v21 = vpop.f32.mrf.mxu1 }
 0x3ff   :  { %6035 = vmatmul.mubr.bf16.gmra.mxu0 %v14480_v13  ;;  %v4211_v8 = vadd.f32 %v4210_v56, %v4108_v24  ;;  %6076 = vmatpush2.bf16.msra.mxu1 %v8793_v3  ;;  %v14492_v3 = vld [vmem:[#allocation17_spill] sm:$0xff] }
 0x400   :  { %7898 = vmatprep.mubr.msk.bf16.mxu0 %vm205_vm0, %v14481_v38  ;;  %v4212_v16 = vpop.f32.mrf.mxu0  ;;  %v4329_v63 = vpop.f32.mrf.mxu1  ;;  %v4122_v24 = vadd.f32 %v14493_v51, %v14492_v3  ;;  %v14496_v38 = vld [vmem:[#allocation39_spill] sm:$0xff]  ;;  %v14503_v51 = vld [vmem:[#allocation42_spill] sm:$0xff] }
 0x401   :  { %v4213_v50 = vadd.f32 %v4212_v16, %v4110_v27  ;;  %v12763_v34 = vadd.f32 %v4313_v49, %v4211_v8  ;;  %v14486_v49 = vld [vmem:[#allocation16_spill] sm:$0xff]  ;;  %v14495_v8 = vld [vmem:[#allocation21_spill] sm:$0xff] }
 0x402   :  { %6078 = vmatmul.mubr.bf16.vlgmr.msra.gmra.mxu1 %v14483_v26  ;;  %v4214_v37 = vpop.f32.mrf.mxu0  ;;  %v4469_v42 = vpop.f32.mrf.mxu1  ;;  %v4118_v40 = vadd.f32 %v14487_v39, %v14486_v49  ;;  %v14497_v16 = vld [vmem:[#allocation20_spill] sm:$0xff]  ;;  %v14500_v49 = vld [vmem:[#allocation29_spill] sm:$0xff] }
 0x403   :  { %v4215_v44 = vadd.f32 %v4214_v37, %v4112_v23  ;;  %6087 = vmatprep.mubr.bf16.mxu1 %v14485_v52  ;;  %v12769_v19 = vadd.f32 %v4315_v14, %v4213_v50  ;;  %v4124_v15 = vadd.f32 %v14497_v16, %v14496_v38  ;;  %v14498_v52 = vld [vmem:[#allocation53_spill] sm:$0xff] }
 0x404   :  { %v4216_v32 = vpop.f32.mrf.mxu0  ;;  %v12771_v20 = vpop.f32.mrf.mxu1 }
 0x405   :  { %v4217_v2 = vadd.f32 %v4216_v32, %v4114_v48  ;;  %v12773_v12 = vadd.f32 %v4317_v28, %v4215_v44  ;;  %v14499_v32 = vld [vmem:[#allocation24_spill] sm:$0xff] }
 0x406   :  { %v4473_v57 = vpop.f32.mrf.mxu1 }
 0x407   :  { %6181 = vmatmul.mubr.bf16.vlgmr.msra.gmra.mxu0 %v14488_v45  ;;  %v4220_v35 = vpop.f32.mrf.mxu0  ;;  %v12778_v47 = vadd.f32 %v4319_v54, %v4217_v2 }
 0x408   :  { %v4221_v14 = vadd.f32 %v4220_v35, %v4118_v40  ;;  %7899 = vmatprep.mubr.msk.bf16.mxu0 %vm205_vm0, %v14491_v29  ;;  %v12784_v11 = vpop.f32.mrf.mxu1 }
 0x409   :  { %v4222_v28 = vpop.f32.mrf.mxu0 }
 0x40a   :  { %v4223_v56 = vadd.f32 %v4222_v28, %v4120_v61  ;;  %6088 = vmatmul.mubr.bf16.gmra.mxu1 %v14494_v36  ;;  %v4479_v27 = vpop.f32.mrf.mxu1  ;;  %v12789_v13 = vadd.f32 %v4323_v17, %v4221_v14 }
 0x40b   :  { %v4224_v54 = vpop.f32.mrf.mxu0  ;;  %6097 = vmatprep.mubr.bf16.mxu1 %v14495_v8 }
 0x40c   :  { %v4225_v23 = vadd.f32 %v4224_v54, %v4122_v24  ;;  %v12794_v50 = vpop.f32.mrf.mxu1  ;;  %v12796_v26 = vadd.f32 %v4325_v0, %v4223_v56  ;;  %v14501_v0 = vld [vmem:[#allocation19_spill] sm:$0xff]  ;;  %v14504_v24 = vld [vmem:[#allocation30_spill] sm:$0xff] }
 0x40d   :  { %v4226_v37 = vpop.f32.mrf.mxu0 }
 0x40e   :  { %v4227_v53 = vadd.f32 %v4226_v37, %v4124_v15  ;;  %v4483_v48 = vpop.f32.mrf.mxu1  ;;  %v12798_v44 = vadd.f32 %v4327_v21, %v4225_v23  ;;  %v14502_v21 = vld [vmem:[#allocation34_spill] sm:$0xff] }
 0x40f   :  { %6191 = vmatmul.mubr.bf16.gmra.mxu0 %v14498_v52  ;;  %v4366_v17 = vpop.f32.mrf.mxu0  ;;  %v14509_v52 = vld [vmem:[#allocation13_spill] sm:$0xff] }
 0x410   :  { %v4367_v2 = vadd.f32 %v4366_v17, %v14499_v32  ;;  %7900 = vmatprep.mubr.msk.bf16.mxu0 %vm205_vm0, %v14500_v49  ;;  %v4485_v39 = vpop.f32.mrf.mxu1  ;;  %v12804_v40 = vadd.f32 %v4329_v63, %v4227_v53 }
 0x411   :  { %v4368_v45 = vpop.f32.mrf.mxu0 }
 0x412   :  { %v12806_v35 = vadd.f32 %v4469_v42, %v4367_v2  ;;  %6098 = vmatmul.mubr.bf16.gmra.mxu1 %v14501_v0  ;;  %v4489_v5 = vpop.f32.mrf.mxu1  ;;  %v14511_v2 = vld [vmem:[#allocation3_spill] sm:$0xff] }
 0x413   :  { %v4370_v62 = vpop.f32.mrf.mxu0  ;;  %6107 = vmatprep.mubr.bf16.mxu1 %v14502_v21 }
 0x414   :  { %v4371_v61 = vadd.f32 %v4370_v62, %v12545_v18  ;;  %v4491_v14 = vpop.f32.mrf.mxu1  ;;  %v14506_v18 = vld [vmem:[#allocation45_spill] sm:$0xff]  ;;  %v14513_v62 = vld [vmem:[#allocation50_spill] sm:$0xff] }
 0x415   :  { %v12811_v29 = vpop.f32.mrf.mxu0 }
 0x416   :  { %v12813_v28 = vadd.f32 %v4473_v57, %v4371_v61  ;;  %v4493_v3 = vpop.f32.mrf.mxu1  ;;  %v14507_v57 = vld [vmem:[#allocation51_spill] sm:$0xff]  ;;  %v14514_v61 = vld [vmem:[#allocation54_spill] sm:$0xff] }
 0x417   :  { %6201 = vmatmul.mubr.bf16.gmra.mxu0 %v14503_v51  ;;  %v4376_v63 = vpop.f32.mrf.mxu0 }
 0x418   :  { %v4377_v42 = vadd.f32 %v4376_v63, %v12593_v60  ;;  %7901 = vmatprep.mubr.msk.bf16.mxu0 %vm205_vm0, %v14504_v24  ;;  %v4495_v56 = vpop.f32.mrf.mxu1 }
 0x419   :  { %v12819_v36 = vpop.f32.mrf.mxu0 }
 0x41a   :  { %v12821_v54 = vadd.f32 %v4479_v27, %v4377_v42  ;;  %6108 = vmatmul.mubr.bf16.gmra.mxu1 %v14506_v18  ;;  %v4499_v8 = vpop.f32.mrf.mxu1  ;;  %v14517_v18 = vld [vmem:[#allocation38_spill] sm:$0xff] }
 0x41b   :  { %v4380_v38 = vpop.f32.mrf.mxu0  ;;  %6117 = vmatprep.mubr.bf16.mxu1 %v14507_v57 }
 0x41c   :  { %14505 = vst [vmem:[#allocation55_spill] sm:$0xff] %v12821_v54  ;;  %v4381_v16 = vadd.f32 %v4380_v38, %v12615_v55  ;;  %v4501_v15 = vpop.f32.mrf.mxu1 }
 0x41d   :  { %v4382_v23 = vpop.f32.mrf.mxu0 }
 0x41e   :  { %v12826_v37 = vadd.f32 %v4483_v48, %v4381_v16  ;;  %v4383_v60 = vadd.f32 %v4382_v23, %v12626_v4  ;;  %v4503_v53 = vpop.f32.mrf.mxu1  ;;  %v14519_v16 = vld [vmem:[#allocation5_spill] sm:$0xff] }
 0x41f   :  { %6211 = vmatmul.mubr.bf16.gmra.mxu0 %v14509_v52  ;;  %v4386_v17 = vpop.f32.mrf.mxu0  ;;  %v4369_v52 = vadd.f32 %v4368_v45, %v12535_v31  ;;  %v4373_v45 = vadd.f32 %v12811_v29, %v12557_v41  ;;  %v14526_v41 = vld [vmem:[#allocation31_spill] sm:$0xff]  ;;  %v4379_v29 = vadd.f32 %v12819_v36, %v12601_v25 }
 0x420   :  { %14508 = vst [vmem:[#allocation56_spill] sm:$0xff] %v12826_v37  ;;  %v12830_v27 = vadd.f32 %v4485_v39, %v4383_v60  ;;  %v4387_v32 = vadd.f32 %v4386_v17, %v12637_v9  ;;  %7902 = vmatprep.mubr.msk.bf16.mxu0 %vm205_vm0, %v14511_v2  ;;  %v4505_v49 = vpop.f32.mrf.mxu1  ;;  %v14521_v60 = vld [vmem:[#allocation28_spill] sm:$0xff] }
 0x421   :  { %v4388_v0 = vpop.f32.mrf.mxu0  ;;  %v12899_v36 = vadd.f32 %v12794_v50, %v4379_v29 }
 0x422   :  { %14510 = vst [vmem:[#allocation59_spill] sm:$0xff] %v12830_v27  ;;  %v12835_v55 = vadd.f32 %v4489_v5, %v4387_v32  ;;  %v4389_v48 = vadd.f32 %v4388_v0, %v12649_v59  ;;  %6118 = vmatmul.mubr.bf16.gmra.mxu1 %v14513_v62  ;;  %v4509_v4 = vpop.f32.mrf.mxu1  ;;  %v14522_v32 = vld [vmem:[#allocation44_spill] sm:$0xff] }
 0x423   :  { %v4390_v21 = vpop.f32.mrf.mxu0  ;;  %6127 = vmatprep.mubr.bf16.mxu1 %v14514_v61  ;;  %v14525_v61 = vld [vmem:[#allocation48_spill] sm:$0xff]  ;;  %14530 = vst [vmem:[#allocation65_spill] sm:$0xff] %v12899_v36 }
 0x424   :  { %14512 = vst [vmem:[#allocation60_spill] sm:$0xff] %v12835_v55  ;;  %v12840_v51 = vadd.f32 %v4491_v14, %v4389_v48  ;;  %v4391_v39 = vadd.f32 %v4390_v21, %v12659_v43  ;;  %v4511_v9 = vpop.f32.mrf.mxu1  ;;  %v14524_v21 = vld [vmem:[#allocation18_spill] sm:$0xff] }
 0x425   :  { %v4392_v63 = vpop.f32.mrf.mxu0 }
 0x426   :  { %14515 = vst [vmem:[#allocation35_spill] sm:$0xff] %v12840_v51  ;;  %v12843_v42 = vadd.f32 %v4493_v3, %v4391_v39  ;;  %v4393_v24 = vadd.f32 %v4392_v63, %v12670_v33  ;;  %v4513_v5 = vpop.f32.mrf.mxu1 }
 0x427   :  { %6221 = vmatmul.mubr.bf16.gmra.mxu0 %v14517_v18  ;;  %v4396_v59 = vpop.f32.mrf.mxu0 }
 0x428   :  { %14516 = vst [vmem:[#allocation61_spill] sm:$0xff] %v12843_v42  ;;  %v12847_v38 = vadd.f32 %v4495_v56, %v4393_v24  ;;  %v4397_v57 = vadd.f32 %v4396_v59, %v12681_v6  ;;  %7903 = vmatprep.mubr.msk.bf16.mxu0 %vm205_vm0, %v14519_v16  ;;  %v4515_v14 = vpop.f32.mrf.mxu1 }
 0x429   :  { %v4398_v23 = vpop.f32.mrf.mxu0 }
 0x42a   :  { %14518 = vst [vmem:[#allocation14_spill] sm:$0xff] %v12847_v38  ;;  %v12852_v43 = vadd.f32 %v4499_v8, %v4397_v57  ;;  %v4399_v3 = vadd.f32 %v4398_v23, %v12693_v30  ;;  %6128 = vmatmul.mubr.bf16.gmra.mxu1 %v14521_v60  ;;  %v4519_v33 = vpop.f32.mrf.mxu1  ;;  %v12865_v30 = vadd.f32 %v12771_v20, %v4369_v52 }
 0x42b   :  { %v4400_v17 = vpop.f32.mrf.mxu0  ;;  %6137 = vmatprep.mubr.bf16.mxu1 %v14522_v32 }
 0x42c   :  { %14520 = vst [vmem:[#allocation12_spill] sm:$0xff] %v12852_v43  ;;  %v12858_v56 = vadd.f32 %v4501_v15, %v4399_v3  ;;  %v4401_v6 = vadd.f32 %v4400_v17, %v12703_v58  ;;  %v4521_v2 = vpop.f32.mrf.mxu1  ;;  %v14191_v17 = vmov 0.0  }
 0x42d   :  { %v4402_v0 = vpop.f32.mrf.mxu0  ;;  %6451 = vmatprep.subr.mxu1 %v14191_v17  ;;  %6378 = vmatprep.subr.mxu0 %v14191_v17 }
 0x42e   :  { %14523 = vst [vmem:[#allocation62_spill] sm:$0xff] %v12858_v56  ;;  %v12861_v48 = vadd.f32 %v4503_v53, %v4401_v6  ;;  %v4403_v8 = vadd.f32 %v4402_v0, %v12714_v46  ;;  %v4523_v62 = vpop.f32.mrf.mxu1 }
 0x42f   :  { %6231 = vmatmul.mubr.bf16.gmra.mxu0 %v14524_v21  ;;  %v4406_v31 = vpop.f32.mrf.mxu0 }
 0x430   :  { %v12872_v58 = vadd.f32 %v4505_v49, %v4403_v8  ;;  %v4407_v53 = vadd.f32 %v4406_v31, %v12725_v10  ;;  %7904 = vmatprep.mubr.msk.bf16.mxu0 %vm205_vm0, %v14525_v61  ;;  %v4525_v46 = vpop.f32.mrf.mxu1  ;;  %v12886_v10 = vadd.f32 %v12784_v11, %v4373_v45  ;;  %v14531_v11 = vld [vmem:[#allocation9_spill] sm:$0xff]  ;;  %v7919_v61 = vld [vmem:[%s14077_s5 + $0x150] sm:$0xff] }
 0x431   :  { %v4408_v39 = vpop.f32.mrf.mxu0 }
 0x432   :  { %v12879_v63 = vadd.f32 %v4509_v4, %v4407_v53  ;;  %v4409_v24 = vadd.f32 %v4408_v39, %v12734_v1  ;;  %6138 = vmatmul.mubr.bf16.gmra.mxu1 %v14526_v41  ;;  %14527 = vst [vmem:[#allocation57_spill] sm:$0xff] %v12886_v10  ;;  %v4529_v4 = vpop.f32.mrf.mxu1  ;;  %v6330_v39 = vld [vmem:[%s14077_s5 + $0x60] sm:$0xff]  ;;  %v6336_v53 = vld [vmem:[%s14077_s5 + $0x90] sm:$0xff] }
 0x433   :  { %v4410_v49 = vpop.f32.mrf.mxu0 }
 0x434   :  { %v12890_v59 = vadd.f32 %v4511_v9, %v4409_v24  ;;  %v4411_v57 = vadd.f32 %v4410_v49, %v12739_v7  ;;  %v4531_v7 = vpop.f32.mrf.mxu1  ;;  %v7918_v49 = vld [vmem:[%s14077_s5 + $0x148] sm:$0xff] }
 0x435   :  { %v4412_v16 = vpop.f32.mrf.mxu0 }
 0x436   :  { %14528 = vst [vmem:[#allocation58_spill] sm:$0xff] %v12890_v59  ;;  %v12895_v23 = vadd.f32 %v4513_v5, %v4411_v57  ;;  %v4413_v25 = vadd.f32 %v4412_v16, %v12745_v22  ;;  %v6333_v22 = vld [vmem:[%s14077_s5 + $0x78] sm:$0xff]  ;;  %v4533_v8 = vpop.f32.mrf.mxu1 }
 0x437   :  { %6241 = vmatmul.mubr.bf16.gmra.mxu0 %v14531_v11  ;;  %v4416_v3 = vpop.f32.mrf.mxu0  ;;  %6452 = vmatpush1.msra.mxu1 %v6333_v22  ;;  %v6329_v57 = vld [vmem:[%s14077_s5 + $0x58] sm:$0xff] }
 0x438   :  { %14529 = vst [vmem:[#allocation64_spill] sm:$0xff] %v12895_v23  ;;  %v12904_v60 = vadd.f32 %v4515_v14, %v4413_v25  ;;  %v4417_v52 = vadd.f32 %v4416_v3, %v12763_v34  ;;  %6453 = vmatprep.subr.mxu1 %v14191_v17  ;;  %v6332_v34 = vld [vmem:[%s14077_s5 + $0x70] sm:$0xff]  ;;  %v4535_v41 = vpop.f32.mrf.mxu1  ;;  %v7917_v3 = vld [vmem:[%s14077_s5 + $0x140] sm:$0xff] }
 0x439   :  { %v4418_v50 = vpop.f32.mrf.mxu0  ;;  %6454 = vmatpush1.msra.mxu1 %v6332_v34  ;;  %v7916_v34 = vld [vmem:[%s14077_s5 + $0x138] sm:$0xff] }
 0x43a   :  { %14532 = vst [vmem:[#allocation22_spill] sm:$0xff] %v12904_v60  ;;  %v12914_v32 = vadd.f32 %v4519_v33, %v4417_v52  ;;  %v4419_v14 = vadd.f32 %v4418_v50, %v12769_v19  ;;  %6455 = vmatprep.subr.mxu1 %v14191_v17  ;;  %v7920_v19 = vld [vmem:[%s14077_s5 + $0x158] sm:$0xff]  ;;  %v6331_v33 = vld [vmem:[%s14077_s5 + $0x68] sm:$0xff]  ;;  %v6328_v52 = vld [vmem:[%s14077_s5 + $0x50] sm:$0xff] }
 0x43b   :  { %v4420_v6 = vpop.f32.mrf.mxu0  ;;  %6379 = vmatpush1.msra.mxu0 %v7920_v19  ;;  %6456 = vmatpush1.msra.mxu1 %v6331_v33 }
 0x43c   :  { %14533 = vst [vmem:[#allocation63_spill] sm:$0xff] %v12914_v32  ;;  %v12923_v21 = vadd.f32 %v4521_v2, %v4419_v14  ;;  %v4421_v31 = vadd.f32 %v4420_v6, %v12773_v12  ;;  %6380 = vmatprep.subr.mxu0 %v14191_v17  ;;  %6457 = vmatprep.subr.mxu1 %v14191_v17  ;;  %v6327_v6 = vld [vmem:[%s14077_s5 + $0x48] sm:$0xff] }
 0x43d   :  { %v4422_v45 = vpop.f32.mrf.mxu0  ;;  %6381 = vmatpush1.msra.mxu0 %v7919_v61  ;;  %6458 = vmatpush1.msra.mxu1 %v6330_v39  ;;  %v7914_v39 = vld [vmem:[%s14077_s5 + $0x128] sm:$0xff] }
 0x43e   :  { %14534 = vst [vmem:[#allocation11_spill] sm:$0xff] %v12923_v21  ;;  %v12935_v2 = vadd.f32 %v4523_v62, %v4421_v31  ;;  %v4423_v12 = vadd.f32 %v4422_v45, %v12778_v47  ;;  %6382 = vmatprep.subr.mxu0 %v14191_v17  ;;  %6459 = vmatprep.subr.mxu1 %v14191_v17  ;;  %v7915_v45 = vld [vmem:[%s14077_s5 + $0x130] sm:$0xff] }
 0x43f   :  { %v4426_v24 = vpop.f32.mrf.mxu0  ;;  %6383 = vmatpush1.msra.mxu0 %v7918_v49  ;;  %6460 = vmatpush1.msra.mxu1 %v6329_v57  ;;  %v7913_v49 = vld [vmem:[%s14077_s5 + $0x120] sm:$0xff]  ;;  %v6324_v57 = vld [vmem:[%s14077_s5 + $0x30] sm:$0xff] }
 0x440   :  { %14535 = vst [vmem:[#allocation2_spill] sm:$0xff] %v12935_v2  ;;  %v12948_v47 = vadd.f32 %v4525_v46, %v4423_v12  ;;  %v4427_v29 = vadd.f32 %v4426_v24, %v12789_v13  ;;  %6384 = vmatprep.subr.mxu0 %v14191_v17  ;;  %6461 = vmatprep.subr.mxu1 %v14191_v17  ;;  %v6326_v12 = vld [vmem:[%s14077_s5 + $0x40] sm:$0xff]  ;;  %v6325_v24 = vld [vmem:[%s14077_s5 + $0x38] sm:$0xff] }
 0x441   :  { %v4428_v16 = vpop.f32.mrf.mxu0  ;;  %6385 = vmatpush1.msra.mxu0 %v7917_v3  ;;  %6462 = vmatpush1.msra.mxu1 %v6328_v52  ;;  %v6323_v3 = vld [vmem:[%s14077_s5 + $0x28] sm:$0xff] }
 0x442   :  { %14536 = vst [vmem:[#allocation8_spill] sm:$0xff] %v12948_v47  ;;  %v12961_v25 = vadd.f32 %v4529_v4, %v4427_v29  ;;  %v4429_v13 = vadd.f32 %v4428_v16, %v12796_v26  ;;  %v5667_v11 = vpop.f32.mrf.mxu1  ;;  %6386 = vmatprep.subr.mxu0 %v14191_v17  ;;  %6463 = vmatprep.subr.mxu1 %v14191_v17 }
 0x443   :  { %v4430_v22 = vpop.f32.mrf.mxu0  ;;  %6387 = vmatpush1.msra.mxu0 %v7916_v34  ;;  %6464 = vmatpush1.msra.mxu1 %v6327_v6 }
 0x444   :  { %14537 = vst [vmem:[#allocation41_spill] sm:$0xff] %v12961_v25  ;;  %v12974_v26 = vadd.f32 %v4531_v7, %v4429_v13  ;;  %v4431_v50 = vadd.f32 %v4430_v22, %v12798_v44  ;;  %v5669_v14 = vpop.f32.mrf.mxu1  ;;  %6388 = vmatprep.subr.mxu0 %v14191_v17  ;;  %6465 = vmatprep.subr.mxu1 %v14191_v17  ;;  %v7912_v13 = vld [vmem:[%s14077_s5 + $0x118] sm:$0xff]  ;;  %v7911_v22 = vld [vmem:[%s14077_s5 + $0x110] sm:$0xff] }
 0x445   :  { %v4432_v31 = vpop.f32.mrf.mxu0  ;;  %6389 = vmatpush1.msra.mxu0 %v7915_v45  ;;  %6466 = vmatpush1.msra.mxu1 %v6326_v12  ;;  %v6321_v45 = vld [vmem:[%s14077_s5 + $0x18] sm:$0xff] }
 0x446   :  { %14538 = vst [vmem:[#allocation49_spill] sm:$0xff] %v12974_v26  ;;  %v12987_v44 = vadd.f32 %v4533_v8, %v4431_v50  ;;  %v4433_v19 = vadd.f32 %v4432_v31, %v12804_v40  ;;  %v5671_v33 = vpop.f32.mrf.mxu1  ;;  %6390 = vmatprep.subr.mxu0 %v14191_v17  ;;  %6467 = vmatprep.subr.mxu1 %v14191_v17  ;;  %v6322_v50 = vld [vmem:[%s14077_s5 + $0x20] sm:$0xff] }
 0x447   :  { %6391 = vmatpush1.msra.mxu0 %v7914_v39  ;;  %6468 = vmatpush1.msra.mxu1 %v6325_v24  ;;  %v7909_v24 = vld [vmem:[%s14077_s5 + $0x100] sm:$0xff] }
 0x448   :  { %14539 = vst [vmem:[#allocation33_spill] sm:$0xff] %v12987_v44  ;;  %v13000_v61 = vadd.f32 %v4535_v41, %v4433_v19  ;;  %v5673_v40 = vpop.f32.mrf.mxu1  ;;  %6392 = vmatprep.subr.mxu0 %v14191_v17  ;;  %6469 = vmatprep.subr.mxu1 %v14191_v17  ;;  %v7910_v19 = vld [vmem:[%s14077_s5 + $0x108] sm:$0xff] }
 0x449   :  { %6393 = vmatpush1.msra.mxu0 %v7913_v49  ;;  %6470 = vmatpush1.msra.mxu1 %v6324_v57  ;;  %v6320_v49 = vld [vmem:[%s14077_s5 + $0x10] sm:$0xff] }
 0x44a   :  { %14540 = vst [vmem:[#allocation10_spill] sm:$0xff] %v13000_v61  ;;  %v5677_v41 = vpop.f32.mrf.mxu1  ;;  %6394 = vmatprep.subr.mxu0 %v14191_v17  ;;  %6471 = vmatprep.subr.mxu1 %v14191_v17 }
 0x44b   :  { %6395 = vmatpush1.msra.mxu0 %v7912_v13  ;;  %6472 = vmatpush1.msra.mxu1 %v6323_v3  ;;  %v7908_v3 = vld [vmem:[%s14077_s5 + $0xf8] sm:$0xff] }
 0x44c   :  { %v5679_v16 = vpop.f32.mrf.mxu1  ;;  %6396 = vmatprep.subr.mxu0 %v14191_v17  ;;  %6473 = vmatprep.subr.mxu1 %v14191_v17 }
 0x44d   :  { %6397 = vmatpush1.msra.mxu0 %v7911_v22  ;;  %6474 = vmatpush1.msra.mxu1 %v6322_v50  ;;  %v6319_v22 = vld [vmem:[%s14077_s5 + $0x8] sm:$0xff] }
 0x44e   :  { %v5681_v52 = vpop.f32.mrf.mxu1  ;;  %6398 = vmatprep.subr.mxu0 %v14191_v17  ;;  %6475 = vmatprep.subr.mxu1 %v14191_v17 }
 0x44f   :  { %v5770_v34 = vpop.f32.mrf.mxu0  ;;  %6399 = vmatpush1.msra.mxu0 %v7910_v19  ;;  %6476 = vmatpush1.msra.mxu1 %v6321_v45  ;;  %v7907_v19 = vld [vmem:[%s14077_s5 + $0xf0] sm:$0xff]  ;;  %v6318_v45 = vld [vmem:[%s14077_s5] sm:$0xff] }
 0x450   :  { %v13036_v6 = vadd.f32 %v5770_v34, %v5667_v11  ;;  %v5683_v31 = vpop.f32.mrf.mxu1  ;;  %6400 = vmatprep.subr.mxu0 %v14191_v17  ;;  %6477 = vmatprep.subr.mxu1 %v14191_v17 }
 0x451   :  { %v5772_v12 = vpop.f32.mrf.mxu0  ;;  %6401 = vmatpush1.msra.mxu0 %v7909_v24  ;;  %6478 = vmatpush1.msra.mxu1 %v6320_v49  ;;  %v7906_v49 = vld [vmem:[%s14077_s5 + $0xe8] sm:$0xff] }
 0x452   :  { %v13046_v39 = vadd.f32 %v5772_v12, %v5669_v14  ;;  %v5687_v11 = vpop.f32.mrf.mxu1  ;;  %6402 = vmatprep.subr.mxu0 %v14191_v17  ;;  %6479 = vmatprep.subr.mxu1 %v14191_v17 }
 0x453   :  { %v5774_v57 = vpop.f32.mrf.mxu0  ;;  %6403 = vmatpush1.msra.mxu0 %v7908_v3  ;;  %6480 = vmatpush1.msra.mxu1 %v6319_v22 }
 0x454   :  { %v13056_v13 = vadd.f32 %v5774_v57, %v5671_v33  ;;  %v5689_v14 = vpop.f32.mrf.mxu1  ;;  %6404 = vmatprep.subr.mxu0 %v14191_v17  ;;  %6481 = vmatprep.subr.mxu1 %v14191_v17  ;;  %v6345_v57 = vld [vmem:[%s14077_s5 + $0xd8] sm:$0xff] }
 0x455   :  { %v5776_v50 = vpop.f32.mrf.mxu0  ;;  %6405 = vmatpush1.msra.mxu0 %v7907_v19  ;;  %6482 = vmatpush1.msra.mxu1 %v6318_v45  ;;  %v6344_v19 = vld [vmem:[%s14077_s5 + $0xd0] sm:$0xff] }
 0x456   :  { %v13066_v34 = vadd.f32 %v5776_v50, %v5673_v40  ;;  %v5691_v33 = vpop.f32.mrf.mxu1  ;;  %6406 = vmatprep.subr.mxu0 %v14191_v17  ;;  %6491 = vmatprep.subr.mxu1 %v14191_v17  ;;  %v7905_v50 = vld [vmem:[%s14077_s5 + $0xe0] sm:$0xff] }
 0x457   :  { %v5780_v12 = vpop.f32.mrf.mxu0  ;;  %6407 = vmatpush1.msra.mxu0 %v7906_v49  ;;  %6492 = vmatpush2.msra.mxu1 %v6345_v57  ;;  %v7932_v49 = vld [vmem:[%s14077_s5 + $0x1b8] sm:$0xff]  ;;  %v6343_v57 = vld [vmem:[%s14077_s5 + $0xc8] sm:$0xff] }
 0x458   :  { %v13076_v24 = vadd.f32 %v5780_v12, %v5677_v41  ;;  %v5693_v40 = vpop.f32.mrf.mxu1  ;;  %6408 = vmatprep.subr.mxu0 %v14191_v17  ;;  %6493 = vmatprep.subr.mxu1 %v14191_v17 }
 0x459   :  { %v5782_v3 = vpop.f32.mrf.mxu0  ;;  %6409 = vmatpush1.msra.mxu0 %v7905_v50  ;;  %6494 = vmatpush2.msra.mxu1 %v6344_v19  ;;  %v7931_v19 = vld [vmem:[%s14077_s5 + $0x1b0] sm:$0xff] }
 0x45a   :  { %v13086_v22 = vadd.f32 %v5782_v3, %v5679_v16  ;;  %v5697_v41 = vpop.f32.mrf.mxu1  ;;  %6418 = vmatprep.subr.mxu0 %v14191_v17  ;;  %6495 = vmatprep.subr.mxu1 %v14191_v17 }
 0x45b   :  { %v5784_v45 = vpop.f32.mrf.mxu0  ;;  %6419 = vmatpush2.msra.mxu0 %v7932_v49  ;;  %6496 = vmatpush2.msra.mxu1 %v6343_v57  ;;  %v7930_v57 = vld [vmem:[%s14077_s5 + $0x1a8] sm:$0xff] }
 0x45c   :  { %v13096_v12 = vadd.f32 %v5784_v45, %v5681_v52  ;;  %v5699_v16 = vpop.f32.mrf.mxu1  ;;  %6420 = vmatprep.subr.mxu0 %v14191_v17  ;;  %6497 = vmatprep.subr.mxu1 %v14191_v17  ;;  %v6342_v45 = vld [vmem:[%s14077_s5 + $0xc0] sm:$0xff] }
 0x45d   :  { %v5786_v3 = vpop.f32.mrf.mxu0  ;;  %6421 = vmatpush2.msra.mxu0 %v7931_v19  ;;  %6498 = vmatpush2.msra.mxu1 %v6342_v45  ;;  %v6340_v45 = vld [vmem:[%s14077_s5 + $0xb0] sm:$0xff] }
 0x45e   :  { %v13106_v50 = vadd.f32 %v5786_v3, %v5683_v31  ;;  %v5701_v52 = vpop.f32.mrf.mxu1  ;;  %6422 = vmatprep.subr.mxu0 %v14191_v17  ;;  %6499 = vmatprep.subr.mxu1 %v14191_v17  ;;  %v6341_v3 = vld [vmem:[%s14077_s5 + $0xb8] sm:$0xff] }
 0x45f   :  { %v5790_v29 = vpop.f32.mrf.mxu0  ;;  %6423 = vmatpush2.msra.mxu0 %v7930_v57  ;;  %6500 = vmatpush2.msra.mxu1 %v6341_v3  ;;  %v6339_v3 = vld [vmem:[%s14077_s5 + $0xa8] sm:$0xff] }
 0x460   :  { %v13116_v49 = vadd.f32 %v5790_v29, %v5687_v11  ;;  %v5703_v31 = vpop.f32.mrf.mxu1  ;;  %6424 = vmatprep.subr.mxu0 %v14191_v17  ;;  %6501 = vmatprep.subr.mxu1 %v14191_v17  ;;  %v7929_v11 = vld [vmem:[%s14077_s5 + $0x1a0] sm:$0xff] }
 0x461   :  { %v5792_v8 = vpop.f32.mrf.mxu0  ;;  %6425 = vmatpush2.msra.mxu0 %v7929_v11  ;;  %6502 = vmatpush2.msra.mxu1 %v6340_v45  ;;  %v6338_v45 = vld [vmem:[%s14077_s5 + $0xa0] sm:$0xff] }
 0x462   :  { %v13126_v19 = vadd.f32 %v5792_v8, %v5689_v14  ;;  %v5707_v29 = vpop.f32.mrf.mxu1  ;;  %6426 = vmatprep.subr.mxu0 %v14191_v17  ;;  %6503 = vmatprep.subr.mxu1 %v14191_v17  ;;  %v7928_v14 = vld [vmem:[%s14077_s5 + $0x198] sm:$0xff] }
 0x463   :  { %v5794_v7 = vpop.f32.mrf.mxu0  ;;  %6427 = vmatpush2.msra.mxu0 %v7928_v14  ;;  %6504 = vmatpush2.msra.mxu1 %v6339_v3  ;;  %v6337_v3 = vld [vmem:[%s14077_s5 + $0x98] sm:$0xff] }
 0x464   :  { %v13136_v57 = vadd.f32 %v5794_v7, %v5691_v33  ;;  %v5709_v8 = vpop.f32.mrf.mxu1  ;;  %6428 = vmatprep.subr.mxu0 %v14191_v17  ;;  %6505 = vmatprep.subr.mxu1 %v14191_v17  ;;  %v7927_v33 = vld [vmem:[%s14077_s5 + $0x190] sm:$0xff] }
 0x465   :  { %v5796_v4 = vpop.f32.mrf.mxu0  ;;  %6429 = vmatpush2.msra.mxu0 %v7927_v33  ;;  %6506 = vmatpush2.msra.mxu1 %v6338_v45  ;;  %v7925_v45 = vld [vmem:[%s14077_s5 + $0x180] sm:$0xff] }
 0x466   :  { %v13146_v11 = vadd.f32 %v5796_v4, %v5693_v40  ;;  %v5711_v7 = vpop.f32.mrf.mxu1  ;;  %6430 = vmatprep.subr.mxu0 %v14191_v17  ;;  %6507 = vmatprep.subr.mxu1 %v14191_v17  ;;  %v7926_v40 = vld [vmem:[%s14077_s5 + $0x188] sm:$0xff] }
 0x467   :  { %v5800_v46 = vpop.f32.mrf.mxu0  ;;  %6431 = vmatpush2.msra.mxu0 %v7926_v40  ;;  %6508 = vmatpush2.msra.mxu1 %v6337_v3  ;;  %v6335_v3 = vld [vmem:[%s14077_s5 + $0x88] sm:$0xff] }
 0x468   :  { %v13156_v14 = vadd.f32 %v5800_v46, %v5697_v41  ;;  %v5713_v4 = vpop.f32.mrf.mxu1  ;;  %6432 = vmatprep.subr.mxu0 %v14191_v17  ;;  %6509 = vmatprep.subr.mxu1 %v14191_v17 }
 0x469   :  { %v5802_v62 = vpop.f32.mrf.mxu0  ;;  %6433 = vmatpush2.msra.mxu0 %v7925_v45  ;;  %6510 = vmatpush2.msra.mxu1 %v6336_v53  ;;  %v7923_v53 = vld [vmem:[%s14077_s5 + $0x170] sm:$0xff]  ;;  %v6334_v45 = vld [vmem:[%s14077_s5 + $0x80] sm:$0xff] }
 0x46a   :  { %v13166_v33 = vadd.f32 %v5802_v62, %v5699_v16  ;;  %v5717_v46 = vpop.f32.mrf.mxu1  ;;  %6434 = vmatprep.subr.mxu0 %v14191_v17  ;;  %6511 = vmatprep.subr.mxu1 %v14191_v17  ;;  %v7924_v16 = vld [vmem:[%s14077_s5 + $0x178] sm:$0xff] }
 0x46b   :  { %v5804_v41 = vpop.f32.mrf.mxu0  ;;  %6435 = vmatpush2.msra.mxu0 %v7924_v16  ;;  %6512 = vmatpush2.msra.mxu1 %v6335_v3  ;;  %v7922_v16 = vld [vmem:[%s14077_s5 + $0x168] sm:$0xff] }
 0x46c   :  { %v13176_v0 = vadd.f32 %v5804_v41, %v5701_v52  ;;  %v5719_v40 = vpop.f32.mrf.mxu1  ;;  %6436 = vmatprep.subr.mxu0 %v14191_v17  ;;  %6513 = vmatprep.subr.mxu1 %v14191_v17 }
 0x46d   :  { %v5806_v62 = vpop.f32.mrf.mxu0  ;;  %6437 = vmatpush2.msra.mxu0 %v7923_v53  ;;  %6514 = vmatpush2.msra.mxu1 %v6334_v45 }
 0x46e   :  { %v13186_v5 = vadd.f32 %v5806_v62, %v5703_v31  ;;  %v5721_v52 = vpop.f32.mrf.mxu1  ;;  %6438 = vmatprep.subr.mxu0 %v14191_v17  ;;  %6656 = vmatprep.subr.mxu1 %v14191_v17 }
 0x46f   :  { %v5810_v41 = vpop.f32.mrf.mxu0  ;;  %6439 = vmatpush2.msra.mxu0 %v7922_v16 }
 0x470   :  { %v13196_v9 = vadd.f32 %v5810_v41, %v5707_v29  ;;  %v5723_v31 = vpop.f32.mrf.mxu1  ;;  %6440 = vmatprep.subr.mxu0 %v14191_v17  ;;  %v7921_v29 = vld [vmem:[%s14077_s5 + $0x160] sm:$0xff] }
 0x471   :  { %v5812_v62 = vpop.f32.mrf.mxu0  ;;  %6441 = vmatpush2.msra.mxu0 %v7921_v29 }
 0x472   :  { %v13203_v3 = vadd.f32 %v5812_v62, %v5709_v8  ;;  %v5727_v41 = vpop.f32.mrf.mxu1  ;;  %6553 = vmatprep.subr.mxu0 %v14191_v17 }
 0x473   :  { %v5814_v1 = vpop.f32.mrf.mxu0 }
 0x474   :  { %v13209_v53 = vadd.f32 %v5814_v1, %v5711_v7  ;;  %v5729_v8 = vpop.f32.mrf.mxu1 }
 0x475   :  { %v5816_v45 = vpop.f32.mrf.mxu0 }
 0x476   :  { %v13212_v18 = vadd.f32 %v5816_v45, %v5713_v4  ;;  %v5731_v56 = vpop.f32.mrf.mxu1 }
 0x477   :  { %v5820_v20 = vpop.f32.mrf.mxu0 }
 0x478   :  { %v13214_v62 = vadd.f32 %v5820_v20, %v5717_v46  ;;  %v5733_v29 = vpop.f32.mrf.mxu1 }
 0x479   :  { %v5822_v16 = vpop.f32.mrf.mxu0 }
 0x47a   :  { %v13216_v15 = vadd.f32 %v5822_v16, %v5719_v40 }
 0x47b   :  { %v5824_v61 = vpop.f32.mrf.mxu0 }
 0x47c   :  { %v13218_v44 = vadd.f32 %v5824_v61, %v5721_v52 }
 0x47d   :  { %v5826_v43 = vpop.f32.mrf.mxu0 }
 0x47e   :  { %v13220_v1 = vadd.f32 %v5826_v43, %v5723_v31 }
 0x47f   :  { %v5830_v7 = vpop.f32.mrf.mxu0 }
 0x480   :  { %v13222_v26 = vadd.f32 %v5830_v7, %v5727_v41 }
 0x481   :  { %v5832_v4 = vpop.f32.mrf.mxu0 }
 0x482   :  { %v13224_v45 = vadd.f32 %v5832_v4, %v5729_v8  ;;  %v5873_v17 = vpop.f32.mrf.mxu1 }
 0x483   :  { %v5834_v20 = vpop.f32.mrf.mxu0  ;;  %v5874_v46 = vadd.f32 %v5873_v17, %v13036_v6 }
 0x484   :  { %v13227_v40 = vadd.f32 %v5834_v20, %v5731_v56  ;;  %v5875_v16 = vpop.f32.mrf.mxu1 }
 0x485   :  { %v5836_v38 = vpop.f32.mrf.mxu0  ;;  %v5876_v61 = vadd.f32 %v5875_v16, %v13046_v39 }
 0x486   :  { %v13230_v52 = vadd.f32 %v5836_v38, %v5733_v29  ;;  %v5877_v43 = vpop.f32.mrf.mxu1 }
 0x487   :  { %v5878_v31 = vadd.f32 %v5877_v43, %v13056_v13 }
 0x488   :  { %v5879_v41 = vpop.f32.mrf.mxu1 }
 0x489   :  { %v5880_v7 = vadd.f32 %v5879_v41, %v13066_v34 }
 0x48a   :  { %v5883_v8 = vpop.f32.mrf.mxu1 }
 0x48b   :  { %v5884_v4 = vadd.f32 %v5883_v8, %v13076_v24 }
 0x48c   :  { %v5885_v25 = vpop.f32.mrf.mxu1 }
 0x48d   :  { %v5886_v17 = vadd.f32 %v5885_v25, %v13086_v22 }
 0x48e   :  { %v5887_v56 = vpop.f32.mrf.mxu1 }
 0x48f   :  { %v5888_v6 = vadd.f32 %v5887_v56, %v13096_v12  ;;  %v5976_v20 = vpop.f32.mrf.mxu0 }
 0x490   :  { %v13237_v42 = vadd.f32 %v5976_v20, %v5874_v46  ;;  %v5889_v38 = vpop.f32.mrf.mxu1 }
 0x491   :  { %v5890_v39 = vadd.f32 %v5889_v38, %v13106_v50  ;;  %v5978_v29 = vpop.f32.mrf.mxu0 }
 0x492   :  { %v13240_v13 = vadd.f32 %v5978_v29, %v5876_v61  ;;  %v5893_v16 = vpop.f32.mrf.mxu1 }
 0x493   :  { %v5894_v34 = vadd.f32 %v5893_v16, %v13116_v49  ;;  %v5980_v43 = vpop.f32.mrf.mxu0 }
 0x494   :  { %v13243_v24 = vadd.f32 %v5980_v43, %v5878_v31  ;;  %v5895_v41 = vpop.f32.mrf.mxu1 }
 0x495   :  { %v5896_v25 = vadd.f32 %v5895_v41, %v13126_v19  ;;  %v5982_v22 = vpop.f32.mrf.mxu0 }
 0x496   :  { %v13246_v12 = vadd.f32 %v5982_v22, %v5880_v7  ;;  %v5897_v46 = vpop.f32.mrf.mxu1 }
 0x497   :  { %v5898_v8 = vadd.f32 %v5897_v46, %v13136_v57  ;;  %v5986_v56 = vpop.f32.mrf.mxu0 }
 0x498   :  { %v13249_v50 = vadd.f32 %v5986_v56, %v5884_v4  ;;  %v5899_v61 = vpop.f32.mrf.mxu1 }
 0x499   :  { %v5900_v20 = vadd.f32 %v5899_v61, %v13146_v11  ;;  %v5988_v38 = vpop.f32.mrf.mxu0 }
 0x49a   :  { %v13252_v49 = vadd.f32 %v5988_v38, %v5886_v17  ;;  %v5903_v31 = vpop.f32.mrf.mxu1 }
 0x49b   :  { %v5904_v29 = vadd.f32 %v5903_v31, %v13156_v14  ;;  %v5990_v16 = vpop.f32.mrf.mxu0 }
 0x49c   :  { %v13255_v19 = vadd.f32 %v5990_v16, %v5888_v6  ;;  %v5905_v7 = vpop.f32.mrf.mxu1 }
 0x49d   :  { %v5906_v43 = vadd.f32 %v5905_v7, %v13166_v33  ;;  %v5992_v41 = vpop.f32.mrf.mxu0 }
 0x49e   :  { %v13258_v57 = vadd.f32 %v5992_v41, %v5890_v39  ;;  %v13260_v4 = vpop.f32.mrf.mxu1 }
 0x49f   :  { %v5996_v22 = vpop.f32.mrf.mxu0 }
 0x4a0   :  { %v13262_v46 = vadd.f32 %v5996_v22, %v5894_v34  ;;  %v13264_v11 = vpop.f32.mrf.mxu1 }
 0x4a1   :  { %v5998_v17 = vpop.f32.mrf.mxu0 }
 0x4a2   :  { %v13266_v56 = vadd.f32 %v5998_v17, %v5896_v25  ;;  %v13268_v14 = vpop.f32.mrf.mxu1 }
 0x4a3   :  { %v6000_v6 = vpop.f32.mrf.mxu0 }
 0x4a4   :  { %v13270_v61 = vadd.f32 %v6000_v6, %v5898_v8  ;;  %v13272_v38 = vpop.f32.mrf.mxu1 }
 0x4a5   :  { %v6002_v33 = vpop.f32.mrf.mxu0 }
 0x4a6   :  { %v13274_v39 = vadd.f32 %v6002_v33, %v5900_v20  ;;  %v5917_v31 = vpop.f32.mrf.mxu1 }
 0x4a7   :  { %v5918_v16 = vadd.f32 %v5917_v31, %v13209_v53  ;;  %v6006_v34 = vpop.f32.mrf.mxu0 }
 0x4a8   :  { %v13277_v7 = vadd.f32 %v6006_v34, %v5904_v29  ;;  %v13279_v41 = vpop.f32.mrf.mxu1 }
 0x4a9   :  { %v6008_v25 = vpop.f32.mrf.mxu0 }
 0x4aa   :  { %v13281_v22 = vadd.f32 %v6008_v25, %v5906_v43  ;;  %v5923_v17 = vpop.f32.mrf.mxu1 }
 0x4ab   :  { %v5924_v8 = vadd.f32 %v5923_v17, %v13214_v62  ;;  %v13284_v6 = vpop.f32.mrf.mxu0 }
 0x4ac   :  { %v13286_v47 = vpop.f32.mrf.mxu1 }
 0x4ad   :  { %v13288_v20 = vpop.f32.mrf.mxu0 }
 0x4ae   :  { %v5927_v33 = vpop.f32.mrf.mxu1 }
 0x4af   :  { %v5928_v53 = vadd.f32 %v5927_v33, %v13218_v44  ;;  %v13291_v31 = vpop.f32.mrf.mxu0 }
 0x4b0   :  { %v5929_v29 = vpop.f32.mrf.mxu1 }
 0x4b1   :  { %v5930_v34 = vadd.f32 %v5929_v29, %v13220_v1  ;;  %v13294_v51 = vpop.f32.mrf.mxu0 }
 0x4b2   :  { %v5933_v43 = vpop.f32.mrf.mxu1 }
 0x4b3   :  { %v5934_v25 = vadd.f32 %v5933_v43, %v13222_v26  ;;  %v6020_v62 = vpop.f32.mrf.mxu0 }
 0x4b4   :  { %v13297_v17 = vadd.f32 %v6020_v62, %v5918_v16  ;;  %v5935_v2 = vpop.f32.mrf.mxu1 }
 0x4b5   :  { %v5936_v55 = vadd.f32 %v5935_v2, %v13224_v45  ;;  %v13300_v21 = vpop.f32.mrf.mxu0 }
 0x4b6   :  { %v5937_v27 = vpop.f32.mrf.mxu1 }
 0x4b7   :  { %v5938_v44 = vadd.f32 %v5937_v27, %v13227_v40  ;;  %v6026_v33 = vpop.f32.mrf.mxu0 }
 0x4b8   :  { %v13303_v32 = vadd.f32 %v6026_v33, %v5924_v8  ;;  %v5939_v1 = vpop.f32.mrf.mxu1 }
 0x4b9   :  { %v5940_v29 = vadd.f32 %v5939_v1, %v13230_v52  ;;  %v13306_v37 = vpop.f32.mrf.mxu0 }
 0x4ba   :  { %14541 = vst [vmem:[#allocation4_spill] sm:$0xff] %v13303_v32 }
 0x4bb   :  { %v6030_v26 = vpop.f32.mrf.mxu0 }
 0x4bc   :  { %v13308_v43 = vadd.f32 %v6030_v26, %v5928_v53 }
 0x4bd   :  { %v6032_v16 = vpop.f32.mrf.mxu0 }
 0x4be   :  { %14542 = vst [vmem:[#allocation36_spill] sm:$0xff] %v13308_v43  ;;  %v13310_v62 = vadd.f32 %v6032_v16, %v5930_v34 }
 0x4bf   :  { %v6036_v2 = vpop.f32.mrf.mxu0 }
 0x4c0   :  { %14543 = vst [vmem:[#allocation46_spill] sm:$0xff] %v13310_v62  ;;  %v13312_v45 = vadd.f32 %v6036_v2, %v5934_v25 }
 0x4c1   :  { %v6038_v60 = vpop.f32.mrf.mxu0 }
 0x4c2   :  { %14544 = vst [vmem:[#allocation23_spill] sm:$0xff] %v13312_v45  ;;  %v13314_v36 = vadd.f32 %v6038_v60, %v5936_v55  ;;  %v6079_v27 = vpop.f32.mrf.mxu1 }
 0x4c3   :  { %v6040_v40 = vpop.f32.mrf.mxu0 }
 0x4c4   :  { %14545 = vst [vmem:[#allocation26_spill] sm:$0xff] %v13314_v36  ;;  %v13316_v8 = vadd.f32 %v6040_v40, %v5938_v44  ;;  %v6081_v33 = vpop.f32.mrf.mxu1 }
 0x4c5   :  { %v6042_v52 = vpop.f32.mrf.mxu0 }
 0x4c6   :  { %14546 = vst [vmem:[#allocation32_spill] sm:$0xff] %v13316_v8  ;;  %v13318_v1 = vadd.f32 %v6042_v52, %v5940_v29  ;;  %v13320_v23 = vpop.f32.mrf.mxu1 }
 0x4c7   :  { %v6182_v53 = vpop.f32.mrf.mxu0 }
 0x4c8   :  { %14547 = vst [vmem:[#allocation15_spill] sm:$0xff] %v13318_v1  ;;  %v13322_v26 = vpop.f32.mrf.mxu1 }
 0x4c9   :  { %v13324_v34 = vpop.f32.mrf.mxu0 }
 0x4ca   :  { %v6089_v25 = vpop.f32.mrf.mxu1 }
 0x4cb   :  { %v6090_v16 = vadd.f32 %v6089_v25, %v13249_v50  ;;  %v13327_v55 = vpop.f32.mrf.mxu0 }
 0x4cc   :  { %v13329_v60 = vpop.f32.mrf.mxu1 }
 0x4cd   :  { %v13331_v44 = vpop.f32.mrf.mxu0 }
 0x4ce   :  { %v6093_v2 = vpop.f32.mrf.mxu1 }
 0x4cf   :  { %v6094_v29 = vadd.f32 %v6093_v2, %v13255_v19  ;;  %v6192_v40 = vpop.f32.mrf.mxu0 }
 0x4d0   :  { %v13334_v52 = vadd.f32 %v6192_v40, %v6090_v16  ;;  %v13336_v1 = vpop.f32.mrf.mxu1 }
 0x4d1   :  { %v13338_v8 = vpop.f32.mrf.mxu0 }
 0x4d2   :  { %14548 = vst [vmem:[#allocation52_spill] sm:$0xff] %v13334_v52  ;;  %v6099_v36 = vpop.f32.mrf.mxu1 }
 0x4d3   :  { %v6100_v45 = vadd.f32 %v6099_v36, %v13262_v46  ;;  %v6196_v50 = vpop.f32.mrf.mxu0 }
 0x4d4   :  { %v13341_v25 = vadd.f32 %v6196_v50, %v6094_v29  ;;  %v6101_v62 = vpop.f32.mrf.mxu1 }
 0x4d5   :  { %v6102_v54 = vadd.f32 %v6101_v62, %v13266_v56  ;;  %v13344_v43 = vpop.f32.mrf.mxu0 }
 0x4d6   :  { %14549 = vst [vmem:[#allocation16_spill] sm:$0xff] %v13341_v25  ;;  %v6103_v32 = vpop.f32.mrf.mxu1 }
 0x4d7   :  { %v6104_v19 = vadd.f32 %v6103_v32, %v13270_v61  ;;  %v6202_v16 = vpop.f32.mrf.mxu0  ;;  %v5908_v32 = vadd.f32 %v13260_v4, %v13176_v0  ;;  %v6080_v0 = vadd.f32 %v6079_v27, %v13237_v42 }
 0x4d8   :  { %v13347_v2 = vadd.f32 %v6202_v16, %v6100_v45  ;;  %v6105_v40 = vpop.f32.mrf.mxu1  ;;  %v5914_v16 = vadd.f32 %v13268_v14, %v13196_v9  ;;  %v6082_v9 = vadd.f32 %v6081_v33, %v13240_v13  ;;  %v5920_v33 = vadd.f32 %v13279_v41, %v13212_v18 }
 0x4d9   :  { %v6106_v52 = vadd.f32 %v6105_v40, %v13274_v39  ;;  %v6204_v59 = vpop.f32.mrf.mxu0  ;;  %v6183_v14 = vadd.f32 %v6182_v53, %v6080_v0 }
 0x4da   :  { %v13350_v10 = vadd.f32 %v6204_v59, %v6102_v54  ;;  %v6109_v36 = vpop.f32.mrf.mxu1  ;;  %v5910_v54 = vadd.f32 %v13264_v11, %v13186_v5  ;;  %v6011_v59 = vadd.f32 %v13284_v6, %v5908_v32  ;;  %v2047_v5 = vld [vmem:[%s14078_s4] sm:$0x3]  ;;  %v5916_v11 = vadd.f32 %v13272_v38, %v13203_v3 }
 0x4db   :  { %v6110_v46 = vadd.f32 %v6109_v36, %v13277_v7  ;;  %v6206_v29 = vpop.f32.mrf.mxu0  ;;  %v6017_v6 = vadd.f32 %v13291_v31, %v5914_v16  ;;  %v6185_v3 = vadd.f32 %v13324_v34, %v6082_v9  ;;  %v14553_v34 = vmax.f32 %v12806_v35, %v12861_v48 }
 0x4dc   :  { %v13353_v50 = vadd.f32 %v6206_v29, %v6104_v19  ;;  %v6111_v56 = vpop.f32.mrf.mxu1  ;;  %v6013_v40 = vadd.f32 %v13288_v20, %v5910_v54  ;;  %v6019_v27 = vadd.f32 %v13294_v51, %v5916_v11  ;;  %v6084_v29 = vadd.f32 %v13320_v23, %v13243_v24 }
 0x4dd   :  { %v6112_v62 = vadd.f32 %v6111_v56, %v13281_v22  ;;  %v6208_v25 = vpop.f32.mrf.mxu0  ;;  %v14550_v56 = vld [vmem:[#allocation43_spill] sm:$0xff]  ;;  %v6086_v51 = vadd.f32 %v13322_v26, %v13246_v12  ;;  %v6023_v18 = vadd.f32 %v13300_v21, %v5920_v33  ;;  %v14554_v26 = vmax.f32 %v12865_v30, %v12872_v58 }
 0x4de   :  { %v13358_v61 = vadd.f32 %v6208_v25, %v6106_v52  ;;  %v6113_v45 = vpop.f32.mrf.mxu1  ;;  %v6187_v53 = vadd.f32 %v13327_v55, %v6084_v29  ;;  %v14552_v23 = vsub.s32 1, %v14550_v56  ;;  %v5926_v35 = vadd.f32 %v13286_v47, %v13216_v15  ;;  %v14559_v29 = vld [vmem:[#allocation4_spill] sm:$0xff] }
 0x4df   :  { %v6212_v39 = vpop.f32.mrf.mxu0  ;;  %v6114_v4 = vadd.f32 %v6113_v45, %v6011_v59  ;;  %v6189_v12 = vadd.f32 %v13331_v44, %v6086_v51  ;;  %v6092_v48 = vadd.f32 %v13329_v60, %v13252_v49  ;;  %v14555_v30 = vmax.f32 %v12813_v28, %v12879_v63 }
 0x4e0   :  { %v13363_v7 = vadd.f32 %v6212_v39, %v6110_v46  ;;  %v6115_v19 = vpop.f32.mrf.mxu1  ;;  %v13393_v24 = vrot.slane %v2047_v5, %v14552_v23  ;;  %v6096_v15 = vadd.f32 %v13336_v1, %v13258_v57  ;;  %v14562_v23 = vld [vmem:[#allocation55_spill] sm:$0xff] }
 0x4e1   :  { %v6214_v22 = vpop.f32.mrf.mxu0  ;;  %v6116_v20 = vadd.f32 %v6115_v19, %v6013_v40  ;;  %v6195_v47 = vadd.f32 %v13338_v8, %v6092_v48  ;;  %v7979_v8 = vld [vmem:[%s14077_s5 + $0x318] sm:$0xff]  ;;  %v7977_v48 = vld [vmem:[%s14077_s5 + $0x308] sm:$0xff] }
 0x4e2   :  { %v13369_v52 = vadd.f32 %v6214_v22, %v6112_v62  ;;  %v6119_v25 = vpop.f32.mrf.mxu1  ;;  %v14551_v62 = vsub.s32 0, %v14550_v56 }
 0x4e3   :  { %v6216_v36 = vpop.f32.mrf.mxu0  ;;  %v6120_v38 = vadd.f32 %v6119_v25, %v6017_v6 }
 0x4e4   :  { %v6217_v46 = vadd.f32 %v6216_v36, %v6114_v4  ;;  %v6121_v42 = vpop.f32.mrf.mxu1  ;;  %v13383_v32 = vrot.slane %v2047_v5, %v14551_v62 }
 0x4e5   :  { %v6218_v45 = vpop.f32.mrf.mxu0  ;;  %v6122_v19 = vadd.f32 %v6121_v42, %v6019_v27 }
 0x4e6   :  { %v6251_v31 = vmax.f32 %v6183_v14, %v6217_v46  ;;  %v6219_v39 = vadd.f32 %v6218_v45, %v6116_v20  ;;  %v6123_v13 = vpop.f32.mrf.mxu1  ;;  %v6029_v14 = vadd.f32 %v13306_v37, %v5926_v35  ;;  %v14556_v20 = vld [vmem:[#allocation57_spill] sm:$0xff]  ;;  %v14557_v46 = vld [vmem:[#allocation58_spill] sm:$0xff]  ;;  %v14560_v37 = vld [vmem:[#allocation52_spill] sm:$0xff] }
 0x4e7   :  { %v6222_v54 = vpop.f32.mrf.mxu0  ;;  %v6124_v21 = vadd.f32 %v6123_v13, %v13297_v17  ;;  %v14558_v42 = vmax.f32 %v14556_v20, %v14557_v46  ;;  %v14575_v20 = vld [vmem:[#allocation11_spill] sm:$0xff] }
 0x4e8   :  { %v6265_v59 = vmax.f32 %v14553_v34, %v6251_v31  ;;  %v6252_v16 = vmax.f32 %v6185_v3, %v6219_v39  ;;  %v6223_v22 = vadd.f32 %v6222_v54, %v6120_v38  ;;  %v6125_v40 = vpop.f32.mrf.mxu1  ;;  %v14561_v38 = vld [vmem:[#allocation36_spill] sm:$0xff] }
 0x4e9   :  { %v6224_v41 = vpop.f32.mrf.mxu0  ;;  %v6126_v6 = vadd.f32 %v6125_v40, %v6023_v18  ;;  %v14563_v54 = vld [vmem:[#allocation64_spill] sm:$0xff]  ;;  %v14565_v40 = vld [vmem:[#allocation65_spill] sm:$0xff]  ;;  %v14566_v18 = vld [vmem:[#allocation22_spill] sm:$0xff] }
 0x4ea   :  { %v6266_v55 = vmax.f32 %v14554_v26, %v6252_v16  ;;  %v6253_v0 = vmax.f32 %v6187_v53, %v6223_v22  ;;  %v6225_v4 = vadd.f32 %v6224_v41, %v6122_v19  ;;  %v6129_v25 = vpop.f32.mrf.mxu1  ;;  %v6290_v5 = vadd.f32 %v13383_v32, %v6265_v59  ;;  %v7978_v16 = vld [vmem:[%s14077_s5 + $0x310] sm:$0xff] }
 0x4eb   :  { %v6226_v11 = vpop.f32.mrf.mxu0  ;;  %v6130_v28 = vadd.f32 %v6129_v25, %v14559_v29  ;;  %v6199_v53 = vadd.f32 %v13344_v43, %v6096_v15  ;;  %v14564_v34 = vmax.f32 %v14562_v23, %v14563_v54  ;;  %v14567_v41 = vmax.f32 %v14565_v40, %v14566_v18  ;;  %v14568_v26 = vld [vmem:[#allocation16_spill] sm:$0xff]  ;;  %v14583_v18 = vld [vmem:[#allocation35_spill] sm:$0xff] }
 0x4ec   :  { %v6291_v44 = vadd.f32 %v13393_v24, %v6266_v55  ;;  %v6267_v58 = vmax.f32 %v14555_v30, %v6253_v0  ;;  %v6254_v36 = vmax.f32 %v6189_v12, %v6225_v4  ;;  %v6131_v9 = vpop.f32.mrf.mxu1  ;;  %v6227_v49 = vadd.f32 %v6226_v11, %v6124_v21  ;;  %v14570_v21 = vld [vmem:[#allocation56_spill] sm:$0xff]  ;;  %v14571_v11 = vld [vmem:[#allocation63_spill] sm:$0xff] }
 0x4ed   :  { %v6228_v60 = vpop.f32.mrf.mxu0  ;;  %v6304_v62 = vmax.f32 %v6290_v5, 0.0  ;;  %v6132_v39 = vadd.f32 %v6131_v9, %v6029_v14  ;;  %v14569_v25 = vmov 0.0   ;;  %v7950_v9 = vld [vmem:[%s14077_s5 + $0x238] sm:$0xff]  ;;  %v14573_v14 = vld [vmem:[#allocation46_spill] sm:$0xff] }
 0x4ee   :  { %v6305_v17 = vmax.f32 %v6291_v44, 0.0  ;;  %v6268_v27 = vmax.f32 %v14558_v42, %v6254_v36  ;;  %v6229_v63 = vadd.f32 %v6228_v60, %v6126_v6  ;;  %v6133_v56 = vpop.f32.mrf.mxu1  ;;  %v6292_v45 = vadd.f32 %v13383_v32, %v6267_v58 }
 0x4ef   :  { %v6255_v3 = vmax.f32 %v14560_v37, %v6227_v49  ;;  %v6134_v57 = vadd.f32 %v6133_v56, %v14561_v38  ;;  %v6232_v1 = vpop.f32.mrf.mxu0  ;;  %v14572_v44 = vmax.f32 %v14570_v21, %v14571_v11  ;;  %v7976_v49 = vld [vmem:[%s14077_s5 + $0x300] sm:$0xff]  ;;  %v7949_v56 = vld [vmem:[%s14077_s5 + $0x230] sm:$0xff]  ;;  %v14589_v11 = vld [vmem:[#allocation15_spill] sm:$0xff] }
 0x4f0   :  { %v6293_v31 = vadd.f32 %v13393_v24, %v6268_v27  ;;  %v6256_v13 = vmax.f32 %v6195_v47, %v6229_v63  ;;  %v6233_v33 = vadd.f32 %v6232_v1, %v6130_v28  ;;  %7934 = vmatprep.mubr.msk.f32.mxu1 %vm277_vm2, %v6305_v17  ;;  %v6135_v51 = vpop.f32.mrf.mxu1  ;;  %v6306_v4 = vmax.f32 %v6292_v45, 0.0  ;;  %v14574_v17 = vld [vmem:[#allocation59_spill] sm:$0xff]  ;;  %v14580_v1 = vld [vmem:[#allocation2_spill] sm:$0xff] }
 0x4f1   :  { %v13433_v59 = vmax.f32 %v14564_v34, %v6255_v3  ;;  %v6234_v19 = vpop.f32.mrf.mxu0  ;;  %6516 = vmatmul.mubr.f32.vlgmr.msra.gmra.mxu1 %v6304_v62  ;;  %v6136_v15 = vadd.f32 %v6135_v51, %v14573_v14  ;;  %v14576_v46 = vmax.f32 %v14574_v17, %v14575_v20  ;;  %v14577_v27 = vld [vmem:[#allocation23_spill] sm:$0xff]  ;;  %v14578_v62 = vld [vmem:[#allocation26_spill] sm:$0xff]  ;;  %v14582_v51 = vld [vmem:[#allocation32_spill] sm:$0xff] }
 0x4f2   :  { %v6307_v22 = vmax.f32 %v6293_v31, 0.0  ;;  %v6270_v12 = vmax.f32 %v14567_v41, %v6256_v13  ;;  %v6257_v55 = vmax.f32 %v14568_v26, %v6233_v33  ;;  %v6235_v0 = vadd.f32 %v6234_v19, %v6132_v39  ;;  %6657 = vmatpush1.msra.mxu1 %v7979_v8  ;;  %v6139_v43 = vpop.f32.mrf.mxu1  ;;  %v7948_v39 = vld [vmem:[%s14077_s5 + $0x228] sm:$0xff]  ;;  %v7975_v13 = vld [vmem:[%s14077_s5 + $0x2f8] sm:$0xff]  ;;  %v14584_v41 = vld [vmem:[#allocation8_spill] sm:$0xff] }
 0x4f3   :  { %6658 = vmatprep.subr.mxu1 %v14569_v25  ;;  %v6236_v35 = vpop.f32.mrf.mxu0  ;;  %v6140_v29 = vadd.f32 %v6139_v43, %v14577_v27  ;;  %v7972_v17 = vld [vmem:[%s14077_s5 + $0x2e0] sm:$0xff]  ;;  %v14593_v20 = vld [vmem:[#allocation12_spill] sm:$0xff]  ;;  %v7944_v27 = vld [vmem:[%s14077_s5 + $0x208] sm:$0xff] }
 0x4f4   :  { %v6295_v5 = vadd.f32 %v13393_v24, %v6270_v12  ;;  %v13450_v30 = vmax.f32 %v14572_v44, %v6257_v55  ;;  %v6258_v58 = vmax.f32 %v6199_v53, %v6235_v0  ;;  %v6237_v6 = vadd.f32 %v6236_v35, %v6134_v57  ;;  %6659 = vmatpush1.msra.mxu1 %v7978_v16  ;;  %v6141_v36 = vpop.f32.mrf.mxu1  ;;  %v14579_v57 = vld [vmem:[#allocation60_spill] sm:$0xff]  ;;  %v14586_v55 = vld [vmem:[#allocation61_spill] sm:$0xff] }
 0x4f5   :  { %7933 = vmatprep.mubr.msk.f32.mxu0 %vm277_vm2, %v6307_v22  ;;  %6660 = vmatprep.subr.mxu1 %v14569_v25  ;;  %v6238_v47 = vpop.f32.mrf.mxu0  ;;  %v6142_v45 = vadd.f32 %v6141_v36, %v14578_v62  ;;  %v14581_v8 = vmax.f32 %v14579_v57, %v14580_v1  ;;  %v7974_v22 = vld [vmem:[%s14077_s5 + $0x2f0] sm:$0xff]  ;;  %v14585_v12 = vmax.f32 %v14583_v18, %v14584_v41  ;;  %v14587_v0 = vld [vmem:[#allocation41_spill] sm:$0xff]  ;;  %v14590_v36 = vld [vmem:[#allocation14_spill] sm:$0xff] }
 0x4f6   :  { %v6309_v60 = vmax.f32 %v6295_v5, 0.0  ;;  %v6272_v42 = vmax.f32 %v14576_v46, %v6258_v58  ;;  %v6259_v28 = vmax.f32 %v13347_v2, %v6237_v6  ;;  %6443 = vmatmul.mubr.f32.vlgmr.msra.gmra.mxu0 %v6306_v4  ;;  %6661 = vmatpush1.msra.mxu1 %v7977_v48  ;;  %v6143_v63 = vpop.f32.mrf.mxu1  ;;  %v6239_v37 = vadd.f32 %v6238_v47, %v6136_v15  ;;  %v7946_v5 = vld [vmem:[%s14077_s5 + $0x218] sm:$0xff]  ;;  %v14596_v62 = vld [vmem:[#allocation62_spill] sm:$0xff]  ;;  %v7969_v1 = vld [vmem:[%s14077_s5 + $0x2c8] sm:$0xff] }
 0x4f7   :  { %6554 = vmatpush1.msra.mxu0 %v7950_v9  ;;  %6662 = vmatprep.subr.mxu1 %v14569_v25  ;;  %v6242_v3 = vpop.f32.mrf.mxu0  ;;  %v6144_v53 = vadd.f32 %v6143_v63, %v14582_v51  ;;  %v14588_v43 = vmax.f32 %v14586_v55, %v14587_v0  ;;  %v14591_v9 = vld [vmem:[#allocation49_spill] sm:$0xff]  ;;  %v7989_v18 = vld [vmem:[%s14077_s5 + $0x368] sm:$0xff]  ;;  %v7961_v41 = vld [vmem:[%s14077_s5 + $0x290] sm:$0xff] }
 0x4f8   :  { %v6297_v38 = vadd.f32 %v13393_v24, %v6272_v42  ;;  %v6273_v2 = vmax.f32 %v14581_v8, %v6259_v28  ;;  %6555 = vmatprep.subr.mxu0 %v14569_v25  ;;  %v6243_v31 = vadd.f32 %v6242_v3, %v6140_v29  ;;  %6663 = vmatpush1.msra.mxu1 %v7976_v49  ;;  %v6145_v19 = vpop.f32.mrf.mxu1  ;;  %v7945_v49 = vld [vmem:[%s14077_s5 + $0x210] sm:$0xff]  ;;  %v14594_v46 = vld [vmem:[#allocation33_spill] sm:$0xff]  ;;  %v7959_v55 = vld [vmem:[%s14077_s5 + $0x280] sm:$0xff] }
 0x4f9   :  { %v6260_v33 = vmax.f32 %v13350_v10, %v6239_v37  ;;  %6556 = vmatpush1.msra.mxu0 %v7949_v56  ;;  %7963 = vmatprep.mubr.msk.f32.mxu0 %vm277_vm2, %v6309_v60  ;;  %v6244_v23 = vpop.f32.mrf.mxu0  ;;  %v7947_v10 = vld [vmem:[%s14077_s5 + $0x220] sm:$0xff]  ;;  %v6146_v44 = vadd.f32 %v6145_v19, %v14589_v11  ;;  %v14592_v14 = vmax.f32 %v14590_v36, %v14591_v9  ;;  %v7971_v28 = vld [vmem:[%s14077_s5 + $0x2d8] sm:$0xff]  ;;  %v7970_v3 = vld [vmem:[%s14077_s5 + $0x2d0] sm:$0xff] }
 0x4fa   :  { %v13486_v54 = vadd.f32 %v13383_v32, %v6273_v2  ;;  %v6261_v34 = vmax.f32 %v13353_v50, %v6243_v31  ;;  %6557 = vmatprep.subr.mxu0 %v14569_v25  ;;  %6664 = vmatprep.subr.mxu1 %v14569_v25  ;;  %v6245_v16 = vadd.f32 %v6244_v23, %v6142_v45  ;;  %v6311_v40 = vmax.f32 %v6297_v38, 0.0  ;;  %v7943_v56 = vld [vmem:[%s14077_s5 + $0x200] sm:$0xff]  ;;  %v7942_v38 = vld [vmem:[%s14077_s5 + $0x1f8] sm:$0xff]  ;;  %v7941_v8 = vld [vmem:[%s14077_s5 + $0x1f0] sm:$0xff] }
 0x4fb   :  { %v6274_v26 = vmax.f32 %v14585_v12, %v6260_v33  ;;  %6558 = vmatpush1.msra.mxu0 %v7948_v39  ;;  %6665 = vmatpush1.msra.mxu1 %v7975_v13  ;;  %v6246_v50 = vpop.f32.mrf.mxu0  ;;  %v14595_v42 = vmax.f32 %v14593_v20, %v14594_v46  ;;  %v14597_v45 = vld [vmem:[#allocation10_spill] sm:$0xff]  ;;  %v7940_v31 = vld [vmem:[%s14077_s5 + $0x1e8] sm:$0xff]  ;;  %v7967_v39 = vld [vmem:[%s14077_s5 + $0x2b8] sm:$0xff]  ;;  %v6296_v36 = vadd.f32 %v13383_v32, %v13450_v30 }
 0x4fc   :  { %v6275_v4 = vmax.f32 %v14588_v43, %v6261_v34  ;;  %v6262_v35 = vmax.f32 %v13358_v61, %v6245_v16  ;;  %6559 = vmatprep.subr.mxu0 %v14569_v25  ;;  %6666 = vmatprep.subr.mxu1 %v14569_v25  ;;  %v6247_v48 = vadd.f32 %v6246_v50, %v6144_v53  ;;  %v7973_v61 = vld [vmem:[%s14077_s5 + $0x2e8] sm:$0xff]  ;;  %v7968_v2 = vld [vmem:[%s14077_s5 + $0x2c0] sm:$0xff]  ;;  %v7966_v33 = vld [vmem:[%s14077_s5 + $0x2b0] sm:$0xff] }
 0x4fd   :  { %v13510_v21 = vadd.f32 %v13393_v24, %v6274_v26  ;;  %6560 = vmatpush1.msra.mxu0 %v7947_v10  ;;  %6667 = vmatpush1.msra.mxu1 %v7974_v22  ;;  %v6248_v58 = vpop.f32.mrf.mxu0  ;;  %v7939_v13 = vld [vmem:[%s14077_s5 + $0x1e0] sm:$0xff]  ;;  %v7938_v51 = vld [vmem:[%s14077_s5 + $0x1d8] sm:$0xff]  ;;  %v7965_v53 = vld [vmem:[%s14077_s5 + $0x2a8] sm:$0xff] }
 0x4fe   :  { %v13517_v6 = vadd.f32 %v13383_v32, %v6275_v4  ;;  %v13522_v15 = vmax.f32 %v14592_v14, %v6262_v35  ;;  %v6263_v47 = vmax.f32 %v13363_v7, %v6247_v48  ;;  %6561 = vmatprep.subr.mxu0 %v14569_v25  ;;  %6668 = vmatprep.subr.mxu1 %v14569_v25  ;;  %v7937_v23 = vld [vmem:[%s14077_s5 + $0x1d0] sm:$0xff]  ;;  %v7964_v34 = vld [vmem:[%s14077_s5 + $0x2a0] sm:$0xff]  ;;  %v7936_v19 = vld [vmem:[%s14077_s5 + $0x1c8] sm:$0xff] }
 0x4ff   :  { %7992 = vmatprep.mubr.msk.f32.mxu1 %vm277_vm2, %v6311_v40  ;;  %v6249_v60 = vadd.f32 %v6248_v58, %v6146_v44  ;;  %6562 = vmatpush1.msra.mxu0 %v7946_v5  ;;  %v7991_v16 = vld [vmem:[%s14077_s5 + $0x378] sm:$0xff]  ;;  %v7935_v10 = vld [vmem:[%s14077_s5 + $0x1c0] sm:$0xff]  ;;  %v7990_v22 = vld [vmem:[%s14077_s5 + $0x370] sm:$0xff] }
 0x500   :  { %v6277_v7 = vmax.f32 %v14595_v42, %v6263_v47  ;;  %6669 = vmatpush1.msra.mxu1 %v7973_v61  ;;  %6563 = vmatprep.subr.mxu0 %v14569_v25  ;;  %v7962_v40 = vld [vmem:[%s14077_s5 + $0x298] sm:$0xff]  ;;  %v7988_v12 = vld [vmem:[%s14077_s5 + $0x360] sm:$0xff]  ;;  %v7960_v26 = vld [vmem:[%s14077_s5 + $0x288] sm:$0xff]  ;;  %v6301_v47 = vadd.f32 %v13393_v24, %v13522_v15  ;;  %v6313_v42 = vmax.f32 %v13510_v21, 0.0 }
 0x501   :  { %v6264_v29 = vmax.f32 %v13369_v52, %v6249_v60  ;;  %6670 = vmatprep.subr.mxu1 %v14569_v25  ;;  %6564 = vmatpush1.msra.mxu0 %v7945_v49  ;;  %v14598_v52 = vmax.f32 %v14596_v62, %v14597_v45  ;;  %v7987_v50 = vld [vmem:[%s14077_s5 + $0x358] sm:$0xff]  ;;  %v7986_v0 = vld [vmem:[%s14077_s5 + $0x350] sm:$0xff]  ;;  %v7985_v4 = vld [vmem:[%s14077_s5 + $0x348] sm:$0xff]  ;;  %v6294_v49 = vadd.f32 %v13383_v32, %v13433_v59  ;;  %v6310_v60 = vmax.f32 %v6296_v36, 0.0 }
 0x502   :  { %v13547_v63 = vadd.f32 %v13383_v32, %v6277_v7  ;;  %6671 = vmatpush1.msra.mxu1 %v7972_v17  ;;  %6565 = vmatprep.subr.mxu0 %v14569_v25  ;;  %v7958_v43 = vld [vmem:[%s14077_s5 + $0x278] sm:$0xff]  ;;  %v7957_v35 = vld [vmem:[%s14077_s5 + $0x270] sm:$0xff]  ;;  %v7984_v48 = vld [vmem:[%s14077_s5 + $0x340] sm:$0xff]  ;;  %v6315_v17 = vmax.f32 %v6301_v47, 0.0 }
 0x503   :  { %v6278_v37 = vmax.f32 %v14598_v52, %v6264_v29  ;;  %6672 = vmatprep.subr.mxu1 %v14569_v25  ;;  %6566 = vmatpush1.msra.mxu0 %v7944_v27  ;;  %v7956_v5 = vld [vmem:[%s14077_s5 + $0x268] sm:$0xff]  ;;  %v7983_v11 = vld [vmem:[%s14077_s5 + $0x338] sm:$0xff]  ;;  %v7955_v44 = vld [vmem:[%s14077_s5 + $0x260] sm:$0xff]  ;;  %v6308_v20 = vmax.f32 %v6294_v49, 0.0 }
 0x504   :  { %6673 = vmatpush1.msra.mxu1 %v7971_v28  ;;  %6567 = vmatprep.subr.mxu0 %v14569_v25  ;;  %v7982_v58 = vld [vmem:[%s14077_s5 + $0x330] sm:$0xff]  ;;  %v7954_v61 = vld [vmem:[%s14077_s5 + $0x258] sm:$0xff]  ;;  %v7981_v9 = vld [vmem:[%s14077_s5 + $0x328] sm:$0xff] }
 0x505   :  { %v13565_v57 = vadd.f32 %v13393_v24, %v6278_v37  ;;  %6674 = vmatprep.subr.mxu1 %v14569_v25  ;;  %6568 = vmatpush1.msra.mxu0 %v7943_v56  ;;  %v7953_v14 = vld [vmem:[%s14077_s5 + $0x250] sm:$0xff]  ;;  %v7980_v30 = vld [vmem:[%s14077_s5 + $0x320] sm:$0xff]  ;;  %v7952_v24 = vld [vmem:[%s14077_s5 + $0x248] sm:$0xff] }
 0x506   :  { %6675 = vmatpush1.msra.mxu1 %v7970_v3  ;;  %6569 = vmatprep.subr.mxu0 %v14569_v25  ;;  %v8037_v15 = vld [vmem:[%s14077_s5 + $0x4d8] sm:$0xff]  ;;  %v7951_v32 = vld [vmem:[%s14077_s5 + $0x240] sm:$0xff]  ;;  %v8036_v59 = vld [vmem:[%s14077_s5 + $0x4d0] sm:$0xff] }
 0x507   :  { %6676 = vmatprep.subr.mxu1 %v14569_v25  ;;  %6570 = vmatpush1.msra.mxu0 %v7942_v38  ;;  %v8008_v46 = vld [vmem:[%s14077_s5 + $0x3f8] sm:$0xff]  ;;  %v8035_v7 = vld [vmem:[%s14077_s5 + $0x4c8] sm:$0xff]  ;;  %v8007_v27 = vld [vmem:[%s14077_s5 + $0x3f0] sm:$0xff] }
 0x508   :  { %6677 = vmatpush1.msra.mxu1 %v7969_v1  ;;  %6571 = vmatprep.subr.mxu0 %v14569_v25  ;;  %v8034_v21 = vld [vmem:[%s14077_s5 + $0x4c0] sm:$0xff]  ;;  %v8006_v29 = vld [vmem:[%s14077_s5 + $0x3e8] sm:$0xff]  ;;  %v8033_v28 = vld [vmem:[%s14077_s5 + $0x4b8] sm:$0xff] }
 0x509   :  { %6678 = vmatprep.subr.mxu1 %v14569_v25  ;;  %6572 = vmatpush1.msra.mxu0 %v7941_v8  ;;  %v8005_v56 = vld [vmem:[%s14077_s5 + $0x3e0] sm:$0xff]  ;;  %v8032_v62 = vld [vmem:[%s14077_s5 + $0x4b0] sm:$0xff]  ;;  %v8004_v45 = vld [vmem:[%s14077_s5 + $0x3d8] sm:$0xff] }
 0x50a   :  { %6679 = vmatpush1.msra.mxu1 %v7968_v2  ;;  %6573 = vmatprep.subr.mxu0 %v14569_v25  ;;  %v8031_v52 = vld [vmem:[%s14077_s5 + $0x4a8] sm:$0xff]  ;;  %v8003_v37 = vld [vmem:[%s14077_s5 + $0x3d0] sm:$0xff]  ;;  %v8030_v3 = vld [vmem:[%s14077_s5 + $0x4a0] sm:$0xff] }
 0x50b   :  { %6680 = vmatprep.subr.mxu1 %v14569_v25  ;;  %6574 = vmatpush1.msra.mxu0 %v7940_v31  ;;  %v8002_v38 = vld [vmem:[%s14077_s5 + $0x3c8] sm:$0xff]  ;;  %v8029_v1 = vld [vmem:[%s14077_s5 + $0x498] sm:$0xff]  ;;  %v8001_v8 = vld [vmem:[%s14077_s5 + $0x3c0] sm:$0xff] }
 0x50c   :  { %6681 = vmatpush1.msra.mxu1 %v7967_v39  ;;  %6575 = vmatprep.subr.mxu0 %v14569_v25  ;;  %v8028_v2 = vld [vmem:[%s14077_s5 + $0x490] sm:$0xff]  ;;  %v8000_v31 = vld [vmem:[%s14077_s5 + $0x3b8] sm:$0xff]  ;;  %v8027_v39 = vld [vmem:[%s14077_s5 + $0x488] sm:$0xff] }
 0x50d   :  { %6682 = vmatprep.subr.mxu1 %v14569_v25  ;;  %6576 = vmatpush1.msra.mxu0 %v7939_v13  ;;  %v7999_v13 = vld [vmem:[%s14077_s5 + $0x3b0] sm:$0xff]  ;;  %v8041_v36 = vld [vmem:[%s14077_s5 + $0x4f8] sm:$0xff] }
 0x50e   :  { %6683 = vmatpush1.msra.mxu1 %v7966_v33  ;;  %6577 = vmatprep.subr.mxu0 %v14569_v25  ;;  %v8026_v33 = vld [vmem:[%s14077_s5 + $0x480] sm:$0xff]  ;;  %v8012_v47 = vld [vmem:[%s14077_s5 + $0x418] sm:$0xff]  ;;  %v8011_v49 = vld [vmem:[%s14077_s5 + $0x410] sm:$0xff] }
 0x50f   :  { %6684 = vmatprep.subr.mxu1 %v14569_v25  ;;  %6578 = vmatpush1.msra.mxu0 %v7938_v51  ;;  %v7998_v51 = vld [vmem:[%s14077_s5 + $0x3a8] sm:$0xff] }
 0x510   :  { %6685 = vmatpush1.msra.mxu1 %v7965_v53  ;;  %6579 = vmatprep.subr.mxu0 %v14569_v25  ;;  %v8025_v53 = vld [vmem:[%s14077_s5 + $0x478] sm:$0xff] }
 0x511   :  { %6686 = vmatprep.subr.mxu1 %v14569_v25  ;;  %6580 = vmatpush1.msra.mxu0 %v7937_v23  ;;  %v7997_v23 = vld [vmem:[%s14077_s5 + $0x3a0] sm:$0xff] }
 0x512   :  { %6687 = vmatpush1.msra.mxu1 %v7964_v34  ;;  %6581 = vmatprep.subr.mxu0 %v14569_v25  ;;  %v8024_v34 = vld [vmem:[%s14077_s5 + $0x470] sm:$0xff] }
 0x513   :  { %6696 = vmatprep.subr.mxu1 %v14569_v25  ;;  %6582 = vmatpush1.msra.mxu0 %v7936_v19  ;;  %v7996_v19 = vld [vmem:[%s14077_s5 + $0x398] sm:$0xff] }
 0x514   :  { %6697 = vmatpush2.msra.mxu1 %v7991_v16  ;;  %6583 = vmatprep.subr.mxu0 %v14569_v25  ;;  %v8023_v16 = vld [vmem:[%s14077_s5 + $0x468] sm:$0xff] }
 0x515   :  { %6698 = vmatprep.subr.mxu1 %v14569_v25  ;;  %6584 = vmatpush1.msra.mxu0 %v7935_v10  ;;  %v7995_v10 = vld [vmem:[%s14077_s5 + $0x390] sm:$0xff] }
 0x516   :  { %6699 = vmatpush2.msra.mxu1 %v7990_v22  ;;  %6593 = vmatprep.subr.mxu0 %v14569_v25  ;;  %v8022_v22 = vld [vmem:[%s14077_s5 + $0x460] sm:$0xff] }
 0x517   :  { %6700 = vmatprep.subr.mxu1 %v14569_v25  ;;  %6594 = vmatpush2.msra.mxu0 %v7962_v40  ;;  %v7994_v40 = vld [vmem:[%s14077_s5 + $0x388] sm:$0xff] }
 0x518   :  { %6701 = vmatpush2.msra.mxu1 %v7989_v18  ;;  %6595 = vmatprep.subr.mxu0 %v14569_v25  ;;  %v8049_v18 = vld [vmem:[%s14077_s5 + $0x538] sm:$0xff] }
 0x519   :  { %6702 = vmatprep.subr.mxu1 %v14569_v25  ;;  %6596 = vmatpush2.msra.mxu0 %v7961_v41  ;;  %v7993_v41 = vld [vmem:[%s14077_s5 + $0x380] sm:$0xff] }
 0x51a   :  { %6703 = vmatpush2.msra.mxu1 %v7988_v12  ;;  %6597 = vmatprep.subr.mxu0 %v14569_v25  ;;  %v8048_v12 = vld [vmem:[%s14077_s5 + $0x530] sm:$0xff] }
 0x51b   :  { %6704 = vmatprep.subr.mxu1 %v14569_v25  ;;  %6598 = vmatpush2.msra.mxu0 %v7960_v26  ;;  %v8020_v26 = vld [vmem:[%s14077_s5 + $0x458] sm:$0xff] }
 0x51c   :  { %6705 = vmatpush2.msra.mxu1 %v7987_v50  ;;  %6599 = vmatprep.subr.mxu0 %v14569_v25  ;;  %v8047_v50 = vld [vmem:[%s14077_s5 + $0x528] sm:$0xff] }
 0x51d   :  { %6706 = vmatprep.subr.mxu1 %v14569_v25  ;;  %6600 = vmatpush2.msra.mxu0 %v7959_v55  ;;  %v8019_v55 = vld [vmem:[%s14077_s5 + $0x450] sm:$0xff] }
 0x51e   :  { %6707 = vmatpush2.msra.mxu1 %v7986_v0  ;;  %6601 = vmatprep.subr.mxu0 %v14569_v25  ;;  %v8046_v0 = vld [vmem:[%s14077_s5 + $0x520] sm:$0xff] }
 0x51f   :  { %6708 = vmatprep.subr.mxu1 %v14569_v25  ;;  %6602 = vmatpush2.msra.mxu0 %v7958_v43  ;;  %v8018_v43 = vld [vmem:[%s14077_s5 + $0x448] sm:$0xff] }
 0x520   :  { %6709 = vmatpush2.msra.mxu1 %v7985_v4  ;;  %6603 = vmatprep.subr.mxu0 %v14569_v25  ;;  %v8045_v4 = vld [vmem:[%s14077_s5 + $0x518] sm:$0xff] }
 0x521   :  { %6710 = vmatprep.subr.mxu1 %v14569_v25  ;;  %6604 = vmatpush2.msra.mxu0 %v7957_v35  ;;  %v8017_v35 = vld [vmem:[%s14077_s5 + $0x440] sm:$0xff] }
 0x522   :  { %6711 = vmatpush2.msra.mxu1 %v7984_v48  ;;  %6605 = vmatprep.subr.mxu0 %v14569_v25  ;;  %v8044_v48 = vld [vmem:[%s14077_s5 + $0x510] sm:$0xff] }
 0x523   :  { %6712 = vmatprep.subr.mxu1 %v14569_v25  ;;  %6606 = vmatpush2.msra.mxu0 %v7956_v5  ;;  %v8016_v5 = vld [vmem:[%s14077_s5 + $0x438] sm:$0xff] }
 0x524   :  { %6713 = vmatpush2.msra.mxu1 %v7983_v11  ;;  %6607 = vmatprep.subr.mxu0 %v14569_v25  ;;  %v8043_v11 = vld [vmem:[%s14077_s5 + $0x508] sm:$0xff] }
 0x525   :  { %6714 = vmatprep.subr.mxu1 %v14569_v25  ;;  %6608 = vmatpush2.msra.mxu0 %v7955_v44  ;;  %v8015_v44 = vld [vmem:[%s14077_s5 + $0x430] sm:$0xff] }
 0x526   :  { %6715 = vmatpush2.msra.mxu1 %v7982_v58  ;;  %6609 = vmatprep.subr.mxu0 %v14569_v25  ;;  %v8042_v58 = vld [vmem:[%s14077_s5 + $0x500] sm:$0xff] }
 0x527   :  { %6716 = vmatprep.subr.mxu1 %v14569_v25  ;;  %6610 = vmatpush2.msra.mxu0 %v7954_v61  ;;  %v8014_v61 = vld [vmem:[%s14077_s5 + $0x428] sm:$0xff] }
 0x528   :  { %6717 = vmatpush2.msra.mxu1 %v7981_v9  ;;  %6611 = vmatprep.subr.mxu0 %v14569_v25  ;;  %v8013_v9 = vld [vmem:[%s14077_s5 + $0x420] sm:$0xff] }
 0x529   :  { %6718 = vmatprep.subr.mxu1 %v14569_v25  ;;  %6612 = vmatpush2.msra.mxu0 %v7953_v14  ;;  %v8040_v14 = vld [vmem:[%s14077_s5 + $0x4f0] sm:$0xff] }
 0x52a   :  { %6719 = vmatpush2.msra.mxu1 %v7980_v30  ;;  %6613 = vmatprep.subr.mxu0 %v14569_v25  ;;  %v8039_v30 = vld [vmem:[%s14077_s5 + $0x4e8] sm:$0xff] }
 0x52b   :  { %6721 = vmatmul.mubr.f32.vlgmr.msra.gmra.mxu1 %v6310_v60  ;;  %6862 = vmatprep.subr.mxu1 %v14569_v25  ;;  %v8038_v60 = vld [vmem:[%s14077_s5 + $0x4e0] sm:$0xff] }
 0x52c   :  { %6614 = vmatpush2.msra.mxu0 %v7952_v24  ;;  %6863 = vmatpush1.msra.mxu1 %v8037_v15  ;;  %v8010_v24 = vld [vmem:[%s14077_s5 + $0x408] sm:$0xff]  ;;  %v6314_v15 = vmax.f32 %v13517_v6, 0.0  ;;  %v8066_v6 = vld [vmem:[%s14077_s5 + $0x5b8] sm:$0xff] }
 0x52d   :  { %8050 = vmatprep.mubr.msk.f32.mxu1 %vm277_vm2, %v6315_v17  ;;  %6615 = vmatprep.subr.mxu0 %v14569_v25  ;;  %v8009_v17 = vld [vmem:[%s14077_s5 + $0x400] sm:$0xff] }
 0x52e   :  { %6864 = vmatprep.subr.mxu1 %v14569_v25  ;;  %6616 = vmatpush2.msra.mxu0 %v7951_v32  ;;  %v6312_v32 = vmax.f32 %v13486_v54, 0.0  ;;  %v8064_v54 = vld [vmem:[%s14077_s5 + $0x5a8] sm:$0xff] }
 0x52f   :  { %6865 = vmatpush1.msra.mxu1 %v8036_v59  ;;  %6618 = vmatmul.mubr.f32.vlgmr.msra.gmra.mxu0 %v6308_v20  ;;  %v6317_v59 = vmax.f32 %v13565_v57, 0.0  ;;  %v8065_v20 = vld [vmem:[%s14077_s5 + $0x5b0] sm:$0xff]  ;;  %v8063_v57 = vld [vmem:[%s14077_s5 + $0x5a0] sm:$0xff] }
 0x530   :  { %6759 = vmatprep.subr.mxu0 %v14569_v25  ;;  %6866 = vmatprep.subr.mxu1 %v14569_v25 }
 0x531   :  { %6760 = vmatpush1.msra.mxu0 %v8008_v46  ;;  %8021 = vmatprep.mubr.msk.f32.mxu0 %vm277_vm2, %v6313_v42  ;;  %v8062_v46 = vld [vmem:[%s14077_s5 + $0x598] sm:$0xff]  ;;  %v8061_v42 = vld [vmem:[%s14077_s5 + $0x590] sm:$0xff] }
 0x532   :  { %6867 = vmatpush1.msra.mxu1 %v8035_v7  ;;  %6761 = vmatprep.subr.mxu0 %v14569_v25  ;;  %v8060_v7 = vld [vmem:[%s14077_s5 + $0x588] sm:$0xff] }
 0x533   :  { %6868 = vmatprep.subr.mxu1 %v14569_v25  ;;  %6762 = vmatpush1.msra.mxu0 %v8007_v27  ;;  %v8059_v27 = vld [vmem:[%s14077_s5 + $0x580] sm:$0xff] }
 0x534   :  { %6869 = vmatpush1.msra.mxu1 %v8034_v21  ;;  %6763 = vmatprep.subr.mxu0 %v14569_v25  ;;  %v8058_v21 = vld [vmem:[%s14077_s5 + $0x578] sm:$0xff] }
 0x535   :  { %6870 = vmatprep.subr.mxu1 %v14569_v25  ;;  %6764 = vmatpush1.msra.mxu0 %v8006_v29  ;;  %v8057_v29 = vld [vmem:[%s14077_s5 + $0x570] sm:$0xff] }
 0x536   :  { %6871 = vmatpush1.msra.mxu1 %v8033_v28  ;;  %6765 = vmatprep.subr.mxu0 %v14569_v25  ;;  %v8056_v28 = vld [vmem:[%s14077_s5 + $0x568] sm:$0xff] }
 0x537   :  { %6872 = vmatprep.subr.mxu1 %v14569_v25  ;;  %6766 = vmatpush1.msra.mxu0 %v8005_v56  ;;  %v8055_v56 = vld [vmem:[%s14077_s5 + $0x560] sm:$0xff] }
 0x538   :  { %6873 = vmatpush1.msra.mxu1 %v8032_v62  ;;  %6767 = vmatprep.subr.mxu0 %v14569_v25  ;;  %v8054_v62 = vld [vmem:[%s14077_s5 + $0x558] sm:$0xff] }
 0x539   :  { %6874 = vmatprep.subr.mxu1 %v14569_v25  ;;  %6768 = vmatpush1.msra.mxu0 %v8004_v45  ;;  %v8053_v45 = vld [vmem:[%s14077_s5 + $0x550] sm:$0xff] }
 0x53a   :  { %6875 = vmatpush1.msra.mxu1 %v8031_v52  ;;  %6769 = vmatprep.subr.mxu0 %v14569_v25  ;;  %v8052_v52 = vld [vmem:[%s14077_s5 + $0x548] sm:$0xff] }
 0x53b   :  { %6876 = vmatprep.subr.mxu1 %v14569_v25  ;;  %6770 = vmatpush1.msra.mxu0 %v8003_v37  ;;  %v8051_v37 = vld [vmem:[%s14077_s5 + $0x540] sm:$0xff] }
 0x53c   :  { %6877 = vmatpush1.msra.mxu1 %v8030_v3  ;;  %6771 = vmatprep.subr.mxu0 %v14569_v25  ;;  %v8078_v3 = vld [vmem:[%s14077_s5 + $0x618] sm:$0xff] }
 0x53d   :  { %6878 = vmatprep.subr.mxu1 %v14569_v25  ;;  %6772 = vmatpush1.msra.mxu0 %v8002_v38  ;;  %v8077_v38 = vld [vmem:[%s14077_s5 + $0x610] sm:$0xff] }
 0x53e   :  { %6879 = vmatpush1.msra.mxu1 %v8029_v1  ;;  %6773 = vmatprep.subr.mxu0 %v14569_v25  ;;  %v8076_v1 = vld [vmem:[%s14077_s5 + $0x608] sm:$0xff] }
 0x53f   :  { %6880 = vmatprep.subr.mxu1 %v14569_v25  ;;  %6774 = vmatpush1.msra.mxu0 %v8001_v8  ;;  %v8075_v8 = vld [vmem:[%s14077_s5 + $0x600] sm:$0xff] }
 0x540   :  { %6881 = vmatpush1.msra.mxu1 %v8028_v2  ;;  %6775 = vmatprep.subr.mxu0 %v14569_v25  ;;  %v8074_v2 = vld [vmem:[%s14077_s5 + $0x5f8] sm:$0xff] }
 0x541   :  { %6882 = vmatprep.subr.mxu1 %v14569_v25  ;;  %6776 = vmatpush1.msra.mxu0 %v8000_v31  ;;  %v8073_v31 = vld [vmem:[%s14077_s5 + $0x5f0] sm:$0xff] }
 0x542   :  { %6883 = vmatpush1.msra.mxu1 %v8027_v39  ;;  %6777 = vmatprep.subr.mxu0 %v14569_v25  ;;  %v8072_v39 = vld [vmem:[%s14077_s5 + $0x5e8] sm:$0xff] }
 0x543   :  { %6884 = vmatprep.subr.mxu1 %v14569_v25  ;;  %6778 = vmatpush1.msra.mxu0 %v7999_v13  ;;  %v8071_v13 = vld [vmem:[%s14077_s5 + $0x5e0] sm:$0xff] }
 0x544   :  { %6885 = vmatpush1.msra.mxu1 %v8026_v33  ;;  %6779 = vmatprep.subr.mxu0 %v14569_v25  ;;  %v8070_v33 = vld [vmem:[%s14077_s5 + $0x5d8] sm:$0xff] }
 0x545   :  { %6886 = vmatprep.subr.mxu1 %v14569_v25  ;;  %6780 = vmatpush1.msra.mxu0 %v7998_v51  ;;  %v8069_v51 = vld [vmem:[%s14077_s5 + $0x5d0] sm:$0xff] }
 0x546   :  { %6887 = vmatpush1.msra.mxu1 %v8025_v53  ;;  %6781 = vmatprep.subr.mxu0 %v14569_v25  ;;  %v8068_v53 = vld [vmem:[%s14077_s5 + $0x5c8] sm:$0xff] }
 0x547   :  { %6888 = vmatprep.subr.mxu1 %v14569_v25  ;;  %6782 = vmatpush1.msra.mxu0 %v7997_v23  ;;  %v8067_v23 = vld [vmem:[%s14077_s5 + $0x5c0] sm:$0xff] }
 0x548   :  { %6889 = vmatpush1.msra.mxu1 %v8024_v34  ;;  %6783 = vmatprep.subr.mxu0 %v14569_v25  ;;  %v6316_v34 = vmax.f32 %v13547_v63, 0.0 }
 0x549   :  { %6890 = vmatprep.subr.mxu1 %v14569_v25  ;;  %6784 = vmatpush1.msra.mxu0 %v7996_v19 }
 0x54a   :  { %6891 = vmatpush1.msra.mxu1 %v8023_v16  ;;  %6785 = vmatprep.subr.mxu0 %v14569_v25 }
 0x54b   :  { %6892 = vmatprep.subr.mxu1 %v14569_v25  ;;  %6786 = vmatpush1.msra.mxu0 %v7995_v10 }
 0x54c   :  { %6893 = vmatpush1.msra.mxu1 %v8022_v22  ;;  %6787 = vmatprep.subr.mxu0 %v14569_v25 }
 0x54d   :  { %6902 = vmatprep.subr.mxu1 %v14569_v25  ;;  %6788 = vmatpush1.msra.mxu0 %v7994_v40 }
 0x54e   :  { %6903 = vmatpush2.msra.mxu1 %v8049_v18  ;;  %6789 = vmatprep.subr.mxu0 %v14569_v25 }
 0x54f   :  { %6904 = vmatprep.subr.mxu1 %v14569_v25  ;;  %6790 = vmatpush1.msra.mxu0 %v7993_v41 }
 0x550   :  { %6905 = vmatpush2.msra.mxu1 %v8048_v12  ;;  %6799 = vmatprep.subr.mxu0 %v14569_v25 }
 0x551   :  { %6906 = vmatprep.subr.mxu1 %v14569_v25  ;;  %6800 = vmatpush2.msra.mxu0 %v8020_v26 }
 0x552   :  { %6907 = vmatpush2.msra.mxu1 %v8047_v50  ;;  %6801 = vmatprep.subr.mxu0 %v14569_v25 }
 0x553   :  { %6908 = vmatprep.subr.mxu1 %v14569_v25  ;;  %6802 = vmatpush2.msra.mxu0 %v8019_v55 }
 0x554   :  { %6909 = vmatpush2.msra.mxu1 %v8046_v0  ;;  %6803 = vmatprep.subr.mxu0 %v14569_v25 }
 0x555   :  { %6910 = vmatprep.subr.mxu1 %v14569_v25  ;;  %6804 = vmatpush2.msra.mxu0 %v8018_v43 }
 0x556   :  { %6911 = vmatpush2.msra.mxu1 %v8045_v4  ;;  %6805 = vmatprep.subr.mxu0 %v14569_v25 }
 0x557   :  { %6912 = vmatprep.subr.mxu1 %v14569_v25  ;;  %6806 = vmatpush2.msra.mxu0 %v8017_v35 }
 0x558   :  { %6913 = vmatpush2.msra.mxu1 %v8044_v48  ;;  %6807 = vmatprep.subr.mxu0 %v14569_v25 }
 0x559   :  { %6914 = vmatprep.subr.mxu1 %v14569_v25  ;;  %6808 = vmatpush2.msra.mxu0 %v8016_v5  ;;  %v8080_v5 = vld [vmem:[%s14079_s6] ss:$0 sm:$0xff] }
 0x55a   :  { %6915 = vmatpush2.msra.mxu1 %v8043_v11  ;;  %6809 = vmatprep.subr.mxu0 %v14569_v25 }
 0x55b   :  { %6916 = vmatprep.subr.mxu1 %v14569_v25  ;;  %6810 = vmatpush2.msra.mxu0 %v8015_v44 }
 0x55c   :  { %6917 = vmatpush2.msra.mxu1 %v8042_v58  ;;  %6811 = vmatprep.subr.mxu0 %v14569_v25 }
 0x55d   :  { %6918 = vmatprep.subr.mxu1 %v14569_v25  ;;  %6812 = vmatpush2.msra.mxu0 %v8014_v61 }
 0x55e   :  { %6919 = vmatpush2.msra.mxu1 %v8041_v36  ;;  %6813 = vmatprep.subr.mxu0 %v14569_v25 }
 0x55f   :  { %6920 = vmatprep.subr.mxu1 %v14569_v25  ;;  %6814 = vmatpush2.msra.mxu0 %v8013_v9 }
 0x560   :  { %6921 = vmatpush2.msra.mxu1 %v8040_v14  ;;  %6815 = vmatprep.subr.mxu0 %v14569_v25 }
 0x561   :  { %6922 = vmatprep.subr.mxu1 %v14569_v25  ;;  %6816 = vmatpush2.msra.mxu0 %v8012_v47 }
 0x562   :  { %6923 = vmatpush2.msra.mxu1 %v8039_v30  ;;  %6817 = vmatprep.subr.mxu0 %v14569_v25 }
 0x563   :  { %6924 = vmatprep.subr.mxu1 %v14569_v25  ;;  %6818 = vmatpush2.msra.mxu0 %v8011_v49 }
 0x564   :  { %6925 = vmatpush2.msra.mxu1 %v8038_v60  ;;  %6819 = vmatprep.subr.mxu0 %v14569_v25 }
 0x565   :  { %6927 = vmatmul.mubr.f32.vlgmr.msra.gmra.mxu1 %v6314_v15  ;;  %6820 = vmatpush2.msra.mxu0 %v8010_v24 }
 0x566   :  { %6821 = vmatprep.subr.mxu0 %v14569_v25 }
 0x567   :  { %6822 = vmatpush2.msra.mxu0 %v8009_v17 }
 0x568   :  { %6824 = vmatmul.mubr.f32.vlgmr.msra.gmra.mxu0 %v6312_v32  ;;  %6965 = vmatprep.subr.mxu0 %v14569_v25 }
 0x569   :  { %6966 = vmatpush1.msra.mxu0 %v8066_v6  ;;  %8079 = vmatprep.mubr.msk.f32.mxu0 %vm277_vm2, %v6317_v59 }
 0x56a   :  { %6967 = vmatprep.subr.mxu0 %v14569_v25 }
 0x56b   :  { %6968 = vmatpush1.msra.mxu0 %v8065_v20 }
 0x56c   :  { %6969 = vmatprep.subr.mxu0 %v14569_v25 }
 0x56d   :  { %6970 = vmatpush1.msra.mxu0 %v8064_v54 }
 0x56e   :  { %6971 = vmatprep.subr.mxu0 %v14569_v25 }
 0x56f   :  { %6972 = vmatpush1.msra.mxu0 %v8063_v57 }
 0x570   :  { %6973 = vmatprep.subr.mxu0 %v14569_v25 }
 0x571   :  { %6974 = vmatpush1.msra.mxu0 %v8062_v46 }
 0x572   :  { %6975 = vmatprep.subr.mxu0 %v14569_v25 }
 0x573   :  { %6976 = vmatpush1.msra.mxu0 %v8061_v42 }
 0x574   :  { %6977 = vmatprep.subr.mxu0 %v14569_v25 }
 0x575   :  { %6978 = vmatpush1.msra.mxu0 %v8060_v7 }
 0x576   :  { %6979 = vmatprep.subr.mxu0 %v14569_v25 }
 0x577   :  { %6980 = vmatpush1.msra.mxu0 %v8059_v27 }
 0x578   :  { %6981 = vmatprep.subr.mxu0 %v14569_v25 }
 0x579   :  { %6982 = vmatpush1.msra.mxu0 %v8058_v21 }
 0x57a   :  { %6983 = vmatprep.subr.mxu0 %v14569_v25 }
 0x57b   :  { %6984 = vmatpush1.msra.mxu0 %v8057_v29 }
 0x57c   :  { %6985 = vmatprep.subr.mxu0 %v14569_v25 }
 0x57d   :  { %6986 = vmatpush1.msra.mxu0 %v8056_v28 }
 0x57e   :  { %6987 = vmatprep.subr.mxu0 %v14569_v25 }
 0x57f   :  { %6988 = vmatpush1.msra.mxu0 %v8055_v56 }
 0x580   :  { %6989 = vmatprep.subr.mxu0 %v14569_v25 }
 0x581   :  { %6990 = vmatpush1.msra.mxu0 %v8054_v62 }
 0x582   :  { %6991 = vmatprep.subr.mxu0 %v14569_v25 }
 0x583   :  { %6992 = vmatpush1.msra.mxu0 %v8053_v45 }
 0x584   :  { %6993 = vmatprep.subr.mxu0 %v14569_v25 }
 0x585   :  { %6994 = vmatpush1.msra.mxu0 %v8052_v52 }
 0x586   :  { %6995 = vmatprep.subr.mxu0 %v14569_v25 }
 0x587   :  { %6996 = vmatpush1.msra.mxu0 %v8051_v37 }
 0x588   :  { %7005 = vmatprep.subr.mxu0 %v14569_v25 }
 0x589   :  { %7006 = vmatpush2.msra.mxu0 %v8078_v3 }
 0x58a   :  { %7007 = vmatprep.subr.mxu0 %v14569_v25 }
 0x58b   :  { %7008 = vmatpush2.msra.mxu0 %v8077_v38 }
 0x58c   :  { %7009 = vmatprep.subr.mxu0 %v14569_v25 }
 0x58d   :  { %7010 = vmatpush2.msra.mxu0 %v8076_v1 }
 0x58e   :  { %7011 = vmatprep.subr.mxu0 %v14569_v25 }
 0x58f   :  { %7012 = vmatpush2.msra.mxu0 %v8075_v8 }
 0x590   :  { %7013 = vmatprep.subr.mxu0 %v14569_v25 }
 0x591   :  { %7014 = vmatpush2.msra.mxu0 %v8074_v2 }
 0x592   :  { %7015 = vmatprep.subr.mxu0 %v14569_v25 }
 0x593   :  { %7016 = vmatpush2.msra.mxu0 %v8073_v31 }
 0x594   :  { %7017 = vmatprep.subr.mxu0 %v14569_v25 }
 0x595   :  { %7018 = vmatpush2.msra.mxu0 %v8072_v39 }
 0x596   :  { %7019 = vmatprep.subr.mxu0 %v14569_v25 }
 0x597   :  { %7020 = vmatpush2.msra.mxu0 %v8071_v13 }
 0x598   :  { %7021 = vmatprep.subr.mxu0 %v14569_v25 }
 0x599   :  { %7022 = vmatpush2.msra.mxu0 %v8070_v33 }
 0x59a   :  { %7023 = vmatprep.subr.mxu0 %v14569_v25 }
 0x59b   :  { %7024 = vmatpush2.msra.mxu0 %v8069_v51 }
 0x59c   :  { %7025 = vmatprep.subr.mxu0 %v14569_v25 }
 0x59d   :  { %7026 = vmatpush2.msra.mxu0 %v8068_v53 }
 0x59e   :  { %7027 = vmatprep.subr.mxu0 %v14569_v25 }
 0x59f   :  { %7028 = vmatpush2.msra.mxu0 %v8067_v23 }
 0x5a0   :  { %7030 = vmatmul.mubr.f32.vlgmr.msra.gmra.mxu0 %v6316_v34 }
 0x5b1   :  { %v6517_v19 = vpop.f32.mrf.mxu1 }
 0x5b3   :  { %v6519_v16 = vpop.f32.mrf.mxu1 }
 0x5b6   :  { %v6444_v10 = vpop.f32.mrf.mxu0 }
 0x5b7   :  { %v6518_v22 = vadd.f32 %v6517_v19, %v6444_v10 }
 0x5b8   :  { %v6446_v40 = vpop.f32.mrf.mxu0 }
 0x5eb   :  { %v6722_v18 = vpop.f32.mrf.mxu1 }
 0x5ed   :  { %v6724_v41 = vpop.f32.mrf.mxu1 }
 0x5ef   :  { %v6619_v12 = vpop.f32.mrf.mxu0 }
 0x5f0   :  { %v6623_v26 = vadd.f32 %v6619_v12, %v6518_v22 }
 0x5f1   :  { %v6621_v50 = vpop.f32.mrf.mxu0 }
 0x5f2   :  { %v6726_v55 = vadd.f32 %v6722_v18, %v6623_v26 }
 0x625   :  { %v6928_v0 = vpop.f32.mrf.mxu1 }
 0x627   :  { %v6930_v43 = vpop.f32.mrf.mxu1 }
 0x628   :  { %v6825_v4 = vpop.f32.mrf.mxu0 }
 0x629   :  { %v6829_v63 = vadd.f32 %v6825_v4, %v6726_v55 }
 0x62a   :  { %v6827_v35 = vpop.f32.mrf.mxu0 }
 0x62b   :  { %v6932_v48 = vadd.f32 %v6928_v0, %v6829_v63 }
 0x660   :  { %v7031_v25 = vpop.f32.mrf.mxu0 }
 0x661   :  { %v7035_v11 = vadd.f32 %v7031_v25, %v6932_v48 }
 0x662   :  { %v7033_v44 = vpop.f32.mrf.mxu0 }
 0x663   :  { %v7043_v58 = vadd.f32 %v8080_v5, %v7035_v11 }
 0x665   :  { %7044 = vst [vmem:[%s14080_s7] sm:$0xff] %v7043_v58 }

</bundles_post_ra>
